<compile_context>
chip_gen: v5e
topology: v5e:2x2
jax: 0.10.0
libtpu: 0.0.40
codegen_flags: <defaults>
</compile_context>

<pallas_src>
import functools

import numpy as np
import jax
import jax.numpy as jnp
from jax import lax
from jax.experimental import pallas as pl
from jax.experimental.pallas import tpu as pltpu

EPS = 1e-5
VMEM_LIMIT = 32 * 1024 * 1024   # safe on v5e/v6e/v7x; raise for big real-shape tiles


# ------------------------------ kernel bodies ------------------------------ #

def _partial_stats(y):
    """Per-channel [sum; sum_of_squares] of an f32 (rows, C) tile -> (1, 2, C)."""
    s = jnp.sum(y, axis=0, keepdims=True)
    ss = jnp.sum(y * y, axis=0, keepdims=True)
    return jnp.concatenate([s, ss], axis=0)[None]


def conv1x1_in_nchw_stats_kernel(x_ref, w_ref, y_ref, stats_ref):
    """1x1 conv reading NCHW input directly.

    In-kernel (Cin, HW) -> (HW, Cin) transpose (XLU slot, overlapped), then
    bf16 MXU matmul with f32 accumulation + per-image BN1 partial stats.
    Fusing the layout change here removes a standalone XLA NCHW->NHWC pass.
    """
    x = jnp.transpose(x_ref[0])                                  # (HW, Cin) f32
    y = jnp.dot(x.astype(jnp.bfloat16), w_ref[...],
                preferred_element_type=jnp.float32)              # (HW, width)
    y_ref[...] = y.astype(y_ref.dtype)
    stats_ref[...] = _partial_stats(y)


def bn_relu_gconv3x3_stats_kernel(y1_ref, s1_ref, w2_ref, y2_ref, stats_ref):
    """Fused bn1+relu -> grouped 3x3 conv (single K=9*width matmul) + BN2 stats.

    One grid step == one image.  The 9 taps are built entirely in VMEM
    (zero-pad -> shifted slices -> lane-concat); nothing im2col-like touches HBM.
    """
    _, H, W, C = y1_ref.shape
    scale = s1_ref[0:1, :].reshape(1, 1, C)
    shift = s1_ref[1:2, :].reshape(1, 1, C)
    a = jnp.maximum(y1_ref[0].astype(jnp.float32) * scale + shift, 0.0)  # (H,W,C)

    zcol = jnp.zeros((H, 1, C), jnp.float32)
    zrow = jnp.zeros((1, W + 2, C), jnp.float32)
    ap = jnp.concatenate([zcol, a, zcol], axis=1)        # (H,   W+2, C)
    ap = jnp.concatenate([zrow, ap, zrow], axis=0)       # (H+2, W+2, C)

    taps = [ap[ky:ky + H, kx:kx + W, :] for ky in range(3) for kx in range(3)]
    col = jnp.concatenate(taps, axis=-1).astype(jnp.bfloat16)   # (H, W, 9C)
    col = col.reshape(H * W, 9 * C)

    y = jnp.dot(col, w2_ref[...], preferred_element_type=jnp.float32)   # (H*W, C)
    y2_ref[...] = y.astype(y2_ref.dtype)
    stats_ref[...] = _partial_stats(y)


def bn_relu_conv1x1_stats_kernel(y2_ref, s2_ref, w3_ref, y3_ref, stats_ref):
    """Fused bn2+relu -> 1x1 conv + per-tile BN3 stats."""
    a = jnp.maximum(
        y2_ref[...].astype(jnp.float32) * s2_ref[0:1, :] + s2_ref[1:2, :], 0.0)
    y = jnp.dot(a.astype(jnp.bfloat16), w3_ref[...],
                preferred_element_type=jnp.float32)
    y3_ref[...] = y.astype(y3_ref.dtype)
    stats_ref[...] = _partial_stats(y)


def bn_add_relu_out_nchw_kernel(y3_ref, id_ref, s3_ref, o_ref):
    """bn3 -> residual add (NCHW identity) -> relu, writing NCHW output.

    One in-kernel (HW, C) -> (C, HW) transpose replaces a full XLA transpose
    pass over the output activation.
    """
    y = y3_ref[...].astype(jnp.float32) * s3_ref[0:1, :] + s3_ref[1:2, :]  # (HW, C)
    o = jnp.maximum(jnp.transpose(y) + id_ref[0], 0.0)                     # (C, HW)
    o_ref[...] = o[None]


# ------------------------------ host-side glue ----------------------------- #

def _compiler_params():
    return pltpu.CompilerParams(dimension_semantics=("parallel",),
                                vmem_limit_bytes=VMEM_LIMIT)


def _bn_scale_shift(partial_stats, m_rows, gamma, beta):
    """Partial (sum, sumsq) tiles -> per-channel (scale, shift) for BN, in f32."""
    s = jnp.sum(partial_stats, axis=0)                       # (2, C)
    mean = s[0:1] / m_rows
    var = jnp.maximum(s[1:2] / m_rows - mean * mean, 0.0)    # biased (training) var
    scale = gamma * lax.rsqrt(var + EPS)
    shift = beta - mean * scale
    return jnp.concatenate([scale, shift], axis=0)           # (2, C)


def _pick_tm(m, target=1024):
    """Largest power-of-two row tile that still yields >=2 grid steps (megacore)."""
    for t in (target, 512, 256, 128, 64, 32, 16, 8):
        if t <= m and m % t == 0 and m // t >= 2:
            return t
    return m


@functools.partial(jax.jit, static_argnames=("stride", "tm"))
def block_forward(x_nchw, params, stride=1, tm=None):
    assert stride == 1  # TODO(synk): stride>1 / downsample branch not implemented
    (w1, g1, b1, w2cat, g2, b2, w3, g3, b3) = params
    N, Cin, H, W = x_nchw.shape
    width = w1.shape[1]
    Cout = w3.shape[1]
    assert Cin == Cout, "identity residual path requires inplanes == planes*4"
    HW = H * W
    M = N * HW
    if tm is None:
        tm = _pick_tm(M)
    assert M % tm == 0
    nt = M // tm

    x_chw = x_nchw.reshape(N, Cin, HW)          # free view; stays NCHW in HBM
    w1b = w1.astype(jnp.bfloat16)
    w2b = w2cat.astype(jnp.bfloat16)
    w3b = w3.astype(jnp.bfloat16)

    # -- stage 1: conv1 (1x1) from NCHW input, BN1 partial stats ------------- #
    y1, st1 = pl.pallas_call(
        conv1x1_in_nchw_stats_kernel,
        out_shape=(jax.ShapeDtypeStruct((M, width), jnp.bfloat16),
                   jax.ShapeDtypeStruct((N, 2, width), jnp.float32)),
        grid=(N,),
        in_specs=[pl.BlockSpec((1, Cin, HW), lambda n: (n, 0, 0)),
                  pl.BlockSpec((Cin, width), lambda n: (0, 0))],
        out_specs=(pl.BlockSpec((HW, width), lambda n: (n, 0)),
                   pl.BlockSpec((1, 2, width), lambda n: (n, 0, 0))),
        compiler_params=_compiler_params(),
    )(x_chw, w1b)
    s1 = _bn_scale_shift(st1, M, g1, b1)

    # -- stage 2: bn1+relu fused into grouped 3x3 conv, BN2 partial stats ----- #
    y1_img = y1.reshape(N, H, W, width)
    y2, st2 = pl.pallas_call(
        bn_relu_gconv3x3_stats_kernel,
        out_shape=(jax.ShapeDtypeStruct((M, width), jnp.bfloat16),
                   jax.ShapeDtypeStruct((N, 2, width), jnp.float32)),
        grid=(N,),
        in_specs=[pl.BlockSpec((1, H, W, width), lambda n: (n, 0, 0, 0)),
                  pl.BlockSpec((2, width), lambda n: (0, 0)),
                  pl.BlockSpec((9 * width, width), lambda n: (0, 0))],
        out_specs=(pl.BlockSpec((HW, width), lambda n: (n, 0)),
                   pl.BlockSpec((1, 2, width), lambda n: (n, 0, 0))),
        compiler_params=_compiler_params(),
    )(y1_img, s1, w2b)
    s2 = _bn_scale_shift(st2, M, g2, b2)

    # -- stage 3: bn2+relu fused into conv3 (1x1), BN3 partial stats ---------- #
    y3, st3 = pl.pallas_call(
        bn_relu_conv1x1_stats_kernel,
        out_shape=(jax.ShapeDtypeStruct((M, Cout), jnp.bfloat16),
                   jax.ShapeDtypeStruct((nt, 2, Cout), jnp.float32)),
        grid=(nt,),
        in_specs=[pl.BlockSpec((tm, width), lambda i: (i, 0)),
                  pl.BlockSpec((2, width), lambda i: (0, 0)),
                  pl.BlockSpec((width, Cout), lambda i: (0, 0))],
        out_specs=(pl.BlockSpec((tm, Cout), lambda i: (i, 0)),
                   pl.BlockSpec((1, 2, Cout), lambda i: (i, 0, 0))),
        compiler_params=_compiler_params(),
    )(y2, s2, w3b)
    s3 = _bn_scale_shift(st3, M, g3, b3)

    # -- stage 4: bn3 + residual add + relu, NCHW output directly ------------- #
    out = pl.pallas_call(
        bn_add_relu_out_nchw_kernel,
        out_shape=jax.ShapeDtypeStruct((N, Cout, HW), jnp.float32),
        grid=(N,),
        in_specs=[pl.BlockSpec((HW, Cout), lambda n: (n, 0)),
                  pl.BlockSpec((1, Cin, HW), lambda n: (n, 0, 0)),
                  pl.BlockSpec((2, Cout), lambda n: (0, 0))],
        out_specs=pl.BlockSpec((1, Cout, HW), lambda n: (n, 0, 0)),
        compiler_params=_compiler_params(),
    )(y3, x_chw, s3)

    return out.reshape(N, Cout, H, W)   # free view back to NCHW image shape


# ------------------------------ parameter setup ---------------------------- #

def make_params(key, inplanes, planes, groups=32, width_per_group=4):
    width = int(planes * (width_per_group / 64)) * groups
    cout = planes * 4
    cpg = width // groups  # channels per group
    ks = jax.random.split(key, 9)

    # PyTorch-shaped weights
    w1_oihw = jax.random.normal(ks[0], (width, inplanes, 1, 1), jnp.float32) * 0.1
    w2_oihw = jax.random.normal(ks[1], (width, cpg, 3, 3), jnp.float32) * 0.1
    w3_oihw = jax.random.normal(ks[2], (cout, width, 1, 1), jnp.float32) * 0.1

    def bn_params(kg, kb, c):
        gamma = jax.random.uniform(kg, (1, c), jnp.float32, 0.5, 1.5)
        beta = jax.random.normal(kb, (1, c), jnp.float32) * 0.1
        return gamma, beta

    g1, b1 = bn_params(ks[3], ks[4], width)
    g2, b2 = bn_params(ks[5], ks[6], width)
    g3, b3 = bn_params(ks[7], ks[8], cout)

    # kernel-layout weights
    w1 = jnp.transpose(w1_oihw[:, :, 0, 0])                       # (Cin, width)
    w3 = jnp.transpose(w3_oihw[:, :, 0, 0])                       # (width, Cout)

    # grouped conv -> tap-major block-diagonal weight stacked along K:
    # row t*width + ci, col o  ==  w2[o, ci - g*cpg, ky, kx] when ci is in o's group.
    # (dense zeros waste ~groups x MXU FLOPs but keep one large-K contraction;
    #  fine while conv2 is memory-bound at these widths.)
    w2_np = np.asarray(w2_oihw)
    w2bd = np.zeros((9, width, width), np.float32)
    for o in range(width):
        g = o // cpg
        for k in range(cpg):
            ci = g * cpg + k
            for ky in range(3):
                for kx in range(3):
                    w2bd[ky * 3 + kx, ci, o] = w2_np[o, k, ky, kx]
    w2cat = jnp.asarray(w2bd.reshape(9 * width, width))           # (9*width, width)

    kernel_params = (w1, g1, b1, w2cat, g2, b2, w3, g3, b3)
    torch_weights = (w1_oihw, w2_oihw, w3_oihw)
    return kernel_params, torch_weights, groups


# ------------------------------ pure-JAX reference ------------------------- #

def ref_forward(x, torch_weights, kernel_params, groups, stride=1):
    w1_oihw, w2_oihw, w3_oihw = torch_weights
    (_, g1, b1, _, g2, b2, _, g3, b3) = kernel_params
    dn = ("NCHW", "OIHW", "NCHW")

    def bn(y, gamma, beta):
        gamma = gamma.reshape(1, -1, 1, 1)
        beta = beta.reshape(1, -1, 1, 1)
        mean = y.mean(axis=(0, 2, 3), keepdims=True)
        var = ((y - mean) ** 2).mean(axis=(0, 2, 3), keepdims=True)
        return (y - mean) * lax.rsqrt(var + EPS) * gamma + beta

    hp = lax.Precision.HIGHEST
    o = lax.conv_general_dilated(x, w1_oihw, (1, 1), "VALID",
                                 dimension_numbers=dn, precision=hp)
    o = jax.nn.relu(bn(o, g1, b1))
    o = lax.conv_general_dilated(o, w2_oihw, (stride, stride),
                                 ((1, 1), (1, 1)), dimension_numbers=dn,
                                 feature_group_count=groups, precision=hp)
    o = jax.nn.relu(bn(o, g2, b2))
    o = lax.conv_general_dilated(o, w3_oihw, (1, 1), "VALID",
                                 dimension_numbers=dn, precision=hp)
    o = bn(o, g3, b3)
    return jax.nn.relu(o + x)


# ------------------------------------ main --------------------------------- #

if __name__ == "__main__":
    key = jax.random.PRNGKey(0)
    kx, kp = jax.random.split(key)

    # planes=64 -> width=128 (lane-dense), Cout=256; inplanes=planes*4 so the
    # identity residual path is valid.  M = 2*16*16 = 512 rows -> 2 row-tiles.
    N, H, W = 2, 16, 16
    planes = 64
    inplanes = planes * 4
    x = jax.random.normal(kx, (N, inplanes, H, W), jnp.float32)

    params, torch_w, groups = make_params(kp, inplanes, planes)

    out = block_forward(x, params, stride=1)
    out = jax.block_until_ready(out)

    ref = jax.block_until_ready(ref_forward(x, torch_w, params, groups))
    # bf16 matmul operands / bf16 inter-stage activations (f32 accumulation)
    # -> compare against the f32 reference at a matching tolerance.
    np.testing.assert_allclose(np.asarray(out), np.asarray(ref),
                               rtol=3e-2, atol=3e-2)
    assert out.shape == (N, planes * 4, H, W)
    print("KERNEL_OK")
</pallas_src>

<mosaic_0001>
module attributes {stable_mosaic.version = 11 : i64} {
  func.func @conv1x1_in_nchw_stats_kernel(%arg0: i32, %arg1: memref<1x256x256xf32, #tpu.memory_space<vmem>>, %arg2: memref<256x128xbf16, #tpu.memory_space<vmem>>, %arg3: memref<256x128xbf16, #tpu.memory_space<vmem>>, %arg4: memref<1x2x128xf32, #tpu.memory_space<vmem>>) attributes {dimension_semantics = [#tpu.dimension_semantics<parallel>], iteration_bounds = array<i64: 2>, scalar_prefetch = 0 : i64, scratch_operands = 0 : i64, tpu.core_type = #tpu.core_type<tc>, window_params = [{transform_indices = @transform_0, window_bounds = array<i64: 1, 256, 256>}, {pipeline_mode = #tpu.pipeline_mode<synchronous>, transform_indices = @transform_1, window_bounds = array<i64: 256, 128>}, {transform_indices = @transform_2, window_bounds = array<i64: 256, 128>}, {transform_indices = @transform_3, window_bounds = array<i64: 1, 2, 128>}]} {
    %c0 = arith.constant 0 : index
    %c0_0 = arith.constant 0 : index
    %c0_1 = arith.constant 0 : index
    %0 = vector.load %arg1[%c0, %c0_0, %c0_1] : memref<1x256x256xf32, #tpu.memory_space<vmem>>, vector<1x256x256xf32>
    %1 = vector.shape_cast %0 : vector<1x256x256xf32> to vector<256x256xf32>
    %2 = tpu.transpose %1, [1, 0] : vector<256x256xf32> -> vector<256x256xf32>
    %3 = arith.truncf %2 : vector<256x256xf32> to vector<256x256xbf16>
    %c0_2 = arith.constant 0 : index
    %c0_3 = arith.constant 0 : index
    %4 = vector.load %arg2[%c0_2, %c0_3] : memref<256x128xbf16, #tpu.memory_space<vmem>>, vector<256x128xbf16>
    %cst = arith.constant dense<0.000000e+00> : vector<256x128xf32>
    %5 = tpu.matmul %3, %4, %cst {dimension_numbers = #tpu.dot_dimension_numbers<[1], [0], [0], [1], [0, 0, 1, 1], [], []>} : vector<256x256xbf16>, vector<256x128xbf16>, vector<256x128xf32> -> vector<256x128xf32>
    %6 = arith.truncf %5 : vector<256x128xf32> to vector<256x128xbf16>
    %c0_4 = arith.constant 0 : index
    %c0_5 = arith.constant 0 : index
    %7 = vector.load %arg3[%c0_4, %c0_5] : memref<256x128xbf16, #tpu.memory_space<vmem>>, vector<256x128xbf16>
    tpu.vector_store %arg3[%c0_4, %c0_5], %6 {strides = array<i32>} : memref<256x128xbf16, #tpu.memory_space<vmem>>, vector<256x128xbf16>,
    %cst_6 = arith.constant dense<0.000000e+00> : vector<128xf32>
    %8 = vector.multi_reduction <add>, %5, %cst_6 [0] : vector<256x128xf32> to vector<128xf32>
    %9 = vector.shape_cast %8 : vector<128xf32> to vector<1x128xf32>
    %10 = arith.mulf %5, %5 : vector<256x128xf32>
    %cst_7 = arith.constant dense<0.000000e+00> : vector<128xf32>
    %11 = vector.multi_reduction <add>, %10, %cst_7 [0] : vector<256x128xf32> to vector<128xf32>
    %12 = vector.shape_cast %11 : vector<128xf32> to vector<1x128xf32>
    %13 = tpu.concatenate %9, %12 in 0 : vector<1x128xf32>, vector<1x128xf32> -> vector<2x128xf32>
    %14 = vector.shape_cast %13 : vector<2x128xf32> to vector<1x2x128xf32>
    %c0_8 = arith.constant 0 : index
    %c0_9 = arith.constant 0 : index
    %c0_10 = arith.constant 0 : index
    %15 = vector.load %arg4[%c0_8, %c0_9, %c0_10] : memref<1x2x128xf32, #tpu.memory_space<vmem>>, vector<1x2x128xf32>
    tpu.vector_store %arg4[%c0_8, %c0_9, %c0_10], %14 {strides = array<i32>} : memref<1x2x128xf32, #tpu.memory_space<vmem>>, vector<1x2x128xf32>,
    return
  }
  func.func @transform_0(%arg0: i32) -> (i32, i32, i32) {
    %c0_i32 = arith.constant 0 : i32
    %c0_i32_0 = arith.constant 0 : i32
    %c0_i32_1 = arith.constant 0 : i32
    return %arg0, %c0_i32, %c0_i32_0 : i32, i32, i32
  }
  func.func @transform_1(%arg0: i32) -> (i32, i32) {
    %c0_i32 = arith.constant 0 : i32
    %c0_i32_0 = arith.constant 0 : i32
    %c0_i32_1 = arith.constant 0 : i32
    return %c0_i32, %c0_i32_0 : i32, i32
  }
  func.func @transform_2(%arg0: i32) -> (i32, i32) {
    %c0_i32 = arith.constant 0 : i32
    %c0_i32_0 = arith.constant 0 : i32
    return %arg0, %c0_i32 : i32, i32
  }
  func.func @transform_3(%arg0: i32) -> (i32, i32, i32) {
    %c0_i32 = arith.constant 0 : i32
    %c0_i32_0 = arith.constant 0 : i32
    %c0_i32_1 = arith.constant 0 : i32
    return %arg0, %c0_i32, %c0_i32_0 : i32, i32, i32
  }
}

module attributes {stable_mosaic.version = 11 : i64} {
  func.func @bn_relu_gconv3x3_stats_kernel(%arg0: i32, %arg1: memref<1x16x16x128xbf16, #tpu.memory_space<vmem>>, %arg2: memref<2x128xf32, #tpu.memory_space<vmem>>, %arg3: memref<1152x128xbf16, #tpu.memory_space<vmem>>, %arg4: memref<256x128xbf16, #tpu.memory_space<vmem>>, %arg5: memref<1x2x128xf32, #tpu.memory_space<vmem>>) attributes {dimension_semantics = [#tpu.dimension_semantics<parallel>], iteration_bounds = array<i64: 2>, scalar_prefetch = 0 : i64, scratch_operands = 0 : i64, tpu.core_type = #tpu.core_type<tc>, window_params = [{transform_indices = @transform_0, window_bounds = array<i64: 1, 16, 16, 128>}, {pipeline_mode = #tpu.pipeline_mode<synchronous>, transform_indices = @transform_1, window_bounds = array<i64: 2, 128>}, {pipeline_mode = #tpu.pipeline_mode<synchronous>, transform_indices = @transform_2, window_bounds = array<i64: 1152, 128>}, {transform_indices = @transform_3, window_bounds = array<i64: 256, 128>}, {transform_indices = @transform_4, window_bounds = array<i64: 1, 2, 128>}]} {
    %c0 = arith.constant 0 : index
    %c0_0 = arith.constant 0 : index
    %0 = vector.load %arg2[%c0, %c0_0] : memref<2x128xf32, #tpu.memory_space<vmem>>, vector<1x128xf32>
    %1 = vector.shape_cast %0 : vector<1x128xf32> to vector<1x1x128xf32>
    %c1 = arith.constant 1 : index
    %c0_1 = arith.constant 0 : index
    %2 = vector.load %arg2[%c1, %c0_1] : memref<2x128xf32, #tpu.memory_space<vmem>>, vector<1x128xf32>
    %3 = vector.shape_cast %2 : vector<1x128xf32> to vector<1x1x128xf32>
    %c0_2 = arith.constant 0 : index
    %c0_3 = arith.constant 0 : index
    %c0_4 = arith.constant 0 : index
    %c0_5 = arith.constant 0 : index
    %4 = vector.load %arg1[%c0_2, %c0_3, %c0_4, %c0_5] : memref<1x16x16x128xbf16, #tpu.memory_space<vmem>>, vector<1x16x16x128xbf16>
    %5 = vector.shape_cast %4 : vector<1x16x16x128xbf16> to vector<16x16x128xbf16>
    %6 = arith.extf %5 : vector<16x16x128xbf16> to vector<16x16x128xf32>
    %7 = vector.broadcast %1 : vector<1x1x128xf32> to vector<16x16x128xf32>
    %8 = arith.mulf %6, %7 : vector<16x16x128xf32>
    %9 = vector.broadcast %3 : vector<1x1x128xf32> to vector<16x16x128xf32>
    %10 = arith.addf %8, %9 : vector<16x16x128xf32>
    %cst = arith.constant 0.000000e+00 : f32
    %11 = vector.broadcast %cst : f32 to vector<16x16x128xf32>
    %12 = arith.maximumf %10, %11 : vector<16x16x128xf32>
    %cst_6 = arith.constant 0.000000e+00 : f32
    %13 = vector.broadcast %cst_6 : f32 to vector<16x1x128xf32>
    %cst_7 = arith.constant 0.000000e+00 : f32
    %14 = vector.broadcast %cst_7 : f32 to vector<1x18x128xf32>
    %15 = tpu.concatenate %13, %12, %13 in 1 : vector<16x1x128xf32>, vector<16x16x128xf32>, vector<16x1x128xf32> -> vector<16x18x128xf32>
    %16 = tpu.concatenate %14, %15, %14 in 0 : vector<1x18x128xf32>, vector<16x18x128xf32>, vector<1x18x128xf32> -> vector<18x18x128xf32>
    %17 = vector.extract_strided_slice %16 {offsets = [0, 0, 0], sizes = [16, 16, 128], strides = [1, 1, 1]} : vector<18x18x128xf32> to vector<16x16x128xf32>
    %18 = vector.extract_strided_slice %16 {offsets = [0, 1, 0], sizes = [16, 16, 128], strides = [1, 1, 1]} : vector<18x18x128xf32> to vector<16x16x128xf32>
    %19 = vector.extract_strided_slice %16 {offsets = [0, 2, 0], sizes = [16, 16, 128], strides = [1, 1, 1]} : vector<18x18x128xf32> to vector<16x16x128xf32>
    %20 = vector.extract_strided_slice %16 {offsets = [1, 0, 0], sizes = [16, 16, 128], strides = [1, 1, 1]} : vector<18x18x128xf32> to vector<16x16x128xf32>
    %21 = vector.extract_strided_slice %16 {offsets = [1, 1, 0], sizes = [16, 16, 128], strides = [1, 1, 1]} : vector<18x18x128xf32> to vector<16x16x128xf32>
    %22 = vector.extract_strided_slice %16 {offsets = [1, 2, 0], sizes = [16, 16, 128], strides = [1, 1, 1]} : vector<18x18x128xf32> to vector<16x16x128xf32>
    %23 = vector.extract_strided_slice %16 {offsets = [2, 0, 0], sizes = [16, 16, 128], strides = [1, 1, 1]} : vector<18x18x128xf32> to vector<16x16x128xf32>
    %24 = vector.extract_strided_slice %16 {offsets = [2, 1, 0], sizes = [16, 16, 128], strides = [1, 1, 1]} : vector<18x18x128xf32> to vector<16x16x128xf32>
    %25 = vector.extract_strided_slice %16 {offsets = [2, 2, 0], sizes = [16, 16, 128], strides = [1, 1, 1]} : vector<18x18x128xf32> to vector<16x16x128xf32>
    %26 = tpu.concatenate %17, %18, %19, %20, %21, %22, %23, %24, %25 in 2 : vector<16x16x128xf32>, vector<16x16x128xf32>, vector<16x16x128xf32>, vector<16x16x128xf32>, vector<16x16x128xf32>, vector<16x16x128xf32>, vector<16x16x128xf32>, vector<16x16x128xf32>, vector<16x16x128xf32> -> vector<16x16x1152xf32>
    %27 = arith.truncf %26 : vector<16x16x1152xf32> to vector<16x16x1152xbf16>
    %28 = vector.shape_cast %27 : vector<16x16x1152xbf16> to vector<256x1152xbf16>
    %c0_8 = arith.constant 0 : index
    %c0_9 = arith.constant 0 : index
    %29 = vector.load %arg3[%c0_8, %c0_9] : memref<1152x128xbf16, #tpu.memory_space<vmem>>, vector<1152x128xbf16>
    %cst_10 = arith.constant dense<0.000000e+00> : vector<256x128xf32>
    %30 = tpu.matmul %28, %29, %cst_10 {dimension_numbers = #tpu.dot_dimension_numbers<[1], [0], [0], [1], [0, 0, 1, 1], [], []>} : vector<256x1152xbf16>, vector<1152x128xbf16>, vector<256x128xf32> -> vector<256x128xf32>
    %31 = arith.truncf %30 : vector<256x128xf32> to vector<256x128xbf16>
    %c0_11 = arith.constant 0 : index
    %c0_12 = arith.constant 0 : index
    %32 = vector.load %arg4[%c0_11, %c0_12] : memref<256x128xbf16, #tpu.memory_space<vmem>>, vector<256x128xbf16>
    tpu.vector_store %arg4[%c0_11, %c0_12], %31 {strides = array<i32>} : memref<256x128xbf16, #tpu.memory_space<vmem>>, vector<256x128xbf16>,
    %cst_13 = arith.constant dense<0.000000e+00> : vector<128xf32>
    %33 = vector.multi_reduction <add>, %30, %cst_13 [0] : vector<256x128xf32> to vector<128xf32>
    %34 = vector.shape_cast %33 : vector<128xf32> to vector<1x128xf32>
    %35 = arith.mulf %30, %30 : vector<256x128xf32>
    %cst_14 = arith.constant dense<0.000000e+00> : vector<128xf32>
    %36 = vector.multi_reduction <add>, %35, %cst_14 [0] : vector<256x128xf32> to vector<128xf32>
    %37 = vector.shape_cast %36 : vector<128xf32> to vector<1x128xf32>
    %38 = tpu.concatenate %34, %37 in 0 : vector<1x128xf32>, vector<1x128xf32> -> vector<2x128xf32>
    %39 = vector.shape_cast %38 : vector<2x128xf32> to vector<1x2x128xf32>
    %c0_15 = arith.constant 0 : index
    %c0_16 = arith.constant 0 : index
    %c0_17 = arith.constant 0 : index
    %40 = vector.load %arg5[%c0_15, %c0_16, %c0_17] : memref<1x2x128xf32, #tpu.memory_space<vmem>>, vector<1x2x128xf32>
    tpu.vector_store %arg5[%c0_15, %c0_16, %c0_17], %39 {strides = array<i32>} : memref<1x2x128xf32, #tpu.memory_space<vmem>>, vector<1x2x128xf32>,
    return
  }
  func.func @transform_0(%arg0: i32) -> (i32, i32, i32, i32) {
    %c0_i32 = arith.constant 0 : i32
    %c0_i32_0 = arith.constant 0 : i32
    %c0_i32_1 = arith.constant 0 : i32
    %c0_i32_2 = arith.constant 0 : i32
    return %arg0, %c0_i32, %c0_i32_0, %c0_i32_1 : i32, i32, i32, i32
  }
  func.func @transform_1(%arg0: i32) -> (i32, i32) {
    %c0_i32 = arith.constant 0 : i32
    %c0_i32_0 = arith.constant 0 : i32
    %c0_i32_1 = arith.constant 0 : i32
    return %c0_i32, %c0_i32_0 : i32, i32
  }
  func.func @transform_2(%arg0: i32) -> (i32, i32) {
    %c0_i32 = arith.constant 0 : i32
    %c0_i32_0 = arith.constant 0 : i32
    %c0_i32_1 = arith.constant 0 : i32
    return %c0_i32, %c0_i32_0 : i32, i32
  }
  func.func @transform_3(%arg0: i32) -> (i32, i32) {
    %c0_i32 = arith.constant 0 : i32
    %c0_i32_0 = arith.constant 0 : i32
    return %arg0, %c0_i32 : i32, i32
  }
  func.func @transform_4(%arg0: i32) -> (i32, i32, i32) {
    %c0_i32 = arith.constant 0 : i32
    %c0_i32_0 = arith.constant 0 : i32
    %c0_i32_1 = arith.constant 0 : i32
    return %arg0, %c0_i32, %c0_i32_0 : i32, i32, i32
  }
}

module attributes {stable_mosaic.version = 11 : i64} {
  func.func @bn_add_relu_out_nchw_kernel(%arg0: i32, %arg1: memref<256x256xbf16, #tpu.memory_space<vmem>>, %arg2: memref<1x256x256xf32, #tpu.memory_space<vmem>>, %arg3: memref<2x256xf32, #tpu.memory_space<vmem>>, %arg4: memref<1x256x256xf32, #tpu.memory_space<vmem>>) attributes {dimension_semantics = [#tpu.dimension_semantics<parallel>], iteration_bounds = array<i64: 2>, scalar_prefetch = 0 : i64, scratch_operands = 0 : i64, tpu.core_type = #tpu.core_type<tc>, window_params = [{transform_indices = @transform_0, window_bounds = array<i64: 256, 256>}, {transform_indices = @transform_1, window_bounds = array<i64: 1, 256, 256>}, {pipeline_mode = #tpu.pipeline_mode<synchronous>, transform_indices = @transform_2, window_bounds = array<i64: 2, 256>}, {transform_indices = @transform_3, window_bounds = array<i64: 1, 256, 256>}]} {
    %c0 = arith.constant 0 : index
    %c0_0 = arith.constant 0 : index
    %0 = vector.load %arg1[%c0, %c0_0] : memref<256x256xbf16, #tpu.memory_space<vmem>>, vector<256x256xbf16>
    %1 = arith.extf %0 : vector<256x256xbf16> to vector<256x256xf32>
    %c0_1 = arith.constant 0 : index
    %c0_2 = arith.constant 0 : index
    %2 = vector.load %arg3[%c0_1, %c0_2] : memref<2x256xf32, #tpu.memory_space<vmem>>, vector<1x256xf32>
    %3 = vector.broadcast %2 : vector<1x256xf32> to vector<256x256xf32>
    %4 = arith.mulf %1, %3 : vector<256x256xf32>
    %c1 = arith.constant 1 : index
    %c0_3 = arith.constant 0 : index
    %5 = vector.load %arg3[%c1, %c0_3] : memref<2x256xf32, #tpu.memory_space<vmem>>, vector<1x256xf32>
    %6 = vector.broadcast %5 : vector<1x256xf32> to vector<256x256xf32>
    %7 = arith.addf %4, %6 : vector<256x256xf32>
    %8 = tpu.transpose %7, [1, 0] : vector<256x256xf32> -> vector<256x256xf32>
    %c0_4 = arith.constant 0 : index
    %c0_5 = arith.constant 0 : index
    %c0_6 = arith.constant 0 : index
    %9 = vector.load %arg2[%c0_4, %c0_5, %c0_6] : memref<1x256x256xf32, #tpu.memory_space<vmem>>, vector<1x256x256xf32>
    %10 = vector.shape_cast %9 : vector<1x256x256xf32> to vector<256x256xf32>
    %11 = arith.addf %8, %10 : vector<256x256xf32>
    %cst = arith.constant 0.000000e+00 : f32
    %12 = vector.broadcast %cst : f32 to vector<256x256xf32>
    %13 = arith.maximumf %11, %12 : vector<256x256xf32>
    %14 = vector.shape_cast %13 : vector<256x256xf32> to vector<1x256x256xf32>
    %c0_7 = arith.constant 0 : index
    %c0_8 = arith.constant 0 : index
    %c0_9 = arith.constant 0 : index
    %15 = vector.load %arg4[%c0_7, %c0_8, %c0_9] : memref<1x256x256xf32, #tpu.memory_space<vmem>>, vector<1x256x256xf32>
    tpu.vector_store %arg4[%c0_7, %c0_8, %c0_9], %14 {strides = array<i32>} : memref<1x256x256xf32, #tpu.memory_space<vmem>>, vector<1x256x256xf32>,
    return
  }
  func.func @transform_0(%arg0: i32) -> (i32, i32) {
    %c0_i32 = arith.constant 0 : i32
    %c0_i32_0 = arith.constant 0 : i32
    return %arg0, %c0_i32 : i32, i32
  }
  func.func @transform_1(%arg0: i32) -> (i32, i32, i32) {
    %c0_i32 = arith.constant 0 : i32
    %c0_i32_0 = arith.constant 0 : i32
    %c0_i32_1 = arith.constant 0 : i32
    return %arg0, %c0_i32, %c0_i32_0 : i32, i32, i32
  }
  func.func @transform_2(%arg0: i32) -> (i32, i32) {
    %c0_i32 = arith.constant 0 : i32
    %c0_i32_0 = arith.constant 0 : i32
    %c0_i32_1 = arith.constant 0 : i32
    return %c0_i32, %c0_i32_0 : i32, i32
  }
  func.func @transform_3(%arg0: i32) -> (i32, i32, i32) {
    %c0_i32 = arith.constant 0 : i32
    %c0_i32_0 = arith.constant 0 : i32
    %c0_i32_1 = arith.constant 0 : i32
    return %arg0, %c0_i32, %c0_i32_0 : i32, i32, i32
  }
}

module attributes {stable_mosaic.version = 11 : i64} {
  func.func @bn_relu_conv1x1_stats_kernel(%arg0: i32, %arg1: memref<256x128xbf16, #tpu.memory_space<vmem>>, %arg2: memref<2x128xf32, #tpu.memory_space<vmem>>, %arg3: memref<128x256xbf16, #tpu.memory_space<vmem>>, %arg4: memref<256x256xbf16, #tpu.memory_space<vmem>>, %arg5: memref<1x2x256xf32, #tpu.memory_space<vmem>>) attributes {dimension_semantics = [#tpu.dimension_semantics<parallel>], iteration_bounds = array<i64: 2>, scalar_prefetch = 0 : i64, scratch_operands = 0 : i64, tpu.core_type = #tpu.core_type<tc>, window_params = [{transform_indices = @transform_0, window_bounds = array<i64: 256, 128>}, {pipeline_mode = #tpu.pipeline_mode<synchronous>, transform_indices = @transform_1, window_bounds = array<i64: 2, 128>}, {pipeline_mode = #tpu.pipeline_mode<synchronous>, transform_indices = @transform_2, window_bounds = array<i64: 128, 256>}, {transform_indices = @transform_3, window_bounds = array<i64: 256, 256>}, {transform_indices = @transform_4, window_bounds = array<i64: 1, 2, 256>}]} {
    %c0 = arith.constant 0 : index
    %c0_0 = arith.constant 0 : index
    %0 = vector.load %arg1[%c0, %c0_0] : memref<256x128xbf16, #tpu.memory_space<vmem>>, vector<256x128xbf16>
    %1 = arith.extf %0 : vector<256x128xbf16> to vector<256x128xf32>
    %c0_1 = arith.constant 0 : index
    %c0_2 = arith.constant 0 : index
    %2 = vector.load %arg2[%c0_1, %c0_2] : memref<2x128xf32, #tpu.memory_space<vmem>>, vector<1x128xf32>
    %3 = vector.broadcast %2 : vector<1x128xf32> to vector<256x128xf32>
    %4 = arith.mulf %1, %3 : vector<256x128xf32>
    %c1 = arith.constant 1 : index
    %c0_3 = arith.constant 0 : index
    %5 = vector.load %arg2[%c1, %c0_3] : memref<2x128xf32, #tpu.memory_space<vmem>>, vector<1x128xf32>
    %6 = vector.broadcast %5 : vector<1x128xf32> to vector<256x128xf32>
    %7 = arith.addf %4, %6 : vector<256x128xf32>
    %cst = arith.constant 0.000000e+00 : f32
    %8 = vector.broadcast %cst : f32 to vector<256x128xf32>
    %9 = arith.maximumf %7, %8 : vector<256x128xf32>
    %10 = arith.truncf %9 : vector<256x128xf32> to vector<256x128xbf16>
    %c0_4 = arith.constant 0 : index
    %c0_5 = arith.constant 0 : index
    %11 = vector.load %arg3[%c0_4, %c0_5] : memref<128x256xbf16, #tpu.memory_space<vmem>>, vector<128x256xbf16>
    %cst_6 = arith.constant dense<0.000000e+00> : vector<256x256xf32>
    %12 = tpu.matmul %10, %11, %cst_6 {dimension_numbers = #tpu.dot_dimension_numbers<[1], [0], [0], [1], [0, 0, 1, 1], [], []>} : vector<256x128xbf16>, vector<128x256xbf16>, vector<256x256xf32> -> vector<256x256xf32>
    %13 = arith.truncf %12 : vector<256x256xf32> to vector<256x256xbf16>
    %c0_7 = arith.constant 0 : index
    %c0_8 = arith.constant 0 : index
    %14 = vector.load %arg4[%c0_7, %c0_8] : memref<256x256xbf16, #tpu.memory_space<vmem>>, vector<256x256xbf16>
    tpu.vector_store %arg4[%c0_7, %c0_8], %13 {strides = array<i32>} : memref<256x256xbf16, #tpu.memory_space<vmem>>, vector<256x256xbf16>,
    %cst_9 = arith.constant dense<0.000000e+00> : vector<256xf32>
    %15 = vector.multi_reduction <add>, %12, %cst_9 [0] : vector<256x256xf32> to vector<256xf32>
    %16 = vector.shape_cast %15 : vector<256xf32> to vector<1x256xf32>
    %17 = arith.mulf %12, %12 : vector<256x256xf32>
    %cst_10 = arith.constant dense<0.000000e+00> : vector<256xf32>
    %18 = vector.multi_reduction <add>, %17, %cst_10 [0] : vector<256x256xf32> to vector<256xf32>
    %19 = vector.shape_cast %18 : vector<256xf32> to vector<1x256xf32>
    %20 = tpu.concatenate %16, %19 in 0 : vector<1x256xf32>, vector<1x256xf32> -> vector<2x256xf32>
    %21 = vector.shape_cast %20 : vector<2x256xf32> to vector<1x2x256xf32>
    %c0_11 = arith.constant 0 : index
    %c0_12 = arith.constant 0 : index
    %c0_13 = arith.constant 0 : index
    %22 = vector.load %arg5[%c0_11, %c0_12, %c0_13] : memref<1x2x256xf32, #tpu.memory_space<vmem>>, vector<1x2x256xf32>
    tpu.vector_store %arg5[%c0_11, %c0_12, %c0_13], %21 {strides = array<i32>} : memref<1x2x256xf32, #tpu.memory_space<vmem>>, vector<1x2x256xf32>,
    return
  }
  func.func @transform_0(%arg0: i32) -> (i32, i32) {
    %c0_i32 = arith.constant 0 : i32
    %c0_i32_0 = arith.constant 0 : i32
    return %arg0, %c0_i32 : i32, i32
  }
  func.func @transform_1(%arg0: i32) -> (i32, i32) {
    %c0_i32 = arith.constant 0 : i32
    %c0_i32_0 = arith.constant 0 : i32
    %c0_i32_1 = arith.constant 0 : i32
    return %c0_i32, %c0_i32_0 : i32, i32
  }
  func.func @transform_2(%arg0: i32) -> (i32, i32) {
    %c0_i32 = arith.constant 0 : i32
    %c0_i32_0 = arith.constant 0 : i32
    %c0_i32_1 = arith.constant 0 : i32
    return %c0_i32, %c0_i32_0 : i32, i32
  }
  func.func @transform_3(%arg0: i32) -> (i32, i32) {
    %c0_i32 = arith.constant 0 : i32
    %c0_i32_0 = arith.constant 0 : i32
    return %arg0, %c0_i32 : i32, i32
  }
  func.func @transform_4(%arg0: i32) -> (i32, i32, i32) {
    %c0_i32 = arith.constant 0 : i32
    %c0_i32_0 = arith.constant 0 : i32
    %c0_i32_1 = arith.constant 0 : i32
    return %arg0, %c0_i32, %c0_i32_0 : i32, i32, i32
  }
}

</mosaic_0001>

<bundles_post_ra>
// kernel: block_forward.7
= control target key start
LH: loop header
LB: loop body
LE: loop exit
PB: predicated region body
PF: predicated region fallthrough
CT: control target
= control target key end

     0   :  { %s938_s12 = smov 0   ;;  %s1346_s0 = inlined_call_operand.vmem [shape: bf16[512,256], index: 0, kind: input, shape index: {}]   ;;  %s1347_s1 = inlined_call_operand.vmem [shape: f32[2,256,256], index: 1, kind: input, shape index: {}]   ;;  %s1348_s2 = inlined_call_operand.vmem [shape: f32[2,256], index: 2, kind: input, shape index: {}]   ;;  %s1349_s3 = inlined_call_operand.vmem [shape: f32[2,256,256], index: 3, kind: output, shape index: {}]  }
   0x1 LB: > { %s944_s13 = sadd.s32 4294967295, %s916_s12   ;;  %p888_p0 = scmp.ge.s32.totalorder %s916_s12, 1  ;;  %s916_s12 = sphi %s938_s12, %s13_s12  }
   0x2   : > { %p149_p1 = scmp.lt.s32.totalorder %s916_s12, 3 }
   0x4   : > { %p150_p2 = pnand %p888_p0, %p149_p1 }
   0x5   : > { %s889_s14 = sshll.u32 (!%p150_p2), %s944_s13, 5  ;;  %p186_p4 = scmp.lt.s32.totalorder (!%p150_p2), %s944_s13, 1 }
   0x6   : > { %153 = sbr.rel (%p150_p2) target bundleno = 439 (0x1b7), region = 32  ;;  %p180_p3 = scmp.lt.s32.totalorder (!%p150_p2), %s889_s14, 63 }
   0xb   : > { %s1351_s14 = smov (!%p180_p3, %s889_s14), 63  ;;  %v952_v0 = vld [vmem:[%s1348_s2] ss:$2 sm:$0x3]  ;;  %s1353_s13 = smov (!%p186_p4, %s944_s13), 1 }
   0xc   : > { %s899_s17 = sshll.u32 %s1351_s14, 3  ;;  %v957_v1 = vld [vmem:[%s1348_s2 + $0x1] ss:$2 sm:$0x3]  ;;  %v965_v2 = vperm.slane %v952_v0, 0  ;;  %v1049_v56 = vperm.slane %v952_v0, 1 }
   0xd   : > { %s962_s22 = scalar_lea.vmem %s1346_s0, %s899_s17  ;;  %v975_v6 = vperm.slane %v957_v1, 0  ;;  %v1052_v57 = vperm.slane %v957_v1, 1  ;;  %s900_s23 = sshll.u32 %s1353_s13, 9 }
   0xe   : > { %v968_v3 = vld [vmem:[%s962_s22] sm:$0xff]  ;;  %v971_v4 = vld [vmem:[%s962_s22 + $0x8] sm:$0xff]  ;;  %v982_v11 = vld [vmem:[%s962_s22 + $0x10] sm:$0xff]  ;;  %s1139_s26 = scalar_lea.vmem %s1347_s1, %s900_s23  ;;  %s1152_s29 = scalar_lea.vmem %s1349_s3, %s900_s23 }
   0xf   : > { %v228_v5 = vunpack.c.l.bf16 %v968_v3  ;;  %v230_v8 = vunpack.c.l.bf16 %v971_v4  ;;  %v232_v13 = vunpack.c.l.bf16 %v982_v11  ;;  %v988_v15 = vld [vmem:[%s962_s22 + $0x18] sm:$0xff]  ;;  %v994_v19 = vld [vmem:[%s962_s22 + $0x20] sm:$0xff]  ;;  %v1000_v23 = vld [vmem:[%s962_s22 + $0x28] sm:$0xff]  ;;  %v229_v55 = vunpack.c.h.bf16 %v968_v3 }
  0x10   : > { %v234_v17 = vunpack.c.l.bf16 %v988_v15  ;;  %v236_v21 = vunpack.c.l.bf16 %v994_v19  ;;  %v238_v25 = vunpack.c.l.bf16 %v1000_v23  ;;  %v1006_v27 = vld [vmem:[%s962_s22 + $0x30] sm:$0xff]  ;;  %v1012_v31 = vld [vmem:[%s962_s22 + $0x38] sm:$0xff]  ;;  %v1018_v35 = vld [vmem:[%s962_s22 + $0x40] sm:$0xff]  ;;  %v231_v0 = vunpack.c.h.bf16 %v971_v4 }
  0x11   : > { %v298_v7 = vmul.f32 %v965_v2, %v228_v5  ;;  %v300_v10 = vmul.f32 %v965_v2, %v230_v8  ;;  %v302_v14 = vmul.f32 %v965_v2, %v232_v13  ;;  %v240_v29 = vunpack.c.l.bf16 %v1006_v27  ;;  %v1024_v39 = vld [vmem:[%s962_s22 + $0x48] sm:$0xff]  ;;  %v1030_v43 = vld [vmem:[%s962_s22 + $0x50] sm:$0xff]  ;;  %v1036_v47 = vld [vmem:[%s962_s22 + $0x58] sm:$0xff] }
  0x12   : > { %v304_v18 = vmul.f32 %v965_v2, %v234_v17  ;;  %v306_v22 = vmul.f32 %v965_v2, %v236_v21  ;;  %v308_v26 = vmul.f32 %v965_v2, %v238_v25  ;;  %v242_v33 = vunpack.c.l.bf16 %v1012_v31  ;;  %v1042_v51 = vld [vmem:[%s962_s22 + $0x60] sm:$0xff]  ;;  %v1055_v58 = vld [vmem:[%s962_s22 + $0x68] sm:$0xff]  ;;  %v1064_v3 = vld [vmem:[%s962_s22 + $0x70] sm:$0xff] }
  0x13   : > { %v369_v9 = vadd.f32 %v975_v6, %v298_v7  ;;  %v371_v12 = vadd.f32 %v975_v6, %v300_v10  ;;  %v373_v16 = vadd.f32 %v975_v6, %v302_v14  ;;  %v310_v30 = vmul.f32 %v965_v2, %v240_v29  ;;  %v212_v8 = vld [vmem:[%s962_s22 + $0x80] sm:$0xff]  ;;  %v1075_v14 = vld [vmem:[%s962_s22 + $0x78] sm:$0xff]  ;;  %v213_v21 = vld [vmem:[%s962_s22 + $0x88] sm:$0xff] }
  0x14   : > { %v375_v20 = vadd.f32 %v975_v6, %v304_v18  ;;  %v377_v24 = vadd.f32 %v975_v6, %v306_v22  ;;  %v379_v28 = vadd.f32 %v975_v6, %v308_v26  ;;  %v312_v34 = vmul.f32 %v965_v2, %v242_v33  ;;  %v214_v33 = vld [vmem:[%s962_s22 + $0x90] sm:$0xff] }
  0x15   : > { %433 = vxpose.xlu0.b32.start [1/16] %v369_v9, 128  ;;  %v381_v32 = vadd.f32 %v975_v6, %v310_v30  ;;  %v244_v37 = vunpack.c.l.bf16 %v1018_v35  ;;  %v246_v41 = vunpack.c.l.bf16 %v1024_v39  ;;  %v248_v45 = vunpack.c.l.bf16 %v1030_v43 }
  0x16   : > { %v383_v36 = vadd.f32 %v975_v6, %v312_v34  ;;  %v250_v49 = vunpack.c.l.bf16 %v1036_v47  ;;  %v252_v53 = vunpack.c.l.bf16 %v1042_v51  ;;  %v299_v59 = vmul.f32 %v1049_v56, %v229_v55  ;;  %v216_v55 = vld [vmem:[%s962_s22 + $0xa0] sm:$0xff] }
  0x17   : > { %v314_v38 = vmul.f32 %v965_v2, %v244_v37  ;;  %v316_v42 = vmul.f32 %v965_v2, %v246_v41  ;;  %v318_v46 = vmul.f32 %v965_v2, %v248_v45  ;;  %v254_v61 = vunpack.c.l.bf16 %v1055_v58  ;;  %v215_v45 = vld [vmem:[%s962_s22 + $0x98] sm:$0xff] }
  0x18   : > { %v320_v50 = vmul.f32 %v965_v2, %v250_v49  ;;  %v322_v54 = vmul.f32 %v965_v2, %v252_v53  ;;  %v370_v62 = vadd.f32 %v1052_v57, %v299_v59  ;;  %v301_v1 = vmul.f32 %v1049_v56, %v231_v0 }
  0x19   : > { %v385_v40 = vadd.f32 %v975_v6, %v314_v38  ;;  %v387_v44 = vadd.f32 %v975_v6, %v316_v42  ;;  %v389_v48 = vadd.f32 %v975_v6, %v318_v46  ;;  %v324_v63 = vmul.f32 %v965_v2, %v254_v61 }
  0x1a   : > { %v391_v52 = vadd.f32 %v975_v6, %v320_v50  ;;  %v393_v60 = vadd.f32 %v975_v6, %v322_v54  ;;  %465 = vxpose.xlu1.b32.start [1/16] %v370_v62, 128  ;;  %v256_v7 = vunpack.c.l.bf16 %v1064_v3  ;;  %v372_v9 = vadd.f32 %v1052_v57, %v301_v1 }
  0x1b   : > { %v395_v5 = vadd.f32 %v975_v6, %v324_v63  ;;  %v260_v10 = vunpack.c.l.bf16 %v212_v8  ;;  %v233_v4 = vunpack.c.h.bf16 %v982_v11  ;;  %v235_v26 = vunpack.c.h.bf16 %v988_v15 }
  0x1c   : > { %v326_v13 = vmul.f32 %v965_v2, %v256_v7  ;;  %v237_v15 = vunpack.c.h.bf16 %v994_v19  ;;  %v265_v54 = vunpack.c.h.bf16 %v214_v33  ;;  %v217_v7 = vld [vmem:[%s962_s22 + $0xa8] sm:$0xff] }
  0x1d   : > { %434 = vxpose.xlu0.b32.cont [2/16] %v371_v12, 128  ;;  %v330_v12 = vmul.f32 %v965_v2, %v260_v10  ;;  %v303_v17 = vmul.f32 %v1049_v56, %v233_v4  ;;  %v305_v29 = vmul.f32 %v1049_v56, %v235_v26  ;;  %v243_v4 = vunpack.c.h.bf16 %v1012_v31 }
  0x1e   : > { %v397_v18 = vadd.f32 %v975_v6, %v326_v13  ;;  %v307_v41 = vmul.f32 %v1049_v56, %v237_v15  ;;  %v335_v63 = vmul.f32 %v1049_v56, %v265_v54 }
  0x1f   : > { %v374_v22 = vadd.f32 %v1052_v57, %v303_v17  ;;  %v376_v34 = vadd.f32 %v1052_v57, %v305_v29  ;;  %v269_v17 = vunpack.c.h.bf16 %v216_v55  ;;  %v219_v29 = vld [vmem:[%s962_s22 + $0xb8] sm:$0xff] }
  0x20   : > { %v378_v46 = vadd.f32 %v1052_v57, %v307_v41  ;;  %v406_v1 = vadd.f32 %v1052_v57, %v335_v63 }
  0x22   : > { %466 = vxpose.xlu1.b32.cont [2/16] %v372_v9, 128  ;;  %v270_v9 = vunpack.c.l.bf16 %v217_v7 }
  0x25   : > { %435 = vxpose.xlu0.b32.cont [3/16] %v373_v16, 128  ;;  %v401_v16 = vadd.f32 %v975_v6, %v330_v12  ;;  %v340_v12 = vmul.f32 %v965_v2, %v270_v9 }
  0x27   : > { %497 = vxpose.xlu2.b32.start [1/16] %v401_v16, 128 }
  0x2a   : > { %467 = vxpose.xlu1.b32.cont [3/16] %v374_v22, 128 }
  0x2d   : > { %436 = vxpose.xlu0.b32.cont [4/16] %v375_v20, 128  ;;  %v258_v20 = vunpack.c.l.bf16 %v1075_v14 }
  0x2f   : > { %v328_v11 = vmul.f32 %v965_v2, %v258_v20  ;;  %v313_v20 = vmul.f32 %v1049_v56, %v243_v4 }
  0x31   : > { %v399_v30 = vadd.f32 %v975_v6, %v328_v11  ;;  %v384_v22 = vadd.f32 %v1052_v57, %v313_v20  ;;  %v245_v11 = vunpack.c.h.bf16 %v1018_v35 }
  0x32   : > { %468 = vxpose.xlu1.b32.cont [4/16] %v376_v34, 128 }
  0x35   : > { %437 = vxpose.xlu0.b32.cont [5/16] %v377_v24, 128  ;;  %v262_v24 = vunpack.c.l.bf16 %v213_v21 }
  0x37   : > { %v332_v25 = vmul.f32 %v965_v2, %v262_v24 }
  0x3a   : > { %469 = vxpose.xlu1.b32.cont [5/16] %v378_v46, 128 }
  0x3d   : > { %438 = vxpose.xlu0.b32.cont [6/16] %v379_v28, 128  ;;  %v403_v28 = vadd.f32 %v975_v6, %v332_v25  ;;  %v339_v25 = vmul.f32 %v1049_v56, %v269_v17 }
  0x3f   : > { %498 = vxpose.xlu2.b32.cont [2/16] %v403_v28, 128  ;;  %v410_v26 = vadd.f32 %v1052_v57, %v339_v25  ;;  %v271_v28 = vunpack.c.h.bf16 %v217_v7  ;;  %v565_v7 = vld [vmem:[%s1139_s26 + $0x20] sm:$0xff] }
  0x41   : > { %v341_v34 = vmul.f32 %v1049_v56, %v271_v28 }
  0x45   : > { %439 = vxpose.xlu0.b32.cont [7/16] %v381_v32, 128  ;;  %v261_v32 = vunpack.c.h.bf16 %v212_v8 }
  0x47   : > { %v331_v38 = vmul.f32 %v1049_v56, %v261_v32  ;;  %v274_v32 = vunpack.c.l.bf16 %v219_v29 }
  0x49   : > { %v402_v42 = vadd.f32 %v1052_v57, %v331_v38  ;;  %v344_v35 = vmul.f32 %v965_v2, %v274_v32  ;;  %v247_v38 = vunpack.c.h.bf16 %v1024_v39 }
  0x4d   : > { %440 = vxpose.xlu0.b32.cont [8/16] %v383_v36, 128  ;;  %v264_v36 = vunpack.c.l.bf16 %v214_v33 }
  0x4f   : > { %v334_v37 = vmul.f32 %v965_v2, %v264_v36  ;;  %v415_v36 = vadd.f32 %v975_v6, %v344_v35 }
  0x55   : > { %441 = vxpose.xlu0.b32.cont [9/16] %v385_v40, 128  ;;  %v405_v40 = vadd.f32 %v975_v6, %v334_v37  ;;  %v561_v37 = vld [vmem:[%s1139_s26] sm:$0xff] }
  0x57   : > { %499 = vxpose.xlu2.b32.cont [3/16] %v405_v40, 128  ;;  %v412_v40 = vadd.f32 %v1052_v57, %v341_v34 }
  0x5d   : > { %442 = vxpose.xlu0.b32.cont [10/16] %v387_v44, 128  ;;  %v263_v44 = vunpack.c.h.bf16 %v213_v21 }
  0x5f   : > { %v333_v50 = vmul.f32 %v1049_v56, %v263_v44  ;;  %v317_v44 = vmul.f32 %v1049_v56, %v247_v38 }
  0x61   : > { %v404_v53 = vadd.f32 %v1052_v57, %v333_v50  ;;  %v388_v39 = vadd.f32 %v1052_v57, %v317_v44 }
  0x65   : > { %443 = vxpose.xlu0.b32.cont [11/16] %v389_v48, 128  ;;  %v266_v48 = vunpack.c.l.bf16 %v215_v45 }
  0x67   : > { %v336_v49 = vmul.f32 %v965_v2, %v266_v48 }
  0x69   : > { %v407_v19 = vadd.f32 %v975_v6, %v336_v49 }
  0x6b   : > { %500 = vxpose.xlu2.b32.cont [4/16] %v407_v19, 128 }
  0x6d   : > { %444 = vxpose.xlu0.b32.cont [12/16] %v391_v52, 128  ;;  %v239_v52 = vunpack.c.h.bf16 %v1000_v23  ;;  %v241_v23 = vunpack.c.h.bf16 %v1006_v27  ;;  %v411_v27 = vadd.f32 %v975_v6, %v340_v12 }
  0x6f   : > { %v309_v59 = vmul.f32 %v1049_v56, %v239_v52  ;;  %v311_v8 = vmul.f32 %v1049_v56, %v241_v23  ;;  %v563_v52 = vld [vmem:[%s1139_s26 + $0x10] sm:$0xff] }
  0x71   : > { %v380_v61 = vadd.f32 %v1052_v57, %v309_v59  ;;  %v382_v10 = vadd.f32 %v1052_v57, %v311_v8  ;;  %v275_v59 = vunpack.c.h.bf16 %v219_v29  ;;  %v251_v8 = vunpack.c.h.bf16 %v1036_v47 }
  0x73   : > { %470 = vxpose.xlu1.b32.cont [6/16] %v380_v61, 128 }
  0x75   : > { %445 = vxpose.xlu0.b32.cont [13/16] %v393_v60, 128  ;;  %v268_v60 = vunpack.c.l.bf16 %v216_v55 }
  0x77   : > { %v338_v62 = vmul.f32 %v965_v2, %v268_v60  ;;  %v221_v60 = vld [vmem:[%s962_s22 + $0xc8] sm:$0xff] }
  0x78   : > { %v278_v63 = vunpack.c.l.bf16 %v221_v60 }
  0x79   : > { %v409_v0 = vadd.f32 %v975_v6, %v338_v62 }
  0x7b   : > { %501 = vxpose.xlu2.b32.cont [5/16] %v409_v0, 128  ;;  %471 = vxpose.xlu1.b32.cont [7/16] %v382_v10, 128 }
  0x7d   : > { %446 = vxpose.xlu0.b32.cont [14/16] %v395_v5, 128  ;;  %v267_v5 = vunpack.c.h.bf16 %v215_v45 }
  0x7f   : > { %v337_v13 = vmul.f32 %v1049_v56, %v267_v5 }
  0x81   : > { %v408_v16 = vadd.f32 %v1052_v57, %v337_v13  ;;  %v222_v13 = vld [vmem:[%s962_s22 + $0xd0] sm:$0xff] }
  0x83   : > { %502 = vxpose.xlu2.b32.cont [6/16] %v411_v27, 128  ;;  %472 = vxpose.xlu1.b32.cont [8/16] %v384_v22, 128  ;;  %v321_v27 = vmul.f32 %v1049_v56, %v251_v8  ;;  %v567_v22 = vld [vmem:[%s1139_s26 + $0x30] sm:$0xff] }
  0x85   : > { %447 = vxpose.xlu0.b32.cont [15/16] %v397_v18, 128  ;;  %v218_v18 = vld [vmem:[%s962_s22 + $0xb0] sm:$0xff]  ;;  %v392_v17 = vadd.f32 %v1052_v57, %v321_v27 }
  0x86   : > { %v272_v21 = vunpack.c.l.bf16 %v218_v18  ;;  %v273_v41 = vunpack.c.h.bf16 %v218_v18 }
  0x88   : > { %v342_v24 = vmul.f32 %v965_v2, %v272_v21  ;;  %v343_v50 = vmul.f32 %v1049_v56, %v273_v41  ;;  %v224_v41 = vld [vmem:[%s962_s22 + $0xe0] sm:$0xff] }
  0x89   : > { %v285_v8 = vunpack.c.h.bf16 %v224_v41 }
  0x8a   : > { %v413_v31 = vadd.f32 %v975_v6, %v342_v24  ;;  %v414_v55 = vadd.f32 %v1052_v57, %v343_v50  ;;  %v253_v24 = vunpack.c.h.bf16 %v1042_v51  ;;  %v571_v50 = vld [vmem:[%s1139_s26 + $0x50] sm:$0xff] }
  0x8c   : > { %503 = vxpose.xlu2.b32.cont [7/16] %v413_v31, 128  ;;  %v323_v28 = vmul.f32 %v1049_v56, %v253_v24 }
  0x8d   : > { %448 = vxpose.xlu0.b32.end [16/16] %v399_v30, 128  ;;  %v315_v30 = vmul.f32 %v1049_v56, %v245_v11  ;;  %v279_v11 = vunpack.c.h.bf16 %v221_v60 }
  0x8e   : > { %v394_v32 = vadd.f32 %v1052_v57, %v323_v28 }
  0x8f   : > { %v386_v33 = vadd.f32 %v1052_v57, %v315_v30  ;;  %v349_v51 = vmul.f32 %v1049_v56, %v279_v11 }
  0x91   : > { %473 = vxpose.xlu1.b32.cont [9/16] %v386_v33, 128 }
  0x94   : > { %504 = vxpose.xlu2.b32.cont [8/16] %v415_v36, 128  ;;  %v569_v36 = vld [vmem:[%s1139_s26 + $0x40] sm:$0xff] }
  0x95   : > { %529 = vxpose.xlu0.b32.start [1/16] %v402_v42, 128  ;;  %v220_v42 = vld [vmem:[%s962_s22 + $0xc0] sm:$0xff] }
  0x96   : > { %v276_v46 = vunpack.c.l.bf16 %v220_v42  ;;  %v277_v12 = vunpack.c.h.bf16 %v220_v42 }
  0x98   : > { %v346_v49 = vmul.f32 %v965_v2, %v276_v46  ;;  %v347_v47 = vmul.f32 %v1049_v56, %v277_v12 }
  0x99   : > { %474 = vxpose.xlu1.b32.cont [10/16] %v388_v39, 128 }
  0x9a   : > { %v417_v19 = vadd.f32 %v975_v6, %v346_v49  ;;  %v418_v31 = vadd.f32 %v1052_v57, %v347_v47 }
  0x9c   : > { %505 = vxpose.xlu2.b32.cont [9/16] %v417_v19, 128  ;;  %v257_v19 = vunpack.c.h.bf16 %v1064_v3 }
  0x9d   : > { %530 = vxpose.xlu0.b32.cont [2/16] %v404_v53, 128  ;;  %v249_v53 = vunpack.c.h.bf16 %v1030_v43  ;;  %v345_v43 = vmul.f32 %v1049_v56, %v275_v59 }
  0x9e   : > { %v327_v59 = vmul.f32 %v1049_v56, %v257_v19  ;;  %v593_v19 = vld [vmem:[%s1139_s26 + $0x100] sm:$0xff] }
  0x9f   : > { %v319_v61 = vmul.f32 %v1049_v56, %v249_v53  ;;  %v416_v10 = vadd.f32 %v1052_v57, %v345_v43  ;;  %v259_v43 = vunpack.c.h.bf16 %v1075_v14  ;;  %v355_v14 = vmul.f32 %v1049_v56, %v285_v8 }
  0xa1   : > { %v390_v0 = vadd.f32 %v1052_v57, %v319_v61  ;;  %v426_v47 = vadd.f32 %v1052_v57, %v355_v14 }
  0xa3   : > { %475 = vxpose.xlu1.b32.cont [11/16] %v390_v0, 128 }
  0xa5   : > { %531 = vxpose.xlu0.b32.cont [3/16] %v406_v1, 128  ;;  %v348_v1 = vmul.f32 %v965_v2, %v278_v63 }
  0xa7   : > { %v419_v5 = vadd.f32 %v975_v6, %v348_v1  ;;  %v573_v1 = vld [vmem:[%s1139_s26 + $0x60] sm:$0xff] }
  0xa9   : > { %506 = vxpose.xlu2.b32.cont [10/16] %v419_v5, 128 }
  0xab   : > { %476 = vxpose.xlu1.b32.cont [12/16] %v392_v17, 128 }
  0xad   : > { %532 = vxpose.xlu0.b32.cont [4/16] %v408_v16, 128  ;;  %v280_v16 = vunpack.c.l.bf16 %v222_v13 }
  0xaf   : > { %v350_v20 = vmul.f32 %v965_v2, %v280_v16 }
  0xb1   : > { %v421_v21 = vadd.f32 %v975_v6, %v350_v20 }
  0xb3   : > { %507 = vxpose.xlu2.b32.cont [11/16] %v421_v21, 128  ;;  %477 = vxpose.xlu1.b32.cont [13/16] %v394_v32, 128 }
  0xb5   : > { %533 = vxpose.xlu0.b32.cont [5/16] %v410_v26, 128  ;;  %v223_v26 = vld [vmem:[%s962_s22 + $0xd8] sm:$0xff] }
  0xb6   : > { %v282_v30 = vunpack.c.l.bf16 %v223_v26 }
  0xb8   : > { %v352_v35 = vmul.f32 %v965_v2, %v282_v30 }
  0xb9   : > { %v449_v15 = vpop.trf.xlu0 }
  0xba   : > { %v625_v45 = vadd.f32 %v561_v37, %v449_v15  ;;  %v423_v34 = vadd.f32 %v975_v6, %v352_v35  ;;  %v255_v37 = vunpack.c.h.bf16 %v1055_v58  ;;  %v420_v15 = vadd.f32 %v1052_v57, %v349_v51 }
  0xbc   : > { %v689_v48 = vmax.f32 %v625_v45, 0.0  ;;  %508 = vxpose.xlu2.b32.cont [12/16] %v423_v34, 128  ;;  %v325_v42 = vmul.f32 %v1049_v56, %v255_v37  ;;  %v284_v45 = vunpack.c.l.bf16 %v224_v41  ;;  %v581_v41 = vld [vmem:[%s1139_s26 + $0xa0] sm:$0xff] }
  0xbd   : > { %534 = vxpose.xlu0.b32.cont [6/16] %v412_v40, 128  ;;  %v281_v40 = vunpack.c.h.bf16 %v222_v13 }
  0xbe   : > { %753 = vst [vmem:[%s1152_s29] sm:$0xff] %v689_v48  ;;  %v396_v46 = vadd.f32 %v1052_v57, %v325_v42  ;;  %v354_v48 = vmul.f32 %v965_v2, %v284_v45 }
  0xbf   : > { %v351_v58 = vmul.f32 %v1049_v56, %v281_v40 }
  0xc0   : > { %478 = vxpose.xlu1.b32.cont [14/16] %v396_v46, 128  ;;  %v425_v49 = vadd.f32 %v975_v6, %v354_v48 }
  0xc1   : > { %v450_v54 = vpop.trf.xlu0  ;;  %v422_v53 = vadd.f32 %v1052_v57, %v351_v58 }
  0xc2   : > { %v627_v62 = vadd.f32 %v563_v52, %v450_v54  ;;  %v283_v54 = vunpack.c.h.bf16 %v223_v26 }
  0xc4   : > { %v691_v23 = vmax.f32 %v627_v62, 0.0  ;;  %509 = vxpose.xlu2.b32.cont [13/16] %v425_v49, 128  ;;  %v398_v62 = vadd.f32 %v1052_v57, %v327_v59  ;;  %v353_v3 = vmul.f32 %v1049_v56, %v283_v54 }
  0xc5   : > { %535 = vxpose.xlu0.b32.cont [7/16] %v414_v55, 128  ;;  %v225_v55 = vld [vmem:[%s962_s22 + $0xe8] sm:$0xff] }
  0xc6   : > { %755 = vst [vmem:[%s1152_s29 + $0x10] sm:$0xff] %v691_v23  ;;  %v286_v61 = vunpack.c.l.bf16 %v225_v55  ;;  %v287_v21 = vunpack.c.h.bf16 %v225_v55 }
  0xc8   : > { %v356_v0 = vmul.f32 %v965_v2, %v286_v61  ;;  %479 = vxpose.xlu1.b32.cont [15/16] %v398_v62, 128  ;;  %v357_v26 = vmul.f32 %v1049_v56, %v287_v21 }
  0xc9   : > { %v451_v9 = vpop.trf.xlu0 }
  0xca   : > { %v629_v4 = vadd.f32 %v565_v7, %v451_v9  ;;  %v427_v23 = vadd.f32 %v975_v6, %v356_v0  ;;  %v424_v7 = vadd.f32 %v1052_v57, %v353_v3  ;;  %v226_v9 = vld [vmem:[%s962_s22 + $0xf0] sm:$0xff]  ;;  %v428_v32 = vadd.f32 %v1052_v57, %v357_v26  ;;  %v564_v0 = vld [vmem:[%s1139_s26 + $0x18] sm:$0xff] }
  0xcb   : > { %v288_v13 = vunpack.c.l.bf16 %v226_v9  ;;  %v595_v3 = vld [vmem:[%s1139_s26 + $0x110] sm:$0xff] }
  0xcc   : > { %v693_v18 = vmax.f32 %v629_v4, 0.0  ;;  %510 = vxpose.xlu2.b32.cont [14/16] %v427_v23, 128 }
  0xcd   : > { %536 = vxpose.xlu0.b32.cont [8/16] %v416_v10, 128  ;;  %v329_v10 = vmul.f32 %v1049_v56, %v259_v43  ;;  %v358_v16 = vmul.f32 %v965_v2, %v288_v13  ;;  %v589_v13 = vld [vmem:[%s1139_s26 + $0xe0] sm:$0xff] }
  0xce   : > { %757 = vst [vmem:[%s1152_s29 + $0x20] sm:$0xff] %v693_v18  ;;  %v575_v18 = vld [vmem:[%s1139_s26 + $0x70] sm:$0xff] }
  0xcf   : > { %v400_v27 = vadd.f32 %v1052_v57, %v329_v10  ;;  %v429_v17 = vadd.f32 %v975_v6, %v358_v16 }
  0xd1   : > { %v452_v25 = vpop.trf.xlu0  ;;  %480 = vxpose.xlu1.b32.end [16/16] %v400_v27, 128  ;;  %v566_v27 = vld [vmem:[%s1139_s26 + $0x28] sm:$0xff] }
  0xd2   : > { %v631_v29 = vadd.f32 %v567_v22, %v452_v25  ;;  %v227_v22 = vld [vmem:[%s962_s22 + $0xf8] sm:$0xff] }
  0xd3   : > { %v290_v25 = vunpack.c.l.bf16 %v227_v22  ;;  %v291_v37 = vunpack.c.h.bf16 %v227_v22 }
  0xd4   : > { %v695_v33 = vmax.f32 %v631_v29, 0.0  ;;  %511 = vxpose.xlu2.b32.cont [15/16] %v429_v17, 128  ;;  %v577_v29 = vld [vmem:[%s1139_s26 + $0x80] sm:$0xff] }
  0xd5   : > { %537 = vxpose.xlu0.b32.cont [9/16] %v418_v31, 128  ;;  %v360_v11 = vmul.f32 %v965_v2, %v290_v25  ;;  %v579_v2 = vld [vmem:[%s1139_s26 + $0x90] sm:$0xff]  ;;  %v361_v40 = vmul.f32 %v1049_v56, %v291_v37 }
  0xd6   : > { %759 = vst [vmem:[%s1152_s29 + $0x30] sm:$0xff] %v695_v33  ;;  %v289_v33 = vunpack.c.h.bf16 %v226_v9  ;;  %v591_v25 = vld [vmem:[%s1139_s26 + $0xf0] sm:$0xff] }
  0xd7   : > { %v431_v28 = vadd.f32 %v975_v6, %v360_v11  ;;  %v599_v11 = vld [vmem:[%s1139_s26 + $0x130] sm:$0xff] }
  0xd8   : > { %v359_v34 = vmul.f32 %v1049_v56, %v289_v33  ;;  %v585_v56 = vld [vmem:[%s1139_s26 + $0xc0] sm:$0xff] }
  0xd9   : > { %v453_v38 = vpop.trf.xlu0 }
  0xda   : > { %v633_v44 = vadd.f32 %v569_v36, %v453_v38  ;;  %v430_v6 = vadd.f32 %v1052_v57, %v359_v34 }
  0xdc   : > { %v697_v39 = vmax.f32 %v633_v44, 0.0  ;;  %512 = vxpose.xlu2.b32.end [16/16] %v431_v28, 128  ;;  %v432_v44 = vadd.f32 %v1052_v57, %v361_v40 }
  0xdd   : > { %538 = vxpose.xlu0.b32.cont [10/16] %v420_v15, 128 }
  0xde   : > { %761 = vst [vmem:[%s1152_s29 + $0x40] sm:$0xff] %v697_v39  ;;  %v583_v39 = vld [vmem:[%s1139_s26 + $0xb0] sm:$0xff] }
  0xe1   : > { %v454_v52 = vpop.trf.xlu0 }
  0xe2   : > { %v635_v60 = vadd.f32 %v571_v50, %v454_v52  ;;  %v562_v50 = vld [vmem:[%s1139_s26 + $0x8] sm:$0xff] }
  0xe4   : > { %v699_v63 = vmax.f32 %v635_v60, 0.0 }
  0xe5   : > { %539 = vxpose.xlu0.b32.cont [11/16] %v422_v53, 128 }
  0xe6   : > { %763 = vst [vmem:[%s1152_s29 + $0x50] sm:$0xff] %v699_v63  ;;  %v587_v63 = vld [vmem:[%s1139_s26 + $0xd0] sm:$0xff] }
  0xe9   : > { %v455_v5 = vpop.trf.xlu0 }
  0xea   : > { %v637_v12 = vadd.f32 %v573_v1, %v455_v5 }
  0xec   : > { %v701_v4 = vmax.f32 %v637_v12, 0.0 }
  0xed   : > { %540 = vxpose.xlu0.b32.cont [12/16] %v424_v7, 128 }
  0xee   : > { %765 = vst [vmem:[%s1152_s29 + $0x60] sm:$0xff] %v701_v4  ;;  %v597_v4 = vld [vmem:[%s1139_s26 + $0x120] sm:$0xff] }
  0xf1   : > { %v456_v20 = vpop.trf.xlu0 }
  0xf2   : > { %v639_v24 = vadd.f32 %v575_v18, %v456_v20 }
  0xf4   : > { %v703_v31 = vmax.f32 %v639_v24, 0.0 }
  0xf5   : > { %541 = vxpose.xlu0.b32.cont [13/16] %v426_v47, 128 }
  0xf6   : > { %767 = vst [vmem:[%s1152_s29 + $0x70] sm:$0xff] %v703_v31  ;;  %v568_v31 = vld [vmem:[%s1139_s26 + $0x38] sm:$0xff] }
  0xf9   : > { %v457_v30 = vpop.trf.xlu0 }
  0xfa   : > { %v641_v35 = vadd.f32 %v577_v29, %v457_v30 }
  0xfc   : > { %v705_v51 = vmax.f32 %v641_v35, 0.0 }
  0xfd   : > { %542 = vxpose.xlu0.b32.cont [14/16] %v428_v32, 128  ;;  %v513_v57 = vpop.trf.xlu2  ;;  %v481_v55 = vpop.trf.xlu1 }
  0xfe   : > { %769 = vst [vmem:[%s1152_s29 + $0x80] sm:$0xff] %v705_v51  ;;  %v626_v54 = vadd.f32 %v562_v50, %v513_v57  ;;  %v657_v59 = vadd.f32 %v593_v19, %v481_v55 }
 0x100   : > { %v690_v61 = vmax.f32 %v626_v54, 0.0  ;;  %v721_v62 = vmax.f32 %v657_v59, 0.0  ;;  %v598_v59 = vld [vmem:[%s1139_s26 + $0x128] sm:$0xff] }
 0x101   : > { %v458_v36 = vpop.trf.xlu0 }
 0x102   : > { %v643_v38 = vadd.f32 %v579_v2, %v458_v36  ;;  %754 = vst [vmem:[%s1152_s29 + $0x8] sm:$0xff] %v690_v61  ;;  %v594_v2 = vld [vmem:[%s1139_s26 + $0x108] sm:$0xff]  ;;  %v605_v61 = vld [vmem:[%s1139_s26 + $0x160] sm:$0xff] }
 0x103   : > { %785 = vst [vmem:[%s1152_s29 + $0x100] sm:$0xff] %v721_v62  ;;  %v570_v36 = vld [vmem:[%s1139_s26 + $0x48] sm:$0xff] }
 0x104   : > { %v707_v15 = vmax.f32 %v643_v38, 0.0 }
 0x105   : > { %543 = vxpose.xlu0.b32.cont [15/16] %v430_v6, 128  ;;  %v514_v1 = vpop.trf.xlu2  ;;  %v482_v7 = vpop.trf.xlu1  ;;  %v601_v6 = vld [vmem:[%s1139_s26 + $0x140] sm:$0xff] }
 0x106   : > { %771 = vst [vmem:[%s1152_s29 + $0x90] sm:$0xff] %v707_v15  ;;  %v628_v5 = vadd.f32 %v564_v0, %v514_v1  ;;  %v659_v8 = vadd.f32 %v595_v3, %v482_v7 }
 0x108   : > { %v692_v10 = vmax.f32 %v628_v5, 0.0  ;;  %v723_v12 = vmax.f32 %v659_v8, 0.0  ;;  %v600_v8 = vld [vmem:[%s1139_s26 + $0x138] sm:$0xff] }
 0x109   : > { %v459_v42 = vpop.trf.xlu0 }
 0x10a   : > { %v645_v45 = vadd.f32 %v581_v41, %v459_v42  ;;  %756 = vst [vmem:[%s1152_s29 + $0x18] sm:$0xff] %v692_v10  ;;  %v607_v10 = vld [vmem:[%s1139_s26 + $0x170] sm:$0xff] }
 0x10b   : > { %787 = vst [vmem:[%s1152_s29 + $0x110] sm:$0xff] %v723_v12 }
 0x10c   : > { %v709_v46 = vmax.f32 %v645_v45, 0.0 }
 0x10d   : > { %544 = vxpose.xlu0.b32.end [16/16] %v432_v44, 128  ;;  %v515_v14 = vpop.trf.xlu2  ;;  %v483_v20 = vpop.trf.xlu1 }
 0x10e   : > { %773 = vst [vmem:[%s1152_s29 + $0xa0] sm:$0xff] %v709_v46  ;;  %v630_v18 = vadd.f32 %v566_v27, %v515_v14  ;;  %v661_v47 = vadd.f32 %v597_v4, %v483_v20 }
 0x110   : > { %v694_v22 = vmax.f32 %v630_v18, 0.0  ;;  %v725_v24 = vmax.f32 %v661_v47, 0.0  ;;  %v602_v47 = vld [vmem:[%s1139_s26 + $0x148] sm:$0xff] }
 0x111   : > { %v460_v48 = vpop.trf.xlu0 }
 0x112   : > { %v647_v58 = vadd.f32 %v583_v39, %v460_v48  ;;  %758 = vst [vmem:[%s1152_s29 + $0x28] sm:$0xff] %v694_v22  ;;  %v596_v39 = vld [vmem:[%s1139_s26 + $0x118] sm:$0xff]  ;;  %v609_v22 = vld [vmem:[%s1139_s26 + $0x180] sm:$0xff] }
 0x113   : > { %789 = vst [vmem:[%s1152_s29 + $0x120] sm:$0xff] %v725_v24  ;;  %v572_v48 = vld [vmem:[%s1139_s26 + $0x58] sm:$0xff] }
 0x114   : > { %v711_v49 = vmax.f32 %v647_v58, 0.0  ;;  %v603_v58 = vld [vmem:[%s1139_s26 + $0x150] sm:$0xff] }
 0x115   : > { %v516_v28 = vpop.trf.xlu2  ;;  %v484_v32 = vpop.trf.xlu1 }
 0x116   : > { %775 = vst [vmem:[%s1152_s29 + $0xb0] sm:$0xff] %v711_v49  ;;  %v632_v30 = vadd.f32 %v568_v31, %v516_v28  ;;  %v663_v33 = vadd.f32 %v599_v11, %v484_v32 }
 0x118   : > { %v696_v51 = vmax.f32 %v632_v30, 0.0  ;;  %v727_v34 = vmax.f32 %v663_v33, 0.0  ;;  %v604_v33 = vld [vmem:[%s1139_s26 + $0x158] sm:$0xff] }
 0x119   : > { %v461_v52 = vpop.trf.xlu0 }
 0x11a   : > { %v649_v53 = vadd.f32 %v585_v56, %v461_v52  ;;  %760 = vst [vmem:[%s1152_s29 + $0x38] sm:$0xff] %v696_v51  ;;  %v611_v51 = vld [vmem:[%s1139_s26 + $0x190] sm:$0xff] }
 0x11b   : > { %791 = vst [vmem:[%s1152_s29 + $0x130] sm:$0xff] %v727_v34 }
 0x11c   : > { %v713_v60 = vmax.f32 %v649_v53, 0.0 }
 0x11d   : > { %v517_v38 = vpop.trf.xlu2  ;;  %v485_v41 = vpop.trf.xlu1 }
 0x11e   : > { %777 = vst [vmem:[%s1152_s29 + $0xc0] sm:$0xff] %v713_v60  ;;  %v634_v40 = vadd.f32 %v570_v36, %v517_v38  ;;  %v665_v42 = vadd.f32 %v601_v6, %v485_v41  ;;  %v574_v60 = vld [vmem:[%s1139_s26 + $0x68] sm:$0xff] }
 0x120   : > { %v698_v45 = vmax.f32 %v634_v40, 0.0  ;;  %v729_v46 = vmax.f32 %v665_v42, 0.0  ;;  %v606_v42 = vld [vmem:[%s1139_s26 + $0x168] sm:$0xff] }
 0x121   : > { %v462_v23 = vpop.trf.xlu0 }
 0x122   : > { %v651_v43 = vadd.f32 %v587_v63, %v462_v23  ;;  %762 = vst [vmem:[%s1152_s29 + $0x48] sm:$0xff] %v698_v45  ;;  %v613_v45 = vld [vmem:[%s1139_s26 + $0x1a0] sm:$0xff] }
 0x123   : > { %793 = vst [vmem:[%s1152_s29 + $0x140] sm:$0xff] %v729_v46 }
 0x124   : > { %v715_v9 = vmax.f32 %v651_v43, 0.0 }
 0x125   : > { %v518_v56 = vpop.trf.xlu2  ;;  %v486_v52 = vpop.trf.xlu1 }
 0x126   : > { %779 = vst [vmem:[%s1152_s29 + $0xd0] sm:$0xff] %v715_v9  ;;  %v636_v19 = vadd.f32 %v572_v48, %v518_v56  ;;  %v667_v57 = vadd.f32 %v603_v58, %v486_v52  ;;  %v576_v9 = vld [vmem:[%s1139_s26 + $0x78] sm:$0xff] }
 0x128   : > { %v700_v54 = vmax.f32 %v636_v19, 0.0  ;;  %v731_v55 = vmax.f32 %v667_v57, 0.0  ;;  %v608_v57 = vld [vmem:[%s1139_s26 + $0x178] sm:$0xff] }
 0x129   : > { %v463_v16 = vpop.trf.xlu0 }
 0x12a   : > { %v653_v17 = vadd.f32 %v589_v13, %v463_v16  ;;  %764 = vst [vmem:[%s1152_s29 + $0x58] sm:$0xff] %v700_v54  ;;  %v615_v54 = vld [vmem:[%s1139_s26 + $0x1b0] sm:$0xff] }
 0x12b   : > { %795 = vst [vmem:[%s1152_s29 + $0x150] sm:$0xff] %v731_v55 }
 0x12c   : > { %v717_v21 = vmax.f32 %v653_v17, 0.0 }
 0x12d   : > { %v519_v63 = vpop.trf.xlu2  ;;  %v487_v23 = vpop.trf.xlu1 }
 0x12e   : > { %781 = vst [vmem:[%s1152_s29 + $0xe0] sm:$0xff] %v717_v21  ;;  %v638_v3 = vadd.f32 %v574_v60, %v519_v63  ;;  %v669_v1 = vadd.f32 %v605_v61, %v487_v23  ;;  %v578_v21 = vld [vmem:[%s1139_s26 + $0x88] sm:$0xff] }
 0x130   : > { %v702_v5 = vmax.f32 %v638_v3, 0.0  ;;  %v733_v7 = vmax.f32 %v669_v1, 0.0  ;;  %v610_v1 = vld [vmem:[%s1139_s26 + $0x188] sm:$0xff] }
 0x131   : > { %v464_v26 = vpop.trf.xlu0 }
 0x132   : > { %v655_v29 = vadd.f32 %v591_v25, %v464_v26  ;;  %766 = vst [vmem:[%s1152_s29 + $0x68] sm:$0xff] %v702_v5  ;;  %v617_v5 = vld [vmem:[%s1139_s26 + $0x1c0] sm:$0xff] }
 0x133   : > { %797 = vst [vmem:[%s1152_s29 + $0x160] sm:$0xff] %v733_v7 }
 0x134   : > { %v719_v35 = vmax.f32 %v655_v29, 0.0 }
 0x135   : > { %v520_v13 = vpop.trf.xlu2  ;;  %v488_v16 = vpop.trf.xlu1 }
 0x136   : > { %783 = vst [vmem:[%s1152_s29 + $0xf0] sm:$0xff] %v719_v35  ;;  %v640_v4 = vadd.f32 %v576_v9, %v520_v13  ;;  %v671_v14 = vadd.f32 %v607_v10, %v488_v16  ;;  %v580_v35 = vld [vmem:[%s1139_s26 + $0x98] sm:$0xff] }
 0x138   : > { %v704_v18 = vmax.f32 %v640_v4, 0.0  ;;  %v735_v20 = vmax.f32 %v671_v14, 0.0  ;;  %v612_v14 = vld [vmem:[%s1139_s26 + $0x198] sm:$0xff] }
 0x139   : > { %v545_v37 = vpop.trf.xlu0 }
 0x13a   : > { %v658_v15 = vadd.f32 %v594_v2, %v545_v37  ;;  %768 = vst [vmem:[%s1152_s29 + $0x78] sm:$0xff] %v704_v18  ;;  %v619_v18 = vld [vmem:[%s1139_s26 + $0x1d0] sm:$0xff] }
 0x13b   : > { %799 = vst [vmem:[%s1152_s29 + $0x170] sm:$0xff] %v735_v20 }
 0x13c   : > { %v722_v44 = vmax.f32 %v658_v15, 0.0 }
 0x13d   : > { %v521_v25 = vpop.trf.xlu2  ;;  %v489_v26 = vpop.trf.xlu1 }
 0x13e   : > { %786 = vst [vmem:[%s1152_s29 + $0x108] sm:$0xff] %v722_v44  ;;  %v642_v11 = vadd.f32 %v578_v21, %v521_v25  ;;  %v673_v28 = vadd.f32 %v609_v22, %v489_v26  ;;  %v582_v44 = vld [vmem:[%s1139_s26 + $0xa8] sm:$0xff] }
 0x140   : > { %v706_v30 = vmax.f32 %v642_v11, 0.0  ;;  %v737_v32 = vmax.f32 %v673_v28, 0.0  ;;  %v614_v28 = vld [vmem:[%s1139_s26 + $0x1a8] sm:$0xff] }
 0x141   : > { %v546_v49 = vpop.trf.xlu0 }
 0x142   : > { %v660_v50 = vadd.f32 %v596_v39, %v546_v49  ;;  %770 = vst [vmem:[%s1152_s29 + $0x88] sm:$0xff] %v706_v30  ;;  %v621_v30 = vld [vmem:[%s1139_s26 + $0x1e0] sm:$0xff] }
 0x143   : > { %801 = vst [vmem:[%s1152_s29 + $0x180] sm:$0xff] %v737_v32 }
 0x144   : > { %v724_v53 = vmax.f32 %v660_v50, 0.0 }
 0x145   : > { %v522_v2 = vpop.trf.xlu2  ;;  %v490_v37 = vpop.trf.xlu1 }
 0x146   : > { %788 = vst [vmem:[%s1152_s29 + $0x118] sm:$0xff] %v724_v53  ;;  %v644_v6 = vadd.f32 %v580_v35, %v522_v2  ;;  %v675_v38 = vadd.f32 %v611_v51, %v490_v37  ;;  %v584_v53 = vld [vmem:[%s1139_s26 + $0xb8] sm:$0xff] }
 0x148   : > { %v708_v40 = vmax.f32 %v644_v6, 0.0  ;;  %v739_v41 = vmax.f32 %v675_v38, 0.0  ;;  %v616_v38 = vld [vmem:[%s1139_s26 + $0x1b8] sm:$0xff] }
 0x149   : > { %v547_v62 = vpop.trf.xlu0 }
 0x14a   : > { %v662_v0 = vadd.f32 %v598_v59, %v547_v62  ;;  %772 = vst [vmem:[%s1152_s29 + $0x98] sm:$0xff] %v708_v40  ;;  %v623_v40 = vld [vmem:[%s1139_s26 + $0x1f0] sm:$0xff] }
 0x14b   : > { %803 = vst [vmem:[%s1152_s29 + $0x190] sm:$0xff] %v739_v41 }
 0x14c   : > { %v726_v43 = vmax.f32 %v662_v0, 0.0 }
 0x14d   : > { %v523_v39 = vpop.trf.xlu2  ;;  %v491_v49 = vpop.trf.xlu1 }
 0x14e   : > { %790 = vst [vmem:[%s1152_s29 + $0x128] sm:$0xff] %v726_v43  ;;  %v646_v58 = vadd.f32 %v582_v44, %v523_v39  ;;  %v677_v56 = vadd.f32 %v613_v45, %v491_v49  ;;  %v586_v43 = vld [vmem:[%s1139_s26 + $0xc8] sm:$0xff] }
 0x150   : > { %v710_v19 = vmax.f32 %v646_v58, 0.0  ;;  %v741_v52 = vmax.f32 %v677_v56, 0.0  ;;  %v618_v56 = vld [vmem:[%s1139_s26 + $0x1c8] sm:$0xff] }
 0x151   : > { %v548_v12 = vpop.trf.xlu0 }
 0x152   : > { %v664_v27 = vadd.f32 %v600_v8, %v548_v12  ;;  %774 = vst [vmem:[%s1152_s29 + $0xa8] sm:$0xff] %v710_v19 }
 0x153   : > { %805 = vst [vmem:[%s1152_s29 + $0x1a0] sm:$0xff] %v741_v52 }
 0x154   : > { %v728_v17 = vmax.f32 %v664_v27, 0.0 }
 0x155   : > { %v524_v59 = vpop.trf.xlu2  ;;  %v492_v62 = vpop.trf.xlu1 }
 0x156   : > { %792 = vst [vmem:[%s1152_s29 + $0x138] sm:$0xff] %v728_v17  ;;  %v648_v61 = vadd.f32 %v584_v53, %v524_v59  ;;  %v679_v63 = vadd.f32 %v615_v54, %v492_v62  ;;  %v588_v17 = vld [vmem:[%s1139_s26 + $0xd8] sm:$0xff]  ;;  %v622_v59 = vld [vmem:[%s1139_s26 + $0x1e8] sm:$0xff] }
 0x158   : > { %v712_v3 = vmax.f32 %v648_v61, 0.0  ;;  %v743_v23 = vmax.f32 %v679_v63, 0.0  ;;  %v624_v63 = vld [vmem:[%s1139_s26 + $0x1f8] sm:$0xff] }
 0x159   : > { %v549_v24 = vpop.trf.xlu0 }
 0x15a   : > { %v666_v31 = vadd.f32 %v602_v47, %v549_v24  ;;  %776 = vst [vmem:[%s1152_s29 + $0xb8] sm:$0xff] %v712_v3 }
 0x15b   : > { %807 = vst [vmem:[%s1152_s29 + $0x1b0] sm:$0xff] %v743_v23 }
 0x15c   : > { %v730_v29 = vmax.f32 %v666_v31, 0.0 }
 0x15d   : > { %v525_v8 = vpop.trf.xlu2  ;;  %v493_v12 = vpop.trf.xlu1 }
 0x15e   : > { %794 = vst [vmem:[%s1152_s29 + $0x148] sm:$0xff] %v730_v29  ;;  %v650_v10 = vadd.f32 %v586_v43, %v525_v8  ;;  %v681_v13 = vadd.f32 %v617_v5, %v493_v12  ;;  %v590_v29 = vld [vmem:[%s1139_s26 + $0xe8] sm:$0xff] }
 0x160   : > { %v714_v4 = vmax.f32 %v650_v10, 0.0  ;;  %v745_v16 = vmax.f32 %v681_v13, 0.0 }
 0x161   : > { %v550_v34 = vpop.trf.xlu0 }
 0x162   : > { %v668_v36 = vadd.f32 %v604_v33, %v550_v34  ;;  %778 = vst [vmem:[%s1152_s29 + $0xc8] sm:$0xff] %v714_v4 }
 0x163   : > { %809 = vst [vmem:[%s1152_s29 + $0x1c0] sm:$0xff] %v745_v16 }
 0x164   : > { %v732_v15 = vmax.f32 %v668_v36, 0.0 }
 0x165   : > { %v526_v47 = vpop.trf.xlu2  ;;  %v494_v24 = vpop.trf.xlu1 }
 0x166   : > { %796 = vst [vmem:[%s1152_s29 + $0x158] sm:$0xff] %v732_v15  ;;  %v652_v22 = vadd.f32 %v588_v17, %v526_v47  ;;  %v683_v25 = vadd.f32 %v619_v18, %v494_v24  ;;  %v592_v15 = vld [vmem:[%s1139_s26 + $0xf8] sm:$0xff] }
 0x168   : > { %v716_v11 = vmax.f32 %v652_v22, 0.0  ;;  %v747_v26 = vmax.f32 %v683_v25, 0.0 }
 0x169   : > { %v551_v46 = vpop.trf.xlu0 }
 0x16a   : > { %v670_v48 = vadd.f32 %v606_v42, %v551_v46  ;;  %780 = vst [vmem:[%s1152_s29 + $0xd8] sm:$0xff] %v716_v11 }
 0x16b   : > { %811 = vst [vmem:[%s1152_s29 + $0x1d0] sm:$0xff] %v747_v26 }
 0x16c   : > { %v734_v50 = vmax.f32 %v670_v48, 0.0 }
 0x16d   : > { %v527_v33 = vpop.trf.xlu2  ;;  %v495_v34 = vpop.trf.xlu1 }
 0x16e   : > { %798 = vst [vmem:[%s1152_s29 + $0x168] sm:$0xff] %v734_v50  ;;  %v654_v51 = vadd.f32 %v590_v29, %v527_v33  ;;  %v685_v2 = vadd.f32 %v621_v30, %v495_v34 }
 0x170   : > { %v718_v6 = vmax.f32 %v654_v51, 0.0  ;;  %v749_v37 = vmax.f32 %v685_v2, 0.0 }
 0x171   : > { %v552_v55 = vpop.trf.xlu0 }
 0x172   : > { %v672_v60 = vadd.f32 %v608_v57, %v552_v55  ;;  %782 = vst [vmem:[%s1152_s29 + $0xe8] sm:$0xff] %v718_v6  ;;  %v620_v57 = vld [vmem:[%s1139_s26 + $0x1d8] sm:$0xff] }
 0x173   : > { %813 = vst [vmem:[%s1152_s29 + $0x1e0] sm:$0xff] %v749_v37 }
 0x174   : > { %v736_v0 = vmax.f32 %v672_v60, 0.0 }
 0x175   : > { %v528_v42 = vpop.trf.xlu2  ;;  %v496_v46 = vpop.trf.xlu1 }
 0x176   : > { %800 = vst [vmem:[%s1152_s29 + $0x178] sm:$0xff] %v736_v0  ;;  %v656_v45 = vadd.f32 %v592_v15, %v528_v42  ;;  %v687_v39 = vadd.f32 %v623_v40, %v496_v46 }
 0x178   : > { %v720_v58 = vmax.f32 %v656_v45, 0.0  ;;  %v751_v49 = vmax.f32 %v687_v39, 0.0 }
 0x179   : > { %v553_v7 = vpop.trf.xlu0 }
 0x17a   : > { %v674_v9 = vadd.f32 %v610_v1, %v553_v7  ;;  %784 = vst [vmem:[%s1152_s29 + $0xf8] sm:$0xff] %v720_v58 }
 0x17b   : > { %815 = vst [vmem:[%s1152_s29 + $0x1f0] sm:$0xff] %v751_v49 }
 0x17c   : > { %v738_v27 = vmax.f32 %v674_v9, 0.0 }
 0x17e   : > { %802 = vst [vmem:[%s1152_s29 + $0x188] sm:$0xff] %v738_v27 }
 0x181   : > { %v554_v20 = vpop.trf.xlu0 }
 0x182   : > { %v676_v21 = vadd.f32 %v612_v14, %v554_v20 }
 0x184   : > { %v740_v31 = vmax.f32 %v676_v21, 0.0 }
 0x186   : > { %804 = vst [vmem:[%s1152_s29 + $0x198] sm:$0xff] %v740_v31 }
 0x189   : > { %v555_v32 = vpop.trf.xlu0 }
 0x18a   : > { %v678_v35 = vadd.f32 %v614_v28, %v555_v32 }
 0x18c   : > { %v742_v36 = vmax.f32 %v678_v35, 0.0 }
 0x18e   : > { %806 = vst [vmem:[%s1152_s29 + $0x1a8] sm:$0xff] %v742_v36 }
 0x191   : > { %v556_v41 = vpop.trf.xlu0 }
 0x192   : > { %v680_v44 = vadd.f32 %v616_v38, %v556_v41 }
 0x194   : > { %v744_v48 = vmax.f32 %v680_v44, 0.0 }
 0x196   : > { %808 = vst [vmem:[%s1152_s29 + $0x1b8] sm:$0xff] %v744_v48 }
 0x199   : > { %v557_v50 = vpop.trf.xlu0 }
 0x19a   : > { %v682_v19 = vadd.f32 %v618_v56, %v557_v50 }
 0x19c   : > { %v746_v52 = vmax.f32 %v682_v19, 0.0 }
 0x19e   : > { %810 = vst [vmem:[%s1152_s29 + $0x1c8] sm:$0xff] %v746_v52 }
 0x1a1   : > { %v558_v53 = vpop.trf.xlu0 }
 0x1a2   : > { %v684_v54 = vadd.f32 %v620_v57, %v558_v53 }
 0x1a4   : > { %v748_v55 = vmax.f32 %v684_v54, 0.0 }
 0x1a6   : > { %812 = vst [vmem:[%s1152_s29 + $0x1d8] sm:$0xff] %v748_v55 }
 0x1a9   : > { %v559_v60 = vpop.trf.xlu0 }
 0x1aa   : > { %v686_v61 = vadd.f32 %v622_v59, %v559_v60 }
 0x1ac   : > { %v750_v62 = vmax.f32 %v686_v61, 0.0 }
 0x1ae   : > { %814 = vst [vmem:[%s1152_s29 + $0x1e8] sm:$0xff] %v750_v62 }
 0x1b1   : > { %v560_v0 = vpop.trf.xlu0 }
 0x1b2   : > { %v688_v3 = vadd.f32 %v624_v63, %v560_v0 }
 0x1b4   : > { %v752_v23 = vmax.f32 %v688_v3, 0.0 }
 0x1b6   : > { %816 = vst [vmem:[%s1152_s29 + $0x1f8] sm:$0xff] %v752_v23 }
 0x1b7 PF: > { %s13_s12 = sadd.s32 1, %s916_s12  }
 0x1b8   : > { %p10_p5 = scmp.ge.s32.totalorder %s13_s12, 4  }
 0x1ba   :  { %12 = sbr.rel (!%p10_p5) target bundleno = 1 (0x1), region = 66 }

// kernel: block_forward.6
= control target key start
LH: loop header
LB: loop body
LE: loop exit
PB: predicated region body
PF: predicated region fallthrough
CT: control target
= control target key end

     0   :  { %s1281_s15 = smov 0   ;;  %s1796_s0 = inlined_call_operand.vmem [shape: bf16[512,128], index: 0, kind: input, shape index: {}]   ;;  %s1797_s1 = inlined_call_operand.vmem [shape: f32[2,128], index: 1, kind: input, shape index: {}]   ;;  %s1798_s2 = inlined_call_operand.vmem [shape: bf16[128,256], index: 2, kind: input, shape index: {}]   ;;  %s1799_s3 = inlined_call_operand.vmem [shape: bf16[512,256], index: 3, kind: output, shape index: {0}]   ;;  %s1800_s4 = inlined_call_operand.vmem [shape: f32[2,2,256], index: 4, kind: output, shape index: {1}]  }
   0x1 LB: > { %s1287_s16 = sadd.s32 4294967295, %s1254_s15   ;;  %p1051_p0 = scmp.ge.s32.totalorder %s1254_s15, 1  ;;  %s1254_s15 = sphi %s1281_s15, %s15_s15  }
   0x2   : > { %p166_p1 = scmp.lt.s32.totalorder %s1254_s15, 3 }
   0x4   : > { %p167_p2 = pnand %p1051_p0, %p166_p1 }
   0x5   : > { %s1052_s25 = sshll.u32 (!%p167_p2), %s1287_s16, 5  ;;  %p211_p4 = scmp.lt.s32.totalorder (!%p167_p2), %s1287_s16, 1 }
   0x6   : > { %170 = sbr.rel (%p167_p2) target bundleno = 345 (0x159), region = 32  ;;  %p199_p3 = scmp.lt.s32.totalorder (!%p167_p2), %s1052_s25, 63 }
   0xb   : > { %v1117_v0 = vld [vmem:[%s1798_s2 + $0x70] sm:$0xf]  ;;  %v1142_v1 = vld [vmem:[%s1798_s2 + $0x74] sm:$0xf0]  ;;  %v1141_v2 = vld [vmem:[%s1798_s2 + $0x74] sm:$0xf] }
   0xc   : > { %v1118_v3 = vor.u32 %v1142_v1, %v1117_v0  ;;  %v1119_v4 = vld [vmem:[%s1798_s2 + $0x78] sm:$0xf0]  ;;  %v1109_v5 = vld [vmem:[%s1798_s2 + $0x60] sm:$0xf]  ;;  %v1140_v6 = vld [vmem:[%s1798_s2 + $0x64] sm:$0xf0] }
   0xd   : > { %v1122_v7 = vor.u32 %v1141_v2, %v1119_v4  ;;  %v1139_v8 = vld [vmem:[%s1798_s2 + $0x64] sm:$0xf]  ;;  %v1111_v9 = vld [vmem:[%s1798_s2 + $0x68] sm:$0xf0]  ;;  %v1110_v10 = vor.u32 %v1140_v6, %v1109_v5  ;;  %v1101_v12 = vld [vmem:[%s1798_s2 + $0x50] sm:$0xf] }
   0xe   : > { %492 = vmatpush.bf16.msra.mxu0 %v1118_v3  ;;  %1222 = vmatpush.bf16.msra.mxu2 %v1118_v3  ;;  %v1114_v11 = vor.u32 %v1139_v8, %v1111_v9  ;;  %v1138_v13 = vld [vmem:[%s1798_s2 + $0x54] sm:$0xf0]  ;;  %v1137_v14 = vld [vmem:[%s1798_s2 + $0x54] sm:$0xf]  ;;  %v1103_v15 = vld [vmem:[%s1798_s2 + $0x58] sm:$0xf0] }
   0xf   : > { %581 = vmatpush.bf16.msra.mxu1 %v1122_v7  ;;  %1230 = vmatpush.bf16.msra.mxu3 %v1122_v7  ;;  %v1102_v16 = vor.u32 %v1138_v13, %v1101_v12  ;;  %v1106_v17 = vor.u32 %v1137_v14, %v1103_v15  ;;  %v1093_v18 = vld [vmem:[%s1798_s2 + $0x40] sm:$0xf]  ;;  %v1136_v19 = vld [vmem:[%s1798_s2 + $0x44] sm:$0xf0]  ;;  %v1135_v20 = vld [vmem:[%s1798_s2 + $0x44] sm:$0xf] }
  0x10   : > { %v1095_v21 = vld [vmem:[%s1798_s2 + $0x48] sm:$0xf0]  ;;  %v1094_v22 = vor.u32 %v1136_v19, %v1093_v18  ;;  %v1085_v24 = vld [vmem:[%s1798_s2 + $0x30] sm:$0xf]  ;;  %v1134_v25 = vld [vmem:[%s1798_s2 + $0x34] sm:$0xf0] }
  0x11   : > { %v1098_v23 = vor.u32 %v1135_v20, %v1095_v21  ;;  %v1133_v26 = vld [vmem:[%s1798_s2 + $0x34] sm:$0xf]  ;;  %v1087_v27 = vld [vmem:[%s1798_s2 + $0x38] sm:$0xf0]  ;;  %s1802_s25 = smov (!%p199_p3, %s1052_s25), 63  ;;  %v1086_v28 = vor.u32 %v1134_v25, %v1085_v24  ;;  %s1804_s16 = smov (!%p211_p4, %s1287_s16), 1 }
  0x12   : > { %493 = vmatpush.bf16.msra.mxu0 %v1110_v10  ;;  %1223 = vmatpush.bf16.msra.mxu2 %v1110_v10  ;;  %v1077_v29 = vld [vmem:[%s1798_s2 + $0x20] sm:$0xf]  ;;  %s1053_s10 = sshll.u32 %s1802_s25, 2  ;;  %v1090_v30 = vor.u32 %v1133_v26, %v1087_v27  ;;  %v1132_v31 = vld [vmem:[%s1798_s2 + $0x24] sm:$0xf0]  ;;  %vm946_vm0 = vcmask 1040384  }
  0x13   : > { %582 = vmatpush.bf16.msra.mxu1 %v1114_v11  ;;  %1231 = vmatpush.bf16.msra.mxu3 %v1114_v11  ;;  %v1131_v32 = vld [vmem:[%s1798_s2 + $0x24] sm:$0xf]  ;;  %s1367_s19 = scalar_lea.vmem %s1796_s0, %s1053_s10  ;;  %v1372_v33 = vld [vmem:[%s1797_s1] ss:$0 sm:$0xff]  ;;  %v1079_v34 = vld [vmem:[%s1798_s2 + $0x28] sm:$0xf0]  ;;  %v1078_v40 = vor.u32 %v1132_v31, %v1077_v29 }
  0x14   : > { %v1144_v35 = vld [vmem:[%s1367_s19] sm:$0xff]   ;;  %v1082_v43 = vor.u32 %v1131_v32, %v1079_v34  ;;  %v1069_v44 = vld [vmem:[%s1798_s2 + $0x10] sm:$0xf]  ;;  %v1130_v45 = vld [vmem:[%s1798_s2 + $0x14] sm:$0xf0]  ;;  %vm952_vm1 = vcmask 1041408  }
  0x15   : > { %v1214_v36 = vld [vmem:[%s1367_s19 + $0x40] sm:$0xff]   ;;  %v1145_v37 = vunpack.c.l.bf16 %v1144_v35  ;;  %v1146_v38 = vunpack.c.h.bf16 %v1144_v35  ;;  %v1129_v48 = vld [vmem:[%s1798_s2 + $0x14] sm:$0xf]  ;;  %v1071_v49 = vld [vmem:[%s1798_s2 + $0x18] sm:$0xf0]  ;;  %v1070_v54 = vor.u32 %v1130_v45, %v1069_v44 }
  0x16   : > { %494 = vmatpush.bf16.msra.mxu0 %v1102_v16  ;;  %1224 = vmatpush.bf16.msra.mxu2 %v1102_v16  ;;  %v1382_v39 = vld [vmem:[%s1797_s1 + $0x1] ss:$0 sm:$0xff]  ;;  %v1177_v41 = vunpack.c.l.bf16 %v1214_v36  ;;  %v1178_v42 = vunpack.c.h.bf16 %v1214_v36  ;;  %v1074_v57 = vor.u32 %v1129_v48, %v1071_v49  ;;  %v1128_v59 = vld [vmem:[%s1798_s2 + $0x4] sm:$0xf0]  ;;  %v1127_v60 = vld [vmem:[%s1798_s2 + $0x4] sm:$0xf] }
  0x17   : > { %583 = vmatpush.bf16.msra.mxu1 %v1106_v17  ;;  %1232 = vmatpush.bf16.msra.mxu3 %v1106_v17  ;;  %v282_v46 = vmul.f32 %v1372_v33, %v1145_v37  ;;  %v283_v47 = vmul.f32 %v1372_v33, %v1146_v38  ;;  %v1061_v58 = vld [vmem:[%s1798_s2] sm:$0xf]  ;;  %v1063_v61 = vld [vmem:[%s1798_s2 + $0x8] sm:$0xf0]  ;;  %v1216_v25 = vld [vmem:[%s1367_s19 + $0x50] sm:$0xff]  }
  0x18   : > { %v298_v50 = vmul.f32 %v1372_v33, %v1177_v41  ;;  %v299_v51 = vmul.f32 %v1372_v33, %v1178_v42  ;;  %v1207_v0 = vld [vmem:[%s1367_s19 + $0x8] sm:$0xff]   ;;  %v1062_v3 = vor.u32 %v1128_v59, %v1061_v58  ;;  %v1066_v5 = vor.u32 %v1127_v60, %v1063_v61  ;;  %v1209_v44 = vld [vmem:[%s1367_s19 + $0x18] sm:$0xff]  }
  0x19   : > { %v316_v52 = vadd.f32 %v1382_v39, %v282_v46  ;;  %v317_v53 = vadd.f32 %v1382_v39, %v283_v47  ;;  %v1215_v4 = vld [vmem:[%s1367_s19 + $0x48] sm:$0xff]   ;;  %v1149_v6 = vunpack.c.l.bf16 %v1207_v0  ;;  %v1150_v7 = vunpack.c.h.bf16 %v1207_v0  ;;  %v1217_v47 = vld [vmem:[%s1367_s19 + $0x58] sm:$0xff]   ;;  %v1210_v0 = vld [vmem:[%s1367_s19 + $0x20] sm:$0xff]  }
  0x1a   : > { %495 = vmatpush.bf16.msra.mxu0 %v1094_v22  ;;  %1225 = vmatpush.bf16.msra.mxu2 %v1094_v22  ;;  %v332_v55 = vadd.f32 %v1382_v39, %v298_v50  ;;  %v333_v56 = vadd.f32 %v1382_v39, %v299_v51  ;;  %v1181_v10 = vunpack.c.l.bf16 %v1215_v4  ;;  %v1182_v11 = vunpack.c.h.bf16 %v1215_v4  ;;  %v1208_v22 = vld [vmem:[%s1367_s19 + $0x10] sm:$0xff]  }
  0x1b   : > { %584 = vmatpush.bf16.msra.mxu1 %v1098_v23  ;;  %1233 = vmatpush.bf16.msra.mxu3 %v1098_v23  ;;  %v348_v62 = vmax.f32 %v316_v52, 0.0  ;;  %v349_v63 = vmax.f32 %v317_v53, 0.0  ;;  %v284_v12 = vmul.f32 %v1372_v33, %v1149_v6  ;;  %v285_v13 = vmul.f32 %v1372_v33, %v1150_v7 }
  0x1c   : > { %v364_v1 = vmax.f32 %v332_v55, 0.0  ;;  %v365_v2 = vmax.f32 %v333_v56, 0.0  ;;  %v300_v14 = vmul.f32 %v1372_v33, %v1181_v10  ;;  %v301_v15 = vmul.f32 %v1372_v33, %v1182_v11 }
  0x1d   : > { %v380_v8 = vpack.c.bf16 %v349_v63, %v348_v62  ;;  %v318_v16 = vadd.f32 %v1382_v39, %v284_v12  ;;  %v319_v17 = vadd.f32 %v1382_v39, %v285_v13  ;;  %v1153_v26 = vunpack.c.l.bf16 %v1208_v22 }
  0x1e   : > { %496 = vmatpush.bf16.msra.mxu0 %v1086_v28  ;;  %1226 = vmatpush.bf16.msra.mxu2 %v1086_v28  ;;  %v388_v9 = vpack.c.bf16 %v365_v2, %v364_v1  ;;  %v334_v18 = vadd.f32 %v1382_v39, %v300_v14  ;;  %v335_v19 = vadd.f32 %v1382_v39, %v301_v15  ;;  %v1154_v27 = vunpack.c.h.bf16 %v1208_v22 }
  0x1f   : > { %585 = vmatpush.bf16.msra.mxu1 %v1090_v30  ;;  %1234 = vmatpush.bf16.msra.mxu3 %v1090_v30  ;;  %v350_v20 = vmax.f32 %v318_v16, 0.0  ;;  %v351_v21 = vmax.f32 %v319_v17, 0.0  ;;  %v1185_v30 = vunpack.c.l.bf16 %v1216_v25  ;;  %v1186_v31 = vunpack.c.h.bf16 %v1216_v25 }
  0x20   : > { %v366_v23 = vmax.f32 %v334_v18, 0.0  ;;  %v367_v24 = vmax.f32 %v335_v19, 0.0  ;;  %v286_v32 = vmul.f32 %v1372_v33, %v1153_v26  ;;  %v287_v34 = vmul.f32 %v1372_v33, %v1154_v27 }
  0x21   : > { %v381_v28 = vpack.c.bf16 %v351_v21, %v350_v20  ;;  %v302_v35 = vmul.f32 %v1372_v33, %v1185_v30  ;;  %v303_v36 = vmul.f32 %v1372_v33, %v1186_v31  ;;  %v1157_v49 = vunpack.c.l.bf16 %v1209_v44  ;;  %v1211_v20 = vld [vmem:[%s1367_s19 + $0x28] sm:$0xff]  }
  0x22   : > { %497 = vmatpush.bf16.msra.mxu0 %v1078_v40  ;;  %1227 = vmatpush.bf16.msra.mxu2 %v1078_v40  ;;  %v389_v29 = vpack.c.bf16 %v367_v24, %v366_v23  ;;  %v320_v37 = vadd.f32 %v1382_v39, %v286_v32  ;;  %v321_v38 = vadd.f32 %v1382_v39, %v287_v34  ;;  %v1158_v50 = vunpack.c.h.bf16 %v1209_v44  ;;  %v1219_v23 = vld [vmem:[%s1367_s19 + $0x68] sm:$0xff]  }
  0x23   : > { %586 = vmatpush.bf16.msra.mxu1 %v1082_v43  ;;  %1235 = vmatpush.bf16.msra.mxu3 %v1082_v43  ;;  %v336_v40 = vadd.f32 %v1382_v39, %v302_v35  ;;  %v337_v41 = vadd.f32 %v1382_v39, %v303_v36  ;;  %v1189_v52 = vunpack.c.l.bf16 %v1217_v47  ;;  %v1190_v53 = vunpack.c.h.bf16 %v1217_v47 }
  0x24   : > { %v352_v42 = vmax.f32 %v320_v37, 0.0  ;;  %v353_v43 = vmax.f32 %v321_v38, 0.0  ;;  %v289_v55 = vmul.f32 %v1372_v33, %v1158_v50  ;;  %v1161_v4 = vunpack.c.l.bf16 %v1210_v0 }
  0x25   : > { %v368_v45 = vmax.f32 %v336_v40, 0.0  ;;  %v369_v46 = vmax.f32 %v337_v41, 0.0  ;;  %v304_v56 = vmul.f32 %v1372_v33, %v1189_v52  ;;  %v1165_v25 = vunpack.c.l.bf16 %v1211_v20 }
  0x26   : > { %498 = vmatpush.bf16.msra.mxu0 %v1070_v54  ;;  %1228 = vmatpush.bf16.msra.mxu2 %v1070_v54  ;;  %v382_v48 = vpack.c.bf16 %v353_v43, %v352_v42  ;;  %v288_v54 = vmul.f32 %v1372_v33, %v1157_v49  ;;  %v323_v59 = vadd.f32 %v1382_v39, %v289_v55  ;;  %v1166_v26 = vunpack.c.h.bf16 %v1211_v20  ;;  %v1212_v42 = vld [vmem:[%s1367_s19 + $0x30] sm:$0xff]  }
  0x27   : > { %587 = vmatpush.bf16.msra.mxu1 %v1074_v57  ;;  %1236 = vmatpush.bf16.msra.mxu3 %v1074_v57  ;;  %v390_v51 = vpack.c.bf16 %v369_v46, %v368_v45  ;;  %v305_v57 = vmul.f32 %v1372_v33, %v1190_v53  ;;  %v338_v60 = vadd.f32 %v1382_v39, %v304_v56  ;;  %v1220_v45 = vld [vmem:[%s1367_s19 + $0x70] sm:$0xff]   ;;  %v1169_v46 = vunpack.c.l.bf16 %v1212_v42 }
  0x28   : > { %v322_v58 = vadd.f32 %v1382_v39, %v288_v54  ;;  %v355_v63 = vmax.f32 %v323_v59, 0.0  ;;  %v290_v10 = vmul.f32 %v1372_v33, %v1161_v4  ;;  %v292_v30 = vmul.f32 %v1372_v33, %v1165_v25 }
  0x29   : > { %v339_v61 = vadd.f32 %v1382_v39, %v305_v57  ;;  %v370_v1 = vmax.f32 %v338_v60, 0.0  ;;  %v293_v31 = vmul.f32 %v1372_v33, %v1166_v26  ;;  %v1170_v47 = vunpack.c.h.bf16 %v1212_v42 }
  0x2a   : > { %499 = vmatpush.bf16.msra.mxu0 %v1062_v3  ;;  %1229 = vmatpush.bf16.msra.mxu2 %v1062_v3  ;;  %v354_v62 = vmax.f32 %v322_v58, 0.0  ;;  %v1218_v3 = vld [vmem:[%s1367_s19 + $0x60] sm:$0xff]   ;;  %v324_v14 = vadd.f32 %v1382_v39, %v290_v10  ;;  %v326_v35 = vadd.f32 %v1382_v39, %v292_v30  ;;  %v1201_v50 = vunpack.c.l.bf16 %v1220_v45 }
  0x2b   : > { %588 = vmatpush.bf16.msra.mxu1 %v1066_v5  ;;  %1237 = vmatpush.bf16.msra.mxu3 %v1066_v5  ;;  %v371_v2 = vmax.f32 %v339_v61, 0.0  ;;  %v1162_v5 = vunpack.c.h.bf16 %v1210_v0  ;;  %v327_v36 = vadd.f32 %v1382_v39, %v293_v31  ;;  %v294_v52 = vmul.f32 %v1372_v33, %v1169_v46 }
  0x2c   : > { %v383_v6 = vpack.c.bf16 %v355_v63, %v354_v62  ;;  %v356_v18 = vmax.f32 %v324_v14, 0.0  ;;  %v358_v40 = vmax.f32 %v326_v35, 0.0  ;;  %v295_v53 = vmul.f32 %v1372_v33, %v1170_v47  ;;  %v1213_v62 = vld [vmem:[%s1367_s19 + $0x38] sm:$0xff]  }
  0x2d   : > { %500 = vmatmul.bf16.vlgmr.msra.gmra.mxu0 %v380_v8  ;;  %540 = vmatmul.bf16.vlgmr.msra.gmra.mxu2 %v388_v9  ;;  %v391_v7 = vpack.c.bf16 %v371_v2, %v370_v1  ;;  %v291_v11 = vmul.f32 %v1372_v33, %v1162_v5  ;;  %v359_v41 = vmax.f32 %v327_v36, 0.0  ;;  %v310_v54 = vmul.f32 %v1372_v33, %v1201_v50  ;;  %v1221_v1 = vld [vmem:[%s1367_s19 + $0x78] sm:$0xff]   ;;  %s1125_s19 = sshll.u32 %s1802_s25, 3  ;;  %s1126_s25 = sshll.u32 %s1804_s16, 2 }
  0x2e   : > { %589 = vmatmul.bf16.vlgmr.msra.gmra.mxu1 %v380_v8  ;;  %629 = vmatmul.bf16.vlgmr.msra.gmra.mxu3 %v388_v9  ;;  %v1193_v8 = vunpack.c.l.bf16 %v1218_v3  ;;  %v1194_v9 = vunpack.c.h.bf16 %v1218_v3  ;;  %v328_v56 = vadd.f32 %v1382_v39, %v294_v52  ;;  %v329_v57 = vadd.f32 %v1382_v39, %v295_v53  ;;  %s1490_s22 = scalar_lea.vmem %s1799_s3, %s1125_s19  ;;  %s215_s26 = scalar_lea.vmem %s1800_s4, %s1126_s25 }
  0x2f   : > { %v325_v15 = vadd.f32 %v1382_v39, %v291_v11  ;;  %v344_v58 = vadd.f32 %v1382_v39, %v310_v54  ;;  %v1173_v3 = vunpack.c.l.bf16 %v1213_v62  ;;  %v1174_v4 = vunpack.c.h.bf16 %v1213_v62 }
  0x30   : > { %v306_v12 = vmul.f32 %v1372_v33, %v1193_v8  ;;  %v307_v13 = vmul.f32 %v1372_v33, %v1194_v9  ;;  %v360_v60 = vmax.f32 %v328_v56, 0.0  ;;  %v361_v61 = vmax.f32 %v329_v57, 0.0 }
  0x31   : > { %v357_v19 = vmax.f32 %v325_v15, 0.0  ;;  %v376_v63 = vmax.f32 %v344_v58, 0.0  ;;  %v296_v8 = vmul.f32 %v1372_v33, %v1173_v3  ;;  %v297_v9 = vmul.f32 %v1372_v33, %v1174_v4 }
  0x32   : > { %v340_v16 = vadd.f32 %v1382_v39, %v306_v12  ;;  %v341_v17 = vadd.f32 %v1382_v39, %v307_v13  ;;  %v386_v2 = vpack.c.bf16 %v361_v61, %v360_v60 }
  0x33   : > { %v384_v24 = vpack.c.bf16 %v357_v19, %v356_v18  ;;  %v330_v12 = vadd.f32 %v1382_v39, %v296_v8  ;;  %v331_v13 = vadd.f32 %v1382_v39, %v297_v9 }
  0x34   : > { %v372_v21 = vmax.f32 %v340_v16, 0.0  ;;  %v373_v22 = vmax.f32 %v341_v17, 0.0 }
  0x35   : > { %v362_v16 = vmax.f32 %v330_v12, 0.0  ;;  %v363_v17 = vmax.f32 %v331_v13, 0.0 }
  0x36   : > { %v392_v27 = vpack.c.bf16 %v373_v22, %v372_v21 }
  0x37   : > { %v387_v20 = vpack.c.bf16 %v363_v17, %v362_v16 }
  0x3d   : > { %505 = vmatmul.bf16.gmra.mxu0 %v381_v28  ;;  %545 = vmatmul.bf16.gmra.mxu2 %v389_v29 }
  0x3e   : > { %594 = vmatmul.bf16.gmra.mxu1 %v381_v28  ;;  %634 = vmatmul.bf16.gmra.mxu3 %v389_v29  ;;  %v1197_v28 = vunpack.c.l.bf16 %v1219_v23  ;;  %v1198_v29 = vunpack.c.h.bf16 %v1219_v23 }
  0x40   : > { %v308_v32 = vmul.f32 %v1372_v33, %v1197_v28  ;;  %v309_v34 = vmul.f32 %v1372_v33, %v1198_v29 }
  0x42   : > { %v342_v37 = vadd.f32 %v1382_v39, %v308_v32  ;;  %v343_v38 = vadd.f32 %v1382_v39, %v309_v34 }
  0x44   : > { %v374_v43 = vmax.f32 %v342_v37, 0.0  ;;  %v375_v44 = vmax.f32 %v343_v38, 0.0 }
  0x46   : > { %v393_v49 = vpack.c.bf16 %v375_v44, %v374_v43 }
  0x4d   : > { %510 = vmatmul.bf16.gmra.mxu0 %v382_v48  ;;  %550 = vmatmul.bf16.gmra.mxu2 %v390_v51 }
  0x4e   : > { %599 = vmatmul.bf16.gmra.mxu1 %v382_v48  ;;  %639 = vmatmul.bf16.gmra.mxu3 %v390_v51  ;;  %v385_v48 = vpack.c.bf16 %v359_v41, %v358_v40  ;;  %v1202_v51 = vunpack.c.h.bf16 %v1220_v45 }
  0x50   : > { %v311_v55 = vmul.f32 %v1372_v33, %v1202_v51 }
  0x52   : > { %v345_v59 = vadd.f32 %v1382_v39, %v311_v55 }
  0x54   : > { %v377_v0 = vmax.f32 %v345_v59, 0.0 }
  0x56   : > { %v394_v5 = vpack.c.bf16 %v377_v0, %v376_v63 }
  0x5d   : > { %515 = vmatmul.bf16.gmra.mxu0 %v383_v6  ;;  %555 = vmatmul.bf16.gmra.mxu2 %v391_v7 }
  0x5e   : > { %604 = vmatmul.bf16.gmra.mxu1 %v383_v6  ;;  %644 = vmatmul.bf16.gmra.mxu3 %v391_v7  ;;  %v1205_v6 = vunpack.c.l.bf16 %v1221_v1  ;;  %v1206_v7 = vunpack.c.h.bf16 %v1221_v1 }
  0x60   : > { %v312_v10 = vmul.f32 %v1372_v33, %v1205_v6  ;;  %v313_v11 = vmul.f32 %v1372_v33, %v1206_v7 }
  0x62   : > { %v346_v14 = vadd.f32 %v1382_v39, %v312_v10  ;;  %v347_v15 = vadd.f32 %v1382_v39, %v313_v11 }
  0x64   : > { %v378_v18 = vmax.f32 %v346_v14, 0.0  ;;  %v379_v19 = vmax.f32 %v347_v15, 0.0 }
  0x66   : > { %v395_v21 = vpack.c.bf16 %v379_v19, %v378_v18 }
  0x6d   : > { %520 = vmatmul.bf16.gmra.mxu0 %v384_v24  ;;  %560 = vmatmul.bf16.gmra.mxu2 %v392_v27 }
  0x6e   : > { %609 = vmatmul.bf16.gmra.mxu1 %v384_v24  ;;  %649 = vmatmul.bf16.gmra.mxu3 %v392_v27 }
  0x7d   : > { %525 = vmatmul.bf16.gmra.mxu0 %v385_v48  ;;  %565 = vmatmul.bf16.gmra.mxu2 %v393_v49 }
  0x7e   : > { %614 = vmatmul.bf16.gmra.mxu1 %v385_v48  ;;  %654 = vmatmul.bf16.gmra.mxu3 %v393_v49 }
  0x8d   : > { %530 = vmatmul.bf16.gmra.mxu0 %v386_v2  ;;  %570 = vmatmul.bf16.gmra.mxu2 %v394_v5 }
  0x8e   : > { %619 = vmatmul.bf16.gmra.mxu1 %v386_v2  ;;  %659 = vmatmul.bf16.gmra.mxu3 %v394_v5 }
  0x9d   : > { %535 = vmatmul.bf16.gmra.mxu0 %v387_v20  ;;  %575 = vmatmul.bf16.gmra.mxu2 %v395_v21 }
  0x9e   : > { %624 = vmatmul.bf16.gmra.mxu1 %v387_v20  ;;  %664 = vmatmul.bf16.gmra.mxu3 %v395_v21 }
  0xaa   : > { %v501_v33 = vpop.f32.mrf.mxu0 }
  0xab   : > { %v590_v39 = vpop.f32.mrf.mxu1  ;;  %v808_v27 = vmul.f32 %v501_v33, %v501_v33 }
  0xac   : > { %v670_v22 = vpack.c.bf16 %v590_v39, %v501_v33  ;;  %v809_v31 = vmul.f32 %v590_v39, %v590_v39 }
  0xae   : > { %702 = vst [vmem:[%s1490_s22] sm:$0xff] %v670_v22 }
  0xb0   : > { %v1493_v23 = vpop.f32.mrf.mxu2 }
  0xb1   : > { %v1495_v24 = vpop.f32.mrf.mxu3 }
  0xb2   : > { %v503_v25 = vpop.f32.mrf.mxu0  ;;  %v686_v26 = vpack.c.bf16 %v1495_v24, %v1493_v23 }
  0xb3   : > { %v734_v28 = vadd.f32 %v503_v25, %v501_v33  ;;  %v810_v29 = vmul.f32 %v503_v25, %v503_v25  ;;  %v592_v30 = vpop.f32.mrf.mxu1 }
  0xb4   : > { %v671_v32 = vpack.c.bf16 %v592_v30, %v503_v25  ;;  %v771_v34 = vadd.f32 %v592_v30, %v590_v39  ;;  %v811_v35 = vmul.f32 %v592_v30, %v592_v30  ;;  %718 = vst [vmem:[%s1490_s22 + $0x80] sm:$0xff] %v686_v26 }
  0xb5   : > { %v872_v36 = vadd.f32 %v810_v29, %v808_v27 }
  0xb6   : > { %703 = vst [vmem:[%s1490_s22 + $0x8] sm:$0xff] %v671_v32  ;;  %v909_v37 = vadd.f32 %v811_v35, %v809_v31 }
  0xb8   : > { %v1501_v38 = vpop.f32.mrf.mxu2 }
  0xb9   : > { %v1503_v40 = vpop.f32.mrf.mxu3 }
  0xba   : > { %v506_v41 = vpop.f32.mrf.mxu0  ;;  %v687_v42 = vpack.c.bf16 %v1503_v40, %v1501_v38 }
  0xbb   : > { %v735_v43 = vadd.f32 %v734_v28, %v506_v41  ;;  %v812_v44 = vmul.f32 %v506_v41, %v506_v41  ;;  %v595_v45 = vpop.f32.mrf.mxu1 }
  0xbc   : > { %v672_v46 = vpack.c.bf16 %v595_v45, %v506_v41  ;;  %v772_v47 = vadd.f32 %v771_v34, %v595_v45  ;;  %v813_v48 = vmul.f32 %v595_v45, %v595_v45  ;;  %719 = vst [vmem:[%s1490_s22 + $0x88] sm:$0xff] %v687_v42 }
  0xbd   : > { %v873_v49 = vadd.f32 %v872_v36, %v812_v44 }
  0xbe   : > { %704 = vst [vmem:[%s1490_s22 + $0x10] sm:$0xff] %v672_v46  ;;  %v910_v50 = vadd.f32 %v909_v37, %v813_v48 }
  0xc0   : > { %v1509_v51 = vpop.f32.mrf.mxu2 }
  0xc1   : > { %v1511_v52 = vpop.f32.mrf.mxu3 }
  0xc2   : > { %v508_v53 = vpop.f32.mrf.mxu0  ;;  %v688_v54 = vpack.c.bf16 %v1511_v52, %v1509_v51 }
  0xc3   : > { %v736_v55 = vadd.f32 %v735_v43, %v508_v53  ;;  %v814_v56 = vmul.f32 %v508_v53, %v508_v53  ;;  %v597_v57 = vpop.f32.mrf.mxu1 }
  0xc4   : > { %v673_v58 = vpack.c.bf16 %v597_v57, %v508_v53  ;;  %v773_v59 = vadd.f32 %v772_v47, %v597_v57  ;;  %v815_v60 = vmul.f32 %v597_v57, %v597_v57  ;;  %720 = vst [vmem:[%s1490_s22 + $0x90] sm:$0xff] %v688_v54 }
  0xc5   : > { %v874_v61 = vadd.f32 %v873_v49, %v814_v56 }
  0xc6   : > { %705 = vst [vmem:[%s1490_s22 + $0x18] sm:$0xff] %v673_v58  ;;  %v911_v62 = vadd.f32 %v910_v50, %v815_v60 }
  0xc8   : > { %v1517_v63 = vpop.f32.mrf.mxu2 }
  0xc9   : > { %v1519_v0 = vpop.f32.mrf.mxu3 }
  0xca   : > { %v511_v1 = vpop.f32.mrf.mxu0  ;;  %v689_v2 = vpack.c.bf16 %v1519_v0, %v1517_v63 }
  0xcb   : > { %v737_v3 = vadd.f32 %v736_v55, %v511_v1  ;;  %v816_v4 = vmul.f32 %v511_v1, %v511_v1  ;;  %v600_v5 = vpop.f32.mrf.mxu1 }
  0xcc   : > { %v674_v6 = vpack.c.bf16 %v600_v5, %v511_v1  ;;  %v1523_v7 = vadd.f32 %v773_v59, %v600_v5  ;;  %v817_v8 = vmul.f32 %v600_v5, %v600_v5  ;;  %721 = vst [vmem:[%s1490_s22 + $0x98] sm:$0xff] %v689_v2 }
  0xcd   : > { %v1526_v9 = vadd.f32 %v874_v61, %v816_v4 }
  0xce   : > { %706 = vst [vmem:[%s1490_s22 + $0x20] sm:$0xff] %v674_v6  ;;  %v1529_v10 = vadd.f32 %v911_v62, %v817_v8 }
  0xd0   : > { %v1531_v11 = vpop.f32.mrf.mxu2 }
  0xd1   : > { %v1533_v12 = vpop.f32.mrf.mxu3 }
  0xd2   : > { %v513_v13 = vpop.f32.mrf.mxu0  ;;  %v690_v14 = vpack.c.bf16 %v1533_v12, %v1531_v11 }
  0xd3   : > { %v1537_v15 = vadd.f32 %v737_v3, %v513_v13  ;;  %v1539_v16 = vpop.f32.mrf.mxu1  ;;  %v818_v4 = vmul.f32 %v513_v13, %v513_v13 }
  0xd4   : > { %v675_v17 = vpack.c.bf16 %v1539_v16, %v513_v13  ;;  %722 = vst [vmem:[%s1490_s22 + $0xa0] sm:$0xff] %v690_v14  ;;  %v819_v5 = vmul.f32 %v1539_v16, %v1539_v16  ;;  %v775_v8 = vadd.f32 %v1523_v7, %v1539_v16 }
  0xd6   : > { %707 = vst [vmem:[%s1490_s22 + $0x28] sm:$0xff] %v675_v17 }
  0xd8   : > { %v1544_v18 = vpop.f32.mrf.mxu2 }
  0xd9   : > { %v1546_v19 = vpop.f32.mrf.mxu3 }
  0xda   : > { %v516_v20 = vpop.f32.mrf.mxu0  ;;  %v691_v21 = vpack.c.bf16 %v1546_v19, %v1544_v18 }
  0xdb   : > { %v1550_v33 = vpop.f32.mrf.mxu1  ;;  %v820_v6 = vmul.f32 %v516_v20, %v516_v20 }
  0xdc   : > { %v676_v39 = vpack.c.bf16 %v1550_v33, %v516_v20  ;;  %723 = vst [vmem:[%s1490_s22 + $0xa8] sm:$0xff] %v691_v21  ;;  %v821_v14 = vmul.f32 %v1550_v33, %v1550_v33  ;;  %v876_v21 = vadd.f32 %v1526_v9, %v818_v4 }
  0xde   : > { %708 = vst [vmem:[%s1490_s22 + $0x30] sm:$0xff] %v676_v39  ;;  %v739_v39 = vadd.f32 %v1537_v15, %v516_v20 }
  0xe0   : > { %v1555_v22 = vpop.f32.mrf.mxu2 }
  0xe1   : > { %v1557_v25 = vpop.f32.mrf.mxu3 }
  0xe2   : > { %v518_v26 = vpop.f32.mrf.mxu0  ;;  %v692_v27 = vpack.c.bf16 %v1557_v25, %v1555_v22 }
  0xe3   : > { %v1561_v28 = vpop.f32.mrf.mxu1  ;;  %v740_v9 = vadd.f32 %v739_v39, %v518_v26 }
  0xe4   : > { %v677_v29 = vpack.c.bf16 %v1561_v28, %v518_v26  ;;  %724 = vst [vmem:[%s1490_s22 + $0xb0] sm:$0xff] %v692_v27  ;;  %v822_v27 = vmul.f32 %v518_v26, %v518_v26  ;;  %v823_v7 = vmul.f32 %v1561_v28, %v1561_v28 }
  0xe6   : > { %709 = vst [vmem:[%s1490_s22 + $0x38] sm:$0xff] %v677_v29  ;;  %v913_v29 = vadd.f32 %v1529_v10, %v819_v5 }
  0xe8   : > { %v1566_v30 = vpop.f32.mrf.mxu2 }
  0xe9   : > { %v1568_v31 = vpop.f32.mrf.mxu3 }
  0xea   : > { %v1570_v32 = vpop.f32.mrf.mxu0  ;;  %v693_v34 = vpack.c.bf16 %v1568_v31, %v1566_v30 }
  0xeb   : > { %v1574_v35 = vpop.f32.mrf.mxu1  ;;  %v824_v15 = vmul.f32 %v1570_v32, %v1570_v32 }
  0xec   : > { %v678_v36 = vpack.c.bf16 %v1574_v35, %v1570_v32  ;;  %725 = vst [vmem:[%s1490_s22 + $0xb8] sm:$0xff] %v693_v34  ;;  %v776_v34 = vadd.f32 %v775_v8, %v1550_v33  ;;  %v825_v10 = vmul.f32 %v1574_v35, %v1574_v35 }
  0xee   : > { %710 = vst [vmem:[%s1490_s22 + $0x40] sm:$0xff] %v678_v36 }
  0xf0   : > { %v1580_v37 = vpop.f32.mrf.mxu2 }
  0xf1   : > { %v1582_v41 = vpop.f32.mrf.mxu3 }
  0xf2   : > { %v523_v42 = vpop.f32.mrf.mxu0  ;;  %v694_v43 = vpack.c.bf16 %v1582_v41, %v1580_v37 }
  0xf3   : > { %v1586_v44 = vpop.f32.mrf.mxu1 }
  0xf4   : > { %v679_v45 = vpack.c.bf16 %v1586_v44, %v523_v42  ;;  %726 = vst [vmem:[%s1490_s22 + $0xc0] sm:$0xff] %v694_v43  ;;  %v877_v43 = vadd.f32 %v876_v21, %v820_v6  ;;  %v827_v26 = vmul.f32 %v1586_v44, %v1586_v44 }
  0xf6   : > { %711 = vst [vmem:[%s1490_s22 + $0x48] sm:$0xff] %v679_v45  ;;  %v914_v45 = vadd.f32 %v913_v29, %v821_v14 }
  0xf8   : > { %v1591_v46 = vpop.f32.mrf.mxu2 }
  0xf9   : > { %v1593_v47 = vpop.f32.mrf.mxu3 }
  0xfa   : > { %v526_v48 = vpop.f32.mrf.mxu0  ;;  %v695_v49 = vpack.c.bf16 %v1593_v47, %v1591_v46 }
  0xfb   : > { %v1597_v50 = vpop.f32.mrf.mxu1  ;;  %v828_v6 = vmul.f32 %v526_v48, %v526_v48 }
  0xfc   : > { %v680_v53 = vpack.c.bf16 %v1597_v50, %v526_v48  ;;  %727 = vst [vmem:[%s1490_s22 + $0xc8] sm:$0xff] %v695_v49  ;;  %v777_v49 = vadd.f32 %v776_v34, %v1561_v28  ;;  %v829_v14 = vmul.f32 %v1597_v50, %v1597_v50 }
  0xfe   : > { %712 = vst [vmem:[%s1490_s22 + $0x50] sm:$0xff] %v680_v53  ;;  %v878_v53 = vadd.f32 %v877_v43, %v822_v27 }
 0x100   : > { %v1602_v54 = vpop.f32.mrf.mxu2  ;;  %v879_v4 = vadd.f32 %v878_v53, %v824_v15 }
 0x101   : > { %v1604_v55 = vpop.f32.mrf.mxu3 }
 0x102   : > { %v528_v56 = vpop.f32.mrf.mxu0  ;;  %v696_v57 = vpack.c.bf16 %v1604_v55, %v1602_v54 }
 0x103   : > { %v1608_v58 = vpop.f32.mrf.mxu1  ;;  %v830_v27 = vmul.f32 %v528_v56, %v528_v56 }
 0x104   : > { %v681_v59 = vpack.c.bf16 %v1608_v58, %v528_v56  ;;  %728 = vst [vmem:[%s1490_s22 + $0xd0] sm:$0xff] %v696_v57  ;;  %v741_v57 = vadd.f32 %v740_v9, %v1570_v32 }
 0x106   : > { %713 = vst [vmem:[%s1490_s22 + $0x58] sm:$0xff] %v681_v59  ;;  %v826_v59 = vmul.f32 %v523_v42, %v523_v42  ;;  %v742_v5 = vadd.f32 %v741_v57, %v523_v42  ;;  %v831_v42 = vmul.f32 %v1608_v58, %v1608_v58 }
 0x108   : > { %v1613_v60 = vpop.f32.mrf.mxu2  ;;  %v880_v32 = vadd.f32 %v879_v4, %v826_v59  ;;  %v743_v39 = vadd.f32 %v742_v5, %v526_v48 }
 0x109   : > { %v1615_v61 = vpop.f32.mrf.mxu3 }
 0x10a   : > { %v1617_v62 = vpop.f32.mrf.mxu0  ;;  %v697_v1 = vpack.c.bf16 %v1615_v61, %v1613_v60  ;;  %v744_v43 = vadd.f32 %v743_v39, %v528_v56 }
 0x10b   : > { %v1621_v2 = vpop.f32.mrf.mxu1  ;;  %v832_v48 = vmul.f32 %v1617_v62, %v1617_v62 }
 0x10c   : > { %v682_v3 = vpack.c.bf16 %v1621_v2, %v1617_v62  ;;  %729 = vst [vmem:[%s1490_s22 + $0xd8] sm:$0xff] %v697_v1  ;;  %v915_v1 = vadd.f32 %v914_v45, %v823_v7 }
 0x10e   : > { %714 = vst [vmem:[%s1490_s22 + $0x60] sm:$0xff] %v682_v3  ;;  %v778_v3 = vadd.f32 %v777_v49, %v1574_v35  ;;  %v916_v28 = vadd.f32 %v915_v1, %v825_v10 }
 0x110   : > { %v1633_v17 = vpop.f32.mrf.mxu2  ;;  %v779_v8 = vadd.f32 %v778_v3, %v1586_v44  ;;  %v917_v29 = vadd.f32 %v916_v28, %v827_v26 }
 0x111   : > { %v1637_v13 = vpop.f32.mrf.mxu3 }
 0x112   : > { %v533_v16 = vpop.f32.mrf.mxu0  ;;  %v698_v36 = vpack.c.bf16 %v1637_v13, %v1633_v17  ;;  %v780_v34 = vadd.f32 %v779_v8, %v1597_v50  ;;  %v918_v15 = vadd.f32 %v917_v29, %v829_v14  ;;  %v833_v50 = vmul.f32 %v1621_v2, %v1621_v2 }
 0x113   : > { %v622_v20 = vpop.f32.mrf.mxu1  ;;  %v834_v53 = vmul.f32 %v533_v16, %v533_v16 }
 0x114   : > { %v683_v33 = vpack.c.bf16 %v622_v20, %v533_v16  ;;  %730 = vst [vmem:[%s1490_s22 + $0xe0] sm:$0xff] %v698_v36  ;;  %v881_v36 = vadd.f32 %v880_v32, %v828_v6  ;;  %v781_v45 = vadd.f32 %v780_v34, %v1608_v58  ;;  %v919_v57 = vadd.f32 %v918_v15, %v831_v42 }
 0x115   : > { %v835_v56 = vmul.f32 %v622_v20, %v622_v20 }
 0x116   : > { %715 = vst [vmem:[%s1490_s22 + $0x68] sm:$0xff] %v683_v33  ;;  %v882_v10 = vadd.f32 %v881_v36, %v830_v27  ;;  %v745_v33 = vadd.f32 %v744_v43, %v1617_v62  ;;  %v782_v59 = vadd.f32 %v781_v45, %v1621_v2  ;;  %v920_v4 = vadd.f32 %v919_v57, %v833_v50 }
 0x117   : > { %v842_v50 = vmul.f32 %v1501_v38, %v1501_v38 }
 0x118   : > { %v1659_v21 = vpop.f32.mrf.mxu2  ;;  %v883_v1 = vadd.f32 %v882_v10, %v832_v48  ;;  %v746_v3 = vadd.f32 %v745_v33, %v533_v16  ;;  %v783_v5 = vadd.f32 %v782_v59, %v622_v20  ;;  %v921_v62 = vadd.f32 %v920_v4, %v835_v56 }
 0x119   : > { %v1661_v35 = vpop.f32.mrf.mxu3  ;;  %v843_v33 = vmul.f32 %v1503_v40, %v1503_v40  ;;  %v844_v59 = vmul.f32 %v1509_v51, %v1509_v51  ;;  %v846_v4 = vmul.f32 %v1517_v63, %v1517_v63 }
 0x11a   : > { %v536_v7 = vpop.f32.mrf.mxu0  ;;  %v699_v44 = vpack.c.bf16 %v1661_v35, %v1659_v21  ;;  %v884_v28 = vadd.f32 %v883_v1, %v834_v53 }
 0x11b   : > { %v625_v9 = vpop.f32.mrf.mxu1  ;;  %v836_v26 = vmul.f32 %v536_v7, %v536_v7  ;;  %v747_v8 = vadd.f32 %v746_v3, %v536_v7 }
 0x11c   : > { %v684_v49 = vpack.c.bf16 %v625_v9, %v536_v7  ;;  %731 = vst [vmem:[%s1490_s22 + $0xe8] sm:$0xff] %v699_v44  ;;  %v837_v58 = vmul.f32 %v625_v9, %v625_v9  ;;  %v784_v32 = vadd.f32 %v783_v5, %v625_v9  ;;  %v840_v7 = vmul.f32 %v1493_v23, %v1493_v23 }
 0x11d   : > { %v885_v27 = vadd.f32 %v884_v28, %v836_v26  ;;  %v841_v9 = vmul.f32 %v1495_v24, %v1495_v24 }
 0x11e   : > { %716 = vst [vmem:[%s1490_s22 + $0x70] sm:$0xff] %v684_v49  ;;  %v922_v20 = vadd.f32 %v921_v62, %v837_v58 }
 0x120   : > { %v1677_v6 = vpop.f32.mrf.mxu2 }
 0x121   : > { %v1679_v14 = vpop.f32.mrf.mxu3 }
 0x122   : > { %v538_v39 = vpop.f32.mrf.mxu0  ;;  %v700_v2 = vpack.c.bf16 %v1679_v14, %v1677_v6 }
 0x123   : > { %v748_v16 = vadd.f32 %v747_v8, %v538_v39  ;;  %v838_v29 = vmul.f32 %v538_v39, %v538_v39  ;;  %v627_v34 = vpop.f32.mrf.mxu1 }
 0x124   : > { %v685_v42 = vpack.c.bf16 %v627_v34, %v538_v39  ;;  %v785_v44 = vadd.f32 %v784_v32, %v627_v34  ;;  %v839_v36 = vmul.f32 %v627_v34, %v627_v34  ;;  %732 = vst [vmem:[%s1490_s22 + $0xf0] sm:$0xff] %v700_v2  ;;  %v849_v39 = vmul.f32 %v1533_v12, %v1533_v12 }
 0x125   : > { %v749_v43 = vadd.f32 %v748_v16, %v1493_v23  ;;  %v886_v48 = vadd.f32 %v885_v27, %v838_v29  ;;  %v850_v27 = vmul.f32 %v1544_v18, %v1544_v18  ;;  %v851_v29 = vmul.f32 %v1546_v19, %v1546_v19 }
 0x126   : > { %717 = vst [vmem:[%s1490_s22 + $0x78] sm:$0xff] %v685_v42  ;;  %v786_v15 = vadd.f32 %v785_v44, %v1495_v24  ;;  %v923_v45 = vadd.f32 %v922_v20, %v839_v36 }
 0x127   : > { %v750_v49 = vadd.f32 %v749_v43, %v1501_v38  ;;  %v887_v10 = vadd.f32 %v886_v48, %v840_v7  ;;  %v845_v38 = vmul.f32 %v1511_v52, %v1511_v52 }
 0x128   : > { %v787_v53 = vadd.f32 %v786_v15, %v1503_v40  ;;  %v924_v23 = vadd.f32 %v923_v45, %v841_v9  ;;  %v1697_v57 = vpop.f32.mrf.mxu2 }
 0x129   : > { %v751_v24 = vadd.f32 %v750_v49, %v1509_v51  ;;  %v888_v56 = vadd.f32 %v887_v10, %v842_v50  ;;  %v1702_v1 = vpop.f32.mrf.mxu3  ;;  %v847_v51 = vmul.f32 %v1519_v0, %v1519_v0 }
 0x12a   : > { %v788_v3 = vadd.f32 %v787_v53, %v1511_v52  ;;  %v925_v26 = vadd.f32 %v924_v23, %v843_v33  ;;  %v701_v40 = vpack.c.bf16 %v1702_v1, %v1697_v57  ;;  %v848_v52 = vmul.f32 %v1531_v11, %v1531_v11 }
 0x12b   : > { %v752_v5 = vadd.f32 %v751_v24, %v1517_v63  ;;  %v889_v58 = vadd.f32 %v888_v56, %v844_v59 }
 0x12c   : > { %v789_v28 = vadd.f32 %v788_v3, %v1519_v0  ;;  %v926_v8 = vadd.f32 %v925_v26, %v845_v38  ;;  %733 = vst [vmem:[%s1490_s22 + $0xf8] sm:$0xff] %v701_v40 }
 0x12d   : > { %v753_v62 = vadd.f32 %v752_v5, %v1531_v11  ;;  %v890_v32 = vadd.f32 %v889_v58, %v846_v4  ;;  %v852_v11 = vmul.f32 %v1555_v22, %v1555_v22  ;;  %v864_v58 = vmul.f32 %v1633_v17, %v1633_v17 }
 0x12e   : > { %v790_v2 = vadd.f32 %v789_v28, %v1533_v12  ;;  %v927_v63 = vadd.f32 %v926_v8, %v847_v51  ;;  %v853_v12 = vmul.f32 %v1557_v25, %v1557_v25  ;;  %v865_v28 = vmul.f32 %v1637_v13, %v1637_v13 }
 0x12f   : > { %v754_v16 = vadd.f32 %v753_v62, %v1544_v18  ;;  %v891_v0 = vadd.f32 %v890_v32, %v848_v52  ;;  %v854_v18 = vmul.f32 %v1566_v30, %v1566_v30  ;;  %v866_v62 = vmul.f32 %v1659_v21, %v1659_v21 }
 0x130   : > { %v791_v34 = vadd.f32 %v790_v2, %v1546_v19  ;;  %v928_v20 = vadd.f32 %v927_v63, %v849_v39  ;;  %v855_v19 = vmul.f32 %v1568_v31, %v1568_v31  ;;  %v867_v39 = vmul.f32 %v1661_v35, %v1661_v35 }
 0x131   : > { %v892_v42 = vadd.f32 %v891_v0, %v850_v27  ;;  %v755_v44 = vadd.f32 %v754_v16, %v1555_v22  ;;  %v856_v22 = vmul.f32 %v1580_v37, %v1580_v37  ;;  %v868_v63 = vmul.f32 %v1677_v6, %v1677_v6 }
 0x132   : > { %v929_v36 = vadd.f32 %v928_v20, %v851_v29  ;;  %v792_v7 = vadd.f32 %v791_v34, %v1557_v25  ;;  %v857_v25 = vmul.f32 %v1582_v41, %v1582_v41  ;;  %v869_v16 = vmul.f32 %v1679_v14, %v1679_v14 }
 0x133   : > { %v756_v43 = vadd.f32 %v755_v44, %v1566_v30  ;;  %v893_v48 = vadd.f32 %v892_v42, %v852_v11  ;;  %v858_v30 = vmul.f32 %v1591_v46, %v1591_v46  ;;  %v870_v29 = vmul.f32 %v1697_v57, %v1697_v57 }
 0x134   : > { %v793_v9 = vadd.f32 %v792_v7, %v1568_v31  ;;  %v930_v15 = vadd.f32 %v929_v36, %v853_v12  ;;  %v859_v31 = vmul.f32 %v1593_v47, %v1593_v47  ;;  %v871_v20 = vmul.f32 %v1702_v1, %v1702_v1 }
 0x135   : > { %v757_v45 = vadd.f32 %v756_v43, %v1580_v37  ;;  %v894_v50 = vadd.f32 %v893_v48, %v854_v18  ;;  %v860_v37 = vmul.f32 %v1602_v54, %v1602_v54 }
 0x136   : > { %v794_v49 = vadd.f32 %v793_v9, %v1582_v41  ;;  %v931_v10 = vadd.f32 %v930_v15, %v855_v19  ;;  %v861_v41 = vmul.f32 %v1604_v55, %v1604_v55 }
 0x137   : > { %v758_v33 = vadd.f32 %v757_v45, %v1591_v46  ;;  %v895_v53 = vadd.f32 %v894_v50, %v856_v22  ;;  %v862_v46 = vmul.f32 %v1613_v60, %v1613_v60 }
 0x138   : > { %v795_v23 = vadd.f32 %v794_v49, %v1593_v47  ;;  %v932_v59 = vadd.f32 %v931_v10, %v857_v25  ;;  %v863_v47 = vmul.f32 %v1615_v61, %v1615_v61 }
 0x139   : > { %v759_v24 = vadd.f32 %v758_v33, %v1602_v54  ;;  %v896_v56 = vadd.f32 %v895_v53, %v858_v30 }
 0x13a   : > { %v796_v38 = vadd.f32 %v795_v23, %v1604_v55  ;;  %v933_v3 = vadd.f32 %v932_v59, %v859_v31 }
 0x13b   : > { %v760_v26 = vadd.f32 %v759_v24, %v1613_v60  ;;  %v897_v40 = vadd.f32 %v896_v56, %v860_v37 }
 0x13c   : > { %v797_v4 = vadd.f32 %v796_v38, %v1615_v61  ;;  %v934_v5 = vadd.f32 %v933_v3, %v861_v41 }
 0x13d   : > { %v761_v54 = vadd.f32 %v760_v26, %v1633_v17  ;;  %v898_v51 = vadd.f32 %v897_v40, %v862_v46 }
 0x13e   : > { %v798_v55 = vadd.f32 %v797_v4, %v1637_v13  ;;  %v935_v8 = vadd.f32 %v934_v5, %v863_v47 }
 0x13f   : > { %v899_v60 = vadd.f32 %v898_v51, %v864_v58  ;;  %v762_v52 = vadd.f32 %v761_v54, %v1659_v21 }
 0x140   : > { %v936_v61 = vadd.f32 %v935_v8, %v865_v28  ;;  %v799_v32 = vadd.f32 %v798_v55, %v1661_v35 }
 0x141   : > { %v900_v17 = vadd.f32 %v899_v60, %v866_v62  ;;  %v763_v2 = vadd.f32 %v762_v52, %v1677_v6 }
 0x142   : > { %v937_v13 = vadd.f32 %v936_v61, %v867_v39  ;;  %v800_v27 = vadd.f32 %v799_v32, %v1679_v14 }
 0x143   : > { %v901_v0 = vadd.f32 %v900_v17, %v868_v63  ;;  %v764_v21 = vadd.f32 %v763_v2, %v1697_v57 }
 0x144   : > { %v938_v35 = vadd.f32 %v937_v13, %v869_v16  ;;  %v801_v34 = vadd.f32 %v800_v27, %v1702_v1 }
 0x145   : > { %v765_v6 = vrot.slane %v764_v21, 4  ;;  %v902_v11 = vadd.f32 %v901_v0, %v870_v29 }
 0x146   : > { %v802_v42 = vrot.slane %v801_v34, 4  ;;  %v939_v44 = vadd.f32 %v938_v35, %v871_v20 }
 0x147   : > { %v766_v12 = vadd.f32 %v765_v6, %v764_v21  ;;  %v903_v14 = vrot.slane %v902_v11, 4 }
 0x148   : > { %v803_v36 = vadd.f32 %v802_v42, %v801_v34  ;;  %v940_v7 = vrot.slane %v939_v44, 4 }
 0x149   : > { %v767_v18 = vrot.slane %v766_v12, 2  ;;  %v904_v43 = vadd.f32 %v903_v14, %v902_v11 }
 0x14a   : > { %v804_v48 = vrot.slane %v803_v36, 2  ;;  %v941_v57 = vadd.f32 %v940_v7, %v939_v44 }
 0x14b   : > { %v768_v19 = vadd.f32 %v767_v18, %v766_v12  ;;  %v905_v9 = vrot.slane %v904_v43, 2 }
 0x14c   : > { %v805_v15 = vadd.f32 %v804_v48, %v803_v36  ;;  %v942_v22 = vrot.slane %v941_v57, 2 }
 0x14d   : > { %v769_v45 = vrot.slane %v768_v19, 1  ;;  %v906_v1 = vadd.f32 %v905_v9, %v904_v43 }
 0x14e   : > { %v806_v50 = vrot.slane %v805_v15, 1  ;;  %v943_v25 = vadd.f32 %v942_v22, %v941_v57 }
 0x14f   : > { %v907_v49 = vrot.slane %v906_v1, 1  ;;  %v770_v30 = vadd.f32 %v769_v45, %v768_v19 }
 0x150   : > { %v944_v10 = vrot.slane %v943_v25, 1  ;;  %v807_v53 = vadd.f32 %v806_v50, %v805_v15 }
 0x151   : > { %v908_v33 = vadd.f32 %v907_v49, %v906_v1 }
 0x152   : > { %v945_v31 = vadd.f32 %v944_v10, %v943_v25 }
 0x153   : > { %v947_v23 = vsel %vm946_vm0, %v770_v30, %v908_v33 }
 0x154   : > { %v948_v59 = vsel %vm946_vm0, %v807_v53, %v945_v31 }
 0x155   : > { %v951_v37 = vrot.slane %v948_v59, 6 }
 0x157   : > { %v953_v24 = vsel %vm952_vm1, %v947_v23, %v951_v37 }
 0x158   : > { %955 = vst [vmem:[%s215_s26] sm:$0xf] %v953_v24 }
 0x159 PF: > { %s15_s15 = sadd.s32 1, %s1254_s15  }
 0x15a   : > { %p12_p5 = scmp.ge.s32.totalorder %s15_s15, 4  }
 0x15c   :  { %14 = sbr.rel (!%p12_p5) target bundleno = 1 (0x1), region = 74 }

// kernel: block_forward.4
= control target key start
LH: loop header
LB: loop body
LE: loop exit
PB: predicated region body
PF: predicated region fallthrough
CT: control target
= control target key end

     0   :  { %s1437_s12 = smov 0   ;;  %s1694_s0 = inlined_call_operand.vmem [shape: f32[2,256,256], index: 0, kind: input, shape index: {}]   ;;  %s1695_s1 = inlined_call_operand.vmem [shape: bf16[256,128], index: 1, kind: input, shape index: {}]   ;;  %s1696_s2 = inlined_call_operand.vmem [shape: bf16[512,128], index: 2, kind: output, shape index: {0}]   ;;  %s1697_s3 = inlined_call_operand.vmem [shape: f32[2,2,128], index: 3, kind: output, shape index: {1}]  }
   0x1 LB: > { %s1443_s13 = sadd.s32 4294967295, %s1415_s12   ;;  %p977_p0 = scmp.ge.s32.totalorder %s1415_s12, 1  ;;  %s1415_s12 = sphi %s1437_s12, %s14_s12  }
   0x2   : > { %p140_p1 = scmp.lt.s32.totalorder %s1415_s12, 3 }
   0x4   : > { %p141_p2 = pnand %p977_p0, %p140_p1 }
   0x5   : > { %p168_p3 = scmp.lt.s32.totalorder (!%p141_p2), %s1443_s13, 1  ;;  %s980_s27 = sshll.u32 (!%p141_p2), %s1443_s13, 5 }
   0x6   : > { %144 = sbr.rel (%p141_p2) target bundleno = 494 (0x1ee), region = 28  ;;  %p174_p4 = scmp.lt.s32.totalorder (!%p141_p2), %s980_s27, 63 }
   0xb   : > { %s1449_s14 = scalar_select %p168_p3, %s1443_s13, 1  ;;  %vm883_vm0 = vcmask 1040384  }
   0xc   : > { %s1699_s27 = smov (!%p174_p4, %s980_s27), 63 }
   0xd   : > { %s1049_s15 = sshll.u32 %s1449_s14, 9  ;;  %s981_s28 = sshll.u32 %s1699_s27, 2 }
   0xe   : > { %s1455_s18 = scalar_lea.vmem %s1694_s0, %s1049_s15  ;;  %s1573_s4 = scalar_lea.vmem %s1696_s2, %s981_s28 }
   0xf   : > { %v183_v0 = vld [vmem:[%s1455_s18] sm:$0xff]  ;;  %v184_v3 = vld [vmem:[%s1455_s18 + $0x8] sm:$0xff]  ;;  %v185_v6 = vld [vmem:[%s1455_s18 + $0x10] sm:$0xff]  ;;  %s982_s13 = sshll.u32 %s1449_s14, 1 }
  0x10   : > { %v215_v1 = vld [vmem:[%s1455_s18 + $0x100] sm:$0xff]  ;;  %v216_v4 = vld [vmem:[%s1455_s18 + $0x108] sm:$0xff]  ;;  %v217_v7 = vld [vmem:[%s1455_s18 + $0x110] sm:$0xff]  ;;  %s182_s7 = scalar_lea.vmem %s1697_s3, %s982_s13 }
  0x11   : > { %v1185_v2 = vpack.i.bf16 %v215_v1, %v183_v0  ;;  %v1297_v5 = vpack.i.bf16 %v216_v4, %v184_v3  ;;  %v186_v8 = vld [vmem:[%s1455_s18 + $0x18] sm:$0xff]  ;;  %v1187_v10 = vpack.i.bf16 %v217_v7, %v185_v6  ;;  %v187_v12 = vld [vmem:[%s1455_s18 + $0x20] sm:$0xff]  ;;  %v188_v14 = vld [vmem:[%s1455_s18 + $0x28] sm:$0xff] }
  0x12   : > { %v218_v9 = vld [vmem:[%s1455_s18 + $0x118] sm:$0xff]  ;;  %v219_v13 = vld [vmem:[%s1455_s18 + $0x120] sm:$0xff]  ;;  %v220_v15 = vld [vmem:[%s1455_s18 + $0x128] sm:$0xff] }
  0x13   : > { %1186 = vxpose.xlu0.b32.start [1/16] %v1185_v2, 128  ;;  %1298 = vxpose.xlu1.b32.start [1/16] %v1297_v5, 128  ;;  %v1299_v11 = vpack.i.bf16 %v218_v9, %v186_v8  ;;  %v1189_v16 = vpack.i.bf16 %v219_v13, %v187_v12  ;;  %v1301_v17 = vpack.i.bf16 %v220_v15, %v188_v14  ;;  %v189_v18 = vld [vmem:[%s1455_s18 + $0x30] sm:$0xff]  ;;  %v190_v20 = vld [vmem:[%s1455_s18 + $0x38] sm:$0xff]  ;;  %v191_v24 = vld [vmem:[%s1455_s18 + $0x40] sm:$0xff] }
  0x14   : > { %v221_v19 = vld [vmem:[%s1455_s18 + $0x130] sm:$0xff]  ;;  %v222_v21 = vld [vmem:[%s1455_s18 + $0x138] sm:$0xff]  ;;  %v223_v25 = vld [vmem:[%s1455_s18 + $0x140] sm:$0xff] }
  0x15   : > { %v1191_v22 = vpack.i.bf16 %v221_v19, %v189_v18  ;;  %v1303_v23 = vpack.i.bf16 %v222_v21, %v190_v20  ;;  %v192_v26 = vld [vmem:[%s1455_s18 + $0x48] sm:$0xff]  ;;  %v1193_v28 = vpack.i.bf16 %v223_v25, %v191_v24  ;;  %v193_v30 = vld [vmem:[%s1455_s18 + $0x50] sm:$0xff]  ;;  %v194_v32 = vld [vmem:[%s1455_s18 + $0x58] sm:$0xff] }
  0x16   : > { %v224_v27 = vld [vmem:[%s1455_s18 + $0x148] sm:$0xff]  ;;  %v225_v31 = vld [vmem:[%s1455_s18 + $0x150] sm:$0xff]  ;;  %v226_v33 = vld [vmem:[%s1455_s18 + $0x158] sm:$0xff] }
  0x17   : > { %v1305_v29 = vpack.i.bf16 %v224_v27, %v192_v26  ;;  %v1195_v34 = vpack.i.bf16 %v225_v31, %v193_v30  ;;  %v1307_v35 = vpack.i.bf16 %v226_v33, %v194_v32  ;;  %v195_v36 = vld [vmem:[%s1455_s18 + $0x60] sm:$0xff]  ;;  %v196_v38 = vld [vmem:[%s1455_s18 + $0x68] sm:$0xff]  ;;  %v197_v42 = vld [vmem:[%s1455_s18 + $0x70] sm:$0xff] }
  0x18   : > { %v227_v37 = vld [vmem:[%s1455_s18 + $0x160] sm:$0xff]  ;;  %v228_v39 = vld [vmem:[%s1455_s18 + $0x168] sm:$0xff]  ;;  %v229_v43 = vld [vmem:[%s1455_s18 + $0x170] sm:$0xff] }
  0x19   : > { %v1197_v40 = vpack.i.bf16 %v227_v37, %v195_v36  ;;  %v1309_v41 = vpack.i.bf16 %v228_v39, %v196_v38  ;;  %v198_v44 = vld [vmem:[%s1455_s18 + $0x78] sm:$0xff]  ;;  %v1199_v46 = vpack.i.bf16 %v229_v43, %v197_v42  ;;  %v199_v48 = vld [vmem:[%s1455_s18 + $0x80] sm:$0xff]  ;;  %v200_v50 = vld [vmem:[%s1455_s18 + $0x88] sm:$0xff] }
  0x1a   : > { %v230_v45 = vld [vmem:[%s1455_s18 + $0x178] sm:$0xff]  ;;  %v231_v49 = vld [vmem:[%s1455_s18 + $0x180] sm:$0xff]  ;;  %v232_v51 = vld [vmem:[%s1455_s18 + $0x188] sm:$0xff] }
  0x1b   : > { %1188 = vxpose.xlu0.b32.cont [2/16] %v1187_v10, 128  ;;  %1300 = vxpose.xlu1.b32.cont [2/16] %v1299_v11, 128  ;;  %v1311_v47 = vpack.i.bf16 %v230_v45, %v198_v44  ;;  %v1201_v52 = vpack.i.bf16 %v231_v49, %v199_v48  ;;  %v1313_v53 = vpack.i.bf16 %v232_v51, %v200_v50  ;;  %v201_v54 = vld [vmem:[%s1455_s18 + $0x90] sm:$0xff]  ;;  %v202_v56 = vld [vmem:[%s1455_s18 + $0x98] sm:$0xff]  ;;  %v203_v60 = vld [vmem:[%s1455_s18 + $0xa0] sm:$0xff] }
  0x1c   : > { %v233_v55 = vld [vmem:[%s1455_s18 + $0x190] sm:$0xff]  ;;  %v234_v57 = vld [vmem:[%s1455_s18 + $0x198] sm:$0xff]  ;;  %v235_v61 = vld [vmem:[%s1455_s18 + $0x1a0] sm:$0xff] }
  0x1d   : > { %v1203_v58 = vpack.i.bf16 %v233_v55, %v201_v54  ;;  %v1315_v59 = vpack.i.bf16 %v234_v57, %v202_v56  ;;  %v204_v62 = vld [vmem:[%s1455_s18 + $0xa8] sm:$0xff]  ;;  %v1205_v0 = vpack.i.bf16 %v235_v61, %v203_v60  ;;  %v205_v2 = vld [vmem:[%s1455_s18 + $0xb0] sm:$0xff]  ;;  %v206_v4 = vld [vmem:[%s1455_s18 + $0xb8] sm:$0xff] }
  0x1e   : > { %v236_v63 = vld [vmem:[%s1455_s18 + $0x1a8] sm:$0xff]  ;;  %v237_v3 = vld [vmem:[%s1455_s18 + $0x1b0] sm:$0xff]  ;;  %v238_v5 = vld [vmem:[%s1455_s18 + $0x1b8] sm:$0xff] }
  0x1f   : > { %v1317_v1 = vpack.i.bf16 %v236_v63, %v204_v62  ;;  %v1207_v6 = vpack.i.bf16 %v237_v3, %v205_v2  ;;  %v1319_v7 = vpack.i.bf16 %v238_v5, %v206_v4  ;;  %v207_v8 = vld [vmem:[%s1455_s18 + $0xc0] sm:$0xff]  ;;  %v1057_v10 = vld [vmem:[%s1695_s1 + $0x38] sm:$0xff]  ;;  %v208_v12 = vld [vmem:[%s1455_s18 + $0xc8] sm:$0xff] }
  0x20   : > { %v239_v9 = vld [vmem:[%s1455_s18 + $0x1c0] sm:$0xff]  ;;  %v1065_v11 = vld [vmem:[%s1695_s1 + $0x78] sm:$0xff]  ;;  %v240_v13 = vld [vmem:[%s1455_s18 + $0x1c8] sm:$0xff]  ;;  %535 = vmatpush.bf16.msra.mxu0 %v1057_v10  ;;  %1161 = vmatpush.bf16.msra.mxu2 %v1057_v10 }
  0x21   : > { %624 = vmatpush.bf16.msra.mxu1 %v1065_v11  ;;  %v1056_v14 = vld [vmem:[%s1695_s1 + $0x30] sm:$0xff]  ;;  %1169 = vmatpush.bf16.msra.mxu3 %v1065_v11  ;;  %v1055_v18 = vld [vmem:[%s1695_s1 + $0x28] sm:$0xff]  ;;  %v1054_v24 = vld [vmem:[%s1695_s1 + $0x20] sm:$0xff] }
  0x22   : > { %v1064_v15 = vld [vmem:[%s1695_s1 + $0x70] sm:$0xff]  ;;  %v1063_v19 = vld [vmem:[%s1695_s1 + $0x68] sm:$0xff]  ;;  %v1062_v25 = vld [vmem:[%s1695_s1 + $0x60] sm:$0xff] }
  0x23   : > { %1190 = vxpose.xlu0.b32.cont [3/16] %v1189_v16, 128  ;;  %1302 = vxpose.xlu1.b32.cont [3/16] %v1301_v17, 128  ;;  %v1209_v16 = vpack.i.bf16 %v239_v9, %v207_v8  ;;  %v1321_v17 = vpack.i.bf16 %v240_v13, %v208_v12  ;;  %v209_v20 = vld [vmem:[%s1455_s18 + $0xd0] sm:$0xff]  ;;  %v211_v30 = vld [vmem:[%s1455_s18 + $0xe0] sm:$0xff]  ;;  %v212_v32 = vld [vmem:[%s1455_s18 + $0xe8] sm:$0xff] }
  0x24   : > { %536 = vmatpush.bf16.msra.mxu0 %v1056_v14  ;;  %1162 = vmatpush.bf16.msra.mxu2 %v1056_v14  ;;  %v241_v21 = vld [vmem:[%s1455_s18 + $0x1d0] sm:$0xff]  ;;  %v243_v31 = vld [vmem:[%s1455_s18 + $0x1e0] sm:$0xff]  ;;  %v244_v33 = vld [vmem:[%s1455_s18 + $0x1e8] sm:$0xff] }
  0x25   : > { %625 = vmatpush.bf16.msra.mxu1 %v1064_v15  ;;  %1170 = vmatpush.bf16.msra.mxu3 %v1064_v15  ;;  %v1211_v26 = vpack.i.bf16 %v241_v21, %v209_v20  ;;  %v213_v36 = vld [vmem:[%s1455_s18 + $0xf0] sm:$0xff]  ;;  %v214_v38 = vld [vmem:[%s1455_s18 + $0xf8] sm:$0xff]  ;;  %v1051_v44 = vld [vmem:[%s1695_s1 + $0x8] sm:$0xff] }
  0x26   : > { %v245_v37 = vld [vmem:[%s1455_s18 + $0x1f0] sm:$0xff]  ;;  %v246_v39 = vld [vmem:[%s1455_s18 + $0x1f8] sm:$0xff]  ;;  %v1059_v45 = vld [vmem:[%s1695_s1 + $0x48] sm:$0xff] }
  0x27   : > { %v1052_v42 = vld [vmem:[%s1695_s1 + $0x10] sm:$0xff] }
  0x28   : > { %537 = vmatpush.bf16.msra.mxu0 %v1055_v18  ;;  %1163 = vmatpush.bf16.msra.mxu2 %v1055_v18  ;;  %v1060_v43 = vld [vmem:[%s1695_s1 + $0x50] sm:$0xff] }
  0x29   : > { %626 = vmatpush.bf16.msra.mxu1 %v1063_v19  ;;  %1171 = vmatpush.bf16.msra.mxu3 %v1063_v19 }
  0x2b   : > { %1192 = vxpose.xlu0.b32.cont [4/16] %v1191_v22, 128  ;;  %1304 = vxpose.xlu1.b32.cont [4/16] %v1303_v23, 128  ;;  %v210_v22 = vld [vmem:[%s1455_s18 + $0xd8] sm:$0xff] }
  0x2c   : > { %v242_v23 = vld [vmem:[%s1455_s18 + $0x1d8] sm:$0xff]  ;;  %538 = vmatpush.bf16.msra.mxu0 %v1054_v24  ;;  %1164 = vmatpush.bf16.msra.mxu2 %v1054_v24 }
  0x2d   : > { %v1323_v27 = vpack.i.bf16 %v242_v23, %v210_v22  ;;  %627 = vmatpush.bf16.msra.mxu1 %v1062_v25  ;;  %1172 = vmatpush.bf16.msra.mxu3 %v1062_v25 }
  0x33   : > { %1194 = vxpose.xlu0.b32.cont [5/16] %v1193_v28, 128  ;;  %1306 = vxpose.xlu1.b32.cont [5/16] %v1305_v29, 128  ;;  %v1053_v28 = vld [vmem:[%s1695_s1 + $0x18] sm:$0xff] }
  0x34   : > { %v1061_v29 = vld [vmem:[%s1695_s1 + $0x58] sm:$0xff]  ;;  %539 = vmatpush.bf16.msra.mxu0 %v1053_v28  ;;  %1165 = vmatpush.bf16.msra.mxu2 %v1053_v28 }
  0x35   : > { %628 = vmatpush.bf16.msra.mxu1 %v1061_v29  ;;  %1173 = vmatpush.bf16.msra.mxu3 %v1061_v29 }
  0x38   : > { %540 = vmatpush.bf16.msra.mxu0 %v1052_v42  ;;  %1166 = vmatpush.bf16.msra.mxu2 %v1052_v42 }
  0x39   : > { %629 = vmatpush.bf16.msra.mxu1 %v1060_v43  ;;  %1174 = vmatpush.bf16.msra.mxu3 %v1060_v43 }
  0x3b   : > { %1196 = vxpose.xlu0.b32.cont [6/16] %v1195_v34, 128  ;;  %1308 = vxpose.xlu1.b32.cont [6/16] %v1307_v35, 128  ;;  %v1213_v34 = vpack.i.bf16 %v243_v31, %v211_v30  ;;  %v1325_v35 = vpack.i.bf16 %v244_v33, %v212_v32 }
  0x3c   : > { %541 = vmatpush.bf16.msra.mxu0 %v1051_v44  ;;  %1167 = vmatpush.bf16.msra.mxu2 %v1051_v44 }
  0x3d   : > { %630 = vmatpush.bf16.msra.mxu1 %v1059_v45  ;;  %1175 = vmatpush.bf16.msra.mxu3 %v1059_v45 }
  0x43   : > { %1198 = vxpose.xlu0.b32.cont [7/16] %v1197_v40, 128  ;;  %1310 = vxpose.xlu1.b32.cont [7/16] %v1309_v41, 128  ;;  %v1215_v40 = vpack.i.bf16 %v245_v37, %v213_v36  ;;  %v1327_v41 = vpack.i.bf16 %v246_v39, %v214_v38 }
  0x4b   : > { %1200 = vxpose.xlu0.b32.cont [8/16] %v1199_v46, 128  ;;  %1312 = vxpose.xlu1.b32.cont [8/16] %v1311_v47, 128  ;;  %v1050_v46 = vld [vmem:[%s1695_s1] sm:$0xff] }
  0x4c   : > { %v1058_v47 = vld [vmem:[%s1695_s1 + $0x40] sm:$0xff]  ;;  %542 = vmatpush.bf16.msra.mxu0 %v1050_v46  ;;  %1168 = vmatpush.bf16.msra.mxu2 %v1050_v46 }
  0x4d   : > { %631 = vmatpush.bf16.msra.mxu1 %v1058_v47  ;;  %1176 = vmatpush.bf16.msra.mxu3 %v1058_v47 }
  0x53   : > { %1202 = vxpose.xlu0.b32.cont [9/16] %v1201_v52, 128  ;;  %1314 = vxpose.xlu1.b32.cont [9/16] %v1313_v53, 128 }
  0x5b   : > { %1204 = vxpose.xlu0.b32.cont [10/16] %v1203_v58, 128  ;;  %1316 = vxpose.xlu1.b32.cont [10/16] %v1315_v59, 128 }
  0x63   : > { %1206 = vxpose.xlu0.b32.cont [11/16] %v1205_v0, 128  ;;  %1318 = vxpose.xlu1.b32.cont [11/16] %v1317_v1, 128 }
  0x6b   : > { %1208 = vxpose.xlu0.b32.cont [12/16] %v1207_v6, 128  ;;  %1320 = vxpose.xlu1.b32.cont [12/16] %v1319_v7, 128 }
  0x73   : > { %1210 = vxpose.xlu0.b32.cont [13/16] %v1209_v16, 128  ;;  %1322 = vxpose.xlu1.b32.cont [13/16] %v1321_v17, 128 }
  0x7b   : > { %1212 = vxpose.xlu0.b32.cont [14/16] %v1211_v26, 128  ;;  %1324 = vxpose.xlu1.b32.cont [14/16] %v1323_v27, 128 }
  0x83   : > { %1214 = vxpose.xlu0.b32.cont [15/16] %v1213_v34, 128  ;;  %1326 = vxpose.xlu1.b32.cont [15/16] %v1325_v35, 128 }
  0x8b   : > { %1216 = vxpose.xlu0.b32.end [16/16] %v1215_v40, 128  ;;  %1328 = vxpose.xlu1.b32.end [16/16] %v1327_v41, 128 }
  0xb7   : > { %v1217_v48 = vpop.trf.xlu0  ;;  %v1329_v49 = vpop.trf.xlu1 }
  0xb8   : > { %v1218_v51 = vunpack.i.l.bf16 %v1217_v48  ;;  %v1221_v52 = vunpack.i.h.bf16 %v1217_v48  ;;  %v1330_v53 = vunpack.i.l.bf16 %v1329_v49  ;;  %v1333_v54 = vunpack.i.h.bf16 %v1329_v49 }
  0xbf   : > { %v1222_v50 = vpop.trf.xlu0  ;;  %v1334_v57 = vpop.trf.xlu1 }
  0xc0   : > { %v1223_v55 = vunpack.i.l.bf16 %v1222_v50  ;;  %v1226_v56 = vunpack.i.h.bf16 %v1222_v50  ;;  %v1335_v58 = vunpack.i.l.bf16 %v1334_v57  ;;  %v1338_v59 = vunpack.i.h.bf16 %v1334_v57 }
  0xc2   : > { %v375_v60 = vpack.c.bf16 %v1223_v55, %v1218_v51  ;;  %v376_v61 = vpack.c.bf16 %v1226_v56, %v1221_v52  ;;  %v391_v62 = vpack.c.bf16 %v1335_v58, %v1330_v53  ;;  %v392_v63 = vpack.c.bf16 %v1338_v59, %v1333_v54 }
  0xc4   : > { %543 = vmatmul.bf16.vlgmr.msra.gmra.mxu0 %v375_v60  ;;  %632 = vmatmul.bf16.vlgmr.msra.gmra.mxu1 %v376_v61 }
  0xc5   : > { %583 = vmatmul.bf16.vlgmr.msra.gmra.mxu2 %v391_v62  ;;  %672 = vmatmul.bf16.vlgmr.msra.gmra.mxu3 %v392_v63 }
  0xc7   : > { %v1227_v0 = vpop.trf.xlu0  ;;  %v1339_v1 = vpop.trf.xlu1 }
  0xc8   : > { %v1228_v3 = vunpack.i.l.bf16 %v1227_v0  ;;  %v1231_v4 = vunpack.i.h.bf16 %v1227_v0  ;;  %v1340_v5 = vunpack.i.l.bf16 %v1339_v1  ;;  %v1343_v6 = vunpack.i.h.bf16 %v1339_v1 }
  0xcf   : > { %v1232_v2 = vpop.trf.xlu0  ;;  %v1344_v9 = vpop.trf.xlu1 }
  0xd0   : > { %v1233_v7 = vunpack.i.l.bf16 %v1232_v2  ;;  %v1236_v8 = vunpack.i.h.bf16 %v1232_v2  ;;  %v1345_v10 = vunpack.i.l.bf16 %v1344_v9  ;;  %v1348_v11 = vunpack.i.h.bf16 %v1344_v9 }
  0xd2   : > { %v377_v12 = vpack.c.bf16 %v1233_v7, %v1228_v3  ;;  %v378_v13 = vpack.c.bf16 %v1236_v8, %v1231_v4  ;;  %v393_v14 = vpack.c.bf16 %v1345_v10, %v1340_v5  ;;  %v394_v15 = vpack.c.bf16 %v1348_v11, %v1343_v6 }
  0xd4   : > { %548 = vmatmul.bf16.gmra.mxu0 %v377_v12  ;;  %637 = vmatmul.bf16.gmra.mxu1 %v378_v13 }
  0xd5   : > { %588 = vmatmul.bf16.gmra.mxu2 %v393_v14  ;;  %677 = vmatmul.bf16.gmra.mxu3 %v394_v15 }
  0xd7   : > { %v1237_v16 = vpop.trf.xlu0  ;;  %v1349_v17 = vpop.trf.xlu1 }
  0xd8   : > { %v1238_v19 = vunpack.i.l.bf16 %v1237_v16  ;;  %v1241_v20 = vunpack.i.h.bf16 %v1237_v16  ;;  %v1350_v21 = vunpack.i.l.bf16 %v1349_v17  ;;  %v1353_v22 = vunpack.i.h.bf16 %v1349_v17 }
  0xdf   : > { %v1242_v18 = vpop.trf.xlu0  ;;  %v1354_v25 = vpop.trf.xlu1 }
  0xe0   : > { %v1243_v23 = vunpack.i.l.bf16 %v1242_v18  ;;  %v1246_v24 = vunpack.i.h.bf16 %v1242_v18  ;;  %v1355_v26 = vunpack.i.l.bf16 %v1354_v25  ;;  %v1358_v27 = vunpack.i.h.bf16 %v1354_v25 }
  0xe2   : > { %v379_v28 = vpack.c.bf16 %v1243_v23, %v1238_v19  ;;  %v380_v29 = vpack.c.bf16 %v1246_v24, %v1241_v20  ;;  %v395_v30 = vpack.c.bf16 %v1355_v26, %v1350_v21  ;;  %v396_v31 = vpack.c.bf16 %v1358_v27, %v1353_v22 }
  0xe4   : > { %553 = vmatmul.bf16.gmra.mxu0 %v379_v28  ;;  %642 = vmatmul.bf16.gmra.mxu1 %v380_v29 }
  0xe5   : > { %593 = vmatmul.bf16.gmra.mxu2 %v395_v30  ;;  %682 = vmatmul.bf16.gmra.mxu3 %v396_v31 }
  0xe7   : > { %v1247_v32 = vpop.trf.xlu0  ;;  %v1359_v33 = vpop.trf.xlu1 }
  0xe8   : > { %v1248_v35 = vunpack.i.l.bf16 %v1247_v32  ;;  %v1251_v36 = vunpack.i.h.bf16 %v1247_v32  ;;  %v1360_v37 = vunpack.i.l.bf16 %v1359_v33  ;;  %v1363_v38 = vunpack.i.h.bf16 %v1359_v33 }
  0xef   : > { %v1252_v34 = vpop.trf.xlu0  ;;  %v1364_v41 = vpop.trf.xlu1 }
  0xf0   : > { %v1253_v39 = vunpack.i.l.bf16 %v1252_v34  ;;  %v1256_v40 = vunpack.i.h.bf16 %v1252_v34  ;;  %v1365_v42 = vunpack.i.l.bf16 %v1364_v41  ;;  %v1368_v43 = vunpack.i.h.bf16 %v1364_v41 }
  0xf2   : > { %v381_v44 = vpack.c.bf16 %v1253_v39, %v1248_v35  ;;  %v382_v45 = vpack.c.bf16 %v1256_v40, %v1251_v36  ;;  %v397_v46 = vpack.c.bf16 %v1365_v42, %v1360_v37  ;;  %v398_v47 = vpack.c.bf16 %v1368_v43, %v1363_v38 }
  0xf4   : > { %558 = vmatmul.bf16.gmra.mxu0 %v381_v44  ;;  %647 = vmatmul.bf16.gmra.mxu1 %v382_v45 }
  0xf5   : > { %598 = vmatmul.bf16.gmra.mxu2 %v397_v46  ;;  %687 = vmatmul.bf16.gmra.mxu3 %v398_v47 }
  0xf7   : > { %v1257_v48 = vpop.trf.xlu0  ;;  %v1369_v49 = vpop.trf.xlu1 }
  0xf8   : > { %v1258_v51 = vunpack.i.l.bf16 %v1257_v48  ;;  %v1261_v52 = vunpack.i.h.bf16 %v1257_v48  ;;  %v1370_v53 = vunpack.i.l.bf16 %v1369_v49  ;;  %v1373_v54 = vunpack.i.h.bf16 %v1369_v49 }
  0xff   : > { %v1262_v50 = vpop.trf.xlu0  ;;  %v1374_v57 = vpop.trf.xlu1 }
 0x100   : > { %v1263_v55 = vunpack.i.l.bf16 %v1262_v50  ;;  %v1266_v56 = vunpack.i.h.bf16 %v1262_v50  ;;  %v1375_v58 = vunpack.i.l.bf16 %v1374_v57  ;;  %v1378_v59 = vunpack.i.h.bf16 %v1374_v57 }
 0x102   : > { %v383_v60 = vpack.c.bf16 %v1263_v55, %v1258_v51  ;;  %v384_v61 = vpack.c.bf16 %v1266_v56, %v1261_v52  ;;  %v399_v62 = vpack.c.bf16 %v1375_v58, %v1370_v53  ;;  %v400_v63 = vpack.c.bf16 %v1378_v59, %v1373_v54 }
 0x104   : > { %563 = vmatmul.bf16.gmra.mxu0 %v383_v60  ;;  %652 = vmatmul.bf16.gmra.mxu1 %v384_v61 }
 0x105   : > { %603 = vmatmul.bf16.gmra.mxu2 %v399_v62  ;;  %692 = vmatmul.bf16.gmra.mxu3 %v400_v63 }
 0x107   : > { %v1267_v0 = vpop.trf.xlu0  ;;  %v1379_v1 = vpop.trf.xlu1 }
 0x108   : > { %v1268_v3 = vunpack.i.l.bf16 %v1267_v0  ;;  %v1271_v4 = vunpack.i.h.bf16 %v1267_v0  ;;  %v1380_v5 = vunpack.i.l.bf16 %v1379_v1  ;;  %v1383_v6 = vunpack.i.h.bf16 %v1379_v1 }
 0x10f   : > { %v1272_v2 = vpop.trf.xlu0  ;;  %v1384_v9 = vpop.trf.xlu1 }
 0x110   : > { %v1273_v7 = vunpack.i.l.bf16 %v1272_v2  ;;  %v1276_v8 = vunpack.i.h.bf16 %v1272_v2  ;;  %v1385_v10 = vunpack.i.l.bf16 %v1384_v9  ;;  %v1388_v11 = vunpack.i.h.bf16 %v1384_v9 }
 0x112   : > { %v385_v12 = vpack.c.bf16 %v1273_v7, %v1268_v3  ;;  %v386_v13 = vpack.c.bf16 %v1276_v8, %v1271_v4  ;;  %v401_v14 = vpack.c.bf16 %v1385_v10, %v1380_v5  ;;  %v402_v15 = vpack.c.bf16 %v1388_v11, %v1383_v6 }
 0x114   : > { %568 = vmatmul.bf16.gmra.mxu0 %v385_v12  ;;  %657 = vmatmul.bf16.gmra.mxu1 %v386_v13 }
 0x115   : > { %608 = vmatmul.bf16.gmra.mxu2 %v401_v14  ;;  %697 = vmatmul.bf16.gmra.mxu3 %v402_v15 }
 0x117   : > { %v1277_v16 = vpop.trf.xlu0  ;;  %v1389_v17 = vpop.trf.xlu1 }
 0x118   : > { %v1278_v19 = vunpack.i.l.bf16 %v1277_v16  ;;  %v1281_v20 = vunpack.i.h.bf16 %v1277_v16  ;;  %v1390_v21 = vunpack.i.l.bf16 %v1389_v17  ;;  %v1393_v22 = vunpack.i.h.bf16 %v1389_v17 }
 0x11f   : > { %v1282_v18 = vpop.trf.xlu0  ;;  %v1394_v25 = vpop.trf.xlu1 }
 0x120   : > { %v1283_v23 = vunpack.i.l.bf16 %v1282_v18  ;;  %v1286_v24 = vunpack.i.h.bf16 %v1282_v18  ;;  %v1395_v26 = vunpack.i.l.bf16 %v1394_v25  ;;  %v1398_v27 = vunpack.i.h.bf16 %v1394_v25 }
 0x122   : > { %v387_v28 = vpack.c.bf16 %v1283_v23, %v1278_v19  ;;  %v388_v29 = vpack.c.bf16 %v1286_v24, %v1281_v20  ;;  %v403_v30 = vpack.c.bf16 %v1395_v26, %v1390_v21  ;;  %v404_v31 = vpack.c.bf16 %v1398_v27, %v1393_v22 }
 0x124   : > { %573 = vmatmul.bf16.gmra.mxu0 %v387_v28  ;;  %662 = vmatmul.bf16.gmra.mxu1 %v388_v29 }
 0x125   : > { %613 = vmatmul.bf16.gmra.mxu2 %v403_v30  ;;  %702 = vmatmul.bf16.gmra.mxu3 %v404_v31 }
 0x127   : > { %v1287_v32 = vpop.trf.xlu0  ;;  %v1399_v33 = vpop.trf.xlu1 }
 0x128   : > { %v1288_v35 = vunpack.i.l.bf16 %v1287_v32  ;;  %v1291_v36 = vunpack.i.h.bf16 %v1287_v32  ;;  %v1400_v37 = vunpack.i.l.bf16 %v1399_v33  ;;  %v1403_v38 = vunpack.i.h.bf16 %v1399_v33 }
 0x12f   : > { %v1292_v34 = vpop.trf.xlu0  ;;  %v1404_v41 = vpop.trf.xlu1 }
 0x130   : > { %v1293_v39 = vunpack.i.l.bf16 %v1292_v34  ;;  %v1296_v40 = vunpack.i.h.bf16 %v1292_v34  ;;  %v1405_v42 = vunpack.i.l.bf16 %v1404_v41  ;;  %v1408_v43 = vunpack.i.h.bf16 %v1404_v41 }
 0x132   : > { %v389_v44 = vpack.c.bf16 %v1293_v39, %v1288_v35  ;;  %v390_v45 = vpack.c.bf16 %v1296_v40, %v1291_v36  ;;  %v405_v46 = vpack.c.bf16 %v1405_v42, %v1400_v37  ;;  %v406_v47 = vpack.c.bf16 %v1408_v43, %v1403_v38 }
 0x134   : > { %578 = vmatmul.bf16.gmra.mxu0 %v389_v44  ;;  %667 = vmatmul.bf16.gmra.mxu1 %v390_v45 }
 0x135   : > { %618 = vmatmul.bf16.gmra.mxu2 %v405_v46  ;;  %707 = vmatmul.bf16.gmra.mxu3 %v406_v47 }
 0x141   : > { %v544_v48 = vpop.f32.mrf.mxu0  ;;  %v633_v49 = vpop.f32.mrf.mxu1 }
 0x142   : > { %v634_v50 = vadd.f32 %v633_v49, %v544_v48 }
 0x144   : > { %v814_v56 = vmul.f32 %v634_v50, %v634_v50 }
 0x148   : > { %v584_v51 = vpop.f32.mrf.mxu2  ;;  %v673_v52 = vpop.f32.mrf.mxu3 }
 0x149   : > { %v546_v53 = vpop.f32.mrf.mxu0  ;;  %v635_v54 = vpop.f32.mrf.mxu1  ;;  %v1576_v61 = vadd.f32 %v673_v52, %v584_v51 }
 0x14a   : > { %v636_v55 = vadd.f32 %v635_v54, %v546_v53 }
 0x14c   : > { %v1069_v57 = vpack.c.bf16 %v636_v55, %v634_v50  ;;  %v777_v58 = vadd.f32 %v636_v55, %v634_v50  ;;  %v815_v59 = vmul.f32 %v636_v55, %v636_v55 }
 0x14e   : > { %1070 = vst [vmem:[%s1573_s4] sm:$0xff] %v1069_v57   ;;  %v846_v60 = vadd.f32 %v815_v59, %v814_v56 }
 0x150   : > { %v586_v62 = vpop.f32.mrf.mxu2  ;;  %v675_v63 = vpop.f32.mrf.mxu3 }
 0x151   : > { %v549_v0 = vpop.f32.mrf.mxu0  ;;  %v638_v1 = vpop.f32.mrf.mxu1  ;;  %v1578_v2 = vadd.f32 %v675_v63, %v586_v62 }
 0x152   : > { %v639_v3 = vadd.f32 %v638_v1, %v549_v0 }
 0x153   : > { %v1109_v4 = vpack.c.bf16 %v1578_v2, %v1576_v61 }
 0x154   : > { %v778_v5 = vadd.f32 %v777_v58, %v639_v3  ;;  %v816_v6 = vmul.f32 %v639_v3, %v639_v3 }
 0x155   : > { %1153 = vst [vmem:[%s1573_s4 + $0x40] sm:$0xff] %v1109_v4  }
 0x156   : > { %v847_v7 = vadd.f32 %v846_v60, %v816_v6 }
 0x158   : > { %v589_v8 = vpop.f32.mrf.mxu2  ;;  %v678_v9 = vpop.f32.mrf.mxu3 }
 0x159   : > { %v551_v10 = vpop.f32.mrf.mxu0  ;;  %v640_v11 = vpop.f32.mrf.mxu1  ;;  %v1588_v17 = vadd.f32 %v678_v9, %v589_v8 }
 0x15a   : > { %v641_v12 = vadd.f32 %v640_v11, %v551_v10 }
 0x15c   : > { %v1074_v13 = vpack.c.bf16 %v641_v12, %v639_v3  ;;  %v1583_v14 = vadd.f32 %v778_v5, %v641_v12  ;;  %v817_v15 = vmul.f32 %v641_v12, %v641_v12 }
 0x15e   : > { %1146 = vst [vmem:[%s1573_s4 + $0x8] sm:$0xff] %v1074_v13   ;;  %v1586_v16 = vadd.f32 %v847_v7, %v817_v15 }
 0x160   : > { %v591_v18 = vpop.f32.mrf.mxu2  ;;  %v680_v19 = vpop.f32.mrf.mxu3 }
 0x161   : > { %v554_v20 = vpop.f32.mrf.mxu0  ;;  %v643_v21 = vpop.f32.mrf.mxu1  ;;  %v1590_v22 = vadd.f32 %v680_v19, %v591_v18 }
 0x162   : > { %v644_v28 = vadd.f32 %v643_v21, %v554_v20 }
 0x163   : > { %v1114_v23 = vpack.c.bf16 %v1590_v22, %v1588_v17 }
 0x164   : > { %v818_v20 = vmul.f32 %v644_v28, %v644_v28 }
 0x165   : > { %1154 = vst [vmem:[%s1573_s4 + $0x48] sm:$0xff] %v1114_v23  }
 0x168   : > { %v594_v24 = vpop.f32.mrf.mxu2  ;;  %v683_v25 = vpop.f32.mrf.mxu3 }
 0x169   : > { %v556_v26 = vpop.f32.mrf.mxu0  ;;  %v645_v27 = vpop.f32.mrf.mxu1  ;;  %v1599_v31 = vadd.f32 %v683_v25, %v594_v24  ;;  %v780_v24 = vadd.f32 %v1583_v14, %v644_v28  ;;  %v849_v25 = vadd.f32 %v1586_v16, %v818_v20 }
 0x16a   : > { %v1595_v29 = vadd.f32 %v645_v27, %v556_v26 }
 0x16c   : > { %v1079_v30 = vpack.c.bf16 %v1595_v29, %v644_v28  ;;  %v819_v23 = vmul.f32 %v1595_v29, %v1595_v29  ;;  %v781_v26 = vadd.f32 %v780_v24, %v1595_v29 }
 0x16e   : > { %1147 = vst [vmem:[%s1573_s4 + $0x10] sm:$0xff] %v1079_v30  }
 0x170   : > { %v596_v32 = vpop.f32.mrf.mxu2  ;;  %v685_v33 = vpop.f32.mrf.mxu3 }
 0x171   : > { %v559_v34 = vpop.f32.mrf.mxu0  ;;  %v648_v35 = vpop.f32.mrf.mxu1  ;;  %v1601_v36 = vadd.f32 %v685_v33, %v596_v32  ;;  %v850_v33 = vadd.f32 %v849_v25, %v819_v23 }
 0x172   : > { %v649_v42 = vadd.f32 %v648_v35, %v559_v34 }
 0x173   : > { %v1119_v37 = vpack.c.bf16 %v1601_v36, %v1599_v31 }
 0x174   : > { %v820_v27 = vmul.f32 %v649_v42, %v649_v42 }
 0x175   : > { %1155 = vst [vmem:[%s1573_s4 + $0x50] sm:$0xff] %v1119_v37   ;;  %v782_v37 = vadd.f32 %v781_v26, %v649_v42  ;;  %v830_v26 = vmul.f32 %v1576_v61, %v1576_v61 }
 0x178   : > { %v599_v38 = vpop.f32.mrf.mxu2  ;;  %v688_v39 = vpop.f32.mrf.mxu3 }
 0x179   : > { %v561_v40 = vpop.f32.mrf.mxu0  ;;  %v650_v41 = vpop.f32.mrf.mxu1  ;;  %v1607_v45 = vadd.f32 %v688_v39, %v599_v38 }
 0x17a   : > { %v651_v43 = vadd.f32 %v650_v41, %v561_v40  ;;  %v851_v41 = vadd.f32 %v850_v33, %v820_v27  ;;  %v831_v33 = vmul.f32 %v1578_v2, %v1578_v2 }
 0x17c   : > { %v1084_v44 = vpack.c.bf16 %v651_v43, %v649_v42  ;;  %v821_v38 = vmul.f32 %v651_v43, %v651_v43 }
 0x17e   : > { %1148 = vst [vmem:[%s1573_s4 + $0x18] sm:$0xff] %v1084_v44   ;;  %v783_v44 = vadd.f32 %v782_v37, %v651_v43  ;;  %v852_v14 = vadd.f32 %v851_v41, %v821_v38 }
 0x180   : > { %v601_v46 = vpop.f32.mrf.mxu2  ;;  %v690_v47 = vpop.f32.mrf.mxu3 }
 0x181   : > { %v564_v48 = vpop.f32.mrf.mxu0  ;;  %v653_v49 = vpop.f32.mrf.mxu1  ;;  %v1609_v50 = vadd.f32 %v690_v47, %v601_v46 }
 0x182   : > { %v654_v56 = vadd.f32 %v653_v49, %v564_v48 }
 0x183   : > { %v1124_v51 = vpack.c.bf16 %v1609_v50, %v1607_v45 }
 0x184   : > { %v822_v46 = vmul.f32 %v654_v56, %v654_v56  ;;  %v784_v28 = vadd.f32 %v783_v44, %v654_v56 }
 0x185   : > { %1156 = vst [vmem:[%s1573_s4 + $0x58] sm:$0xff] %v1124_v51  }
 0x186   : > { %v853_v48 = vadd.f32 %v852_v14, %v822_v46 }
 0x188   : > { %v604_v52 = vpop.f32.mrf.mxu2  ;;  %v693_v53 = vpop.f32.mrf.mxu3 }
 0x189   : > { %v566_v54 = vpop.f32.mrf.mxu0  ;;  %v655_v55 = vpop.f32.mrf.mxu1  ;;  %v1615_v59 = vadd.f32 %v693_v53, %v604_v52 }
 0x18a   : > { %v656_v57 = vadd.f32 %v655_v55, %v566_v54 }
 0x18c   : > { %v1089_v58 = vpack.c.bf16 %v656_v57, %v654_v56  ;;  %v823_v16 = vmul.f32 %v656_v57, %v656_v57  ;;  %v785_v49 = vadd.f32 %v784_v28, %v656_v57 }
 0x18e   : > { %1149 = vst [vmem:[%s1573_s4 + $0x20] sm:$0xff] %v1089_v58   ;;  %v854_v58 = vadd.f32 %v853_v48, %v823_v16  ;;  %v835_v48 = vmul.f32 %v1601_v36, %v1601_v36 }
 0x190   : > { %v606_v60 = vpop.f32.mrf.mxu2  ;;  %v695_v62 = vpop.f32.mrf.mxu3 }
 0x191   : > { %v569_v63 = vpop.f32.mrf.mxu0  ;;  %v658_v0 = vpop.f32.mrf.mxu1  ;;  %v1617_v1 = vadd.f32 %v695_v62, %v606_v60 }
 0x192   : > { %v659_v8 = vadd.f32 %v658_v0, %v569_v63 }
 0x193   : > { %v1129_v3 = vpack.c.bf16 %v1617_v1, %v1615_v59 }
 0x194   : > { %v824_v51 = vmul.f32 %v659_v8, %v659_v8  ;;  %v786_v43 = vadd.f32 %v785_v49, %v659_v8 }
 0x195   : > { %1157 = vst [vmem:[%s1573_s4 + $0x60] sm:$0xff] %v1129_v3  }
 0x196   : > { %v855_v62 = vadd.f32 %v854_v58, %v824_v51  ;;  %v836_v51 = vmul.f32 %v1607_v45, %v1607_v45 }
 0x198   : > { %v609_v4 = vpop.f32.mrf.mxu2  ;;  %v698_v5 = vpop.f32.mrf.mxu3 }
 0x199   : > { %v571_v6 = vpop.f32.mrf.mxu0  ;;  %v660_v7 = vpop.f32.mrf.mxu1  ;;  %v1623_v11 = vadd.f32 %v698_v5, %v609_v4 }
 0x19a   : > { %v661_v9 = vadd.f32 %v660_v7, %v571_v6 }
 0x19c   : > { %v1094_v10 = vpack.c.bf16 %v661_v9, %v659_v8  ;;  %v825_v60 = vmul.f32 %v661_v9, %v661_v9  ;;  %v787_v63 = vadd.f32 %v786_v43, %v661_v9 }
 0x19e   : > { %1150 = vst [vmem:[%s1573_s4 + $0x28] sm:$0xff] %v1094_v10   ;;  %v856_v4 = vadd.f32 %v855_v62, %v825_v60 }
 0x1a0   : > { %v611_v12 = vpop.f32.mrf.mxu2  ;;  %v700_v13 = vpop.f32.mrf.mxu3 }
 0x1a1   : > { %v574_v15 = vpop.f32.mrf.mxu0  ;;  %v663_v18 = vpop.f32.mrf.mxu1  ;;  %v1625_v19 = vadd.f32 %v700_v13, %v611_v12 }
 0x1a2   : > { %v664_v39 = vadd.f32 %v663_v18, %v574_v15 }
 0x1a3   : > { %v1134_v21 = vpack.c.bf16 %v1625_v19, %v1623_v11 }
 0x1a4   : > { %v826_v0 = vmul.f32 %v664_v39, %v664_v39  ;;  %v788_v57 = vadd.f32 %v787_v63, %v664_v39 }
 0x1a5   : > { %1158 = vst [vmem:[%s1573_s4 + $0x68] sm:$0xff] %v1134_v21  }
 0x1a6   : > { %v857_v6 = vadd.f32 %v856_v4, %v826_v0 }
 0x1a8   : > { %v614_v30 = vpop.f32.mrf.mxu2  ;;  %v703_v32 = vpop.f32.mrf.mxu3 }
 0x1a9   : > { %v576_v34 = vpop.f32.mrf.mxu0  ;;  %v665_v35 = vpop.f32.mrf.mxu1  ;;  %v1636_v29 = vadd.f32 %v703_v32, %v614_v30 }
 0x1aa   : > { %v666_v40 = vadd.f32 %v665_v35, %v576_v34 }
 0x1ac   : > { %v1099_v47 = vpack.c.bf16 %v666_v40, %v664_v39  ;;  %v827_v5 = vmul.f32 %v666_v40, %v666_v40  ;;  %v789_v7 = vadd.f32 %v788_v57, %v666_v40  ;;  %v832_v40 = vmul.f32 %v1588_v17, %v1588_v17 }
 0x1ae   : > { %1151 = vst [vmem:[%s1573_s4 + $0x30] sm:$0xff] %v1099_v47   ;;  %v858_v18 = vadd.f32 %v857_v6, %v827_v5 }
 0x1b0   : > { %v616_v52 = vpop.f32.mrf.mxu2  ;;  %v705_v53 = vpop.f32.mrf.mxu3 }
 0x1b1   : > { %v579_v42 = vpop.f32.mrf.mxu0  ;;  %v668_v54 = vpop.f32.mrf.mxu1  ;;  %v1638_v55 = vadd.f32 %v705_v53, %v616_v52  ;;  %v837_v53 = vmul.f32 %v1609_v50, %v1609_v50 }
 0x1b2   : > { %v669_v3 = vadd.f32 %v668_v54, %v579_v42 }
 0x1b3   : > { %v1139_v56 = vpack.c.bf16 %v1638_v55, %v1636_v29  ;;  %v843_v5 = vmul.f32 %v1638_v55, %v1638_v55 }
 0x1b4   : > { %v828_v10 = vmul.f32 %v669_v3, %v669_v3  ;;  %v790_v20 = vadd.f32 %v789_v7, %v669_v3 }
 0x1b5   : > { %1159 = vst [vmem:[%s1573_s4 + $0x70] sm:$0xff] %v1139_v56  }
 0x1b6   : > { %v859_v23 = vadd.f32 %v858_v18, %v828_v10 }
 0x1b8   : > { %v619_v12 = vpop.f32.mrf.mxu2  ;;  %v708_v13 = vpop.f32.mrf.mxu3 }
 0x1b9   : > { %v581_v15 = vpop.f32.mrf.mxu0  ;;  %v670_v8 = vpop.f32.mrf.mxu1  ;;  %v709_v32 = vadd.f32 %v708_v13, %v619_v12 }
 0x1ba   : > { %v671_v21 = vadd.f32 %v670_v8, %v581_v15 }
 0x1bb   : > { %v844_v10 = vmul.f32 %v709_v32, %v709_v32 }
 0x1bc   : > { %v1104_v24 = vpack.c.bf16 %v671_v21, %v669_v3  ;;  %v791_v9 = vadd.f32 %v790_v20, %v671_v21  ;;  %v829_v25 = vmul.f32 %v671_v21, %v671_v21 }
 0x1be   : > { %1152 = vst [vmem:[%s1573_s4 + $0x38] sm:$0xff] %v1104_v24   ;;  %v792_v27 = vadd.f32 %v791_v9, %v1576_v61  ;;  %v860_v30 = vadd.f32 %v859_v23, %v829_v25  ;;  %v833_v61 = vmul.f32 %v1590_v22, %v1590_v22 }
 0x1c0   : > { %v793_v34 = vadd.f32 %v792_v27, %v1578_v2  ;;  %v861_v35 = vadd.f32 %v860_v30, %v830_v26  ;;  %v621_v37 = vpop.f32.mrf.mxu2  ;;  %v710_v38 = vpop.f32.mrf.mxu3  ;;  %v834_v2 = vmul.f32 %v1599_v31, %v1599_v31 }
 0x1c1   : > { %v711_v39 = vadd.f32 %v710_v38, %v621_v37 }
 0x1c2   : > { %v794_v41 = vadd.f32 %v793_v34, %v1588_v17  ;;  %v862_v44 = vadd.f32 %v861_v35, %v831_v33 }
 0x1c3   : > { %v1144_v46 = vpack.c.bf16 %v711_v39, %v709_v32 }
 0x1c4   : > { %v795_v47 = vadd.f32 %v794_v41, %v1590_v22  ;;  %v863_v14 = vadd.f32 %v862_v44, %v832_v40 }
 0x1c5   : > { %1160 = vst [vmem:[%s1573_s4 + $0x78] sm:$0xff] %v1144_v46  }
 0x1c6   : > { %v796_v28 = vadd.f32 %v795_v47, %v1599_v31  ;;  %v864_v16 = vadd.f32 %v863_v14, %v833_v61  ;;  %v838_v31 = vmul.f32 %v1615_v59, %v1615_v59 }
 0x1c8   : > { %v797_v17 = vadd.f32 %v796_v28, %v1601_v36  ;;  %v865_v49 = vadd.f32 %v864_v16, %v834_v2  ;;  %v839_v36 = vmul.f32 %v1617_v1, %v1617_v1 }
 0x1ca   : > { %v866_v52 = vadd.f32 %v865_v49, %v835_v48  ;;  %v798_v22 = vadd.f32 %v797_v17, %v1607_v45  ;;  %v840_v45 = vmul.f32 %v1623_v11, %v1623_v11 }
 0x1cc   : > { %v799_v42 = vadd.f32 %v798_v22, %v1609_v50  ;;  %v867_v54 = vadd.f32 %v866_v52, %v836_v51  ;;  %v841_v50 = vmul.f32 %v1625_v19, %v1625_v19 }
 0x1ce   : > { %v800_v58 = vadd.f32 %v799_v42, %v1615_v59  ;;  %v868_v43 = vadd.f32 %v867_v54, %v837_v53  ;;  %v842_v59 = vmul.f32 %v1636_v29, %v1636_v29 }
 0x1d0   : > { %v801_v60 = vadd.f32 %v800_v58, %v1617_v1  ;;  %v869_v56 = vadd.f32 %v868_v43, %v838_v31 }
 0x1d2   : > { %v802_v62 = vadd.f32 %v801_v60, %v1623_v11  ;;  %v870_v63 = vadd.f32 %v869_v56, %v839_v36 }
 0x1d4   : > { %v803_v0 = vadd.f32 %v802_v62, %v1625_v19  ;;  %v871_v3 = vadd.f32 %v870_v63, %v840_v45  ;;  %v845_v19 = vmul.f32 %v711_v39, %v711_v39 }
 0x1d6   : > { %v804_v4 = vadd.f32 %v803_v0, %v1636_v29  ;;  %v872_v57 = vadd.f32 %v871_v3, %v841_v50 }
 0x1d8   : > { %v805_v1 = vadd.f32 %v804_v4, %v1638_v55  ;;  %v873_v6 = vadd.f32 %v872_v57, %v842_v59 }
 0x1da   : > { %v874_v11 = vadd.f32 %v873_v6, %v843_v5  ;;  %v806_v7 = vadd.f32 %v805_v1, %v709_v32 }
 0x1dc   : > { %v875_v12 = vadd.f32 %v874_v11, %v844_v10  ;;  %v807_v13 = vadd.f32 %v806_v7, %v711_v39 }
 0x1de   : > { %v808_v15 = vrot.slane %v807_v13, 4  ;;  %v876_v8 = vadd.f32 %v875_v12, %v845_v19 }
 0x1e0   : > { %v809_v18 = vadd.f32 %v808_v15, %v807_v13  ;;  %v877_v20 = vrot.slane %v876_v8, 4 }
 0x1e2   : > { %v810_v21 = vrot.slane %v809_v18, 2  ;;  %v878_v29 = vadd.f32 %v877_v20, %v876_v8 }
 0x1e4   : > { %v811_v23 = vadd.f32 %v810_v21, %v809_v18  ;;  %v879_v24 = vrot.slane %v878_v29, 2 }
 0x1e6   : > { %v812_v9 = vrot.slane %v811_v23, 1  ;;  %v880_v25 = vadd.f32 %v879_v24, %v878_v29 }
 0x1e8   : > { %v881_v55 = vrot.slane %v880_v25, 1  ;;  %v813_v26 = vadd.f32 %v812_v9, %v811_v23 }
 0x1ea   : > { %v882_v27 = vadd.f32 %v881_v55, %v880_v25 }
 0x1ec   : > { %v884_v30 = vsel %vm883_vm0, %v813_v26, %v882_v27 }
 0x1ed   : > { %885 = vst [vmem:[%s182_s7] sm:$0x3] %v884_v30 }
 0x1ee PF: > { %s14_s12 = sadd.s32 1, %s1415_s12  }
 0x1ef   : > { %p11_p5 = scmp.ge.s32.totalorder %s14_s12, 4  }
 0x1f1   :  { %13 = sbr.rel (!%p11_p5) target bundleno = 1 (0x1), region = 70 }

// kernel: block_forward.5
= control target key start
LH: loop header
LB: loop body
LE: loop exit
PB: predicated region body
PF: predicated region fallthrough
CT: control target
= control target key end

     0   :  { %s3763_s15 = smov 0   ;;  %s5378_s0 = inlined_call_operand.vmem [shape: bf16[2,16,16,128], index: 0, kind: input, shape index: {}]   ;;  %s5379_s1 = inlined_call_operand.vmem [shape: f32[2,128], index: 1, kind: input, shape index: {}]   ;;  %s5380_s2 = inlined_call_operand.vmem [shape: bf16[1152,128], index: 2, kind: input, shape index: {}]   ;;  %s5381_s3 = inlined_call_operand.vmem [shape: bf16[512,128], index: 3, kind: output, shape index: {0}]   ;;  %s5382_s4 = inlined_call_operand.vmem [shape: f32[2,2,128], index: 4, kind: output, shape index: {1}]  }
   0x1 LB: > { %s3769_s16 = sadd.s32 4294967295, %s3735_s15   ;;  %p3149_p0 = scmp.ge.s32.totalorder %s3735_s15, 1  ;;  %s3735_s15 = sphi %s3763_s15, %s15_s15  }
   0x2   : > { %p165_p1 = scmp.lt.s32.totalorder %s3735_s15, 3 }
   0x4   : > { %p166_p2 = pnand %p3149_p0, %p165_p1 }
   0x6   : > { %169 = sbr.rel (%p166_p2) target bundleno = 792 (0x318), region = 32 }
   0xb   : > { %v3453_v0 = vld [vmem:[%s5380_s2 + $0x38] sm:$0xff]  ;;  %p195_p3 = scmp.lt.s32.totalorder %s3769_s16, 1  ;;  %v3452_v1 = vld [vmem:[%s5380_s2 + $0x30] sm:$0xff]  ;;  %v5383_v2 = vmov 0.0   ;;  %v3451_v4 = vld [vmem:[%s5380_s2 + $0x28] sm:$0xff]  ;;  %vm406_vm0 = vcmask 1040384  }
   0xc   : > { %3692 = vmatpush.bf16.msra.mxu1 %v3453_v0  ;;  %3693 = vmatpush.bf16.msra.mxu2 %v3453_v0  ;;  %v567_v3 = vrot.slane %v5383_v2, 1  ;;  %v3796_v5 = vld [vmem:[%s5379_s1] ss:$0 sm:$0xff]  ;;  %v3807_v12 = vld [vmem:[%s5379_s1 + $0x1] ss:$0 sm:$0xff]  ;;  %vm566_vm1 = vcmask 1046528  }
   0xd   : > { %s3781_s21 = scalar_select %p195_p3, %s3769_s16, 1  ;;  %3694 = vmatpush.bf16.msra.mxu3 %v3453_v0  ;;  %2085 = vmatpush.bf16.msra.mxu0 %v3453_v0  ;;  %v3450_v23 = vld [vmem:[%s5380_s2 + $0x20] sm:$0xff]  ;;  %v3449_v40 = vld [vmem:[%s5380_s2 + $0x18] sm:$0xff]  ;;  %v3448_v57 = vld [vmem:[%s5380_s2 + $0x10] sm:$0xff]  ;;  %vm675_vm2 = vcmask 1045504  }
   0xe   : > { %v3802_v9 = vpack.c.bf16 %v567_v3, %v5383_v2  ;;  %s3152_s17 = sshll.u32 %s3769_s16, 5 }
   0xf   : > { %s3445_s22 = sshll.u32 %s3781_s21, 7  ;;  %p201_p4 = scmp.lt.s32.totalorder %s3152_s17, 63 }
  0x10   : > { %s3791_s27 = scalar_lea.vmem %s5378_s0, %s3445_s22  ;;  %3695 = vmatpush.bf16.msra.mxu1 %v3452_v1  ;;  %3696 = vmatpush.bf16.msra.mxu2 %v3452_v1  ;;  %v1200_v31 = vunpack.c.l.b16 %v3802_v9  ;;  %s3154_s22 = sshll.u32 %s3781_s21, 1 }
  0x11   : > { %v3664_v6 = vld [vmem:[%s3791_s27 + $0x18] sm:$0xff]   ;;  %3697 = vmatpush.bf16.msra.mxu3 %v3452_v1  ;;  %2086 = vmatpush.bf16.msra.mxu0 %v3452_v1  ;;  %v3665_v15 = vld [vmem:[%s3791_s27 + $0x20] sm:$0xff]   ;;  %s5785_s17 = smov (!%p201_p4, %s3152_s17), 63  ;;  %s209_s25 = scalar_lea.vmem %s5382_s4, %s3154_s22 }
  0x12   : > { %v3668_v7 = vld [vmem:[%s3791_s27 + $0x38] sm:$0xff]   ;;  %v3532_v10 = vunpack.c.l.bf16 %v3664_v6  ;;  %v3533_v11 = vunpack.c.h.bf16 %v3664_v6  ;;  %v3536_v18 = vunpack.c.l.bf16 %v3665_v15  ;;  %v3537_v26 = vunpack.c.h.bf16 %v3665_v15  ;;  %s3153_s16 = sshll.u32 %s5785_s17, 2 }
  0x13   : > { %v3672_v8 = vld [vmem:[%s3791_s27 + $0x58] sm:$0xff]   ;;  %v3548_v13 = vunpack.c.l.bf16 %v3668_v7  ;;  %v3549_v14 = vunpack.c.h.bf16 %v3668_v7  ;;  %s5276_s20 = scalar_lea.vmem %s5381_s3, %s3153_s16 }
  0x14   : > { %v3564_v16 = vunpack.c.l.bf16 %v3672_v8  ;;  %v3565_v17 = vunpack.c.h.bf16 %v3672_v8  ;;  %v283_v19 = vmul.f32 %v3796_v5, %v3532_v10  ;;  %v284_v20 = vmul.f32 %v3796_v5, %v3533_v11  ;;  %3698 = vmatpush.bf16.msra.mxu1 %v3451_v4  ;;  %3699 = vmatpush.bf16.msra.mxu2 %v3451_v4 }
  0x15   : > { %v291_v21 = vmul.f32 %v3796_v5, %v3548_v13  ;;  %v292_v22 = vmul.f32 %v3796_v5, %v3549_v14  ;;  %v285_v27 = vmul.f32 %v3796_v5, %v3536_v18  ;;  %3700 = vmatpush.bf16.msra.mxu3 %v3451_v4  ;;  %2087 = vmatpush.bf16.msra.mxu0 %v3451_v4  ;;  %v3447_v14 = vld [vmem:[%s5380_s2 + $0x8] sm:$0xff] }
  0x16   : > { %v299_v24 = vmul.f32 %v3796_v5, %v3564_v16  ;;  %v300_v25 = vmul.f32 %v3796_v5, %v3565_v17  ;;  %v316_v28 = vadd.f32 %v3807_v12, %v283_v19  ;;  %v317_v29 = vadd.f32 %v3807_v12, %v284_v20 }
  0x17   : > { %v324_v30 = vadd.f32 %v3807_v12, %v291_v21  ;;  %v325_v32 = vadd.f32 %v3807_v12, %v292_v22  ;;  %v286_v35 = vmul.f32 %v3796_v5, %v3537_v26  ;;  %v3829_v39 = vadd.f32 %v3807_v12, %v285_v27 }
  0x18   : > { %v332_v33 = vadd.f32 %v3807_v12, %v299_v24  ;;  %v333_v34 = vadd.f32 %v3807_v12, %v300_v25  ;;  %v348_v36 = vmax.f32 %v316_v28, 0.0  ;;  %v349_v37 = vmax.f32 %v317_v29, 0.0  ;;  %3701 = vmatpush.bf16.msra.mxu1 %v3450_v23  ;;  %3702 = vmatpush.bf16.msra.mxu2 %v3450_v23  ;;  %v3446_v28 = vld [vmem:[%s5380_s2] sm:$0xff] }
  0x19   : > { %v356_v38 = vmax.f32 %v324_v30, 0.0  ;;  %v357_v41 = vmax.f32 %v325_v32, 0.0  ;;  %v3835_v44 = vadd.f32 %v3807_v12, %v286_v35  ;;  %3703 = vmatpush.bf16.msra.mxu3 %v3450_v23  ;;  %2088 = vmatpush.bf16.msra.mxu0 %v3450_v23  ;;  %v350_v48 = vmax.f32 %v3829_v39, 0.0  ;;  %v3669_v23 = vld [vmem:[%s3791_s27 + $0x40] sm:$0xff]   ;;  %v3469_v35 = vld [vmem:[%s5380_s2 + $0xb8] sm:$0xff] }
  0x1a   : > { %v364_v42 = vmax.f32 %v332_v33, 0.0  ;;  %v365_v43 = vmax.f32 %v333_v34, 0.0  ;;  %v416_v45 = vrot.slane %v348_v36, 7  ;;  %v417_v46 = vrot.slane %v349_v37, 7 }
  0x1b   : > { %v428_v47 = vrot.slane %v356_v38, 7  ;;  %v429_v49 = vrot.slane %v357_v41, 7  ;;  %v351_v52 = vmax.f32 %v3835_v44, 0.0  ;;  %v419_v32 = vrot.slane %v350_v48, 7  ;;  %v3477_v41 = vld [vmem:[%s5380_s2 + $0xf8] sm:$0xff]  ;;  %v3519_v44 = vld [vmem:[%s3791_s27] sm:$0xff]  }
  0x1c   : > { %v440_v50 = vrot.slane %v364_v42, 7  ;;  %v441_v51 = vrot.slane %v365_v43, 7  ;;  %v3840_v53 = vsel %vm406_vm0, %v416_v45, %v417_v46  ;;  %v3843_v54 = vsel %vm406_vm0, 0.0, %v416_v45  ;;  %3704 = vmatpush.bf16.msra.mxu1 %v3449_v40  ;;  %3705 = vmatpush.bf16.msra.mxu2 %v3449_v40  ;;  %v3673_v43 = vld [vmem:[%s3791_s27 + $0x60] sm:$0xff]  }
  0x1d   : > { %v3846_v55 = vsel %vm406_vm0, %v417_v46, 0.0  ;;  %v3849_v56 = vsel %vm406_vm0, 0.0, %v428_v47  ;;  %v584_v58 = vrot.slane %v3843_v54, 1  ;;  %v585_v59 = vrot.slane %v3840_v53, 1  ;;  %3706 = vmatpush.bf16.msra.mxu3 %v3449_v40  ;;  %2089 = vmatpush.bf16.msra.mxu0 %v3449_v40 }
  0x1e   : > { %5509 = vst [vmem:[#allocation2_spill] sm:$0xff] %v3849_v56  ;;  %v587_v60 = vrot.slane %v3846_v55, 1  ;;  %v3858_v61 = vsel %vm406_vm0, %v428_v47, %v429_v49  ;;  %v3861_v62 = vsel %vm406_vm0, %v429_v49, 0.0  ;;  %v604_v63 = vrot.slane %v3849_v56, 1 }
  0x1f   : > { %5510 = vst [vmem:[#allocation3_spill] sm:$0xff] %v3858_v61  ;;  %v605_v0 = vrot.slane %v3858_v61, 1  ;;  %v3866_v1 = vsel %vm406_vm0, %v440_v50, %v441_v51  ;;  %v3869_v3 = vsel %vm566_vm1, %v584_v58, %v585_v59  ;;  %v607_v6 = vrot.slane %v3861_v62, 1 }
  0x20   : > { %5511 = vst [vmem:[#allocation4_spill] sm:$0xff] %v3861_v62  ;;  %v3872_v4 = vsel %vm566_vm1, %v585_v59, %v587_v60  ;;  %v3876_v7 = vsel %vm406_vm0, 0.0, %v440_v50  ;;  %v3880_v8 = vpack.c.bf16 %v3869_v3, %v3843_v54  ;;  %v3890_v13 = vsel %vm406_vm0, %v441_v51, 0.0  ;;  %3707 = vmatpush.bf16.msra.mxu1 %v3448_v57  ;;  %3708 = vmatpush.bf16.msra.mxu2 %v3448_v57 }
  0x21   : > { %5512 = vst [vmem:[#allocation5_spill] sm:$0xff] %v3866_v1  ;;  %v3884_v10 = vpack.c.bf16 %v3872_v4, %v3840_v53  ;;  %v3887_v11 = vsel %vm566_vm1, %v604_v63, %v605_v0  ;;  %v3896_v15 = vsel %vm566_vm1, %v605_v0, %v607_v6  ;;  %v624_v17 = vrot.slane %v3876_v7, 1  ;;  %3709 = vmatpush.bf16.msra.mxu3 %v3448_v57  ;;  %v3468_v0 = vld [vmem:[%s5380_s2 + $0xb0] sm:$0xff] }
  0x22   : > { %5513 = vst [vmem:[#allocation6_spill] sm:$0xff] %v3876_v7  ;;  %v3900_v16 = vpack.c.bf16 %v3887_v11, %v3849_v56  ;;  %v625_v18 = vrot.slane %v3866_v1, 1  ;;  %2090 = vmatpush.bf16.msra.mxu0 %v3448_v57  ;;  %v1238_v19 = vunpack.c.l.b16 %v3880_v8  ;;  %v3908_v21 = vpack.c.bf16 %v3896_v15, %v3858_v61  ;;  %v3485_v57 = vld [vmem:[%s5380_s2 + $0x138] sm:$0xff]  ;;  %v3476_v6 = vld [vmem:[%s5380_s2 + $0xf0] sm:$0xff] }
  0x23   : > { %5514 = vst [vmem:[#allocation7_spill] sm:$0xff] %v3887_v11  ;;  %v1245_v20 = vunpack.c.l.b16 %v3884_v10  ;;  %v627_v22 = vrot.slane %v3890_v13, 1  ;;  %v3552_v33 = vunpack.c.l.bf16 %v3669_v23  ;;  %v3939_v36 = vpack.c.b16 %v1200_v31, %v1200_v31 }
  0x24   : > { %5515 = vst [vmem:[#allocation8_spill] sm:$0xff] %v3890_v13  ;;  %v1294_v24 = vunpack.c.l.b16 %v3900_v16  ;;  %v3914_v25 = vsel %vm566_vm1, %v624_v17, %v625_v18  ;;  %v1301_v26 = vunpack.c.l.b16 %v3908_v21  ;;  %3710 = vmatpush.bf16.msra.mxu1 %v3447_v14  ;;  %3711 = vmatpush.bf16.msra.mxu2 %v3447_v14  ;;  %v420_v37 = vrot.slane %v351_v52, 7  ;;  %v3461_v52 = vld [vmem:[%s5380_s2 + $0x78] sm:$0xff] }
  0x25   : > { %5516 = vst [vmem:[#allocation9_spill] sm:$0xff] %v3896_v15  ;;  %v3918_v27 = vsel %vm566_vm1, %v625_v18, %v627_v22  ;;  %v3925_v29 = vpack.c.bf16 %v3914_v25, %v3876_v7  ;;  %3712 = vmatpush.bf16.msra.mxu3 %v3447_v14  ;;  %v3931_v34 = vpack.c.b16 %v1245_v20, %v1238_v19  ;;  %v3949_v42 = vsel %vm406_vm0, 0.0, %v419_v32  ;;  %v3462_v15 = vld [vmem:[%s5380_s2 + $0x80] sm:$0xff] }
  0x26   : > { %5517 = vst [vmem:[#allocation10_spill] sm:$0xff] %v3900_v16  ;;  %v3929_v30 = vpack.c.bf16 %v3918_v27, %v3866_v1  ;;  %2091 = vmatpush.bf16.msra.mxu0 %v3447_v14  ;;  %v3941_v38 = vpack.c.b16 %v1301_v26, %v1294_v24  ;;  %v3954_v45 = vsel %vm406_vm0, %v419_v32, %v420_v37  ;;  %v3957_v31 = vsel %vm406_vm0, %v420_v37, 0.0 }
  0x27   : > { %5518 = vst [vmem:[#allocation11_spill] sm:$0xff] %v3908_v21  ;;  %v1350_v39 = vunpack.c.l.b16 %v3925_v29  ;;  %v589_v46 = vrot.slane %v3949_v42, 1  ;;  %v3553_v47 = vunpack.c.h.bf16 %v3669_v23  ;;  %v590_v49 = vrot.slane %v3954_v45, 1  ;;  %v3470_v21 = vld [vmem:[%s5380_s2 + $0xc0] sm:$0xff] }
  0x28   : > { %5519 = vst [vmem:[#allocation12_spill] sm:$0xff] %v3914_v25  ;;  %v1357_v40 = vunpack.c.l.b16 %v3929_v30  ;;  %3713 = vmatpush.bf16.msra.mxu1 %v3446_v28  ;;  %3714 = vmatpush.bf16.msra.mxu2 %v3446_v28  ;;  %v592_v50 = vrot.slane %v3957_v31, 1  ;;  %v293_v51 = vmul.f32 %v3796_v5, %v3552_v33  ;;  %v3568_v59 = vunpack.c.l.bf16 %v3673_v43  ;;  %v3460_v33 = vld [vmem:[%s5380_s2 + $0x70] sm:$0xff] }
  0x29   : > { %5520 = vst [vmem:[#allocation13_spill] sm:$0xff] %v3918_v27  ;;  %3715 = vmatpush.bf16.msra.mxu3 %v3446_v28  ;;  %v294_v58 = vmul.f32 %v3796_v5, %v3553_v47  ;;  %v3569_v60 = vunpack.c.h.bf16 %v3673_v43  ;;  %v3520_v63 = vunpack.c.l.bf16 %v3519_v44  ;;  %v3979_v14 = vsel %vm566_vm1, %v589_v46, %v590_v49  ;;  %v3475_v47 = vld [vmem:[%s5380_s2 + $0xe8] sm:$0xff] }
  0x2a   : > { %5521 = vst [vmem:[#allocation14_spill] sm:$0xff] %v3925_v29  ;;  %v3960_v48 = vpack.c.b16 %v1357_v40, %v1350_v39  ;;  %2092 = vmatpush.bf16.msra.mxu0 %v3446_v28  ;;  %v3982_v17 = vsel %vm566_vm1, %v590_v49, %v592_v50  ;;  %v326_v18 = vadd.f32 %v3807_v12, %v293_v51  ;;  %v3521_v19 = vunpack.c.h.bf16 %v3519_v44  ;;  %v3484_v39 = vld [vmem:[%s5380_s2 + $0x130] sm:$0xff]  ;;  %v3467_v44 = vld [vmem:[%s5380_s2 + $0xa8] sm:$0xff] }
  0x2b   : > { %5522 = vst [vmem:[#allocation15_spill] sm:$0xff] %v3929_v30  ;;  %2113 = vmatmul.bf16.vlgmr.msra.gmra.mxu1 %v3931_v34  ;;  %2133 = vmatmul.bf16.vlgmr.msra.gmra.mxu2 %v3941_v38  ;;  %v3989_v20 = vpack.c.bf16 %v3979_v14, %v3949_v42  ;;  %v3993_v22 = vpack.c.bf16 %v3982_v17, %v3954_v45 }
  0x2c   : > { %5523 = vst [vmem:[#allocation16_spill] sm:$0xff] %v3931_v34  ;;  %2263 = vmatpush.bf16.msrb.mxu2 %v3469_v35  ;;  %v327_v23 = vadd.f32 %v3807_v12, %v294_v58  ;;  %2153 = vmatmul.bf16.vlgmr.msra.gmra.mxu3 %v3960_v48  ;;  %v358_v24 = vmax.f32 %v326_v18, 0.0  ;;  %v301_v26 = vmul.f32 %v3796_v5, %v3568_v59  ;;  %v3459_v18 = vld [vmem:[%s5380_s2 + $0x68] sm:$0xff] }
  0x2d   : > { %5524 = vst [vmem:[#allocation17_spill] sm:$0xff] %v3939_v36  ;;  %2352 = vmatpush.bf16.msrb.mxu3 %v3477_v41  ;;  %2093 = vmatmul.bf16.vlgmr.msra.gmra.mxu0 %v3939_v36  ;;  %v302_v28 = vmul.f32 %v3796_v5, %v3569_v60  ;;  %v277_v32 = vmul.f32 %v3796_v5, %v3520_v63  ;;  %v1252_v49 = vunpack.c.l.b16 %v3989_v20  ;;  %v3670_v34 = vld [vmem:[%s3791_s27 + $0x48] sm:$0xff]  }
  0x2e   : > { %5525 = vst [vmem:[#allocation18_spill] sm:$0xff] %v3941_v38  ;;  %2174 = vmatpush.bf16.msrb.mxu1 %v3461_v52  ;;  %2441 = vmatpush.bf16.msrb.mxu0 %v3485_v57  ;;  %v359_v35 = vmax.f32 %v327_v23, 0.0  ;;  %v278_v37 = vmul.f32 %v3796_v5, %v3521_v19  ;;  %v431_v40 = vrot.slane %v358_v24, 7  ;;  %v334_v41 = vadd.f32 %v3807_v12, %v301_v26  ;;  %v3466_v24 = vld [vmem:[%s5380_s2 + $0xa0] sm:$0xff] }
  0x2f   : > { %5526 = vst [vmem:[#allocation19_spill] sm:$0xff] %v3960_v48  ;;  %v335_v43 = vadd.f32 %v3807_v12, %v302_v28  ;;  %v310_v46 = vadd.f32 %v3807_v12, %v277_v32  ;;  %v1259_v52 = vunpack.c.l.b16 %v3993_v22  ;;  %v3474_v26 = vld [vmem:[%s5380_s2 + $0xe0] sm:$0xff] }
  0x30   : > { %2264 = vmatpush.bf16.msrb.mxu2 %v3468_v0  ;;  %v432_v50 = vrot.slane %v359_v35, 7  ;;  %v311_v51 = vadd.f32 %v3807_v12, %v278_v37  ;;  %v4021_v57 = vsel %vm406_vm0, 0.0, %v431_v40  ;;  %v366_v58 = vmax.f32 %v334_v41, 0.0  ;;  %v3483_v35 = vld [vmem:[%s5380_s2 + $0x128] sm:$0xff] }
  0x31   : > { %2353 = vmatpush.bf16.msrb.mxu3 %v3476_v6  ;;  %5527 = vst [vmem:[#allocation20_spill] sm:$0xff] %v4021_v57  ;;  %v367_v59 = vmax.f32 %v335_v43, 0.0  ;;  %v609_v0 = vrot.slane %v4021_v57, 1  ;;  %v342_v6 = vmax.f32 %v310_v46, 0.0  ;;  %v3458_v46 = vld [vmem:[%s5380_s2 + $0x60] sm:$0xff] }
  0x32   : > { %2175 = vmatpush.bf16.msrb.mxu1 %v3460_v33  ;;  %v4024_v60 = vsel %vm406_vm0, %v431_v40, %v432_v50  ;;  %v4027_v63 = vsel %vm406_vm0, %v432_v50, 0.0  ;;  %2442 = vmatpush.bf16.msrb.mxu0 %v3484_v39  ;;  %v443_v28 = vrot.slane %v366_v58, 7  ;;  %v343_v33 = vmax.f32 %v311_v51, 0.0 }
  0x33   : > { %5528 = vst [vmem:[#allocation21_spill] sm:$0xff] %v4024_v60  ;;  %v610_v19 = vrot.slane %v4024_v60, 1  ;;  %v612_v23 = vrot.slane %v4027_v63, 1  ;;  %v444_v32 = vrot.slane %v367_v59, 7  ;;  %v4050_v40 = vpack.c.b16 %v1259_v52, %v1252_v49 }
  0x34   : > { %5529 = vst [vmem:[#allocation22_spill] sm:$0xff] %v4027_v63  ;;  %2265 = vmatpush.bf16.msrb.mxu2 %v3467_v44  ;;  %v407_v44 = vrot.slane %v342_v6, 7  ;;  %v4067_v49 = vsel %vm406_vm0, 0.0, %v443_v28  ;;  %v408_v51 = vrot.slane %v343_v33, 7  ;;  %v3666_v6 = vld [vmem:[%s3791_s27 + $0x28] sm:$0xff]  }
  0x35   : > { %2354 = vmatpush.bf16.msrb.mxu3 %v3475_v47  ;;  %v4045_v37 = vsel %vm566_vm1, %v609_v0, %v610_v19  ;;  %v4048_v39 = vsel %vm566_vm1, %v610_v19, %v612_v23  ;;  %5532 = vst [vmem:[#allocation25_spill] sm:$0xff] %v4050_v40  ;;  %v4064_v47 = vsel %vm406_vm0, %v443_v28, %v444_v32  ;;  %v4070_v50 = vsel %vm406_vm0, %v444_v32, 0.0 }
  0x36   : > { %5530 = vst [vmem:[#allocation23_spill] sm:$0xff] %v4045_v37  ;;  %v4054_v41 = vpack.c.bf16 %v4045_v37, %v4021_v57  ;;  %v4058_v43 = vpack.c.bf16 %v4048_v39, %v4024_v60  ;;  %2176 = vmatpush.bf16.msrb.mxu1 %v3459_v18  ;;  %v629_v59 = vrot.slane %v4067_v49, 1  ;;  %v630_v0 = vrot.slane %v4064_v47, 1  ;;  %2443 = vmatpush.bf16.msrb.mxu0 %v3483_v35 }
  0x37   : > { %5531 = vst [vmem:[#allocation24_spill] sm:$0xff] %v4048_v39  ;;  %v632_v18 = vrot.slane %v4070_v50, 1  ;;  %v3540_v33 = vunpack.c.l.bf16 %v3666_v6  ;;  %v3541_v35 = vunpack.c.h.bf16 %v3666_v6  ;;  %v3465_v6 = vld [vmem:[%s5380_s2 + $0x98] sm:$0xff] }
  0x38   : > { %5533 = vst [vmem:[#allocation26_spill] sm:$0xff] %v4054_v41  ;;  %2266 = vmatpush.bf16.msrb.mxu2 %v3466_v24  ;;  %v1308_v52 = vunpack.c.l.b16 %v4054_v41  ;;  %v1315_v58 = vunpack.c.l.b16 %v4058_v43  ;;  %v4081_v23 = vsel %vm566_vm1, %v629_v59, %v630_v0  ;;  %v4084_v24 = vsel %vm406_vm0, %v407_v44, %v408_v51 }
  0x39   : > { %5534 = vst [vmem:[#allocation27_spill] sm:$0xff] %v4058_v43  ;;  %2355 = vmatpush.bf16.msrb.mxu3 %v3474_v26  ;;  %v4087_v26 = vsel %vm406_vm0, 0.0, %v407_v44  ;;  %v4090_v28 = vsel %vm566_vm1, %v630_v0, %v632_v18  ;;  %v4094_v32 = vpack.c.bf16 %v4081_v23, %v4067_v49  ;;  %v570_v59 = vrot.slane %v4084_v24, 1 }
  0x3a   : > { %5535 = vst [vmem:[#allocation28_spill] sm:$0xff] %v4064_v47  ;;  %v4078_v19 = vpack.c.b16 %v1315_v58, %v1308_v52  ;;  %2177 = vmatpush.bf16.msrb.mxu1 %v3458_v46  ;;  %v4100_v44 = vpack.c.bf16 %v4090_v28, %v4064_v47  ;;  %v519_v46 = vsel %vm406_vm0, %v408_v51, 0.0  ;;  %v569_v58 = vrot.slane %v4087_v26, 1 }
  0x3b   : > { %5536 = vst [vmem:[#allocation29_spill] sm:$0xff] %v4067_v49  ;;  %2118 = vmatmul.bf16.gmra.mxu1 %v4050_v40  ;;  %v1364_v52 = vunpack.c.l.b16 %v4094_v32  ;;  %v572_v0 = vrot.slane %v519_v46, 1  ;;  %v678_v2 = vrot.slane %v4087_v26, 2  ;;  %v679_v36 = vrot.slane %v4084_v24, 2 }
  0x3c   : > { %5537 = vst [vmem:[#allocation30_spill] sm:$0xff] %v4070_v50  ;;  %2138 = vmatmul.bf16.gmra.mxu2 %v4078_v19  ;;  %v1371_v18 = vunpack.c.l.b16 %v4100_v44  ;;  %v681_v48 = vrot.slane %v519_v46, 2  ;;  %v571_v51 = vsel %vm566_vm1, %v569_v58, %v570_v59  ;;  %v287_v38 = vmul.f32 %v3796_v5, %v3540_v33 }
  0x3d   : > { %5538 = vst [vmem:[#allocation31_spill] sm:$0xff] %v4078_v19  ;;  %v573_v19 = vsel %vm566_vm1, %v570_v59, %v572_v0  ;;  %v288_v40 = vmul.f32 %v3796_v5, %v3541_v35  ;;  %2267 = vmatpush.bf16.msrb.mxu2 %v3465_v6  ;;  %v4126_v46 = vpack.c.bf16 %v571_v51, %v4087_v26  ;;  %v3556_v59 = vunpack.c.l.bf16 %v3670_v34 }
  0x3e   : > { %5539 = vst [vmem:[#allocation32_spill] sm:$0xff] %v4081_v23  ;;  %v4120_v23 = vsel %vm675_vm2, %v678_v2, %v679_v36  ;;  %v4135_v35 = vpack.c.bf16 %v573_v19, %v4084_v24  ;;  %v3674_v2 = vld [vmem:[%s3791_s27 + $0x68] sm:$0xff]   ;;  %v3557_v0 = vunpack.c.h.bf16 %v3670_v34 }
  0x3f   : > { %5540 = vst [vmem:[#allocation33_spill] sm:$0xff] %v4090_v28  ;;  %v4117_v28 = vpack.c.b16 %v1371_v18, %v1364_v52  ;;  %v4129_v58 = vpack.c.bf16 %v4120_v23, %v571_v51  ;;  %v320_v52 = vadd.f32 %v3807_v12, %v287_v38  ;;  %v295_v50 = vmul.f32 %v3796_v5, %v3556_v59 }
  0x40   : > { %5541 = vst [vmem:[#allocation34_spill] sm:$0xff] %v4094_v32  ;;  %v1225_v51 = vunpack.c.l.b16 %v4135_v35  ;;  %v296_v38 = vmul.f32 %v3796_v5, %v3557_v0  ;;  %v3572_v27 = vunpack.c.l.bf16 %v3674_v2  ;;  %v3573_v30 = vunpack.c.h.bf16 %v3674_v2 }
  0x41   : > { %5542 = vst [vmem:[#allocation35_spill] sm:$0xff] %v4100_v44  ;;  %v4123_v44 = vsel %vm675_vm2, %v679_v36, %v681_v48  ;;  %2158 = vmatmul.bf16.gmra.mxu3 %v4117_v28  ;;  %v1216_v36 = vunpack.c.l.b16 %v4126_v46  ;;  %v321_v48 = vadd.f32 %v3807_v12, %v288_v40  ;;  %v1205_v6 = vunpack.c.h.b16 %v4129_v58 }
  0x42   : > { %5543 = vst [vmem:[#allocation36_spill] sm:$0xff] %v4117_v28  ;;  %v4132_v33 = vpack.c.bf16 %v4123_v44, %v573_v19  ;;  %v352_v19 = vmax.f32 %v320_v52, 0.0  ;;  %v3662_v28 = vld [vmem:[%s3791_s27 + $0x8] sm:$0xff]   ;;  %v328_v29 = vadd.f32 %v3807_v12, %v295_v50  ;;  %v329_v49 = vadd.f32 %v3807_v12, %v296_v38  ;;  %v3473_v52 = vld [vmem:[%s5380_s2 + $0xd8] sm:$0xff] }
  0x43   : > { %v353_v32 = vmax.f32 %v321_v48, 0.0  ;;  %v1434_v47 = vpack.c.b16 %v1225_v51, %v1216_v36  ;;  %v303_v13 = vmul.f32 %v3796_v5, %v3572_v27  ;;  %v3482_v48 = vld [vmem:[%s5380_s2 + $0x120] sm:$0xff]  ;;  %v3457_v36 = vld [vmem:[%s5380_s2 + $0x58] sm:$0xff]  ;;  %v304_v50 = vmul.f32 %v3796_v5, %v3573_v30  ;;  %v3464_v27 = vld [vmem:[%s5380_s2 + $0x90] sm:$0xff]  ;;  %2356 = vmatpush.bf16.msrb.mxu3 %v3473_v52 }
  0x44   : > { %v1212_v18 = vunpack.c.h.b16 %v4132_v33  ;;  %v422_v40 = vrot.slane %v352_v19, 7  ;;  %v3524_v2 = vunpack.c.l.bf16 %v3662_v28  ;;  %2444 = vmatpush.bf16.msrb.mxu0 %v3482_v48  ;;  %v3472_v30 = vld [vmem:[%s5380_s2 + $0xd0] sm:$0xff]  ;;  %v361_v38 = vmax.f32 %v329_v49, 0.0  ;;  %2178 = vmatpush.bf16.msrb.mxu1 %v3457_v36 }
  0x45   : > { %v423_v34 = vrot.slane %v353_v32, 7  ;;  %2098 = vmatmul.bf16.gmra.mxu0 %v1434_v47  ;;  %v3481_v47 = vld [vmem:[%s5380_s2 + $0x118] sm:$0xff]  ;;  %2268 = vmatpush.bf16.msrb.mxu2 %v3464_v27  ;;  %v337_v52 = vadd.f32 %v3807_v12, %v304_v50  ;;  %v3525_v48 = vunpack.c.h.bf16 %v3662_v28 }
  0x46   : > { %v4148_v25 = vpack.c.b16 %v1212_v18, %v1205_v6  ;;  %v4163_v32 = vsel %vm406_vm0, 0.0, %v422_v40  ;;  %v360_v18 = vmax.f32 %v328_v29, 0.0  ;;  %v3456_v29 = vld [vmem:[%s5380_s2 + $0x50] sm:$0xff]  ;;  %v435_v7 = vrot.slane %v361_v38, 7 }
  0x47   : > { %v4170_v59 = vsel %vm406_vm0, %v422_v40, %v423_v34  ;;  %v4173_v0 = vsel %vm406_vm0, %v423_v34, 0.0  ;;  %v594_v6 = vrot.slane %v4163_v32, 1  ;;  %v336_v40 = vadd.f32 %v3807_v12, %v303_v13  ;;  %2357 = vmatpush.bf16.msrb.mxu3 %v3472_v30 }
  0x48   : > { %5544 = vst [vmem:[#allocation37_spill] sm:$0xff] %v4148_v25  ;;  %v595_v51 = vrot.slane %v4170_v59, 1  ;;  %v597_v19 = vrot.slane %v4173_v0, 1  ;;  %v434_v34 = vrot.slane %v360_v18, 7  ;;  %v369_v28 = vmax.f32 %v337_v52, 0.0  ;;  %2445 = vmatpush.bf16.msrb.mxu0 %v3481_v47  ;;  %2179 = vmatpush.bf16.msrb.mxu1 %v3456_v29 }
  0x49   : > { %v368_v49 = vmax.f32 %v336_v40, 0.0 }
  0x4a   : > { %v4190_v25 = vsel %vm566_vm1, %v594_v6, %v595_v51  ;;  %v4193_v1 = vsel %vm566_vm1, %v595_v51, %v597_v19  ;;  %v4204_v27 = vsel %vm406_vm0, 0.0, %v434_v34  ;;  %v4207_v50 = vsel %vm406_vm0, %v434_v34, %v435_v7 }
  0x4b   : > { %v4197_v13 = vpack.c.bf16 %v4190_v25, %v4163_v32  ;;  %v4201_v36 = vpack.c.bf16 %v4193_v1, %v4170_v59  ;;  %5545 = vst [vmem:[#allocation38_spill] sm:$0xff] %v4204_v27  ;;  %v4210_v6 = vsel %vm406_vm0, %v435_v7, 0.0  ;;  %v614_v18 = vrot.slane %v4204_v27, 1 }
  0x4c   : > { %5546 = vst [vmem:[#allocation39_spill] sm:$0xff] %v4207_v50  ;;  %v279_v51 = vmul.f32 %v3796_v5, %v3524_v2  ;;  %v615_v40 = vrot.slane %v4207_v50, 1  ;;  %v617_v30 = vrot.slane %v4210_v6, 1  ;;  %v446_v47 = vrot.slane %v368_v49, 7 }
  0x4d   : > { %5547 = vst [vmem:[#allocation40_spill] sm:$0xff] %v4210_v6  ;;  %v1266_v19 = vunpack.c.l.b16 %v4197_v13  ;;  %v1273_v38 = vunpack.c.l.b16 %v4201_v36  ;;  %v447_v34 = vrot.slane %v369_v28, 7  ;;  %v280_v49 = vmul.f32 %v3796_v5, %v3525_v48 }
  0x4e   : > { %v4221_v7 = vsel %vm566_vm1, %v614_v18, %v615_v40  ;;  %v4224_v39 = vsel %vm566_vm1, %v615_v40, %v617_v30  ;;  %v312_v28 = vadd.f32 %v3807_v12, %v279_v51 }
  0x4f   : > { %v4218_v52 = vpack.c.b16 %v1273_v38, %v1266_v19  ;;  %5549 = vst [vmem:[#allocation42_spill] sm:$0xff] %v4221_v7  ;;  %v4228_v2 = vpack.c.bf16 %v4221_v7, %v4204_v27  ;;  %v4232_v29 = vpack.c.bf16 %v4224_v39, %v4207_v50  ;;  %v4238_v18 = vsel %vm406_vm0, %v446_v47, %v447_v34 }
  0x50   : > { %5550 = vst [vmem:[#allocation43_spill] sm:$0xff] %v4224_v39  ;;  %v4241_v19 = vsel %vm406_vm0, 0.0, %v446_v47  ;;  %v4246_v30 = vsel %vm406_vm0, %v447_v34, 0.0  ;;  %v3667_v39 = vld [vmem:[%s3791_s27 + $0x30] sm:$0xff]   ;;  %v635_v51 = vrot.slane %v4238_v18, 1  ;;  %v313_v6 = vadd.f32 %v3807_v12, %v280_v49 }
  0x51   : > { %5548 = vst [vmem:[#allocation41_spill] sm:$0xff] %v4218_v52  ;;  %2123 = vmatmul.bf16.gmra.mxu1 %v4218_v52  ;;  %v1322_v38 = vunpack.c.l.b16 %v4228_v2  ;;  %v1329_v40 = vunpack.c.l.b16 %v4232_v29  ;;  %v634_v48 = vrot.slane %v4241_v19, 1  ;;  %v637_v52 = vrot.slane %v4246_v30, 1 }
  0x52   : > { %5551 = vst [vmem:[#allocation44_spill] sm:$0xff] %v4228_v2  ;;  %v344_v47 = vmax.f32 %v312_v28, 0.0  ;;  %v3544_v34 = vunpack.c.l.bf16 %v3667_v39  ;;  %v3671_v2 = vld [vmem:[%s3791_s27 + $0x50] sm:$0xff]   ;;  %v345_v49 = vmax.f32 %v313_v6, 0.0 }
  0x53   : > { %5552 = vst [vmem:[#allocation45_spill] sm:$0xff] %v4232_v29  ;;  %v4252_v7 = vpack.c.b16 %v1329_v40, %v1322_v38  ;;  %v4256_v37 = vsel %vm566_vm1, %v634_v48, %v635_v51  ;;  %v4259_v29 = vsel %vm566_vm1, %v635_v51, %v637_v52  ;;  %v3545_v40 = vunpack.c.h.bf16 %v3667_v39 }
  0x54   : > { %5553 = vst [vmem:[#allocation46_spill] sm:$0xff] %v4238_v18  ;;  %v4265_v50 = vpack.c.bf16 %v4256_v37, %v4241_v19  ;;  %v4269_v38 = vpack.c.bf16 %v4259_v29, %v4238_v18  ;;  %v410_v28 = vrot.slane %v344_v47, 7  ;;  %v289_v51 = vmul.f32 %v3796_v5, %v3544_v34 }
  0x55   : > { %5554 = vst [vmem:[#allocation47_spill] sm:$0xff] %v4241_v19  ;;  %2143 = vmatmul.bf16.gmra.mxu2 %v4252_v7  ;;  %v290_v6 = vmul.f32 %v3796_v5, %v3545_v40 }
  0x56   : > { %5555 = vst [vmem:[#allocation48_spill] sm:$0xff] %v4246_v30  ;;  %v1378_v48 = vunpack.c.l.b16 %v4265_v50  ;;  %v1385_v52 = vunpack.c.l.b16 %v4269_v38  ;;  %v3560_v30 = vunpack.c.l.bf16 %v3671_v2  ;;  %v4278_v19 = vsel %vm406_vm0, 0.0, %v410_v28 }
  0x57   : > { %5556 = vst [vmem:[#allocation49_spill] sm:$0xff] %v4252_v7  ;;  %v3463_v7 = vld [vmem:[%s5380_s2 + $0x88] sm:$0xff]  ;;  %v574_v39 = vrot.slane %v4278_v19, 1  ;;  %v323_v43 = vadd.f32 %v3807_v12, %v290_v6 }
  0x58   : > { %5557 = vst [vmem:[#allocation50_spill] sm:$0xff] %v4256_v37  ;;  %v411_v37 = vrot.slane %v345_v49, 7  ;;  %v4281_v47 = vpack.c.b16 %v1385_v52, %v1378_v48  ;;  %v297_v34 = vmul.f32 %v3796_v5, %v3560_v30  ;;  %2269 = vmatpush.bf16.msrb.mxu2 %v3463_v7 }
  0x59   : > { %5558 = vst [vmem:[#allocation51_spill] sm:$0xff] %v4259_v29  ;;  %v3561_v29 = vunpack.c.h.bf16 %v3671_v2  ;;  %v355_v7 = vmax.f32 %v323_v43, 0.0 }
  0x5a   : > { %5559 = vst [vmem:[#allocation52_spill] sm:$0xff] %v4265_v50  ;;  %v3675_v50 = vld [vmem:[%s3791_s27 + $0x70] sm:$0xff]   ;;  %v4288_v18 = vsel %vm406_vm0, %v410_v28, %v411_v37  ;;  %v4291_v49 = vsel %vm406_vm0, %v411_v37, 0.0  ;;  %2163 = vmatmul.bf16.gmra.mxu3 %v4281_v47  ;;  %v330_v30 = vadd.f32 %v3807_v12, %v297_v34 }
  0x5b   : > { %5560 = vst [vmem:[#allocation53_spill] sm:$0xff] %v4269_v38  ;;  %v322_v38 = vadd.f32 %v3807_v12, %v289_v51  ;;  %v298_v2 = vmul.f32 %v3796_v5, %v3561_v29  ;;  %v575_v40 = vrot.slane %v4288_v18, 1  ;;  %v577_v48 = vrot.slane %v4291_v49, 1 }
  0x5c   : > { %5561 = vst [vmem:[#allocation54_spill] sm:$0xff] %v4281_v47  ;;  %v3576_v51 = vunpack.c.l.bf16 %v3675_v50  ;;  %v3577_v41 = vunpack.c.h.bf16 %v3675_v50  ;;  %v362_v47 = vmax.f32 %v330_v30, 0.0  ;;  %v426_v43 = vrot.slane %v355_v7, 7  ;;  %v3471_v7 = vld [vmem:[%s5380_s2 + $0xc8] sm:$0xff]  ;;  %2270 = vmatpush.bf16.msrb.mxu2 %v3462_v15 }
  0x5d   : > { %v354_v52 = vmax.f32 %v322_v38, 0.0  ;;  %v331_v28 = vadd.f32 %v3807_v12, %v298_v2  ;;  %v4301_v37 = vsel %vm566_vm1, %v574_v39, %v575_v40  ;;  %v4304_v6 = vsel %vm566_vm1, %v575_v40, %v577_v48  ;;  %2358 = vmatpush.bf16.msrb.mxu3 %v3471_v7  ;;  %v3454_v7 = vld [vmem:[%s5380_s2 + $0x40] sm:$0xff] }
  0x5e   : > { %v4308_v27 = vpack.c.bf16 %v4301_v37, %v4278_v19  ;;  %v4312_v38 = vpack.c.bf16 %v4304_v6, %v4288_v18  ;;  %v437_v39 = vrot.slane %v362_v47, 7  ;;  %v305_v2 = vmul.f32 %v3796_v5, %v3576_v51  ;;  %v3480_v47 = vld [vmem:[%s5380_s2 + $0x110] sm:$0xff] }
  0x5f   : > { %v425_v29 = vrot.slane %v354_v52, 7  ;;  %v363_v34 = vmax.f32 %v331_v28, 0.0  ;;  %v306_v40 = vmul.f32 %v3796_v5, %v3577_v41  ;;  %v4325_v63 = vsel %vm406_vm0, %v426_v43, 0.0  ;;  %v3455_v41 = vld [vmem:[%s5380_s2 + $0x48] sm:$0xff]  ;;  %2446 = vmatpush.bf16.msrb.mxu0 %v3480_v47 }
  0x60   : > { %v1206_v48 = vunpack.c.l.b16 %v4308_v27  ;;  %v1213_v52 = vunpack.c.l.b16 %v4312_v38  ;;  %v4345_v60 = vsel %vm406_vm0, 0.0, %v437_v39  ;;  %v338_v57 = vadd.f32 %v3807_v12, %v305_v2  ;;  %2180 = vmatpush.bf16.msrb.mxu1 %v3455_v41 }
  0x61   : > { %v4315_v50 = vsel %vm406_vm0, 0.0, %v425_v29  ;;  %v4322_v30 = vsel %vm406_vm0, %v425_v29, %v426_v43  ;;  %v602_v29 = vrot.slane %v4325_v63, 1  ;;  %v438_v43 = vrot.slane %v363_v34, 7  ;;  %5563 = vst [vmem:[#allocation56_spill] sm:$0xff] %v4345_v60  ;;  %v3479_v34 = vld [vmem:[%s5380_s2 + $0x108] sm:$0xff]  ;;  %2359 = vmatpush.bf16.msrb.mxu3 %v3470_v21 }
  0x62   : > { %v599_v28 = vrot.slane %v4315_v50, 1  ;;  %v600_v51 = vrot.slane %v4322_v30, 1  ;;  %v4342_v11 = vpack.c.b16 %v1213_v52, %v1206_v48  ;;  %v339_v41 = vadd.f32 %v3807_v12, %v306_v40 }
  0x63   : > { %v4361_v52 = vsel %vm406_vm0, %v437_v39, %v438_v43  ;;  %v4364_v2 = vsel %vm406_vm0, %v438_v43, 0.0  ;;  %v370_v62 = vmax.f32 %v338_v57, 0.0  ;;  %2447 = vmatpush.bf16.msrb.mxu0 %v3479_v34 }
  0x64   : > { %5562 = vst [vmem:[#allocation55_spill] sm:$0xff] %v4342_v11  ;;  %v4355_v16 = vsel %vm566_vm1, %v599_v28, %v600_v51  ;;  %v4358_v48 = vsel %vm566_vm1, %v600_v51, %v602_v29  ;;  %2103 = vmatmul.bf16.gmra.mxu0 %v4342_v11  ;;  %v619_v28 = vrot.slane %v4345_v60, 1  ;;  %v620_v51 = vrot.slane %v4361_v52, 1  ;;  %2181 = vmatpush.bf16.msrb.mxu1 %v3454_v7 }
  0x65   : > { %5564 = vst [vmem:[#allocation57_spill] sm:$0xff] %v4355_v16  ;;  %v4372_v47 = vpack.c.bf16 %v4355_v16, %v4315_v50  ;;  %v4376_v39 = vpack.c.bf16 %v4358_v48, %v4322_v30  ;;  %v622_v15 = vrot.slane %v4364_v2, 1  ;;  %v3663_v16 = vld [vmem:[%s3791_s27 + $0x10] sm:$0xff]  }
  0x66   : > { %5565 = vst [vmem:[#allocation58_spill] sm:$0xff] %v4358_v48  ;;  %v4385_v11 = vsel %vm566_vm1, %v619_v28, %v620_v51  ;;  %v3478_v48 = vld [vmem:[%s5380_s2 + $0x100] sm:$0xff]  ;;  %v3501_v28 = vld [vmem:[%s5380_s2 + $0x1b8] sm:$0xff] }
  0x67   : > { %5566 = vst [vmem:[#allocation59_spill] sm:$0xff] %v4364_v2  ;;  %v1280_v29 = vunpack.c.l.b16 %v4372_v47  ;;  %v1287_v43 = vunpack.c.l.b16 %v4376_v39  ;;  %v4392_v61 = vsel %vm566_vm1, %v620_v51, %v622_v15  ;;  %v4396_v40 = vpack.c.bf16 %v4385_v11, %v4345_v60  ;;  %2619 = vmatpush.bf16.msra.mxu2 %v3501_v28  ;;  %2448 = vmatpush.bf16.msrb.mxu0 %v3478_v48 }
  0x68   : > { %5567 = vst [vmem:[#allocation60_spill] sm:$0xff] %v4385_v11  ;;  %v4405_v21 = vpack.c.bf16 %v4392_v61, %v4361_v52  ;;  %v371_v2 = vmax.f32 %v339_v41, 0.0  ;;  %v449_v51 = vrot.slane %v370_v62, 7  ;;  %v3528_v15 = vunpack.c.l.bf16 %v3663_v16 }
  0x69   : > { %5568 = vst [vmem:[#allocation61_spill] sm:$0xff] %v4392_v61  ;;  %v4401_v57 = vpack.c.b16 %v1287_v43, %v1280_v29  ;;  %v1336_v34 = vunpack.c.l.b16 %v4396_v40  ;;  %v3529_v11 = vunpack.c.h.bf16 %v3663_v16  ;;  %v5571_v60 = vmov 0.0  }
  0x6a   : > { %5569 = vst [vmem:[#allocation62_spill] sm:$0xff] %v4396_v40  ;;  %v1343_v7 = vunpack.c.l.b16 %v4405_v21  ;;  %v4411_v56 = vrot.slane %v5571_v60, 2  ;;  %v450_v29 = vrot.slane %v371_v2, 7  ;;  %v4414_v43 = vsel %vm406_vm0, 0.0, %v449_v51 }
  0x6b   : > { %5570 = vst [vmem:[#allocation63_spill] sm:$0xff] %v4401_v57  ;;  %2128 = vmatmul.bf16.gmra.mxu1 %v4401_v57  ;;  %v281_v61 = vmul.f32 %v3796_v5, %v3528_v15  ;;  %v639_v62 = vrot.slane %v4414_v43, 1  ;;  %v282_v41 = vmul.f32 %v3796_v5, %v3529_v11 }
  0x6c   : > { %5572 = vst [vmem:[#allocation64_spill] sm:$0xff] %v4411_v56  ;;  %v4417_v40 = vpack.c.b16 %v1343_v7, %v1336_v34  ;;  %v4422_v28 = vsel %vm406_vm0, %v449_v51, %v450_v29  ;;  %v4425_v16 = vsel %vm406_vm0, %v450_v29, 0.0  ;;  %v1201_v34 = vunpack.c.h.b16 %v3802_v9  ;;  %v3493_v9 = vld [vmem:[%s5380_s2 + $0x178] sm:$0xff] }
  0x6d   : > { %5574 = vst [vmem:[#allocation66_spill] sm:$0xff] %v4422_v28  ;;  %v314_v60 = vadd.f32 %v3807_v12, %v281_v61  ;;  %v640_v48 = vrot.slane %v4422_v28, 1  ;;  %v642_v2 = vrot.slane %v4425_v16, 1  ;;  %v315_v15 = vadd.f32 %v3807_v12, %v282_v41  ;;  %v3509_v61 = vld [vmem:[%s5380_s2 + $0x1f8] sm:$0xff]  ;;  %2530 = vmatpush.bf16.msra.mxu1 %v3493_v9 }
  0x6e   : > { %5573 = vst [vmem:[#allocation65_spill] sm:$0xff] %v4417_v40  ;;  %2148 = vmatmul.bf16.gmra.mxu2 %v4417_v40  ;;  %v801_v5 = vpack.c.bf16 %v4087_v26, %v4411_v56  ;;  %v3517_v12 = vld [vmem:[%s5380_s2 + $0x238] sm:$0xff]  ;;  %2708 = vmatpush.bf16.msra.mxu3 %v3509_v61  ;;  %v1226_v9 = vunpack.c.h.b16 %v4135_v35  ;;  %v815_v35 = vpack.c.bf16 %v4288_v18, %v4123_v44 }
  0x6f   : > { %5575 = vst [vmem:[#allocation67_spill] sm:$0xff] %v4425_v16  ;;  %v346_v7 = vmax.f32 %v314_v60, 0.0  ;;  %v4436_v11 = vsel %vm566_vm1, %v639_v62, %v640_v48  ;;  %v4439_v51 = vsel %vm566_vm1, %v640_v48, %v642_v2  ;;  %v805_v62 = vpack.c.bf16 %v4084_v24, %v4411_v56  ;;  %2797 = vmatpush.bf16.msra.mxu0 %v3517_v12 }
  0x70   : > { %5576 = vst [vmem:[#allocation68_spill] sm:$0xff] %v4436_v11  ;;  %v4452_v26 = vpack.c.bf16 %v4436_v11, %v4414_v43  ;;  %v4456_v29 = vpack.c.bf16 %v4439_v51, %v4422_v28  ;;  %v347_v41 = vmax.f32 %v315_v15, 0.0  ;;  %v4460_v48 = vpack.c.b16 %v1201_v34, %v1201_v34  ;;  %v3500_v28 = vld [vmem:[%s5380_s2 + $0x1b0] sm:$0xff] }
  0x71   : > { %5577 = vst [vmem:[#allocation69_spill] sm:$0xff] %v4439_v51  ;;  %v413_v60 = vrot.slane %v346_v7, 7  ;;  %v1202_v57 = vunpack.c.l.b16 %v801_v5  ;;  %v1204_v11 = vunpack.c.l.b16 %v4129_v58  ;;  %v1211_v24 = vunpack.c.l.b16 %v4132_v33  ;;  %2620 = vmatpush.bf16.msra.mxu2 %v3500_v28  ;;  %v3516_v28 = vld [vmem:[%s5380_s2 + $0x230] sm:$0xff] }
  0x72   : > { %5578 = vst [vmem:[#allocation70_spill] sm:$0xff] %v4452_v26  ;;  %v1392_v2 = vunpack.c.l.b16 %v4452_v26  ;;  %v1399_v40 = vunpack.c.l.b16 %v4456_v29  ;;  %v414_v16 = vrot.slane %v347_v41, 7  ;;  %v1217_v15 = vunpack.c.h.b16 %v4126_v46 }
  0x73   : > { %5579 = vst [vmem:[#allocation71_spill] sm:$0xff] %v4456_v29  ;;  %v4466_v51 = vsel %vm406_vm0, 0.0, %v413_v60  ;;  %v1209_v61 = vunpack.c.l.b16 %v805_v62  ;;  %v1429_v12 = vpack.c.b16 %v1211_v24, %v1204_v11  ;;  %v810_v41 = vpack.c.bf16 %v4278_v19, %v4120_v23  ;;  %2798 = vmatpush.bf16.msra.mxu0 %v3516_v28 }
  0x74   : > { %5580 = vst [vmem:[#allocation72_spill] sm:$0xff] %v4460_v48  ;;  %v4470_v34 = vpack.c.b16 %v1399_v40, %v1392_v2  ;;  %v579_v7 = vrot.slane %v4466_v51, 1  ;;  %v4475_v56 = vsel %vm406_vm0, %v413_v60, %v414_v16  ;;  %v4478_v58 = vsel %vm406_vm0, %v414_v16, 0.0 }
  0x75   : > { %v580_v46 = vrot.slane %v4475_v56, 1  ;;  %v582_v33 = vrot.slane %v4478_v58, 1  ;;  %v1435_v40 = vpack.c.b16 %v1226_v9, %v1217_v15  ;;  %v1218_v2 = vunpack.c.l.b16 %v810_v41 }
  0x76   : > { %5581 = vst [vmem:[#allocation73_spill] sm:$0xff] %v4470_v34  ;;  %2168 = vmatmul.bf16.gmra.mxu3 %v4470_v34  ;;  %v1219_v60 = vunpack.c.h.b16 %v810_v41  ;;  %v1227_v11 = vunpack.c.l.b16 %v815_v35  ;;  %v1228_v23 = vunpack.c.h.b16 %v815_v35  ;;  %v1427_v44 = vpack.c.b16 %v1209_v61, %v1202_v57 }
  0x77   : > { %v4488_v29 = vsel %vm566_vm1, %v579_v7, %v580_v46  ;;  %v4491_v16 = vsel %vm566_vm1, %v580_v46, %v582_v33  ;;  %v1203_v46 = vunpack.c.h.b16 %v801_v5  ;;  %v1210_v33 = vunpack.c.h.b16 %v805_v62  ;;  %v3508_v5 = vld [vmem:[%s5380_s2 + $0x1f0] sm:$0xff] }
  0x78   : > { %v4495_v24 = vpack.c.bf16 %v4488_v29, %v4466_v51  ;;  %v817_v15 = vpack.c.bf16 %v4491_v16, %v4475_v56  ;;  %v1436_v9 = vpack.c.b16 %v1227_v11, %v1218_v2  ;;  %v1437_v41 = vpack.c.b16 %v1228_v23, %v1219_v60  ;;  %v3492_v62 = vld [vmem:[%s5380_s2 + $0x170] sm:$0xff]  ;;  %2709 = vmatpush.bf16.msra.mxu3 %v3508_v5 }
  0x79   : > { %v1428_v35 = vpack.c.b16 %v1210_v33, %v1203_v46  ;;  %v683_v57 = vrot.slane %v4278_v19, 2  ;;  %v684_v61 = vrot.slane %v4288_v18, 2  ;;  %2531 = vmatpush.bf16.msra.mxu1 %v3492_v62  ;;  %v689_v33 = vrot.slane %v4475_v56, 2 }
  0x7a   : > { %v1222_v7 = vunpack.c.l.b16 %v4495_v24  ;;  %v1231_v34 = vunpack.c.l.b16 %v817_v15  ;;  %v1232_v5 = vunpack.c.h.b16 %v817_v15  ;;  %v3499_v15 = vld [vmem:[%s5380_s2 + $0x1a8] sm:$0xff] }
  0x7b   : > { %2182 = vmatmul.bf16.vlgmr.msrb.gmra.mxu1 %v4460_v48  ;;  %v4520_v19 = vsel %vm675_vm2, %v683_v57, %v684_v61  ;;  %2621 = vmatpush.bf16.msra.mxu2 %v3499_v15 }
  0x7c   : > { %v4501_v26 = vpack.c.b16 %v1231_v34, %v1222_v7  ;;  %v686_v34 = vrot.slane %v4291_v49, 2  ;;  %v1207_v49 = vunpack.c.h.b16 %v4308_v27  ;;  %v4533_v60 = vpack.c.bf16 %v4520_v19, %v4301_v37 }
  0x7d   : > { %v688_v37 = vrot.slane %v4466_v51, 2 }
  0x7e   : > { %2271 = vmatmul.bf16.vlgmr.msrb.gmra.mxu2 %v1427_v44  ;;  %2108 = vmatmul.bf16.gmra.mxu0 %v4501_v26  ;;  %v4523_v18 = vsel %vm675_vm2, %v684_v61, %v686_v34  ;;  %v1220_v44 = vunpack.c.l.b16 %v4533_v60  ;;  %v1223_v34 = vunpack.c.h.b16 %v4495_v24 }
  0x7f   : > { %v823_v2 = vpack.c.bf16 %v4475_v56, %v4523_v18  ;;  %v4537_v11 = vpack.c.bf16 %v4523_v18, %v4304_v6  ;;  %v691_v6 = vrot.slane %v4478_v58, 2 }
  0x81   : > { %v1241_v23 = vunpack.c.l.b16 %v823_v2  ;;  %v1242_v57 = vunpack.c.h.b16 %v823_v2  ;;  %v4551_v61 = vsel %vm675_vm2, %v689_v33, %v691_v6  ;;  %v1239_v6 = vunpack.c.h.b16 %v3880_v8 }
  0x82   : > { %v831_v56 = vpack.c.bf16 %v3840_v53, %v4551_v61  ;;  %v4564_v28 = vpack.c.bf16 %v4551_v61, %v4491_v16 }
  0x84   : > { %v1255_v24 = vunpack.c.l.b16 %v831_v56  ;;  %v1243_v2 = vunpack.c.l.b16 %v4564_v28 }
  0x86   : > { %2360 = vmatmul.bf16.vlgmr.msrb.gmra.mxu3 %v1428_v35 }
  0x8b   : > { %2187 = vmatmul.bf16.gmra.mxu1 %v1435_v40  ;;  %v819_v40 = vpack.c.bf16 %v4466_v51, %v4520_v19 }
  0x8d   : > { %v1235_v35 = vunpack.c.h.b16 %v819_v40 }
  0x8e   : > { %2276 = vmatmul.bf16.gmra.mxu2 %v1436_v9  ;;  %2449 = vmatmul.bf16.vlgmr.msrb.gmra.mxu0 %v1429_v12  ;;  %v1214_v12 = vunpack.c.h.b16 %v4312_v38  ;;  %v1234_v38 = vunpack.c.l.b16 %v819_v40  ;;  %v1229_v9 = vunpack.c.l.b16 %v4537_v11 }
  0x8f   : > { %v1444_v58 = vpack.c.b16 %v1242_v57, %v1235_v35  ;;  %v1246_v35 = vunpack.c.h.b16 %v3884_v10 }
  0x90   : > { %v4539_v27 = vpack.c.b16 %v1214_v12, %v1207_v49  ;;  %v1443_v7 = vpack.c.b16 %v1241_v23, %v1234_v38  ;;  %v1438_v46 = vpack.c.b16 %v1229_v9, %v1220_v44  ;;  %v4566_v49 = vpack.c.b16 %v1232_v5, %v1223_v34 }
  0x91   : > { %v693_v23 = vrot.slane %v3843_v54, 2  ;;  %v694_v44 = vrot.slane %v3840_v53, 2  ;;  %v696_v9 = vrot.slane %v3846_v55, 2 }
  0x93   : > { %v4589_v53 = vsel %vm675_vm2, %v693_v23, %v694_v44  ;;  %v4592_v55 = vsel %vm675_vm2, %v694_v44, %v696_v9 }
  0x94   : > { %v835_v57 = vpack.c.bf16 %v3949_v42, %v4589_v53  ;;  %v839_v34 = vpack.c.bf16 %v3954_v45, %v4592_v55 }
  0x96   : > { %2365 = vmatmul.bf16.gmra.mxu3 %v1437_v41  ;;  %v4548_v41 = vsel %vm675_vm2, %v688_v37, %v689_v33  ;;  %v3507_v37 = vld [vmem:[%s5380_s2 + $0x1e8] sm:$0xff]  ;;  %v1263_v44 = vunpack.c.h.b16 %v835_v57  ;;  %v1270_v9 = vunpack.c.h.b16 %v839_v34 }
  0x97   : > { %v827_v51 = vpack.c.bf16 %v3843_v54, %v4548_v41  ;;  %v4560_v62 = vpack.c.bf16 %v4548_v41, %v4488_v29  ;;  %v3491_v33 = vld [vmem:[%s5380_s2 + $0x168] sm:$0xff]  ;;  %2710 = vmatpush.bf16.msra.mxu3 %v3507_v37 }
  0x98   : > { %v3515_v54 = vld [vmem:[%s5380_s2 + $0x228] sm:$0xff]  ;;  %2532 = vmatpush.bf16.msra.mxu1 %v3491_v33 }
  0x99   : > { %v1248_v12 = vunpack.c.l.b16 %v827_v51  ;;  %v1236_v40 = vunpack.c.l.b16 %v4560_v62  ;;  %2799 = vmatpush.bf16.msra.mxu0 %v3515_v54 }
  0x9b   : > { %2192 = vmatmul.bf16.gmra.mxu1 %v4539_v27  ;;  %v1450_v29 = vpack.c.b16 %v1255_v24, %v1248_v12  ;;  %v1445_v16 = vpack.c.b16 %v1243_v2, %v1236_v40  ;;  %v1262_v12 = vunpack.c.l.b16 %v835_v57  ;;  %v1269_v24 = vunpack.c.l.b16 %v839_v34 }
  0x9e   : > { %2281 = vmatmul.bf16.gmra.mxu2 %v1443_v7  ;;  %2454 = vmatmul.bf16.gmra.mxu0 %v1438_v46  ;;  %v1249_v7 = vunpack.c.h.b16 %v827_v51  ;;  %v1256_v46 = vunpack.c.h.b16 %v831_v56  ;;  %v4602_v51 = vpack.c.bf16 %v4589_v53, %v3869_v3  ;;  %v4606_v56 = vpack.c.bf16 %v4592_v55, %v3872_v4 }
  0x9f   : > { %v1457_v3 = vpack.c.b16 %v1269_v24, %v1262_v12  ;;  %v698_v4 = vrot.slane %v3949_v42, 2 }
  0xa0   : > { %v1451_v5 = vpack.c.b16 %v1256_v46, %v1249_v7  ;;  %v1250_v15 = vunpack.c.l.b16 %v4602_v51  ;;  %v1257_v40 = vunpack.c.l.b16 %v4606_v56 }
  0xa2   : > { %v1452_v2 = vpack.c.b16 %v1257_v40, %v1250_v15 }
  0xa6   : > { %2370 = vmatmul.bf16.gmra.mxu3 %v1444_v58  ;;  %v4612_v58 = vpack.c.b16 %v1246_v35, %v1239_v6  ;;  %v1458_v35 = vpack.c.b16 %v1270_v9, %v1263_v44  ;;  %v706_v44 = vrot.slane %v4173_v0, 2 }
  0xa8   : > { %v4574_v38 = vpop.f32.mrf.mxu1  ;;  %5582 = vst [vmem:[#allocation74_spill] sm:$0xff] %v4612_v58 }
  0xaa   : > { %v4626_v37 = vpop.f32.mrf.mxu0 }
  0xab   : > { %2197 = vmatmul.bf16.gmra.mxu1 %v4566_v49 }
  0xae   : > { %2286 = vmatmul.bf16.gmra.mxu2 %v1450_v29  ;;  %2459 = vmatmul.bf16.gmra.mxu0 %v1445_v16  ;;  %v4608_v8 = vpop.f32.mrf.mxu2  ;;  %v699_v29 = vrot.slane %v3954_v45, 2  ;;  %v701_v16 = vrot.slane %v3957_v31, 2  ;;  %v1253_v45 = vunpack.c.h.b16 %v3989_v20  ;;  %v1260_v31 = vunpack.c.h.b16 %v3993_v22  ;;  %v3498_v22 = vld [vmem:[%s5380_s2 + $0x1a0] sm:$0xff] }
  0xaf   : > { %v4620_v23 = vpop.f32.mrf.mxu3  ;;  %2622 = vmatpush.bf16.msra.mxu2 %v3498_v22 }
  0xb0   : > { %v4610_v10 = vpop.f32.mrf.mxu1  ;;  %5583 = vst [vmem:[#allocation75_spill] sm:$0xff] %v4620_v23  ;;  %v4629_v33 = vsel %vm675_vm2, %v698_v4, %v699_v29  ;;  %v4632_v42 = vsel %vm675_vm2, %v699_v29, %v701_v16  ;;  %v703_v29 = vrot.slane %v4163_v32, 2  ;;  %v704_v16 = vrot.slane %v4170_v59, 2 }
  0xb1   : > { %5584 = vst [vmem:[#allocation76_spill] sm:$0xff] %v4629_v33  ;;  %v843_v54 = vpack.c.bf16 %v4163_v32, %v4629_v33  ;;  %v847_v6 = vpack.c.bf16 %v4170_v59, %v4632_v42  ;;  %v4642_v57 = vpack.c.bf16 %v4629_v33, %v3979_v14  ;;  %v4646_v34 = vpack.c.bf16 %v4632_v42, %v3982_v17  ;;  %v3514_v32 = vld [vmem:[%s5380_s2 + $0x220] sm:$0xff] }
  0xb2   : > { %5585 = vst [vmem:[#allocation77_spill] sm:$0xff] %v4632_v42  ;;  %v4677_v59 = vsel %vm675_vm2, %v703_v29, %v704_v16  ;;  %v4680_v0 = vsel %vm675_vm2, %v704_v16, %v706_v44  ;;  %2800 = vmatpush.bf16.msra.mxu0 %v3514_v32  ;;  %v709_v32 = vrot.slane %v4322_v30, 2  ;;  %v5624_v42 = vld [vmem:[#allocation22_spill] sm:$0xff] }
  0xb3   : > { %5586 = vst [vmem:[#allocation78_spill] sm:$0xff] %v4642_v57  ;;  %v1276_v20 = vunpack.c.l.b16 %v843_v54  ;;  %v1283_v12 = vunpack.c.l.b16 %v847_v6  ;;  %v1264_v24 = vunpack.c.l.b16 %v4642_v57  ;;  %v1271_v15 = vunpack.c.l.b16 %v4646_v34 }
  0xb4   : > { %5587 = vst [vmem:[#allocation79_spill] sm:$0xff] %v4646_v34  ;;  %v1277_v9 = vunpack.c.h.b16 %v843_v54  ;;  %v855_v22 = vpack.c.bf16 %v4322_v30, %v4680_v0  ;;  %v5599_v30 = vld [vmem:[#allocation2_spill] sm:$0xff]  ;;  %v5632_v34 = vld [vmem:[#allocation23_spill] sm:$0xff] }
  0xb5   : > { %v1464_v17 = vpack.c.b16 %v1283_v12, %v1276_v20  ;;  %v1459_v4 = vpack.c.b16 %v1271_v15, %v1264_v24  ;;  %5590 = vst [vmem:[#allocation82_spill] sm:$0xff] %v4677_v59  ;;  %v1274_v20 = vunpack.c.h.b16 %v4201_v36  ;;  %v851_v12 = vpack.c.bf16 %v4315_v50, %v4677_v59 }
  0xb6   : > { %2375 = vmatmul.bf16.gmra.mxu3 %v1451_v5  ;;  %v4622_v7 = vpop.f32.mrf.mxu2  ;;  %v4648_v5 = vpack.c.b16 %v1260_v31, %v1253_v45  ;;  %v1284_v45 = vunpack.c.h.b16 %v847_v6  ;;  %v3506_v31 = vld [vmem:[%s5380_s2 + $0x1e0] sm:$0xff]  ;;  %5591 = vst [vmem:[#allocation83_spill] sm:$0xff] %v4680_v0  ;;  %v1267_v6 = vunpack.c.h.b16 %v4197_v13  ;;  %v4700_v13 = vpack.c.bf16 %v4680_v0, %v4193_v1 }
  0xb7   : > { %v4655_v40 = vpop.f32.mrf.mxu3  ;;  %2711 = vmatpush.bf16.msra.mxu3 %v3506_v31  ;;  %v1290_v16 = vunpack.c.l.b16 %v851_v12  ;;  %v1297_v44 = vunpack.c.l.b16 %v855_v22  ;;  %v708_v1 = vrot.slane %v4315_v50, 2  ;;  %v1281_v50 = vunpack.c.h.b16 %v4372_v47 }
  0xb8   : > { %v4624_v46 = vpop.f32.mrf.mxu1  ;;  %5588 = vst [vmem:[#allocation80_spill] sm:$0xff] %v4648_v5  ;;  %v1465_v24 = vpack.c.b16 %v1284_v45, %v1277_v9  ;;  %v4704_v29 = vpack.c.b16 %v1274_v20, %v1267_v6  ;;  %v1285_v45 = vunpack.c.l.b16 %v4700_v13  ;;  %v711_v6 = vrot.slane %v4325_v63, 2 }
  0xb9   : > { %5589 = vst [vmem:[#allocation81_spill] sm:$0xff] %v4655_v40  ;;  %v1471_v31 = vpack.c.b16 %v1297_v44, %v1290_v16  ;;  %v1298_v40 = vunpack.c.h.b16 %v855_v22  ;;  %v4721_v16 = vsel %vm675_vm2, %v708_v1, %v709_v32  ;;  %v1288_v63 = vunpack.c.h.b16 %v4376_v39 }
  0xba   : > { %5594 = vst [vmem:[#allocation86_spill] sm:$0xff] %v4700_v13  ;;  %v4724_v44 = vsel %vm675_vm2, %v709_v32, %v711_v6 }
  0xbb   : > { %2202 = vmatmul.bf16.gmra.mxu1 %v4612_v58  ;;  %5595 = vst [vmem:[#allocation87_spill] sm:$0xff] %v4704_v29  ;;  %v4742_v47 = vpack.c.b16 %v1288_v63, %v1281_v50  ;;  %v713_v50 = vrot.slane %v5599_v30, 2 }
  0xbc   : > { %5597 = vst [vmem:[#allocation89_spill] sm:$0xff] %v4721_v16 }
  0xbd   : > { %5598 = vst [vmem:[#allocation90_spill] sm:$0xff] %v4724_v44 }
  0xbe   : > { %2291 = vmatmul.bf16.gmra.mxu2 %v1457_v3  ;;  %2464 = vmatmul.bf16.gmra.mxu0 %v1452_v2  ;;  %v4662_v2 = vpop.f32.mrf.mxu0 }
  0xbf   : > { %v4657_v14 = vpop.f32.mrf.mxu2 }
  0xc0   : > { %v4659_v3 = vpop.f32.mrf.mxu1 }
  0xc4   : > { %v4682_v54 = vpop.f32.mrf.mxu3 }
  0xc5   : > { %5592 = vst [vmem:[#allocation84_spill] sm:$0xff] %v4682_v54  ;;  %v1291_v54 = vunpack.c.h.b16 %v851_v12  ;;  %v5601_v12 = vld [vmem:[#allocation57_spill] sm:$0xff] }
  0xc6   : > { %2380 = vmatmul.bf16.gmra.mxu3 %v1458_v35  ;;  %v3490_v35 = vld [vmem:[%s5380_s2 + $0x160] sm:$0xff]  ;;  %v4702_v36 = vpop.f32.mrf.mxu0  ;;  %v4734_v22 = vpack.c.bf16 %v4721_v16, %v5601_v12 }
  0xc7   : > { %2533 = vmatpush.bf16.msra.mxu1 %v3490_v35  ;;  %v4690_v15 = vpop.f32.mrf.mxu2 }
  0xc8   : > { %5602 = vst [vmem:[#allocation2_spill] sm:$0xff] %v4734_v22 }
  0xcb   : > { %2207 = vmatmul.bf16.gmra.mxu1 %v4648_v5 }
  0xcc   : > { %v4709_v35 = vpop.f32.mrf.mxu3 }
  0xcd   : > { %5596 = vst [vmem:[#allocation88_spill] sm:$0xff] %v4709_v35  ;;  %v1472_v35 = vpack.c.b16 %v1298_v40, %v1291_v54  ;;  %v1292_v40 = vunpack.c.l.b16 %v4734_v22 }
  0xce   : > { %2296 = vmatmul.bf16.gmra.mxu2 %v1464_v17  ;;  %2469 = vmatmul.bf16.gmra.mxu0 %v1459_v4  ;;  %v4692_v17 = vpop.f32.mrf.mxu1  ;;  %v4696_v4 = vpack.c.bf16 %v4677_v59, %v4190_v25 }
  0xd0   : > { %5593 = vst [vmem:[#allocation85_spill] sm:$0xff] %v4696_v4  ;;  %v1278_v9 = vunpack.c.l.b16 %v4696_v4  ;;  %v5617_v4 = vld [vmem:[#allocation7_spill] sm:$0xff] }
  0xd2   : > { %v1466_v25 = vpack.c.b16 %v1285_v45, %v1278_v9  ;;  %v859_v9 = vpack.c.bf16 %v5599_v30, %v4721_v16  ;;  %v5600_v45 = vld [vmem:[#allocation3_spill] sm:$0xff]  ;;  %v3497_v16 = vld [vmem:[%s5380_s2 + $0x198] sm:$0xff] }
  0xd3   : > { %v714_v63 = vrot.slane %v5600_v45, 2  ;;  %2623 = vmatpush.bf16.msra.mxu2 %v3497_v16  ;;  %v3505_v30 = vld [vmem:[%s5380_s2 + $0x1d8] sm:$0xff]  ;;  %v5613_v16 = vld [vmem:[#allocation10_spill] sm:$0xff] }
  0xd4   : > { %v1304_v39 = vunpack.c.l.b16 %v859_v9  ;;  %v1305_v22 = vunpack.c.h.b16 %v859_v9  ;;  %2712 = vmatpush.bf16.msra.mxu3 %v3505_v30 }
  0xd6   : > { %2385 = vmatmul.bf16.gmra.mxu3 %v1465_v24  ;;  %v4716_v48 = vpop.f32.mrf.mxu1  ;;  %v4718_v24 = vpop.f32.mrf.mxu0 }
  0xd8   : > { %v4714_v20 = vpop.f32.mrf.mxu2 }
  0xdb   : > { %2212 = vmatmul.bf16.gmra.mxu1 %v4704_v29 }
  0xdd   : > { %v4740_v32 = vpop.f32.mrf.mxu3 }
  0xde   : > { %2301 = vmatmul.bf16.gmra.mxu2 %v1471_v31  ;;  %2474 = vmatmul.bf16.gmra.mxu0 %v1466_v25  ;;  %v863_v31 = vpack.c.bf16 %v5600_v45, %v4724_v44  ;;  %v5603_v25 = vld [vmem:[#allocation58_spill] sm:$0xff]  ;;  %5605 = vst [vmem:[#allocation57_spill] sm:$0xff] %v4740_v32  ;;  %v5608_v32 = vld [vmem:[#allocation4_spill] sm:$0xff]  ;;  %v3489_v45 = vld [vmem:[%s5380_s2 + $0x158] sm:$0xff] }
  0xdf   : > { %v4738_v1 = vpack.c.bf16 %v4724_v44, %v5603_v25  ;;  %5606 = vst [vmem:[#allocation58_spill] sm:$0xff] %v4742_v47  ;;  %2534 = vmatpush.bf16.msra.mxu1 %v3489_v45 }
  0xe0   : > { %v1311_v6 = vunpack.c.l.b16 %v863_v31  ;;  %v4744_v29 = vpop.f32.mrf.mxu2  ;;  %v1312_v59 = vunpack.c.h.b16 %v863_v31 }
  0xe1   : > { %5604 = vst [vmem:[#allocation3_spill] sm:$0xff] %v4738_v1  ;;  %v1299_v54 = vunpack.c.l.b16 %v4738_v1  ;;  %v4750_v12 = vpop.f32.mrf.mxu0 }
  0xe2   : > { %5607 = vst [vmem:[#allocation91_spill] sm:$0xff] %v4744_v29  ;;  %v1478_v25 = vpack.c.b16 %v1311_v6, %v1304_v39  ;;  %v5614_v39 = vld [vmem:[#allocation11_spill] sm:$0xff]  ;;  %v5635_v29 = vld [vmem:[#allocation40_spill] sm:$0xff] }
  0xe3   : > { %v1473_v44 = vpack.c.b16 %v1299_v54, %v1292_v40  ;;  %v1302_v6 = vunpack.c.h.b16 %v5614_v39  ;;  %v5615_v40 = vld [vmem:[#allocation20_spill] sm:$0xff]  ;;  %v3513_v39 = vld [vmem:[%s5380_s2 + $0x218] sm:$0xff] }
  0xe4   : > { %2801 = vmatpush.bf16.msra.mxu0 %v3513_v39 }
  0xe6   : > { %2390 = vmatmul.bf16.gmra.mxu3 %v1472_v35  ;;  %v716_v35 = vrot.slane %v5608_v32, 2  ;;  %v4770_v32 = vsel %vm675_vm2, %v713_v50, %v714_v63  ;;  %v1479_v50 = vpack.c.b16 %v1312_v59, %v1305_v22 }
  0xe7   : > { %5610 = vst [vmem:[#allocation92_spill] sm:$0xff] %v4770_v32  ;;  %v867_v54 = vpack.c.bf16 %v5615_v40, %v4770_v32 }
  0xe8   : > { %v4746_v0 = vpop.f32.mrf.mxu1  ;;  %v4773_v9 = vsel %vm675_vm2, %v714_v63, %v716_v35  ;;  %v4787_v63 = vpack.c.bf16 %v4770_v32, %v5617_v4  ;;  %v5619_v35 = vld [vmem:[#allocation9_spill] sm:$0xff] }
  0xe9   : > { %5611 = vst [vmem:[#allocation93_spill] sm:$0xff] %v4773_v9  ;;  %v4783_v13 = vpop.f32.mrf.mxu0  ;;  %v1318_v5 = vunpack.c.l.b16 %v867_v54  ;;  %v1319_v39 = vunpack.c.h.b16 %v867_v54 }
  0xea   : > { %5618 = vst [vmem:[#allocation10_spill] sm:$0xff] %v4787_v63  ;;  %v1306_v59 = vunpack.c.l.b16 %v4787_v63 }
  0xeb   : > { %2217 = vmatmul.bf16.gmra.mxu1 %v4742_v47  ;;  %v4761_v47 = vpop.f32.mrf.mxu3 }
  0xec   : > { %5609 = vst [vmem:[#allocation4_spill] sm:$0xff] %v4761_v47 }
  0xee   : > { %2306 = vmatmul.bf16.gmra.mxu2 %v1478_v25  ;;  %2479 = vmatmul.bf16.gmra.mxu0 %v1473_v44  ;;  %v1295_v44 = vunpack.c.h.b16 %v5613_v16  ;;  %v5616_v25 = vld [vmem:[#allocation21_spill] sm:$0xff]  ;;  %v4791_v16 = vpack.c.bf16 %v4773_v9, %v5619_v35 }
  0xef   : > { %v871_v47 = vpack.c.bf16 %v5616_v25, %v4773_v9  ;;  %v718_v9 = vrot.slane %v5615_v40, 2 }
  0xf0   : > { %v4759_v1 = vpop.f32.mrf.mxu1  ;;  %5620 = vst [vmem:[#allocation11_spill] sm:$0xff] %v4791_v16  ;;  %v4796_v23 = vpack.c.b16 %v1302_v6, %v1295_v44  ;;  %v1313_v4 = vunpack.c.l.b16 %v4791_v16  ;;  %v719_v44 = vrot.slane %v5616_v25, 2  ;;  %v5627_v25 = vld [vmem:[#allocation38_spill] sm:$0xff] }
  0xf1   : > { %v4775_v31 = vpop.f32.mrf.mxu2  ;;  %v1325_v30 = vunpack.c.l.b16 %v871_v47  ;;  %v1326_v63 = vunpack.c.h.b16 %v871_v47  ;;  %v5630_v47 = vld [vmem:[#allocation27_spill] sm:$0xff] }
  0xf2   : > { %5612 = vst [vmem:[#allocation94_spill] sm:$0xff] %v4775_v31  ;;  %v1480_v6 = vpack.c.b16 %v1313_v4, %v1306_v59  ;;  %v5629_v4 = vld [vmem:[#allocation26_spill] sm:$0xff] }
  0xf3   : > { %5621 = vst [vmem:[#allocation20_spill] sm:$0xff] %v4796_v23  ;;  %v1485_v35 = vpack.c.b16 %v1325_v30, %v1318_v5  ;;  %v1309_v54 = vunpack.c.h.b16 %v5629_v4 }
  0xf6   : > { %2395 = vmatmul.bf16.gmra.mxu3 %v1479_v50  ;;  %v721_v50 = vrot.slane %v5624_v42, 2 }
  0xf8   : > { %v2183_v45 = vpop.f32.mrf.mxu1  ;;  %v4815_v5 = vsel %vm675_vm2, %v719_v44, %v721_v50 }
  0xf9   : > { %v4800_v22 = vpop.f32.mrf.mxu2  ;;  %v4802_v32 = vpop.f32.mrf.mxu3  ;;  %5626 = vst [vmem:[#allocation22_spill] sm:$0xff] %v4815_v5 }
  0xfa   : > { %5622 = vst [vmem:[#allocation21_spill] sm:$0xff] %v4800_v22  ;;  %v4811_v22 = vsel %vm675_vm2, %v718_v9, %v719_v44  ;;  %v5631_v9 = vld [vmem:[#allocation39_spill] sm:$0xff] }
  0xfb   : > { %5623 = vst [vmem:[#allocation7_spill] sm:$0xff] %v4802_v32  ;;  %2222 = vmatmul.bf16.gmra.mxu1 %v4796_v23  ;;  %v4808_v33 = vpop.f32.mrf.mxu0  ;;  %v2184_v32 = vadd.f32 %v2183_v45, %v4626_v37  ;;  %v875_v30 = vpack.c.bf16 %v5627_v25, %v4811_v22  ;;  %v879_v23 = vpack.c.bf16 %v5631_v9, %v4815_v5  ;;  %v5634_v45 = vld [vmem:[#allocation24_spill] sm:$0xff] }
  0xfc   : > { %5625 = vst [vmem:[#allocation9_spill] sm:$0xff] %v4811_v22  ;;  %v4827_v37 = vpack.c.bf16 %v4811_v22, %v5632_v34  ;;  %v4831_v44 = vpack.c.bf16 %v4815_v5, %v5634_v45 }
  0xfe   : > { %2311 = vmatmul.bf16.gmra.mxu2 %v1485_v35  ;;  %2484 = vmatmul.bf16.gmra.mxu0 %v1480_v6  ;;  %v1316_v35 = vunpack.c.h.b16 %v5630_v47  ;;  %v1486_v6 = vpack.c.b16 %v1326_v63, %v1319_v39  ;;  %5633 = vst [vmem:[#allocation26_spill] sm:$0xff] %v4827_v37  ;;  %v1320_v47 = vunpack.c.l.b16 %v4827_v37  ;;  %v1327_v63 = vunpack.c.l.b16 %v4831_v44 }
  0xff   : > { %v726_v37 = vrot.slane %v5635_v29, 2  ;;  %v3504_v29 = vld [vmem:[%s5380_s2 + $0x1d0] sm:$0xff] }
 0x100   : > { %v2185_v16 = vpop.f32.mrf.mxu1  ;;  %v1487_v31 = vpack.c.b16 %v1327_v63, %v1320_v47  ;;  %2713 = vmatpush.bf16.msra.mxu3 %v3504_v29 }
 0x101   : > { %v2272_v40 = vpop.f32.mrf.mxu2  ;;  %v4819_v42 = vpop.f32.mrf.mxu3  ;;  %v2186_v39 = vadd.f32 %v2185_v16, %v4662_v2  ;;  %v3496_v2 = vld [vmem:[%s5380_s2 + $0x190] sm:$0xff]  ;;  %v1333_v16 = vunpack.c.h.b16 %v875_v30 }
 0x102   : > { %5628 = vst [vmem:[#allocation38_spill] sm:$0xff] %v4819_v42  ;;  %v2273_v59 = vadd.f32 %v2272_v40, %v2184_v32  ;;  %v4835_v42 = vpack.c.b16 %v1316_v35, %v1309_v54  ;;  %v1332_v32 = vunpack.c.l.b16 %v875_v30  ;;  %v1339_v40 = vunpack.c.l.b16 %v879_v23  ;;  %2624 = vmatpush.bf16.msra.mxu2 %v3496_v2  ;;  %v5639_v30 = vld [vmem:[#allocation56_spill] sm:$0xff] }
 0x103   : > { %v4833_v50 = vpop.f32.mrf.mxu0  ;;  %v723_v35 = vrot.slane %v5627_v25, 2 }
 0x104   : > { %v1492_v5 = vpack.c.b16 %v1339_v40, %v1332_v32 }
 0x106   : > { %2400 = vmatmul.bf16.gmra.mxu3 %v1486_v6  ;;  %v724_v6 = vrot.slane %v5631_v9, 2 }
 0x108   : > { %v2188_v4 = vpop.f32.mrf.mxu1 }
 0x109   : > { %v2189_v34 = vadd.f32 %v2188_v4, %v4702_v36  ;;  %v2274_v22 = vpop.f32.mrf.mxu2  ;;  %v2361_v57 = vpop.f32.mrf.mxu3 }
 0x10a   : > { %v2275_v45 = vadd.f32 %v2274_v22, %v2186_v39  ;;  %v2362_v54 = vadd.f32 %v2361_v57, %v2273_v59  ;;  %v1340_v22 = vunpack.c.h.b16 %v879_v23  ;;  %v4851_v57 = vsel %vm675_vm2, %v723_v35, %v724_v6  ;;  %v5642_v35 = vld [vmem:[#allocation42_spill] sm:$0xff] }
 0x10b   : > { %2227 = vmatmul.bf16.gmra.mxu1 %v4835_v42  ;;  %v2450_v58 = vpop.f32.mrf.mxu0  ;;  %5637 = vst [vmem:[#allocation39_spill] sm:$0xff] %v4851_v57  ;;  %v883_v59 = vpack.c.bf16 %v5639_v30, %v4851_v57 }
 0x10c   : > { %v4848_v36 = vadd.f32 %v2450_v58, %v2362_v54  ;;  %v4861_v58 = vsel %vm675_vm2, %v724_v6, %v726_v37  ;;  %v1493_v54 = vpack.c.b16 %v1340_v22, %v1333_v16  ;;  %v4871_v37 = vpack.c.bf16 %v4851_v57, %v5642_v35  ;;  %v5643_v6 = vld [vmem:[#allocation43_spill] sm:$0xff] }
 0x10d   : > { %5638 = vst [vmem:[#allocation23_spill] sm:$0xff] %v4861_v58  ;;  %v887_v63 = vpack.c.bf16 %v4361_v52, %v4861_v58  ;;  %v4875_v2 = vpack.c.bf16 %v4861_v58, %v5643_v6  ;;  %v1347_v57 = vunpack.c.h.b16 %v883_v59 }
 0x10e   : > { %2316 = vmatmul.bf16.gmra.mxu2 %v1492_v5  ;;  %5636 = vst [vmem:[#allocation27_spill] sm:$0xff] %v4848_v36  ;;  %2489 = vmatmul.bf16.gmra.mxu0 %v1487_v31  ;;  %v3488_v5 = vld [vmem:[%s5380_s2 + $0x150] sm:$0xff]  ;;  %v1334_v16 = vunpack.c.l.b16 %v4871_v37  ;;  %v728_v36 = vrot.slane %v5639_v30, 2 }
 0x10f   : > { %v5640_v31 = vld [vmem:[#allocation44_spill] sm:$0xff]  ;;  %2535 = vmatpush.bf16.msra.mxu1 %v3488_v5  ;;  %v1353_v29 = vunpack.c.l.b16 %v887_v63  ;;  %v1341_v22 = vunpack.c.l.b16 %v4875_v2 }
 0x110   : > { %v2190_v4 = vpop.f32.mrf.mxu1  ;;  %v1323_v40 = vunpack.c.h.b16 %v5640_v31  ;;  %v1346_v31 = vunpack.c.l.b16 %v883_v59  ;;  %v1344_v59 = vunpack.c.h.b16 %v4405_v21 }
 0x111   : > { %v2191_v25 = vadd.f32 %v2190_v4, %v4718_v24  ;;  %v2277_v23 = vpop.f32.mrf.mxu2  ;;  %v2363_v9 = vpop.f32.mrf.mxu3  ;;  %v5641_v24 = vld [vmem:[#allocation45_spill] sm:$0xff]  ;;  %v3512_v4 = vld [vmem:[%s5380_s2 + $0x210] sm:$0xff] }
 0x112   : > { %v2278_v32 = vadd.f32 %v2277_v23, %v2189_v34  ;;  %v1330_v47 = vunpack.c.h.b16 %v5641_v24  ;;  %v2364_v39 = vadd.f32 %v2363_v9, %v2275_v45  ;;  %2802 = vmatpush.bf16.msra.mxu0 %v3512_v4 }
 0x113   : > { %v2452_v34 = vpop.f32.mrf.mxu0 }
 0x114   : > { %v4880_v23 = vpack.c.b16 %v1330_v47, %v1323_v40  ;;  %v4882_v5 = vadd.f32 %v2452_v34, %v2364_v39  ;;  %v1499_v40 = vpack.c.b16 %v1353_v29, %v1346_v31  ;;  %v729_v39 = vrot.slane %v4361_v52, 2  ;;  %v5645_v34 = vld [vmem:[#allocation59_spill] sm:$0xff]  ;;  %v5648_v31 = vld [vmem:[#allocation6_spill] sm:$0xff] }
 0x115   : > { %v731_v4 = vrot.slane %v5645_v34, 2 }
 0x116   : > { %5644 = vst [vmem:[#allocation24_spill] sm:$0xff] %v4882_v5  ;;  %2405 = vmatmul.bf16.gmra.mxu3 %v1493_v54  ;;  %v1494_v54 = vpack.c.b16 %v1341_v22, %v1334_v16 }
 0x117   : > { %v4898_v30 = vsel %vm675_vm2, %v729_v39, %v731_v4 }
 0x118   : > { %v2193_v45 = vpop.f32.mrf.mxu1  ;;  %5647 = vst [vmem:[#allocation56_spill] sm:$0xff] %v4898_v30 }
 0x119   : > { %v2194_v9 = vadd.f32 %v2193_v45, %v4750_v12  ;;  %v2279_v24 = vpop.f32.mrf.mxu2  ;;  %v2366_v35 = vpop.f32.mrf.mxu3  ;;  %v1354_v12 = vunpack.c.h.b16 %v887_v63  ;;  %v5650_v63 = vld [vmem:[#allocation5_spill] sm:$0xff] }
 0x11a   : > { %v2280_v6 = vadd.f32 %v2279_v24, %v2191_v25  ;;  %v2367_v47 = vadd.f32 %v2366_v35, %v2278_v32  ;;  %v4894_v25 = vsel %vm675_vm2, %v728_v36, %v729_v39  ;;  %v895_v36 = vpack.c.bf16 %v5650_v63, %v4898_v30  ;;  %v5652_v39 = vld [vmem:[#allocation61_spill] sm:$0xff] }
 0x11b   : > { %2232 = vmatmul.bf16.gmra.mxu1 %v4880_v23  ;;  %v2455_v5 = vpop.f32.mrf.mxu0  ;;  %v891_v29 = vpack.c.bf16 %v5648_v31, %v4894_v25 }
 0x11c   : > { %v4891_v58 = vadd.f32 %v2455_v5, %v2367_v47  ;;  %v5649_v5 = vld [vmem:[#allocation62_spill] sm:$0xff]  ;;  %v5651_v47 = vld [vmem:[#allocation60_spill] sm:$0xff] }
 0x11d   : > { %v1337_v24 = vunpack.c.h.b16 %v5649_v5 }
 0x11e   : > { %2321 = vmatmul.bf16.gmra.mxu2 %v1499_v40  ;;  %5646 = vst [vmem:[#allocation40_spill] sm:$0xff] %v4891_v58  ;;  %2494 = vmatmul.bf16.gmra.mxu0 %v1494_v54  ;;  %v1500_v40 = vpack.c.b16 %v1354_v12, %v1347_v57  ;;  %v4912_v54 = vpack.c.bf16 %v4898_v30, %v5652_v39  ;;  %v3495_v30 = vld [vmem:[%s5380_s2 + $0x188] sm:$0xff] }
 0x11f   : > { %v4914_v4 = vpack.c.b16 %v1344_v59, %v1337_v24  ;;  %v733_v59 = vrot.slane %v5648_v31, 2  ;;  %2625 = vmatpush.bf16.msra.mxu2 %v3495_v30  ;;  %v5659_v30 = vld [vmem:[#allocation29_spill] sm:$0xff] }
 0x120   : > { %v2195_v45 = vpop.f32.mrf.mxu1  ;;  %v1355_v57 = vunpack.c.l.b16 %v4912_v54 }
 0x121   : > { %v2196_v32 = vadd.f32 %v2195_v45, %v4783_v13  ;;  %v2282_v52 = vpop.f32.mrf.mxu2  ;;  %v2368_v16 = vpop.f32.mrf.mxu3  ;;  %v4908_v13 = vpack.c.bf16 %v4894_v25, %v5651_v47  ;;  %5653 = vst [vmem:[#allocation44_spill] sm:$0xff] %v4914_v4  ;;  %v1367_v45 = vunpack.c.l.b16 %v895_v36 }
 0x122   : > { %v2283_v22 = vadd.f32 %v2282_v52, %v2194_v9  ;;  %v2369_v35 = vadd.f32 %v2368_v16, %v2280_v6  ;;  %v1360_v9 = vunpack.c.l.b16 %v891_v29 }
 0x123   : > { %v2457_v34 = vpop.f32.mrf.mxu0  ;;  %v1348_v6 = vunpack.c.l.b16 %v4908_v13 }
 0x124   : > { %v4916_v52 = vadd.f32 %v2457_v34, %v2369_v35  ;;  %v1506_v39 = vpack.c.b16 %v1367_v45, %v1360_v9  ;;  %v734_v35 = vrot.slane %v5650_v63, 2  ;;  %v3503_v63 = vld [vmem:[%s5380_s2 + $0x1c8] sm:$0xff] }
 0x125   : > { %v1501_v34 = vpack.c.b16 %v1355_v57, %v1348_v6  ;;  %v3487_v9 = vld [vmem:[%s5380_s2 + $0x148] sm:$0xff]  ;;  %v5660_v57 = vld [vmem:[#allocation14_spill] sm:$0xff]  ;;  %2714 = vmatpush.bf16.msra.mxu3 %v3503_v63 }
 0x126   : > { %5654 = vst [vmem:[#allocation45_spill] sm:$0xff] %v4916_v52  ;;  %2410 = vmatmul.bf16.gmra.mxu3 %v1500_v40  ;;  %v5655_v40 = vld [vmem:[#allocation8_spill] sm:$0xff]  ;;  %2536 = vmatpush.bf16.msra.mxu1 %v3487_v9 }
 0x127   : > { %v736_v52 = vrot.slane %v5655_v40, 2 }
 0x128   : > { %v2198_v21 = vpop.f32.mrf.mxu1 }
 0x129   : > { %v2199_v12 = vadd.f32 %v2198_v21, %v4808_v33  ;;  %v2284_v16 = vpop.f32.mrf.mxu2  ;;  %v2371_v5 = vpop.f32.mrf.mxu3  ;;  %v1368_v21 = vunpack.c.h.b16 %v895_v36 }
 0x12a   : > { %v2285_v47 = vadd.f32 %v2284_v16, %v2196_v32  ;;  %v2372_v24 = vadd.f32 %v2371_v5, %v2283_v22  ;;  %v1361_v32 = vunpack.c.h.b16 %v891_v29  ;;  %v4931_v22 = vsel %vm675_vm2, %v733_v59, %v734_v35 }
 0x12b   : > { %2237 = vmatmul.bf16.gmra.mxu1 %v4914_v4  ;;  %v2460_v58 = vpop.f32.mrf.mxu0  ;;  %5657 = vst [vmem:[#allocation43_spill] sm:$0xff] %v4931_v22  ;;  %v899_v36 = vpack.c.bf16 %v5659_v30, %v4931_v22  ;;  %v1351_v5 = vunpack.c.h.b16 %v5660_v57 }
 0x12c   : > { %v4928_v33 = vadd.f32 %v2460_v58, %v2372_v24  ;;  %v4941_v58 = vsel %vm675_vm2, %v734_v35, %v736_v52  ;;  %v5662_v24 = vld [vmem:[#allocation28_spill] sm:$0xff]  ;;  %v1507_v40 = vpack.c.b16 %v1368_v21, %v1361_v32  ;;  %v5665_v35 = vld [vmem:[#allocation13_spill] sm:$0xff] }
 0x12d   : > { %5658 = vst [vmem:[#allocation59_spill] sm:$0xff] %v4941_v58  ;;  %v903_v59 = vpack.c.bf16 %v5662_v24, %v4941_v58 }
 0x12e   : > { %2326 = vmatmul.bf16.gmra.mxu2 %v1506_v39  ;;  %5656 = vst [vmem:[#allocation42_spill] sm:$0xff] %v4928_v33  ;;  %2499 = vmatmul.bf16.gmra.mxu0 %v1501_v34  ;;  %v4955_v33 = vpack.c.bf16 %v4941_v58, %v5665_v35 }
 0x12f   : > { %v1381_v63 = vunpack.c.l.b16 %v903_v59 }
 0x130   : > { %v2200_v16 = vpop.f32.mrf.mxu1  ;;  %5666 = vst [vmem:[#allocation62_spill] sm:$0xff] %v4955_v33  ;;  %v1369_v21 = vunpack.c.l.b16 %v4955_v33  ;;  %v1382_v33 = vunpack.c.h.b16 %v903_v59  ;;  %v5674_v59 = vld [vmem:[#allocation35_spill] sm:$0xff] }
 0x131   : > { %v2201_v31 = vadd.f32 %v2200_v16, %v4833_v50  ;;  %v2287_v29 = vpop.f32.mrf.mxu2  ;;  %v2373_v45 = vpop.f32.mrf.mxu3  ;;  %v5661_v50 = vld [vmem:[#allocation15_spill] sm:$0xff]  ;;  %v5663_v16 = vld [vmem:[#allocation12_spill] sm:$0xff] }
 0x132   : > { %v2288_v6 = vadd.f32 %v2287_v29, %v2199_v12  ;;  %v1358_v39 = vunpack.c.h.b16 %v5661_v50  ;;  %v2374_v34 = vadd.f32 %v2373_v45, %v2285_v47  ;;  %v4951_v52 = vpack.c.bf16 %v4931_v22, %v5663_v16  ;;  %v3511_v29 = vld [vmem:[%s5380_s2 + $0x208] sm:$0xff] }
 0x133   : > { %v2462_v12 = vpop.f32.mrf.mxu0  ;;  %v1374_v50 = vunpack.c.l.b16 %v899_v36  ;;  %2803 = vmatpush.bf16.msra.mxu0 %v3511_v29 }
 0x134   : > { %5664 = vst [vmem:[#allocation6_spill] sm:$0xff] %v4951_v52  ;;  %v4960_v57 = vpack.c.b16 %v1358_v39, %v1351_v5  ;;  %v4962_v9 = vadd.f32 %v2462_v12, %v2374_v34  ;;  %v1362_v32 = vunpack.c.l.b16 %v4951_v52  ;;  %v738_v5 = vrot.slane %v5659_v30, 2  ;;  %v5668_v12 = vld [vmem:[#allocation30_spill] sm:$0xff] }
 0x135   : > { %v1513_v58 = vpack.c.b16 %v1381_v63, %v1374_v50  ;;  %v739_v39 = vrot.slane %v5662_v24, 2  ;;  %v1375_v52 = vunpack.c.h.b16 %v899_v36  ;;  %v5672_v50 = vld [vmem:[#allocation47_spill] sm:$0xff] }
 0x136   : > { %5667 = vst [vmem:[#allocation5_spill] sm:$0xff] %v4962_v9  ;;  %2415 = vmatmul.bf16.gmra.mxu3 %v1507_v40  ;;  %v1508_v34 = vpack.c.b16 %v1369_v21, %v1362_v32  ;;  %v741_v40 = vrot.slane %v5668_v12, 2  ;;  %v1372_v32 = vunpack.c.h.b16 %v5674_v59  ;;  %v5675_v21 = vld [vmem:[#allocation46_spill] sm:$0xff] }
 0x138   : > { %v2203_v47 = vpop.f32.mrf.mxu1  ;;  %v4977_v30 = vsel %vm675_vm2, %v739_v39, %v741_v40 }
 0x139   : > { %v2289_v45 = vpop.f32.mrf.mxu2  ;;  %v2376_v16 = vpop.f32.mrf.mxu3  ;;  %5671 = vst [vmem:[#allocation8_spill] sm:$0xff] %v4977_v30 }
 0x13a   : > { %v2290_v35 = vadd.f32 %v2289_v45, %v2201_v31  ;;  %v2377_v22 = vadd.f32 %v2376_v16, %v2288_v6  ;;  %v4973_v31 = vsel %vm675_vm2, %v738_v5, %v739_v39  ;;  %v2204_v6 = vadd.f32 %v2203_v47, %v4574_v38  ;;  %v5676_v38 = vld [vmem:[#allocation32_spill] sm:$0xff]  ;;  %v5678_v39 = vld [vmem:[#allocation33_spill] sm:$0xff] }
 0x13b   : > { %2242 = vmatmul.bf16.gmra.mxu1 %v4960_v57  ;;  %v2465_v9 = vpop.f32.mrf.mxu0  ;;  %5670 = vst [vmem:[#allocation61_spill] sm:$0xff] %v4973_v31  ;;  %v4981_v63 = vpack.c.bf16 %v5672_v50, %v4973_v31  ;;  %v911_v45 = vpack.c.bf16 %v5675_v21, %v4977_v30  ;;  %v1514_v5 = vpack.c.b16 %v1382_v33, %v1375_v52 }
 0x13c   : > { %v4970_v29 = vadd.f32 %v2465_v9, %v2377_v22  ;;  %v5673_v9 = vld [vmem:[#allocation34_spill] sm:$0xff]  ;;  %v4989_v47 = vpack.c.bf16 %v4973_v31, %v5676_v38 }
 0x13d   : > { %v1365_v36 = vunpack.c.h.b16 %v5673_v9 }
 0x13e   : > { %2331 = vmatmul.bf16.gmra.mxu2 %v1513_v58  ;;  %5669 = vst [vmem:[#allocation60_spill] sm:$0xff] %v4970_v29  ;;  %2504 = vmatmul.bf16.gmra.mxu0 %v1508_v34  ;;  %v4993_v34 = vpack.c.bf16 %v4977_v30, %v5678_v39  ;;  %v1376_v33 = vunpack.c.l.b16 %v4989_v47  ;;  %v3676_v30 = vld [vmem:[%s3791_s27 + $0x78] sm:$0xff]  }
 0x13f   : > { %5677 = vst [vmem:[#allocation29_spill] sm:$0xff] %v4989_v47  ;;  %v4995_v40 = vpack.c.b16 %v1372_v32, %v1365_v36  ;;  %v743_v32 = vrot.slane %v5672_v50, 2  ;;  %v3580_v31 = vunpack.c.l.bf16 %v3676_v30 }
 0x140   : > { %v2205_v4 = vpop.f32.mrf.mxu1  ;;  %5679 = vst [vmem:[#allocation14_spill] sm:$0xff] %v4993_v34  ;;  %v1383_v52 = vunpack.c.l.b16 %v4993_v34  ;;  %v5690_v34 = vld [vmem:[#allocation51_spill] sm:$0xff] }
 0x141   : > { %v2292_v24 = vpop.f32.mrf.mxu2  ;;  %v2378_v58 = vpop.f32.mrf.mxu3  ;;  %5680 = vst [vmem:[#allocation15_spill] sm:$0xff] %v4995_v40 }
 0x142   : > { %v2293_v22 = vadd.f32 %v2292_v24, %v2204_v6  ;;  %v2379_v16 = vadd.f32 %v2378_v58, %v2290_v35  ;;  %v1388_v6 = vunpack.c.l.b16 %v4981_v63  ;;  %v1395_v24 = vunpack.c.l.b16 %v911_v45 }
 0x143   : > { %v2467_v12 = vpop.f32.mrf.mxu0  ;;  %v2206_v58 = vadd.f32 %v2205_v4, %v4610_v10  ;;  %v3494_v10 = vld [vmem:[%s5380_s2 + $0x180] sm:$0xff]  ;;  %v3581_v4 = vunpack.c.h.bf16 %v3676_v30 }
 0x144   : > { %v4998_v9 = vadd.f32 %v2467_v12, %v2379_v16  ;;  %v1520_v36 = vpack.c.b16 %v1395_v24, %v1388_v6  ;;  %v744_v16 = vrot.slane %v5675_v21, 2  ;;  %v3727_v6 = vld [vmem:[%s5379_s1] ss:$0 sm:$0xff]  ;;  %v1389_v21 = vunpack.c.h.b16 %v4981_v63  ;;  %2626 = vmatpush.bf16.msra.mxu2 %v3494_v10 }
 0x145   : > { %v307_v50 = vmul.f32 %v3727_v6, %v3580_v31  ;;  %v1396_v24 = vunpack.c.h.b16 %v911_v45  ;;  %v3486_v31 = vld [vmem:[%s5380_s2 + $0x140] sm:$0xff] }
 0x146   : > { %5681 = vst [vmem:[#allocation28_spill] sm:$0xff] %v4998_v9  ;;  %2420 = vmatmul.bf16.gmra.mxu3 %v1514_v5  ;;  %v5682_v5 = vld [vmem:[#allocation48_spill] sm:$0xff]  ;;  %v1515_v9 = vpack.c.b16 %v1383_v52, %v1376_v33  ;;  %v308_v33 = vmul.f32 %v3727_v6, %v3581_v4  ;;  %v5018_v52 = vsel %vm675_vm2, %v743_v32, %v744_v16 }
 0x147   : > { %v746_v12 = vrot.slane %v5682_v5, 2  ;;  %5684 = vst [vmem:[#allocation13_spill] sm:$0xff] %v5018_v52  ;;  %v915_v45 = vpack.c.bf16 %v4414_v43, %v5018_v52  ;;  %2537 = vmatpush.bf16.msra.mxu1 %v3486_v31  ;;  %v3728_v5 = vld [vmem:[%s5379_s1 + $0x1] ss:$0 sm:$0xff]  ;;  %v1521_v4 = vpack.c.b16 %v1396_v24, %v1389_v21 }
 0x148   : > { %v2208_v35 = vpop.f32.mrf.mxu1  ;;  %v341_v6 = vadd.f32 %v3728_v5, %v308_v33 }
 0x149   : > { %v2294_v59 = vpop.f32.mrf.mxu2  ;;  %v2381_v38 = vpop.f32.mrf.mxu3  ;;  %v2209_v30 = vadd.f32 %v2208_v35, %v4624_v46  ;;  %v5688_v46 = vld [vmem:[#allocation53_spill] sm:$0xff] }
 0x14a   : > { %v2295_v39 = vadd.f32 %v2294_v59, %v2206_v58  ;;  %v2382_v29 = vadd.f32 %v2381_v38, %v2293_v22  ;;  %v5021_v59 = vsel %vm675_vm2, %v744_v16, %v746_v12  ;;  %v1386_v35 = vunpack.c.h.b16 %v5688_v46 }
 0x14b   : > { %2247 = vmatmul.bf16.gmra.mxu1 %v4995_v40  ;;  %v2470_v47 = vpop.f32.mrf.mxu0  ;;  %5685 = vst [vmem:[#allocation30_spill] sm:$0xff] %v5021_v59  ;;  %v340_v12 = vadd.f32 %v3728_v5, %v307_v50 }
 0x14c   : > { %v5014_v22 = vadd.f32 %v2470_v47, %v2382_v29  ;;  %v3502_v29 = vld [vmem:[%s5380_s2 + $0x1c0] sm:$0xff] }
 0x14d   : > { %v5686_v47 = vld [vmem:[#allocation66_spill] sm:$0xff]  ;;  %2715 = vmatpush.bf16.msra.mxu3 %v3502_v29 }
 0x14e   : > { %2336 = vmatmul.bf16.gmra.mxu2 %v1520_v36  ;;  %5683 = vst [vmem:[#allocation12_spill] sm:$0xff] %v5014_v22  ;;  %2509 = vmatmul.bf16.gmra.mxu0 %v1515_v9  ;;  %v919_v38 = vpack.c.bf16 %v5686_v47, %v5021_v59  ;;  %v5687_v9 = vld [vmem:[#allocation52_spill] sm:$0xff]  ;;  %v5689_v22 = vld [vmem:[#allocation50_spill] sm:$0xff] }
 0x14f   : > { %v1379_v16 = vunpack.c.h.b16 %v5687_v9  ;;  %v5041_v40 = vpack.c.bf16 %v5018_v52, %v5689_v22  ;;  %v1402_v9 = vunpack.c.l.b16 %v915_v45  ;;  %v3510_v29 = vld [vmem:[%s5380_s2 + $0x200] sm:$0xff]  ;;  %v373_v22 = vmax.f32 %v341_v6, 0.0 }
 0x150   : > { %v2210_v58 = vpop.f32.mrf.mxu1  ;;  %v1409_v50 = vunpack.c.l.b16 %v919_v38  ;;  %2804 = vmatpush.bf16.msra.mxu0 %v3510_v29  ;;  %v5692_v29 = vld [vmem:[#allocation67_spill] sm:$0xff] }
 0x151   : > { %v2297_v63 = vpop.f32.mrf.mxu2  ;;  %v2383_v36 = vpop.f32.mrf.mxu3  ;;  %v5050_v31 = vpack.c.b16 %v1386_v35, %v1379_v16  ;;  %v1390_v33 = vunpack.c.l.b16 %v5041_v40 }
 0x152   : > { %v2298_v32 = vadd.f32 %v2297_v63, %v2209_v30  ;;  %v2384_v10 = vadd.f32 %v2383_v36, %v2295_v39  ;;  %v5045_v30 = vpack.c.bf16 %v5021_v59, %v5690_v34  ;;  %v372_v39 = vmax.f32 %v340_v12, 0.0 }
 0x153   : > { %v2472_v63 = vpop.f32.mrf.mxu0  ;;  %v2211_v36 = vadd.f32 %v2210_v58, %v4659_v3  ;;  %v1527_v16 = vpack.c.b16 %v1409_v50, %v1402_v9 }
 0x154   : > { %v5052_v21 = vadd.f32 %v2472_v63, %v2384_v10  ;;  %v1397_v34 = vunpack.c.l.b16 %v5045_v30  ;;  %v452_v35 = vrot.slane %v372_v39, 7  ;;  %v453_v10 = vrot.slane %v373_v22, 7 }
 0x155   : > { %v749_v63 = vrot.slane %v5686_v47, 2 }
 0x156   : > { %5691 = vst [vmem:[#allocation47_spill] sm:$0xff] %v5052_v21  ;;  %2425 = vmatmul.bf16.gmra.mxu3 %v1521_v4  ;;  %v748_v4 = vrot.slane %v4414_v43, 2  ;;  %v1522_v6 = vpack.c.b16 %v1397_v34, %v1390_v33  ;;  %v751_v21 = vrot.slane %v5692_v29, 2  ;;  %v5062_v3 = vsel %vm406_vm0, 0.0, %v452_v35  ;;  %v5696_v34 = vld [vmem:[#allocation71_spill] sm:$0xff] }
 0x158   : > { %v2213_v24 = vpop.f32.mrf.mxu1  ;;  %v5070_v43 = vsel %vm675_vm2, %v748_v4, %v749_v63  ;;  %v5074_v50 = vsel %vm675_vm2, %v749_v63, %v751_v21  ;;  %v5697_v4 = vld [vmem:[#allocation68_spill] sm:$0xff]  ;;  %v5698_v21 = vld [vmem:[#allocation69_spill] sm:$0xff]  ;;  %v804_v63 = vpack.c.bf16 %v4520_v19, %v4520_v19 }
 0x159   : > { %v2299_v46 = vpop.f32.mrf.mxu2  ;;  %v2386_v5 = vpop.f32.mrf.mxu3  ;;  %v2214_v47 = vadd.f32 %v2213_v24, %v4692_v17  ;;  %5694 = vst [vmem:[#allocation35_spill] sm:$0xff] %v5074_v50  ;;  %v5084_v17 = vpack.c.bf16 %v5070_v43, %v5697_v4  ;;  %v5088_v24 = vpack.c.bf16 %v5074_v50, %v5698_v21 }
 0x15a   : > { %v2300_v59 = vadd.f32 %v2299_v46, %v2211_v36  ;;  %v2387_v12 = vadd.f32 %v2386_v5, %v2298_v32  ;;  %v1403_v36 = vunpack.c.h.b16 %v915_v45  ;;  %v1410_v46 = vunpack.c.h.b16 %v919_v38  ;;  %v5695_v38 = vld [vmem:[#allocation70_spill] sm:$0xff] }
 0x15b   : > { %2252 = vmatmul.bf16.gmra.mxu1 %v5050_v31  ;;  %v2475_v52 = vpop.f32.mrf.mxu0  ;;  %v5067_v32 = vsel %vm406_vm0, %v452_v35, %v453_v10  ;;  %v1393_v33 = vunpack.c.h.b16 %v5695_v38  ;;  %v1400_v5 = vunpack.c.h.b16 %v5696_v34  ;;  %v1411_v38 = vunpack.c.l.b16 %v5088_v24 }
 0x15c   : > { %v5064_v58 = vadd.f32 %v2475_v52, %v2387_v12  ;;  %v923_v52 = vpack.c.bf16 %v5062_v3, %v5070_v43  ;;  %v1528_v12 = vpack.c.b16 %v1410_v46, %v1403_v36  ;;  %v5101_v4 = vunpack.c.l.b16 %v804_v63 }
 0x15e   : > { %2341 = vmatmul.bf16.gmra.mxu2 %v1527_v16  ;;  %5693 = vst [vmem:[#allocation34_spill] sm:$0xff] %v5064_v58  ;;  %2514 = vmatmul.bf16.gmra.mxu0 %v1522_v6  ;;  %v926_v16 = vpack.c.bf16 %v5067_v32, %v5074_v50  ;;  %v808_v6 = vpack.c.bf16 %v4523_v18, %v4523_v18  ;;  %v787_v58 = vrot.slane %v5067_v32, 1 }
 0x160   : > { %v2215_v9 = vpop.f32.mrf.mxu1  ;;  %v5103_v19 = vunpack.c.l.b16 %v808_v6  ;;  %v794_v6 = vrot.slane %v5067_v32, 2 }
 0x161   : > { %v2302_v39 = vpop.f32.mrf.mxu2  ;;  %v2388_v22 = vpop.f32.mrf.mxu3  ;;  %v2216_v34 = vadd.f32 %v2215_v9, %v4716_v48  ;;  %v793_v48 = vrot.slane %v5062_v3, 2 }
 0x162   : > { %v2303_v45 = vadd.f32 %v2302_v39, %v2214_v47  ;;  %v2389_v35 = vadd.f32 %v2388_v22, %v2300_v59  ;;  %v5094_v47 = vpack.c.b16 %v1400_v5, %v1393_v33  ;;  %v1416_v39 = vunpack.c.l.b16 %v923_v52 }
 0x163   : > { %v2477_v29 = vpop.f32.mrf.mxu0  ;;  %v1421_v59 = vunpack.c.l.b16 %v926_v16  ;;  %v1404_v22 = vunpack.c.l.b16 %v5084_v17 }
 0x164   : > { %v5096_v36 = vadd.f32 %v2477_v29, %v2389_v35  ;;  %v534_v35 = vsel %vm406_vm0, %v453_v10, 0.0  ;;  %v1417_v10 = vunpack.c.h.b16 %v923_v52 }
 0x165   : > { %v1534_v5 = vpack.c.b16 %v1421_v59, %v1416_v39  ;;  %v1529_v29 = vpack.c.b16 %v1411_v38, %v1404_v22  ;;  %v789_v63 = vrot.slane %v534_v35, 1  ;;  %v796_v50 = vrot.slane %v534_v35, 2 }
 0x166   : > { %5699 = vst [vmem:[#allocation46_spill] sm:$0xff] %v5096_v36  ;;  %2430 = vmatmul.bf16.gmra.mxu3 %v1528_v12  ;;  %v786_v36 = vrot.slane %v5062_v3, 1 }
 0x168   : > { %v2218_v46 = vpop.f32.mrf.mxu1  ;;  %v5117_v38 = vsel %vm566_vm1, %v786_v36, %v787_v58 }
 0x169   : > { %v2304_v18 = vpop.f32.mrf.mxu2  ;;  %v2391_v21 = vpop.f32.mrf.mxu3  ;;  %v2219_v22 = vadd.f32 %v2218_v46, %v4746_v0 }
 0x16a   : > { %v2305_v33 = vadd.f32 %v2304_v18, %v2216_v34  ;;  %v2392_v12 = vadd.f32 %v2391_v21, %v2303_v45  ;;  %v1433_v34 = vpack.c.b16 %v5103_v19, %v5101_v4  ;;  %v1422_v45 = vunpack.c.h.b16 %v926_v16 }
 0x16b   : > { %2257 = vmatmul.bf16.gmra.mxu1 %v5094_v47  ;;  %v2480_v9 = vpop.f32.mrf.mxu0  ;;  %v5120_v18 = vsel %vm566_vm1, %v787_v58, %v789_v63  ;;  %v5123_v21 = vsel %vm675_vm2, %v793_v48, %v794_v6  ;;  %v5126_v4 = vsel %vm675_vm2, %v794_v6, %v796_v50  ;;  %v5702_v6 = vld [vmem:[#allocation37_spill] sm:$0xff] }
 0x16c   : > { %v5113_v39 = vadd.f32 %v2480_v9, %v2392_v12  ;;  %v1535_v35 = vpack.c.b16 %v1422_v45, %v1417_v10  ;;  %v5130_v0 = vpack.c.bf16 %v5123_v21, %v5117_v38  ;;  %v5134_v36 = vpack.c.bf16 %v5126_v4, %v5120_v18 }
 0x16e   : > { %2346 = vmatmul.bf16.gmra.mxu2 %v1534_v5  ;;  %5700 = vst [vmem:[#allocation32_spill] sm:$0xff] %v5113_v39  ;;  %2519 = vmatmul.bf16.gmra.mxu0 %v1529_v29  ;;  %v1418_v50 = vunpack.c.l.b16 %v5130_v0  ;;  %v1423_v29 = vunpack.c.l.b16 %v5134_v36 }
 0x170   : > { %v2220_v59 = vpop.f32.mrf.mxu1  ;;  %v1536_v45 = vpack.c.b16 %v1423_v29, %v1418_v50 }
 0x171   : > { %v2307_v19 = vpop.f32.mrf.mxu2  ;;  %v2393_v5 = vpop.f32.mrf.mxu3 }
 0x172   : > { %v2308_v52 = vadd.f32 %v2307_v19, %v2219_v22  ;;  %v2394_v16 = vadd.f32 %v2393_v5, %v2305_v33  ;;  %v2221_v33 = vadd.f32 %v2220_v59, %v4759_v1  ;;  %v5703_v19 = vld [vmem:[#allocation55_spill] sm:$0xff]  ;;  %v1221_v1 = vunpack.c.h.b16 %v4533_v60 }
 0x173   : > { %v2482_v58 = vpop.f32.mrf.mxu0  ;;  %v1230_v59 = vunpack.c.h.b16 %v4537_v11 }
 0x174   : > { %v5136_v46 = vadd.f32 %v2482_v58, %v2394_v16 }
 0x176   : > { %5701 = vst [vmem:[#allocation33_spill] sm:$0xff] %v5136_v46  ;;  %2435 = vmatmul.bf16.gmra.mxu3 %v1535_v35 }
 0x178   : > { %v2223_v12 = vpop.f32.mrf.mxu1 }
 0x179   : > { %v2309_v48 = vpop.f32.mrf.mxu2  ;;  %v2396_v9 = vpop.f32.mrf.mxu3  ;;  %v2224_v35 = vadd.f32 %v2223_v12, %v4608_v8 }
 0x17a   : > { %v2310_v63 = vadd.f32 %v2309_v48, %v2221_v33  ;;  %v2397_v10 = vadd.f32 %v2396_v9, %v2308_v52  ;;  %v1439_v52 = vpack.c.b16 %v1230_v59, %v1221_v1 }
 0x17b   : > { %2538 = vmatmul.bf16.vlgmr.msra.gmra.mxu1 %v5702_v6  ;;  %v2485_v22 = vpop.f32.mrf.mxu0 }
 0x17c   : > { %v5143_v5 = vadd.f32 %v2485_v22, %v2397_v10 }
 0x17e   : > { %2627 = vmatmul.bf16.vlgmr.msra.gmra.mxu2 %v5703_v19  ;;  %2524 = vmatmul.bf16.gmra.mxu0 %v1536_v45  ;;  %v1237_v19 = vunpack.c.h.b16 %v4560_v62 }
 0x180   : > { %v2225_v16 = vpop.f32.mrf.mxu1 }
 0x181   : > { %v2312_v58 = vpop.f32.mrf.mxu2  ;;  %v2398_v46 = vpop.f32.mrf.mxu3  ;;  %v2226_v9 = vadd.f32 %v2225_v16, %v4622_v7  ;;  %v1244_v7 = vunpack.c.h.b16 %v4564_v28 }
 0x182   : > { %v2313_v39 = vadd.f32 %v2312_v58, %v2224_v35  ;;  %v2399_v33 = vadd.f32 %v2398_v46, %v2310_v63 }
 0x183   : > { %v2487_v48 = vpop.f32.mrf.mxu0  ;;  %v1446_v58 = vpack.c.b16 %v1244_v7, %v1237_v19  ;;  %v5705_v7 = vld [vmem:[#allocation74_spill] sm:$0xff] }
 0x184   : > { %v5148_v50 = vadd.f32 %v2487_v48, %v2399_v33 }
 0x186   : > { %2716 = vmatmul.bf16.vlgmr.msra.gmra.mxu3 %v4539_v27 }
 0x188   : > { %v2228_v29 = vpop.f32.mrf.mxu1 }
 0x189   : > { %v2314_v6 = vpop.f32.mrf.mxu2  ;;  %v2401_v10 = vpop.f32.mrf.mxu3  ;;  %v2229_v46 = vadd.f32 %v2228_v29, %v4657_v14 }
 0x18a   : > { %v2315_v8 = vadd.f32 %v2314_v6, %v2226_v9  ;;  %v2402_v12 = vadd.f32 %v2401_v10, %v2313_v39  ;;  %v813_v39 = vpack.c.bf16 %v4548_v41, %v4548_v41  ;;  %v5704_v9 = vld [vmem:[#allocation16_spill] sm:$0xff] }
 0x18b   : > { %2543 = vmatmul.bf16.gmra.mxu1 %v1439_v52  ;;  %v2490_v45 = vpop.f32.mrf.mxu0 }
 0x18c   : > { %v5153_v60 = vadd.f32 %v2490_v45, %v2402_v12  ;;  %v1258_v45 = vunpack.c.h.b16 %v4606_v56 }
 0x18e   : > { %2632 = vmatmul.bf16.gmra.mxu2 %v4501_v26  ;;  %2805 = vmatmul.bf16.vlgmr.msra.gmra.mxu0 %v1433_v34  ;;  %v818_v26 = vpack.c.bf16 %v4551_v61, %v4551_v61  ;;  %v1224_v34 = vunpack.c.l.b16 %v813_v39 }
 0x190   : > { %v2230_v11 = vpop.f32.mrf.mxu1  ;;  %v1233_v59 = vunpack.c.l.b16 %v818_v26  ;;  %v5706_v26 = vld [vmem:[#allocation91_spill] sm:$0xff] }
 0x191   : > { %v2317_v63 = vpop.f32.mrf.mxu2  ;;  %v2403_v22 = vpop.f32.mrf.mxu3  ;;  %v2231_v62 = vadd.f32 %v2230_v11, %v4690_v15  ;;  %v1251_v15 = vunpack.c.h.b16 %v4602_v51 }
 0x192   : > { %v2318_v27 = vadd.f32 %v2317_v63, %v2229_v46  ;;  %v2404_v16 = vadd.f32 %v2403_v22, %v2315_v8  ;;  %v1442_v41 = vpack.c.b16 %v1233_v59, %v1224_v34  ;;  %v822_v46 = vpack.c.bf16 %v4589_v53, %v4589_v53  ;;  %v5707_v59 = vld [vmem:[#allocation25_spill] sm:$0xff] }
 0x193   : > { %v2492_v35 = vpop.f32.mrf.mxu0  ;;  %v826_v63 = vpack.c.bf16 %v4592_v55, %v4592_v55 }
 0x194   : > { %v5162_v1 = vadd.f32 %v2492_v35, %v2404_v16  ;;  %v1240_v16 = vunpack.c.l.b16 %v822_v46 }
 0x195   : > { %v1247_v39 = vunpack.c.l.b16 %v826_v63 }
 0x196   : > { %2721 = vmatmul.bf16.gmra.mxu3 %v4566_v49 }
 0x197   : > { %v1449_v53 = vpack.c.b16 %v1247_v39, %v1240_v16  ;;  %v5714_v16 = vld [vmem:[#allocation21_spill] sm:$0xff] }
 0x198   : > { %v2233_v14 = vpop.f32.mrf.mxu1 }
 0x199   : > { %v2319_v33 = vpop.f32.mrf.mxu2  ;;  %v2406_v28 = vpop.f32.mrf.mxu3  ;;  %v2234_v49 = vadd.f32 %v2233_v14, %v4714_v20 }
 0x19a   : > { %v2320_v48 = vadd.f32 %v2319_v33, %v2231_v62  ;;  %v2407_v52 = vadd.f32 %v2406_v28, %v2318_v27  ;;  %v1453_v27 = vpack.c.b16 %v1258_v45, %v1251_v15  ;;  %v5708_v33 = vld [vmem:[#allocation94_spill] sm:$0xff]  ;;  %v5712_v15 = vld [vmem:[#allocation77_spill] sm:$0xff] }
 0x19b   : > { %2548 = vmatmul.bf16.gmra.mxu1 %v1446_v58  ;;  %v2495_v29 = vpop.f32.mrf.mxu0  ;;  %v834_v45 = vpack.c.bf16 %v5712_v15, %v5712_v15 }
 0x19c   : > { %v5167_v61 = vadd.f32 %v2495_v29, %v2407_v52  ;;  %v5709_v29 = vld [vmem:[#allocation78_spill] sm:$0xff] }
 0x19e   : > { %2637 = vmatmul.bf16.gmra.mxu2 %v5704_v9  ;;  %2810 = vmatmul.bf16.gmra.mxu0 %v1442_v41  ;;  %v1265_v9 = vunpack.c.h.b16 %v5709_v29 }
 0x1a0   : > { %v2235_v6 = vpop.f32.mrf.mxu1 }
 0x1a1   : > { %v2322_v10 = vpop.f32.mrf.mxu2  ;;  %v2408_v8 = vpop.f32.mrf.mxu3  ;;  %v2236_v51 = vadd.f32 %v2235_v6, %v5706_v26  ;;  %v5710_v6 = vld [vmem:[#allocation79_spill] sm:$0xff] }
 0x1a2   : > { %v2323_v12 = vadd.f32 %v2322_v10, %v2234_v49  ;;  %v2409_v11 = vadd.f32 %v2408_v8, %v2320_v48  ;;  %v1272_v49 = vunpack.c.h.b16 %v5710_v6  ;;  %v5711_v8 = vld [vmem:[#allocation76_spill] sm:$0xff]  ;;  %v5718_v6 = vld [vmem:[#allocation86_spill] sm:$0xff] }
 0x1a3   : > { %v2497_v22 = vpop.f32.mrf.mxu0 }
 0x1a4   : > { %v5176_v19 = vadd.f32 %v2497_v22, %v2409_v11  ;;  %v1460_v46 = vpack.c.b16 %v1272_v49, %v1265_v9  ;;  %v5713_v22 = vld [vmem:[#allocation80_spill] sm:$0xff]  ;;  %v5717_v9 = vld [vmem:[#allocation85_spill] sm:$0xff]  ;;  %v1286_v49 = vunpack.c.h.b16 %v5718_v6 }
 0x1a6   : > { %2726 = vmatmul.bf16.gmra.mxu3 %v5705_v7 }
 0x1a8   : > { %v2238_v20 = vpop.f32.mrf.mxu1 }
 0x1a9   : > { %v2324_v35 = vpop.f32.mrf.mxu2  ;;  %v2411_v56 = vpop.f32.mrf.mxu3  ;;  %v2239_v28 = vadd.f32 %v2238_v20, %v5708_v33  ;;  %v1261_v20 = vunpack.c.l.b16 %v834_v45  ;;  %v5716_v33 = vld [vmem:[#allocation75_spill] sm:$0xff] }
 0x1aa   : > { %v2325_v58 = vadd.f32 %v2324_v35, %v2236_v51  ;;  %v2412_v14 = vadd.f32 %v2411_v56, %v2323_v12  ;;  %v830_v12 = vpack.c.bf16 %v5711_v8, %v5711_v8  ;;  %v5719_v8 = vld [vmem:[#allocation82_spill] sm:$0xff] }
 0x1ab   : > { %2553 = vmatmul.bf16.gmra.mxu1 %v1453_v27  ;;  %v2500_v34 = vpop.f32.mrf.mxu0 }
 0x1ac   : > { %v5181_v55 = vadd.f32 %v2500_v34, %v2412_v14  ;;  %v1254_v7 = vunpack.c.l.b16 %v830_v12  ;;  %v5720_v12 = vld [vmem:[#allocation83_spill] sm:$0xff] }
 0x1ad   : > { %v842_v15 = vpack.c.bf16 %v5720_v12, %v5720_v12  ;;  %v5727_v12 = vld [vmem:[#allocation89_spill] sm:$0xff] }
 0x1ae   : > { %2642 = vmatmul.bf16.gmra.mxu2 %v5707_v59  ;;  %2815 = vmatmul.bf16.gmra.mxu0 %v1449_v53  ;;  %v5715_v53 = vld [vmem:[#allocation41_spill] sm:$0xff] }
 0x1b0   : > { %v2240_v62 = vpop.f32.mrf.mxu1 }
 0x1b1   : > { %v2327_v48 = vpop.f32.mrf.mxu2  ;;  %v2413_v52 = vpop.f32.mrf.mxu3  ;;  %v2241_v39 = vadd.f32 %v2240_v62, %v5714_v16  ;;  %v1279_v62 = vunpack.c.h.b16 %v5717_v9  ;;  %v5722_v16 = vld [vmem:[#allocation81_spill] sm:$0xff] }
 0x1b2   : > { %v2328_v41 = vadd.f32 %v2327_v48, %v2239_v28  ;;  %v2414_v10 = vadd.f32 %v2413_v52, %v2325_v58  ;;  %v1456_v58 = vpack.c.b16 %v1261_v20, %v1254_v7  ;;  %v1275_v20 = vunpack.c.l.b16 %v842_v15  ;;  %v5728_v15 = vld [vmem:[#allocation90_spill] sm:$0xff] }
 0x1b3   : > { %v2502_v11 = vpop.f32.mrf.mxu0 }
 0x1b4   : > { %v5190_v63 = vadd.f32 %v2502_v11, %v2414_v10  ;;  %v1467_v11 = vpack.c.b16 %v1286_v49, %v1279_v62  ;;  %v5725_v49 = vld [vmem:[#allocation2_spill] sm:$0xff] }
 0x1b6   : > { %2731 = vmatmul.bf16.gmra.mxu3 %v5713_v22  ;;  %v5721_v22 = vld [vmem:[#allocation87_spill] sm:$0xff] }
 0x1b8   : > { %v2243_v27 = vpop.f32.mrf.mxu1 }
 0x1b9   : > { %v2329_v26 = vpop.f32.mrf.mxu2  ;;  %v2416_v51 = vpop.f32.mrf.mxu3  ;;  %v2244_v28 = vadd.f32 %v2243_v27, %v5716_v33 }
 0x1ba   : > { %v2330_v35 = vadd.f32 %v2329_v26, %v2241_v39  ;;  %v2417_v56 = vadd.f32 %v2416_v51, %v2328_v41  ;;  %v838_v41 = vpack.c.bf16 %v5719_v8, %v5719_v8 }
 0x1bb   : > { %2558 = vmatmul.bf16.gmra.mxu1 %v1460_v46  ;;  %v2505_v14 = vpop.f32.mrf.mxu0 }
 0x1bc   : > { %v5195_v34 = vadd.f32 %v2505_v14, %v2417_v56  ;;  %v1268_v7 = vunpack.c.l.b16 %v838_v41 }
 0x1be   : > { %2647 = vmatmul.bf16.gmra.mxu2 %v5715_v53  ;;  %2820 = vmatmul.bf16.gmra.mxu0 %v1456_v58  ;;  %v1463_v58 = vpack.c.b16 %v1275_v20, %v1268_v7  ;;  %v5723_v53 = vld [vmem:[#allocation63_spill] sm:$0xff]  ;;  %v5729_v20 = vld [vmem:[#allocation58_spill] sm:$0xff] }
 0x1c0   : > { %v2245_v59 = vpop.f32.mrf.mxu1 }
 0x1c1   : > { %v2332_v48 = vpop.f32.mrf.mxu2  ;;  %v2418_v52 = vpop.f32.mrf.mxu3  ;;  %v2246_v39 = vadd.f32 %v2245_v59, %v5722_v16  ;;  %v1293_v59 = vunpack.c.h.b16 %v5725_v49  ;;  %v5732_v49 = vld [vmem:[#allocation57_spill] sm:$0xff] }
 0x1c2   : > { %v2333_v29 = vadd.f32 %v2332_v48, %v2244_v28  ;;  %v2419_v10 = vadd.f32 %v2418_v52, %v2330_v35  ;;  %v5724_v48 = vld [vmem:[#allocation84_spill] sm:$0xff] }
 0x1c3   : > { %v2507_v45 = vpop.f32.mrf.mxu0 }
 0x1c4   : > { %v5204_v46 = vadd.f32 %v2507_v45, %v2419_v10  ;;  %v5726_v10 = vld [vmem:[#allocation3_spill] sm:$0xff]  ;;  %v850_v45 = vpack.c.bf16 %v5728_v15, %v5728_v15 }
 0x1c5   : > { %v1300_v8 = vunpack.c.h.b16 %v5726_v10 }
 0x1c6   : > { %2736 = vmatmul.bf16.gmra.mxu3 %v5721_v22 }
 0x1c7   : > { %v1474_v22 = vpack.c.b16 %v1300_v8, %v1293_v59 }
 0x1c8   : > { %v2248_v27 = vpop.f32.mrf.mxu1 }
 0x1c9   : > { %v2334_v26 = vpop.f32.mrf.mxu2  ;;  %v2421_v51 = vpop.f32.mrf.mxu3  ;;  %v2249_v52 = vadd.f32 %v2248_v27, %v5724_v48 }
 0x1ca   : > { %v2335_v35 = vadd.f32 %v2334_v26, %v2246_v39  ;;  %v2422_v56 = vadd.f32 %v2421_v51, %v2333_v29  ;;  %v846_v29 = vpack.c.bf16 %v5727_v12, %v5727_v12  ;;  %v1289_v39 = vunpack.c.l.b16 %v850_v45  ;;  %v5730_v26 = vld [vmem:[#allocation88_spill] sm:$0xff]  ;;  %v5733_v12 = vld [vmem:[#allocation10_spill] sm:$0xff] }
 0x1cb   : > { %2563 = vmatmul.bf16.gmra.mxu1 %v1467_v11  ;;  %v2510_v14 = vpop.f32.mrf.mxu0 }
 0x1cc   : > { %v5209_v33 = vadd.f32 %v2510_v14, %v2422_v56  ;;  %v1282_v16 = vunpack.c.l.b16 %v846_v29  ;;  %v5734_v29 = vld [vmem:[#allocation11_spill] sm:$0xff] }
 0x1cd   : > { %v1314_v15 = vunpack.c.h.b16 %v5734_v29  ;;  %v5740_v29 = vld [vmem:[#allocation7_spill] sm:$0xff] }
 0x1ce   : > { %2652 = vmatmul.bf16.gmra.mxu2 %v5723_v53  ;;  %2825 = vmatmul.bf16.gmra.mxu0 %v1463_v58  ;;  %v1470_v53 = vpack.c.b16 %v1289_v39, %v1282_v16 }
 0x1d0   : > { %v2250_v28 = vpop.f32.mrf.mxu1 }
 0x1d1   : > { %v2337_v9 = vpop.f32.mrf.mxu2  ;;  %v2423_v62 = vpop.f32.mrf.mxu3  ;;  %v2251_v51 = vadd.f32 %v2250_v28, %v5730_v26  ;;  %v1307_v28 = vunpack.c.h.b16 %v5733_v12 }
 0x1d2   : > { %v2338_v6 = vadd.f32 %v2337_v9, %v2249_v52  ;;  %v2424_v41 = vadd.f32 %v2423_v62, %v2335_v35  ;;  %v5731_v52 = vld [vmem:[#allocation18_spill] sm:$0xff] }
 0x1d3   : > { %v2512_v11 = vpop.f32.mrf.mxu0  ;;  %v1481_v39 = vpack.c.b16 %v1314_v15, %v1307_v28 }
 0x1d4   : > { %v5218_v7 = vadd.f32 %v2512_v11, %v2424_v41  ;;  %v5735_v11 = vld [vmem:[#allocation92_spill] sm:$0xff] }
 0x1d6   : > { %2741 = vmatmul.bf16.gmra.mxu3 %v5729_v20 }
 0x1d8   : > { %v2253_v27 = vpop.f32.mrf.mxu1 }
 0x1d9   : > { %v2339_v56 = vpop.f32.mrf.mxu2  ;;  %v2426_v58 = vpop.f32.mrf.mxu3  ;;  %v2254_v59 = vadd.f32 %v2253_v27, %v5732_v49 }
 0x1da   : > { %v2340_v35 = vadd.f32 %v2339_v56, %v2251_v51  ;;  %v2427_v14 = vadd.f32 %v2426_v58, %v2338_v6  ;;  %v854_v6 = vpack.c.bf16 %v5735_v11, %v5735_v11  ;;  %v5737_v51 = vld [vmem:[#allocation20_spill] sm:$0xff] }
 0x1db   : > { %2568 = vmatmul.bf16.gmra.mxu1 %v1474_v22  ;;  %v2515_v48 = vpop.f32.mrf.mxu0  ;;  %v5736_v22 = vld [vmem:[#allocation93_spill] sm:$0xff] }
 0x1dc   : > { %v5223_v9 = vadd.f32 %v2515_v48, %v2427_v14  ;;  %v858_v20 = vpack.c.bf16 %v5736_v22, %v5736_v22  ;;  %v1296_v56 = vunpack.c.l.b16 %v854_v6  ;;  %v5738_v14 = vld [vmem:[#allocation4_spill] sm:$0xff]  ;;  %v5741_v22 = vld [vmem:[#allocation26_spill] sm:$0xff] }
 0x1de   : > { %2657 = vmatmul.bf16.gmra.mxu2 %v5731_v52  ;;  %2830 = vmatmul.bf16.gmra.mxu0 %v1470_v53  ;;  %v1303_v58 = vunpack.c.l.b16 %v858_v20  ;;  %v1328_v20 = vunpack.c.h.b16 %v4831_v44 }
 0x1e0   : > { %v2255_v62 = vpop.f32.mrf.mxu1 }
 0x1e1   : > { %v2342_v10 = vpop.f32.mrf.mxu2  ;;  %v2428_v8 = vpop.f32.mrf.mxu3  ;;  %v2256_v53 = vadd.f32 %v2255_v62, %v5738_v14  ;;  %v1321_v62 = vunpack.c.h.b16 %v5741_v22 }
 0x1e2   : > { %v2343_v41 = vadd.f32 %v2342_v10, %v2254_v59  ;;  %v2429_v45 = vadd.f32 %v2428_v8, %v2340_v35  ;;  %v1477_v59 = vpack.c.b16 %v1303_v58, %v1296_v56  ;;  %v5739_v8 = vld [vmem:[#allocation31_spill] sm:$0xff] }
 0x1e3   : > { %v2517_v16 = vpop.f32.mrf.mxu0  ;;  %v1488_v14 = vpack.c.b16 %v1328_v20, %v1321_v62  ;;  %v1335_v20 = vunpack.c.h.b16 %v4871_v37  ;;  %v5748_v37 = vld [vmem:[#allocation27_spill] sm:$0xff] }
 0x1e4   : > { %v5232_v26 = vadd.f32 %v2517_v16, %v2429_v45 }
 0x1e6   : > { %2746 = vmatmul.bf16.gmra.mxu3 %v5737_v51  ;;  %v5743_v51 = vld [vmem:[#allocation22_spill] sm:$0xff] }
 0x1e7   : > { %v866_v56 = vpack.c.bf16 %v5743_v51, %v5743_v51 }
 0x1e8   : > { %v2258_v27 = vpop.f32.mrf.mxu1 }
 0x1e9   : > { %v2344_v48 = vpop.f32.mrf.mxu2  ;;  %v2431_v52 = vpop.f32.mrf.mxu3  ;;  %v2259_v15 = vadd.f32 %v2258_v27, %v5740_v29 }
 0x1ea   : > { %v2345_v35 = vadd.f32 %v2344_v48, %v2256_v53  ;;  %v2432_v49 = vadd.f32 %v2431_v52, %v2343_v41  ;;  %v1317_v52 = vunpack.c.l.b16 %v866_v56 }
 0x1eb   : > { %2573 = vmatmul.bf16.gmra.mxu1 %v1481_v39  ;;  %v2520_v10 = vpop.f32.mrf.mxu0  ;;  %v5742_v39 = vld [vmem:[#allocation9_spill] sm:$0xff] }
 0x1ec   : > { %v5237_v12 = vadd.f32 %v2520_v10, %v2432_v49  ;;  %v862_v41 = vpack.c.bf16 %v5742_v39, %v5742_v39  ;;  %v5744_v49 = vld [vmem:[#allocation38_spill] sm:$0xff]  ;;  %v5746_v39 = vld [vmem:[#allocation39_spill] sm:$0xff] }
 0x1ee   : > { %2662 = vmatmul.bf16.gmra.mxu2 %v5739_v8  ;;  %2835 = vmatmul.bf16.gmra.mxu0 %v1477_v59  ;;  %v1310_v48 = vunpack.c.l.b16 %v862_v41  ;;  %v870_v41 = vpack.c.bf16 %v5746_v39, %v5746_v39  ;;  %v1349_v39 = vunpack.c.h.b16 %v4908_v13  ;;  %v5753_v13 = vld [vmem:[#allocation44_spill] sm:$0xff] }
 0x1f0   : > { %v2260_v28 = vpop.f32.mrf.mxu1  ;;  %v1484_v29 = vpack.c.b16 %v1317_v52, %v1310_v48  ;;  %v1324_v52 = vunpack.c.l.b16 %v870_v41 }
 0x1f1   : > { %v2347_v45 = vpop.f32.mrf.mxu2  ;;  %v2433_v11 = vpop.f32.mrf.mxu3  ;;  %v2261_v59 = vadd.f32 %v2260_v28, %v5744_v49  ;;  %v1342_v28 = vunpack.c.h.b16 %v4875_v2 }
 0x1f2   : > { %v2348_v6 = vadd.f32 %v2347_v45, %v2259_v15  ;;  %v2434_v16 = vadd.f32 %v2433_v11, %v2345_v35  ;;  %v5745_v45 = vld [vmem:[#allocation49_spill] sm:$0xff] }
 0x1f3   : > { %v2522_v58 = vpop.f32.mrf.mxu0 }
 0x1f4   : > { %v5246_v53 = vadd.f32 %v2522_v58, %v2434_v16  ;;  %v1495_v58 = vpack.c.b16 %v1342_v28, %v1335_v20 }
 0x1f6   : > { %2751 = vmatmul.bf16.gmra.mxu3 %v4835_v42 }
 0x1f8   : > { %v2539_v27 = vpop.f32.mrf.mxu1 }
 0x1f9   : > { %v2349_v10 = vpop.f32.mrf.mxu2  ;;  %v2436_v44 = vpop.f32.mrf.mxu3  ;;  %v2540_v2 = vadd.f32 %v2539_v27, %v5748_v37  ;;  %v1356_v27 = vunpack.c.h.b16 %v4912_v54 }
 0x1fa   : > { %v2350_v35 = vadd.f32 %v2349_v10, %v2261_v59  ;;  %v2437_v8 = vadd.f32 %v2436_v44, %v2348_v6  ;;  %v5747_v6 = vld [vmem:[#allocation23_spill] sm:$0xff] }
 0x1fb   : > { %2578 = vmatmul.bf16.gmra.mxu1 %v1488_v14  ;;  %v2525_v15 = vpop.f32.mrf.mxu0  ;;  %v874_v51 = vpack.c.bf16 %v5747_v6, %v5747_v6  ;;  %v5751_v6 = vld [vmem:[#allocation56_spill] sm:$0xff] }
 0x1fc   : > { %v5251_v11 = vadd.f32 %v2525_v15, %v2437_v8 }
 0x1fd   : > { %v1331_v49 = vunpack.c.l.b16 %v874_v51 }
 0x1fe   : > { %2667 = vmatmul.bf16.gmra.mxu2 %v5745_v45  ;;  %2840 = vmatmul.bf16.gmra.mxu0 %v1484_v29  ;;  %v5749_v29 = vld [vmem:[#allocation24_spill] sm:$0xff]  ;;  %v5750_v45 = vld [vmem:[#allocation65_spill] sm:$0xff] }
 0x1ff   : > { %v1491_v44 = vpack.c.b16 %v1331_v49, %v1324_v52 }
 0x200   : > { %v2541_v22 = vpop.f32.mrf.mxu1 }
 0x201   : > { %v2628_v42 = vpop.f32.mrf.mxu2  ;;  %v2438_v62 = vpop.f32.mrf.mxu3  ;;  %v2542_v15 = vadd.f32 %v2541_v22, %v5749_v29  ;;  %v882_v22 = vpack.c.bf16 %v5751_v6, %v5751_v6 }
 0x202   : > { %v2439_v16 = vadd.f32 %v2438_v62, %v2350_v35  ;;  %v2629_v35 = vadd.f32 %v2628_v42, %v2540_v2  ;;  %v878_v42 = vpack.c.bf16 %v4894_v25, %v4894_v25 }
 0x203   : > { %v2527_v56 = vpop.f32.mrf.mxu0  ;;  %v1345_v25 = vunpack.c.l.b16 %v882_v22 }
 0x204   : > { %v5259_v14 = vadd.f32 %v2527_v56, %v2439_v16  ;;  %v1338_v54 = vunpack.c.l.b16 %v878_v42 }
 0x206   : > { %2756 = vmatmul.bf16.gmra.mxu3 %v4880_v23 }
 0x208   : > { %v2544_v48 = vpop.f32.mrf.mxu1 }
 0x209   : > { %v2630_v59 = vpop.f32.mrf.mxu2  ;;  %v2717_v10 = vpop.f32.mrf.mxu3 }
 0x20a   : > { %v2631_v62 = vadd.f32 %v2630_v59, %v2542_v15  ;;  %v2718_v23 = vadd.f32 %v2717_v10, %v2629_v35  ;;  %v1502_v59 = vpack.c.b16 %v1356_v27, %v1349_v39 }
 0x20b   : > { %2583 = vmatmul.bf16.gmra.mxu1 %v1495_v58  ;;  %v2806_v8 = vpop.f32.mrf.mxu0  ;;  %v5752_v58 = vld [vmem:[#allocation40_spill] sm:$0xff] }
 0x20c   : > { %v2807_v51 = vadd.f32 %v2806_v8, %v2718_v23  ;;  %v2545_v52 = vadd.f32 %v2544_v48, %v5752_v58 }
 0x20e   : > { %2672 = vmatmul.bf16.gmra.mxu2 %v5750_v45  ;;  %2845 = vmatmul.bf16.gmra.mxu0 %v1491_v44  ;;  %v2987_v10 = vmul.f32 %v2807_v51, %v2807_v51 }
 0x210   : > { %v2546_v20 = vpop.f32.mrf.mxu1 }
 0x211   : > { %v2633_v28 = vpop.f32.mrf.mxu2  ;;  %v2719_v16 = vpop.f32.mrf.mxu3 }
 0x212   : > { %v2720_v41 = vadd.f32 %v2719_v16, %v2631_v62  ;;  %v2634_v37 = vadd.f32 %v2633_v28, %v2545_v52  ;;  %v1498_v62 = vpack.c.b16 %v1345_v25, %v1338_v54  ;;  %v5754_v16 = vld [vmem:[#allocation45_spill] sm:$0xff]  ;;  %v5756_v52 = vld [vmem:[#allocation6_spill] sm:$0xff]  ;;  %v5758_v54 = vld [vmem:[#allocation43_spill] sm:$0xff] }
 0x213   : > { %v2808_v56 = vpop.f32.mrf.mxu0  ;;  %v2547_v39 = vadd.f32 %v2546_v20, %v5754_v16  ;;  %v886_v20 = vpack.c.bf16 %v5758_v54, %v5758_v54  ;;  %v5759_v25 = vld [vmem:[#allocation59_spill] sm:$0xff] }
 0x214   : > { %v2809_v49 = vadd.f32 %v2808_v56, %v2720_v41  ;;  %v5755_v41 = vld [vmem:[#allocation19_spill] sm:$0xff] }
 0x216   : > { %2761 = vmatmul.bf16.gmra.mxu3 %v5753_v13  ;;  %v3585_v44 = vpack.c.bf16 %v2809_v49, %v2807_v51  ;;  %v2950_v35 = vadd.f32 %v2809_v49, %v2807_v51  ;;  %v2988_v8 = vmul.f32 %v2809_v49, %v2809_v49  ;;  %v1363_v49 = vunpack.c.h.b16 %v5756_v52  ;;  %v5757_v13 = vld [vmem:[#allocation62_spill] sm:$0xff] }
 0x218   : > { %v2549_v2 = vpop.f32.mrf.mxu1  ;;  %3586 = vst [vmem:[%s5276_s20] sm:$0xff] %v3585_v44   ;;  %v3019_v48 = vadd.f32 %v2988_v8, %v2987_v10  ;;  %v890_v10 = vpack.c.bf16 %v5759_v25, %v5759_v25  ;;  %v5760_v8 = vld [vmem:[#allocation42_spill] sm:$0xff] }
 0x219   : > { %v2635_v29 = vpop.f32.mrf.mxu2  ;;  %v2722_v15 = vpop.f32.mrf.mxu3 }
 0x21a   : > { %v2723_v45 = vadd.f32 %v2722_v15, %v2634_v37  ;;  %v2636_v42 = vadd.f32 %v2635_v29, %v2547_v39  ;;  %v2550_v29 = vadd.f32 %v2549_v2, %v5760_v8  ;;  %v5761_v2 = vld [vmem:[#allocation5_spill] sm:$0xff]  ;;  %v5764_v8 = vld [vmem:[#allocation14_spill] sm:$0xff] }
 0x21b   : > { %2588 = vmatmul.bf16.gmra.mxu1 %v1502_v59  ;;  %v2811_v23 = vpop.f32.mrf.mxu0  ;;  %v1370_v59 = vunpack.c.h.b16 %v5757_v13 }
 0x21c   : > { %v2812_v27 = vadd.f32 %v2811_v23, %v2723_v45 }
 0x21d   : > { %v1509_v15 = vpack.c.b16 %v1370_v59, %v1363_v49  ;;  %v5762_v59 = vld [vmem:[#allocation36_spill] sm:$0xff] }
 0x21e   : > { %2677 = vmatmul.bf16.gmra.mxu2 %v5755_v41  ;;  %2850 = vmatmul.bf16.gmra.mxu0 %v1498_v62  ;;  %v2951_v6 = vadd.f32 %v2950_v35, %v2812_v27  ;;  %v2989_v22 = vmul.f32 %v2812_v27, %v2812_v27  ;;  %v1359_v41 = vunpack.c.l.b16 %v890_v10 }
 0x220   : > { %v2551_v28 = vpop.f32.mrf.mxu1  ;;  %v3020_v56 = vadd.f32 %v3019_v48, %v2989_v22  ;;  %v1352_v48 = vunpack.c.l.b16 %v886_v20 }
 0x221   : > { %v2638_v51 = vpop.f32.mrf.mxu2  ;;  %v2724_v58 = vpop.f32.mrf.mxu3 }
 0x222   : > { %v2725_v37 = vadd.f32 %v2724_v58, %v2636_v42  ;;  %v2639_v45 = vadd.f32 %v2638_v51, %v2550_v29  ;;  %v1505_v13 = vpack.c.b16 %v1359_v41, %v1352_v48  ;;  %v1384_v29 = vunpack.c.h.b16 %v5764_v8  ;;  %v5766_v48 = vld [vmem:[#allocation8_spill] sm:$0xff] }
 0x223   : > { %v2813_v44 = vpop.f32.mrf.mxu0 }
 0x224   : > { %v2814_v35 = vadd.f32 %v2813_v44, %v2725_v37  ;;  %v2552_v37 = vadd.f32 %v2551_v28, %v5761_v2  ;;  %v5763_v44 = vld [vmem:[#allocation29_spill] sm:$0xff] }
 0x226   : > { %2766 = vmatmul.bf16.gmra.mxu3 %v4960_v57  ;;  %v3590_v23 = vpack.c.bf16 %v2814_v35, %v2812_v27  ;;  %v2952_v16 = vadd.f32 %v2951_v6, %v2814_v35  ;;  %v2990_v39 = vmul.f32 %v2814_v35, %v2814_v35 }
 0x228   : > { %v2554_v62 = vpop.f32.mrf.mxu1  ;;  %3677 = vst [vmem:[%s5276_s20 + $0x8] sm:$0xff] %v3590_v23   ;;  %v3021_v22 = vadd.f32 %v3020_v56, %v2990_v39  ;;  %v1377_v56 = vunpack.c.h.b16 %v5763_v44  ;;  %v5767_v39 = vld [vmem:[#allocation60_spill] sm:$0xff] }
 0x229   : > { %v2640_v42 = vpop.f32.mrf.mxu2  ;;  %v2727_v58 = vpop.f32.mrf.mxu3  ;;  %v2555_v41 = vadd.f32 %v2554_v62, %v5767_v39  ;;  %v5769_v62 = vld [vmem:[#allocation28_spill] sm:$0xff]  ;;  %v1398_v39 = vunpack.c.h.b16 %v5045_v30 }
 0x22a   : > { %v2728_v52 = vadd.f32 %v2727_v58, %v2639_v45  ;;  %v2641_v57 = vadd.f32 %v2640_v42, %v2552_v37  ;;  %v898_v45 = vpack.c.bf16 %v5766_v48, %v5766_v48  ;;  %v1516_v42 = vpack.c.b16 %v1384_v29, %v1377_v56  ;;  %v5768_v58 = vld [vmem:[#allocation15_spill] sm:$0xff]  ;;  %v5770_v29 = vld [vmem:[#allocation54_spill] sm:$0xff] }
 0x22b   : > { %2593 = vmatmul.bf16.gmra.mxu1 %v1509_v15  ;;  %v2816_v54 = vpop.f32.mrf.mxu0  ;;  %v5765_v15 = vld [vmem:[#allocation61_spill] sm:$0xff] }
 0x22c   : > { %v2817_v49 = vadd.f32 %v2816_v54, %v2728_v52  ;;  %v894_v28 = vpack.c.bf16 %v5765_v15, %v5765_v15 }
 0x22e   : > { %2682 = vmatmul.bf16.gmra.mxu2 %v5762_v59  ;;  %2855 = vmatmul.bf16.gmra.mxu0 %v1505_v13  ;;  %v2953_v27 = vadd.f32 %v2952_v16, %v2817_v49  ;;  %v2991_v6 = vmul.f32 %v2817_v49, %v2817_v49  ;;  %v1373_v59 = vunpack.c.l.b16 %v898_v45 }
 0x230   : > { %v2556_v51 = vpop.f32.mrf.mxu1  ;;  %v3022_v25 = vadd.f32 %v3021_v22, %v2991_v6  ;;  %v1366_v22 = vunpack.c.l.b16 %v894_v28 }
 0x231   : > { %v2643_v20 = vpop.f32.mrf.mxu2  ;;  %v2729_v10 = vpop.f32.mrf.mxu3 }
 0x232   : > { %v2730_v35 = vadd.f32 %v2729_v10, %v2641_v57  ;;  %v2644_v52 = vadd.f32 %v2643_v20, %v2555_v41  ;;  %v1512_v8 = vpack.c.b16 %v1373_v59, %v1366_v22 }
 0x233   : > { %v2818_v23 = vpop.f32.mrf.mxu0 }
 0x234   : > { %v2819_v16 = vadd.f32 %v2818_v23, %v2730_v35  ;;  %v2557_v35 = vadd.f32 %v2556_v51, %v5769_v62 }
 0x236   : > { %2771 = vmatmul.bf16.gmra.mxu3 %v5768_v58  ;;  %v3595_v54 = vpack.c.bf16 %v2819_v16, %v2817_v49  ;;  %v2954_v2 = vadd.f32 %v2953_v27, %v2819_v16  ;;  %v2992_v37 = vmul.f32 %v2819_v16, %v2819_v16  ;;  %v5771_v16 = vld [vmem:[#allocation13_spill] sm:$0xff] }
 0x237   : > { %v902_v51 = vpack.c.bf16 %v5771_v16, %v5771_v16 }
 0x238   : > { %v2559_v13 = vpop.f32.mrf.mxu1  ;;  %3678 = vst [vmem:[%s5276_s20 + $0x10] sm:$0xff] %v3595_v54   ;;  %v3023_v6 = vadd.f32 %v3022_v25, %v2992_v37  ;;  %v1391_v25 = vunpack.c.h.b16 %v5041_v40 }
 0x239   : > { %v2645_v57 = vpop.f32.mrf.mxu2  ;;  %v2732_v10 = vpop.f32.mrf.mxu3  ;;  %v1380_v59 = vunpack.c.l.b16 %v902_v51  ;;  %v1405_v51 = vunpack.c.h.b16 %v5084_v17 }
 0x23a   : > { %v2733_v44 = vadd.f32 %v2732_v10, %v2644_v52  ;;  %v2646_v28 = vadd.f32 %v2645_v57, %v2557_v35  ;;  %v5773_v52 = vld [vmem:[#allocation12_spill] sm:$0xff]  ;;  %v1523_v37 = vpack.c.b16 %v1398_v39, %v1391_v25  ;;  %v5775_v25 = vld [vmem:[#allocation73_spill] sm:$0xff] }
 0x23b   : > { %2598 = vmatmul.bf16.gmra.mxu1 %v1516_v42  ;;  %v2821_v15 = vpop.f32.mrf.mxu0  ;;  %v5772_v42 = vld [vmem:[#allocation30_spill] sm:$0xff]  ;;  %v2560_v54 = vadd.f32 %v2559_v13, %v5773_v52  ;;  %v5774_v13 = vld [vmem:[#allocation47_spill] sm:$0xff] }
 0x23c   : > { %v2822_v56 = vadd.f32 %v2821_v15, %v2733_v44  ;;  %v906_v58 = vpack.c.bf16 %v5772_v42, %v5772_v42  ;;  %v1412_v42 = vunpack.c.h.b16 %v5088_v24  ;;  %v5776_v52 = vld [vmem:[#allocation35_spill] sm:$0xff] }
 0x23e   : > { %2687 = vmatmul.bf16.gmra.mxu2 %v5770_v29  ;;  %2860 = vmatmul.bf16.gmra.mxu0 %v1512_v8  ;;  %v2955_v49 = vadd.f32 %v2954_v2, %v2822_v56  ;;  %v2993_v27 = vmul.f32 %v2822_v56, %v2822_v56  ;;  %v1387_v44 = vunpack.c.l.b16 %v906_v58 }
 0x240   : > { %v2561_v20 = vpop.f32.mrf.mxu1  ;;  %v3024_v45 = vadd.f32 %v3023_v6, %v2993_v27  ;;  %v1519_v29 = vpack.c.b16 %v1387_v44, %v1380_v59  ;;  %v1530_v59 = vpack.c.b16 %v1412_v42, %v1405_v51  ;;  %v1419_v51 = vunpack.c.h.b16 %v5130_v0 }
 0x241   : > { %v2648_v48 = vpop.f32.mrf.mxu2  ;;  %v2734_v23 = vpop.f32.mrf.mxu3  ;;  %v2562_v27 = vadd.f32 %v2561_v20, %v5774_v13  ;;  %v921_v20 = vpack.c.bf16 %v5120_v18, %v5067_v32  ;;  %v1424_v42 = vunpack.c.h.b16 %v5134_v36 }
 0x242   : > { %v2735_v41 = vadd.f32 %v2734_v23, %v2646_v28  ;;  %v2649_v57 = vadd.f32 %v2648_v48, %v2560_v54  ;;  %v914_v54 = vpack.c.bf16 %v5776_v52, %v5776_v52  ;;  %v5779_v52 = vld [vmem:[#allocation32_spill] sm:$0xff] }
 0x243   : > { %v2823_v22 = vpop.f32.mrf.mxu0  ;;  %v1413_v17 = vunpack.c.l.b16 %v921_v20 }
 0x244   : > { %v2824_v2 = vadd.f32 %v2823_v22, %v2735_v41  ;;  %v917_v41 = vpack.c.bf16 %v5117_v38, %v5062_v3  ;;  %v910_v22 = vpack.c.bf16 %v5070_v43, %v5070_v43  ;;  %v1401_v43 = vunpack.c.l.b16 %v914_v54 }
 0x246   : > { %2776 = vmatmul.bf16.gmra.mxu3 %v5050_v31  ;;  %v3600_v6 = vpack.c.bf16 %v2824_v2, %v2822_v56  ;;  %v2956_v30 = vadd.f32 %v2955_v49, %v2824_v2  ;;  %v2994_v10 = vmul.f32 %v2824_v2, %v2824_v2  ;;  %v1394_v24 = vunpack.c.l.b16 %v910_v22 }
 0x248   : > { %v2564_v40 = vpop.f32.mrf.mxu1  ;;  %3679 = vst [vmem:[%s5276_s20 + $0x18] sm:$0xff] %v3600_v6   ;;  %v3025_v15 = vadd.f32 %v3024_v45, %v2994_v10 }
 0x249   : > { %v2650_v8 = vpop.f32.mrf.mxu2  ;;  %v2737_v62 = vpop.f32.mrf.mxu3 }
 0x24a   : > { %v2738_v35 = vadd.f32 %v2737_v62, %v2649_v57  ;;  %v2651_v31 = vadd.f32 %v2650_v8, %v2562_v27  ;;  %v1406_v57 = vunpack.c.l.b16 %v917_v41 }
 0x24b   : > { %2603 = vmatmul.bf16.gmra.mxu1 %v1523_v37  ;;  %v2826_v28 = vpop.f32.mrf.mxu0  ;;  %v5777_v37 = vld [vmem:[#allocation34_spill] sm:$0xff] }
 0x24c   : > { %v2827_v23 = vadd.f32 %v2826_v28, %v2738_v35  ;;  %v2565_v3 = vadd.f32 %v2564_v40, %v5777_v37  ;;  %v1531_v62 = vpack.c.b16 %v1413_v17, %v1406_v57  ;;  %v1526_v35 = vpack.c.b16 %v1401_v43, %v1394_v24  ;;  %v5778_v28 = vld [vmem:[#allocation46_spill] sm:$0xff] }
 0x24d   : > { %v1537_v37 = vpack.c.b16 %v1424_v42, %v1419_v51 }
 0x24e   : > { %2692 = vmatmul.bf16.gmra.mxu2 %v5775_v25  ;;  %2865 = vmatmul.bf16.gmra.mxu0 %v1519_v29  ;;  %v2957_v56 = vadd.f32 %v2956_v30, %v2827_v23  ;;  %v2995_v49 = vmul.f32 %v2827_v23, %v2827_v23  ;;  %v1407_v25 = vunpack.c.h.b16 %v917_v41  ;;  %v922_v41 = vpack.c.bf16 %v5126_v4, %v5126_v4 }
 0x250   : > { %v2566_v48 = vpop.f32.mrf.mxu1  ;;  %v3026_v45 = vadd.f32 %v3025_v15, %v2995_v49  ;;  %v1415_v17 = vunpack.c.l.b16 %v922_v41 }
 0x251   : > { %v2653_v39 = vpop.f32.mrf.mxu2  ;;  %v2739_v16 = vpop.f32.mrf.mxu3  ;;  %v2567_v13 = vadd.f32 %v2566_v48, %v5778_v28  ;;  %v918_v48 = vpack.c.bf16 %v5123_v21, %v5123_v21 }
 0x252   : > { %v2740_v58 = vadd.f32 %v2739_v16, %v2651_v31  ;;  %v2654_v6 = vadd.f32 %v2653_v39, %v2565_v3  ;;  %v1414_v31 = vunpack.c.h.b16 %v921_v20 }
 0x253   : > { %v2828_v2 = vpop.f32.mrf.mxu0  ;;  %v1408_v3 = vunpack.c.l.b16 %v918_v48 }
 0x254   : > { %v2829_v38 = vadd.f32 %v2828_v2, %v2740_v58  ;;  %v1532_v22 = vpack.c.b16 %v1414_v31, %v1407_v25 }
 0x255   : > { %v1533_v4 = vpack.c.b16 %v1415_v17, %v1408_v3 }
 0x256   : > { %2781 = vmatmul.bf16.gmra.mxu3 %v5094_v47  ;;  %v3605_v18 = vpack.c.bf16 %v2829_v38, %v2827_v23  ;;  %v2958_v30 = vadd.f32 %v2957_v56, %v2829_v38  ;;  %v2996_v10 = vmul.f32 %v2829_v38, %v2829_v38 }
 0x258   : > { %v2569_v32 = vpop.f32.mrf.mxu1  ;;  %3680 = vst [vmem:[%s5276_s20 + $0x20] sm:$0xff] %v3605_v18   ;;  %v3027_v8 = vadd.f32 %v3026_v45, %v2996_v10  ;;  %v5780_v10 = vld [vmem:[#allocation33_spill] sm:$0xff] }
 0x259   : > { %v2655_v44 = vpop.f32.mrf.mxu2  ;;  %v2742_v15 = vpop.f32.mrf.mxu3  ;;  %v2570_v54 = vadd.f32 %v2569_v32, %v5779_v52 }
 0x25a   : > { %v2743_v40 = vadd.f32 %v2742_v15, %v2654_v6  ;;  %v2656_v47 = vadd.f32 %v2655_v44, %v2567_v13  ;;  %v5781_v44 = vld [vmem:[#allocation17_spill] sm:$0xff] }
 0x25b   : > { %2608 = vmatmul.bf16.gmra.mxu1 %v1530_v59  ;;  %v2831_v29 = vpop.f32.mrf.mxu0 }
 0x25c   : > { %v2832_v27 = vadd.f32 %v2831_v29, %v2743_v40 }
 0x25e   : > { %2697 = vmatmul.bf16.gmra.mxu2 %v1531_v62  ;;  %2870 = vmatmul.bf16.gmra.mxu0 %v1526_v35  ;;  %v2959_v56 = vadd.f32 %v2958_v30, %v2832_v27  ;;  %v2997_v49 = vmul.f32 %v2832_v27, %v2832_v27 }
 0x260   : > { %v2571_v23 = vpop.f32.mrf.mxu1  ;;  %v3028_v16 = vadd.f32 %v3027_v8, %v2997_v49 }
 0x261   : > { %v2658_v39 = vpop.f32.mrf.mxu2  ;;  %v2744_v45 = vpop.f32.mrf.mxu3  ;;  %v2572_v32 = vadd.f32 %v2571_v23, %v5780_v10 }
 0x262   : > { %v2745_v58 = vadd.f32 %v2744_v45, %v2656_v47  ;;  %v2659_v38 = vadd.f32 %v2658_v39, %v2570_v54 }
 0x263   : > { %v2833_v20 = vpop.f32.mrf.mxu0 }
 0x264   : > { %v2834_v2 = vadd.f32 %v2833_v20, %v2745_v58 }
 0x266   : > { %2786 = vmatmul.bf16.gmra.mxu3 %v1532_v22  ;;  %v3610_v59 = vpack.c.bf16 %v2834_v2, %v2832_v27  ;;  %v2960_v36 = vadd.f32 %v2959_v56, %v2834_v2  ;;  %v2998_v57 = vmul.f32 %v2834_v2, %v2834_v2  ;;  %v5782_v27 = vld [vmem:[#allocation64_spill] sm:$0xff] }
 0x267   : > { %v925_v47 = vpack.c.bf16 %v5782_v27, %v5782_v27  ;;  %v5783_v56 = vld [vmem:[#allocation72_spill] sm:$0xff] }
 0x268   : > { %v2574_v0 = vpop.f32.mrf.mxu1  ;;  %3681 = vst [vmem:[%s5276_s20 + $0x28] sm:$0xff] %v3610_v59   ;;  %v3029_v6 = vadd.f32 %v3028_v16, %v2998_v57 }
 0x269   : > { %v2660_v24 = vpop.f32.mrf.mxu2  ;;  %v2747_v21 = vpop.f32.mrf.mxu3  ;;  %v2575_v31 = vadd.f32 %v2574_v0, %v5143_v5  ;;  %v1420_v42 = vunpack.c.l.b16 %v925_v47 }
 0x26a   : > { %v2748_v18 = vadd.f32 %v2747_v21, %v2659_v38  ;;  %v2661_v8 = vadd.f32 %v2660_v24, %v2572_v32 }
 0x26b   : > { %2613 = vmatmul.bf16.gmra.mxu1 %v1537_v37  ;;  %v2836_v30 = vpop.f32.mrf.mxu0  ;;  %v1538_v20 = vpack.c.b16 %v1420_v42, %v1420_v42 }
 0x26c   : > { %v2837_v43 = vadd.f32 %v2836_v30, %v2748_v18 }
 0x26e   : > { %2702 = vmatmul.bf16.gmra.mxu2 %v5781_v44  ;;  %2875 = vmatmul.bf16.gmra.mxu0 %v1533_v4  ;;  %v2961_v62 = vadd.f32 %v2960_v36, %v2837_v43  ;;  %v2999_v40 = vmul.f32 %v2837_v43, %v2837_v43 }
 0x270   : > { %v2576_v15 = vpop.f32.mrf.mxu1  ;;  %v3030_v29 = vadd.f32 %v3029_v6, %v2999_v40 }
 0x271   : > { %v2663_v35 = vpop.f32.mrf.mxu2  ;;  %v2749_v28 = vpop.f32.mrf.mxu3  ;;  %v2577_v54 = vadd.f32 %v2576_v15, %v5148_v50 }
 0x272   : > { %v2750_v13 = vadd.f32 %v2749_v28, %v2661_v8  ;;  %v2664_v49 = vadd.f32 %v2663_v35, %v2575_v31 }
 0x273   : > { %v2838_v25 = vpop.f32.mrf.mxu0 }
 0x274   : > { %v2839_v23 = vadd.f32 %v2838_v25, %v2750_v13 }
 0x276   : > { %2791 = vmatmul.bf16.gmra.mxu3 %v5783_v56  ;;  %v3615_v16 = vpack.c.bf16 %v2839_v23, %v2837_v43  ;;  %v2962_v45 = vadd.f32 %v2961_v62, %v2839_v23  ;;  %v3000_v51 = vmul.f32 %v2839_v23, %v2839_v23 }
 0x278   : > { %v2579_v39 = vpop.f32.mrf.mxu1  ;;  %3682 = vst [vmem:[%s5276_s20 + $0x30] sm:$0xff] %v3615_v16   ;;  %v3031_v22 = vadd.f32 %v3030_v29, %v3000_v51 }
 0x279   : > { %v2665_v58 = vpop.f32.mrf.mxu2  ;;  %v2752_v48 = vpop.f32.mrf.mxu3  ;;  %v2580_v24 = vadd.f32 %v2579_v39, %v5153_v60 }
 0x27a   : > { %v2753_v41 = vadd.f32 %v2752_v48, %v2664_v49  ;;  %v2666_v5 = vadd.f32 %v2665_v58, %v2577_v54 }
 0x27b   : > { %v2841_v52 = vpop.f32.mrf.mxu0 }
 0x27c   : > { %v2842_v2 = vadd.f32 %v2841_v52, %v2753_v41 }
 0x27e   : > { %2880 = vmatmul.bf16.gmra.mxu0 %v1538_v20  ;;  %v2963_v3 = vadd.f32 %v2962_v45, %v2842_v2  ;;  %v3001_v38 = vmul.f32 %v2842_v2, %v2842_v2 }
 0x280   : > { %v2581_v37 = vpop.f32.mrf.mxu1  ;;  %v3032_v59 = vadd.f32 %v3031_v22, %v3001_v38 }
 0x281   : > { %v2668_v0 = vpop.f32.mrf.mxu2  ;;  %v2754_v36 = vpop.f32.mrf.mxu3  ;;  %v2582_v15 = vadd.f32 %v2581_v37, %v5162_v1 }
 0x282   : > { %v2755_v57 = vadd.f32 %v2754_v36, %v2666_v5  ;;  %v2669_v21 = vadd.f32 %v2668_v0, %v2580_v24 }
 0x283   : > { %v2843_v17 = vpop.f32.mrf.mxu0 }
 0x284   : > { %v2844_v6 = vadd.f32 %v2843_v17, %v2755_v57 }
 0x286   : > { %v3620_v4 = vpack.c.bf16 %v2844_v6, %v2842_v2  ;;  %v2964_v30 = vadd.f32 %v2963_v3, %v2844_v6  ;;  %v3002_v50 = vmul.f32 %v2844_v6, %v2844_v6 }
 0x288   : > { %v2584_v18 = vpop.f32.mrf.mxu1  ;;  %3683 = vst [vmem:[%s5276_s20 + $0x38] sm:$0xff] %v3620_v4   ;;  %v3033_v32 = vadd.f32 %v3032_v59, %v3002_v50 }
 0x289   : > { %v2670_v10 = vpop.f32.mrf.mxu2  ;;  %v2757_v43 = vpop.f32.mrf.mxu3  ;;  %v2585_v31 = vadd.f32 %v2584_v18, %v5167_v61 }
 0x28a   : > { %v2758_v44 = vadd.f32 %v2757_v43, %v2669_v21  ;;  %v2671_v40 = vadd.f32 %v2670_v10, %v2582_v15 }
 0x28b   : > { %v2846_v8 = vpop.f32.mrf.mxu0 }
 0x28c   : > { %v2847_v62 = vadd.f32 %v2846_v8, %v2758_v44 }
 0x28e   : > { %v2965_v29 = vadd.f32 %v2964_v30, %v2847_v62  ;;  %v3003_v60 = vmul.f32 %v2847_v62, %v2847_v62 }
 0x290   : > { %v2586_v35 = vpop.f32.mrf.mxu1  ;;  %v3034_v13 = vadd.f32 %v3033_v32, %v3003_v60 }
 0x291   : > { %v2673_v28 = vpop.f32.mrf.mxu2  ;;  %v2759_v27 = vpop.f32.mrf.mxu3  ;;  %v2587_v48 = vadd.f32 %v2586_v35, %v5176_v19 }
 0x292   : > { %v2760_v47 = vadd.f32 %v2759_v27, %v2671_v40  ;;  %v2674_v56 = vadd.f32 %v2673_v28, %v2585_v31 }
 0x293   : > { %v2848_v25 = vpop.f32.mrf.mxu0 }
 0x294   : > { %v2849_v23 = vadd.f32 %v2848_v25, %v2760_v47 }
 0x296   : > { %v3625_v39 = vpack.c.bf16 %v2849_v23, %v2847_v62  ;;  %v2966_v16 = vadd.f32 %v2965_v29, %v2849_v23  ;;  %v3004_v45 = vmul.f32 %v2849_v23, %v2849_v23 }
 0x298   : > { %v2589_v49 = vpop.f32.mrf.mxu1  ;;  %3684 = vst [vmem:[%s5276_s20 + $0x40] sm:$0xff] %v3625_v39   ;;  %v3035_v51 = vadd.f32 %v3034_v13, %v3004_v45 }
 0x299   : > { %v2675_v1 = vpop.f32.mrf.mxu2  ;;  %v2762_v42 = vpop.f32.mrf.mxu3  ;;  %v2590_v0 = vadd.f32 %v2589_v49, %v5181_v55 }
 0x29a   : > { %v2763_v58 = vadd.f32 %v2762_v42, %v2674_v56  ;;  %v2676_v20 = vadd.f32 %v2675_v1, %v2587_v48 }
 0x29b   : > { %v2851_v22 = vpop.f32.mrf.mxu0 }
 0x29c   : > { %v2852_v41 = vadd.f32 %v2851_v22, %v2763_v58 }
 0x29e   : > { %v2967_v54 = vadd.f32 %v2966_v16, %v2852_v41  ;;  %v3005_v61 = vmul.f32 %v2852_v41, %v2852_v41 }
 0x2a0   : > { %v2591_v52 = vpop.f32.mrf.mxu1  ;;  %v3036_v5 = vadd.f32 %v3035_v51, %v3005_v61 }
 0x2a1   : > { %v2678_v2 = vpop.f32.mrf.mxu2  ;;  %v2764_v37 = vpop.f32.mrf.mxu3  ;;  %v2592_v50 = vadd.f32 %v2591_v52, %v5190_v63 }
 0x2a2   : > { %v2765_v3 = vadd.f32 %v2764_v37, %v2676_v20  ;;  %v2679_v36 = vadd.f32 %v2678_v2, %v2590_v0 }
 0x2a3   : > { %v2853_v38 = vpop.f32.mrf.mxu0 }
 0x2a4   : > { %v2854_v59 = vadd.f32 %v2853_v38, %v2765_v3 }
 0x2a6   : > { %v3630_v17 = vpack.c.bf16 %v2854_v59, %v2852_v41  ;;  %v2968_v24 = vadd.f32 %v2967_v54, %v2854_v59  ;;  %v3006_v6 = vmul.f32 %v2854_v59, %v2854_v59 }
 0x2a8   : > { %v2594_v57 = vpop.f32.mrf.mxu1  ;;  %3685 = vst [vmem:[%s5276_s20 + $0x48] sm:$0xff] %v3630_v17   ;;  %v3037_v21 = vadd.f32 %v3036_v5, %v3006_v6 }
 0x2a9   : > { %v2680_v19 = vpop.f32.mrf.mxu2  ;;  %v2767_v18 = vpop.f32.mrf.mxu3  ;;  %v2595_v29 = vadd.f32 %v2594_v57, %v5195_v34 }
 0x2aa   : > { %v2768_v4 = vadd.f32 %v2767_v18, %v2679_v36  ;;  %v2681_v32 = vadd.f32 %v2680_v19, %v2592_v50 }
 0x2ab   : > { %v2856_v30 = vpop.f32.mrf.mxu0 }
 0x2ac   : > { %v2857_v10 = vadd.f32 %v2856_v30, %v2768_v4 }
 0x2ae   : > { %v2969_v44 = vadd.f32 %v2968_v24, %v2857_v10  ;;  %v3007_v55 = vmul.f32 %v2857_v10, %v2857_v10 }
 0x2b0   : > { %v2596_v43 = vpop.f32.mrf.mxu1  ;;  %v3038_v15 = vadd.f32 %v3037_v21, %v3007_v55 }
 0x2b1   : > { %v2683_v8 = vpop.f32.mrf.mxu2  ;;  %v2769_v62 = vpop.f32.mrf.mxu3  ;;  %v2597_v39 = vadd.f32 %v2596_v43, %v5204_v46 }
 0x2b2   : > { %v2770_v40 = vadd.f32 %v2769_v62, %v2681_v32  ;;  %v2684_v28 = vadd.f32 %v2683_v8, %v2595_v29 }
 0x2b3   : > { %v2858_v35 = vpop.f32.mrf.mxu0 }
 0x2b4   : > { %v2859_v60 = vadd.f32 %v2858_v35, %v2770_v40 }
 0x2b6   : > { %v3635_v27 = vpack.c.bf16 %v2859_v60, %v2857_v10  ;;  %v2970_v47 = vadd.f32 %v2969_v44, %v2859_v60  ;;  %v3008_v25 = vmul.f32 %v2859_v60, %v2859_v60 }
 0x2b8   : > { %v2599_v13 = vpop.f32.mrf.mxu1  ;;  %3686 = vst [vmem:[%s5276_s20 + $0x50] sm:$0xff] %v3635_v27   ;;  %v3039_v31 = vadd.f32 %v3038_v15, %v3008_v25 }
 0x2b9   : > { %v2685_v63 = vpop.f32.mrf.mxu2  ;;  %v2772_v23 = vpop.f32.mrf.mxu3  ;;  %v2600_v20 = vadd.f32 %v2599_v13, %v5209_v33 }
 0x2ba   : > { %v2773_v56 = vadd.f32 %v2772_v23, %v2684_v28  ;;  %v2686_v45 = vadd.f32 %v2685_v63, %v2597_v39 }
 0x2bb   : > { %v2861_v49 = vpop.f32.mrf.mxu0 }
 0x2bc   : > { %v2862_v16 = vadd.f32 %v2861_v49, %v2773_v56 }
 0x2be   : > { %v2971_v51 = vadd.f32 %v2970_v47, %v2862_v16  ;;  %v3009_v34 = vmul.f32 %v2862_v16, %v2862_v16 }
 0x2c0   : > { %v2601_v1 = vpop.f32.mrf.mxu1  ;;  %v3040_v58 = vadd.f32 %v3039_v31, %v3009_v34 }
 0x2c1   : > { %v2688_v42 = vpop.f32.mrf.mxu2  ;;  %v2774_v22 = vpop.f32.mrf.mxu3  ;;  %v2602_v36 = vadd.f32 %v2601_v1, %v5218_v7 }
 0x2c2   : > { %v2775_v48 = vadd.f32 %v2774_v22, %v2686_v45  ;;  %v2689_v54 = vadd.f32 %v2688_v42, %v2600_v20 }
 0x2c3   : > { %v2863_v41 = vpop.f32.mrf.mxu0 }
 0x2c4   : > { %v2864_v52 = vadd.f32 %v2863_v41, %v2775_v48 }
 0x2c6   : > { %v3640_v61 = vpack.c.bf16 %v2864_v52, %v2862_v16  ;;  %v2972_v2 = vadd.f32 %v2971_v51, %v2864_v52  ;;  %v3010_v5 = vmul.f32 %v2864_v52, %v2864_v52 }
 0x2c8   : > { %v2604_v37 = vpop.f32.mrf.mxu1  ;;  %3687 = vst [vmem:[%s5276_s20 + $0x58] sm:$0xff] %v3640_v61   ;;  %v3041_v3 = vadd.f32 %v3040_v58, %v3010_v5 }
 0x2c9   : > { %v2690_v46 = vpop.f32.mrf.mxu2  ;;  %v2777_v38 = vpop.f32.mrf.mxu3  ;;  %v2605_v50 = vadd.f32 %v2604_v37, %v5223_v9 }
 0x2ca   : > { %v2778_v0 = vadd.f32 %v2777_v38, %v2689_v54  ;;  %v2691_v17 = vadd.f32 %v2690_v46, %v2602_v36 }
 0x2cb   : > { %v2866_v59 = vpop.f32.mrf.mxu0 }
 0x2cc   : > { %v2867_v57 = vadd.f32 %v2866_v59, %v2778_v0 }
 0x2ce   : > { %v2973_v24 = vadd.f32 %v2972_v2, %v2867_v57  ;;  %v3011_v6 = vmul.f32 %v2867_v57, %v2867_v57 }
 0x2d0   : > { %v3042_v19 = vadd.f32 %v3041_v3, %v3011_v6  ;;  %v2606_v18 = vpop.f32.mrf.mxu1 }
 0x2d1   : > { %v2693_v33 = vpop.f32.mrf.mxu2  ;;  %v2779_v21 = vpop.f32.mrf.mxu3  ;;  %v2607_v29 = vadd.f32 %v2606_v18, %v5232_v26 }
 0x2d2   : > { %v2780_v4 = vadd.f32 %v2779_v21, %v2691_v17  ;;  %v2694_v32 = vadd.f32 %v2693_v33, %v2605_v50 }
 0x2d3   : > { %v2868_v30 = vpop.f32.mrf.mxu0 }
 0x2d4   : > { %v2869_v10 = vadd.f32 %v2868_v30, %v2780_v4 }
 0x2d6   : > { %v3645_v43 = vpack.c.bf16 %v2869_v10, %v2867_v57  ;;  %v2974_v44 = vadd.f32 %v2973_v24, %v2869_v10  ;;  %v3012_v55 = vmul.f32 %v2869_v10, %v2869_v10 }
 0x2d8   : > { %3688 = vst [vmem:[%s5276_s20 + $0x60] sm:$0xff] %v3645_v43   ;;  %v3043_v7 = vadd.f32 %v3042_v19, %v3012_v55  ;;  %v2609_v40 = vpop.f32.mrf.mxu1 }
 0x2d9   : > { %v2695_v8 = vpop.f32.mrf.mxu2  ;;  %v2782_v15 = vpop.f32.mrf.mxu3  ;;  %v2610_v23 = vadd.f32 %v2609_v40, %v5237_v12 }
 0x2da   : > { %v2783_v62 = vadd.f32 %v2782_v15, %v2694_v32  ;;  %v2696_v28 = vadd.f32 %v2695_v8, %v2607_v29 }
 0x2db   : > { %v2871_v35 = vpop.f32.mrf.mxu0 }
 0x2dc   : > { %v2872_v60 = vadd.f32 %v2871_v35, %v2783_v62 }
 0x2de   : > { %v2975_v13 = vadd.f32 %v2974_v44, %v2872_v60  ;;  %v3013_v27 = vmul.f32 %v2872_v60, %v2872_v60 }
 0x2e0   : > { %v3044_v47 = vadd.f32 %v3043_v7, %v3013_v27  ;;  %v2611_v49 = vpop.f32.mrf.mxu1 }
 0x2e1   : > { %v2698_v9 = vpop.f32.mrf.mxu2  ;;  %v2784_v25 = vpop.f32.mrf.mxu3  ;;  %v2612_v22 = vadd.f32 %v2611_v49, %v5246_v53 }
 0x2e2   : > { %v2785_v63 = vadd.f32 %v2784_v25, %v2696_v28  ;;  %v2699_v39 = vadd.f32 %v2698_v9, %v2610_v23 }
 0x2e3   : > { %v2873_v31 = vpop.f32.mrf.mxu0 }
 0x2e4   : > { %v2874_v56 = vadd.f32 %v2873_v31, %v2785_v63 }
 0x2e6   : > { %v3650_v16 = vpack.c.bf16 %v2874_v56, %v2872_v60  ;;  %v2976_v45 = vadd.f32 %v2975_v13, %v2874_v56  ;;  %v3014_v1 = vmul.f32 %v2874_v56, %v2874_v56 }
 0x2e8   : > { %3689 = vst [vmem:[%s5276_s20 + $0x68] sm:$0xff] %v3650_v16   ;;  %v3045_v26 = vadd.f32 %v3044_v47, %v3014_v1  ;;  %v2614_v12 = vpop.f32.mrf.mxu1 }
 0x2e9   : > { %v2700_v51 = vpop.f32.mrf.mxu2  ;;  %v2787_v34 = vpop.f32.mrf.mxu3  ;;  %v2615_v46 = vadd.f32 %v2614_v12, %v5251_v11 }
 0x2ea   : > { %v2788_v42 = vadd.f32 %v2787_v34, %v2699_v39  ;;  %v2701_v41 = vadd.f32 %v2700_v51, %v2612_v22 }
 0x2eb   : > { %v2876_v58 = vpop.f32.mrf.mxu0 }
 0x2ec   : > { %v2877_v48 = vadd.f32 %v2876_v58, %v2788_v42 }
 0x2ee   : > { %v2977_v20 = vadd.f32 %v2976_v45, %v2877_v48  ;;  %v3015_v52 = vmul.f32 %v2877_v48, %v2877_v48 }
 0x2f0   : > { %v3046_v54 = vadd.f32 %v3045_v26, %v3015_v52  ;;  %v2616_v17 = vpop.f32.mrf.mxu1 }
 0x2f1   : > { %v2789_v61 = vpop.f32.mrf.mxu3  ;;  %v2703_v2 = vpop.f32.mrf.mxu2  ;;  %v2617_v19 = vadd.f32 %v2616_v17, %v5259_v14 }
 0x2f2   : > { %v2790_v5 = vadd.f32 %v2789_v61, %v2701_v41  ;;  %v2704_v38 = vadd.f32 %v2703_v2, %v2615_v46 }
 0x2f3   : > { %v2878_v37 = vpop.f32.mrf.mxu0 }
 0x2f4   : > { %v2879_v3 = vadd.f32 %v2878_v37, %v2790_v5 }
 0x2f6   : > { %v3655_v0 = vpack.c.bf16 %v2879_v3, %v2877_v48  ;;  %v2978_v59 = vadd.f32 %v2977_v20, %v2879_v3  ;;  %v3016_v36 = vmul.f32 %v2879_v3, %v2879_v3 }
 0x2f8   : > { %3690 = vst [vmem:[%s5276_s20 + $0x70] sm:$0xff] %v3655_v0   ;;  %v3047_v53 = vadd.f32 %v3046_v54, %v3016_v36 }
 0x2f9   : > { %v2792_v57 = vpop.f32.mrf.mxu3  ;;  %v2705_v6 = vpop.f32.mrf.mxu2 }
 0x2fa   : > { %v2793_v24 = vadd.f32 %v2792_v57, %v2704_v38  ;;  %v2706_v18 = vadd.f32 %v2705_v6, %v2617_v19 }
 0x2fb   : > { %v2881_v33 = vpop.f32.mrf.mxu0 }
 0x2fc   : > { %v2882_v21 = vadd.f32 %v2881_v33, %v2793_v24 }
 0x2fe   : > { %v2979_v4 = vadd.f32 %v2978_v59, %v2882_v21  ;;  %v3017_v30 = vmul.f32 %v2882_v21, %v2882_v21 }
 0x300   : > { %v3048_v11 = vadd.f32 %v3047_v53, %v3017_v30 }
 0x301   : > { %v2794_v50 = vpop.f32.mrf.mxu3 }
 0x302   : > { %v2795_v10 = vadd.f32 %v2794_v50, %v2706_v18 }
 0x303   : > { %v2883_v32 = vpop.f32.mrf.mxu0 }
 0x304   : > { %v2884_v43 = vadd.f32 %v2883_v32, %v2795_v10 }
 0x306   : > { %v3660_v44 = vpack.c.bf16 %v2884_v43, %v2882_v21  ;;  %v2980_v55 = vadd.f32 %v2979_v4, %v2884_v43  ;;  %v3018_v8 = vmul.f32 %v2884_v43, %v2884_v43 }
 0x308   : > { %3691 = vst [vmem:[%s5276_s20 + $0x78] sm:$0xff] %v3660_v44   ;;  %v2981_v7 = vrot.slane %v2980_v55, 4  ;;  %v3049_v15 = vadd.f32 %v3048_v11, %v3018_v8 }
 0x30a   : > { %v2982_v62 = vadd.f32 %v2981_v7, %v2980_v55  ;;  %v3050_v40 = vrot.slane %v3049_v15, 4 }
 0x30c   : > { %v2983_v35 = vrot.slane %v2982_v62, 2  ;;  %v3051_v14 = vadd.f32 %v3050_v40, %v3049_v15 }
 0x30e   : > { %v2984_v29 = vadd.f32 %v2983_v35, %v2982_v62  ;;  %v3052_v60 = vrot.slane %v3051_v14, 2 }
 0x310   : > { %v2985_v28 = vrot.slane %v2984_v29, 1  ;;  %v3053_v13 = vadd.f32 %v3052_v60, %v3051_v14 }
 0x312   : > { %v3054_v27 = vrot.slane %v3053_v13, 1  ;;  %v2986_v9 = vadd.f32 %v2985_v28, %v2984_v29 }
 0x314   : > { %v3055_v47 = vadd.f32 %v3054_v27, %v3053_v13 }
 0x316   : > { %v3056_v25 = vsel %vm406_vm0, %v2986_v9, %v3055_v47 }
 0x317   : > { %3057 = vst [vmem:[%s209_s25] sm:$0x3] %v3056_v25 }
 0x318 PF: > { %s15_s15 = sadd.s32 1, %s3735_s15  }
 0x319   : > { %p12_p5 = scmp.ge.s32.totalorder %s15_s15, 4  }
 0x31b   :  { %14 = sbr.rel (!%p12_p5) target bundleno = 1 (0x1), region = 74 }

</bundles_post_ra>
